<compile_context>
chip_gen: v7x
topology: tpu7x:2x2x1
jax: 0.10.0
libtpu: 0.0.40
codegen_flags: <defaults>
</compile_context>

<pallas_src>
import functools
import math

import jax
import jax.numpy as jnp
from jax.experimental import pallas as pl
from jax.experimental.pallas import tpu as pltpu

BN_EPS = 0.8  # second positional arg of nn.BatchNorm1d(out_feat, 0.8) is eps
HIDDEN_DIMS = [128, 256, 512, 1024, 1256]


def _round_up(x, m):
    return (x + m - 1) // m * m


# ---------------------------------------------------------------------------
# Single fused Pallas kernel: all 6 (Linear [+BN] + act) stages back-to-back.
# ---------------------------------------------------------------------------
def _generator_kernel(z_ref, *refs, cfgs):
    """refs = (w0, aux0, w1, aux1, ..., w5, aux5, o_ref)."""
    o_ref = refs[-1]
    x = z_ref[...]                                        # (M, K0) bf16
    for i, (use_bn, act) in enumerate(cfgs):
        w_ref = refs[2 * i]                               # (Ki_pad, Ni_pad) bf16
        aux = refs[2 * i + 1][...]                        # (8, Ni_pad) f32
        # bf16 MXU matmul with f32 accumulation.
        y = jnp.dot(x, w_ref[...], preferred_element_type=jnp.float32)
        if use_bn:
            # Training-mode BatchNorm1d over the full (untiled, unpadded) batch.
            # The Linear bias is omitted on purpose: a per-feature constant is
            # exactly cancelled by the mean subtraction below.
            mean = jnp.mean(y, axis=0, keepdims=True)
            var = jnp.mean(jnp.square(y - mean), axis=0, keepdims=True)  # biased
            y = (y - mean) * jax.lax.rsqrt(var + BN_EPS)
            y = y * aux[0:1, :] + aux[1:2, :]             # gamma, beta
        else:
            y = y + aux[0:1, :]                           # bias
        if act == "silu":
            y = y * jax.nn.sigmoid(y)
        else:                                             # "tanh"
            y = jnp.tanh(y)
        if i + 1 < len(cfgs):
            x = y.astype(jnp.bfloat16)                    # next matmul LHS
        else:
            o_ref[...] = y                                # final layer, f32 out


def generator_forward(layers, z, img_shape):
    m, latent_dim = z.shape
    k_pad0 = layers[0]["w"].shape[0]
    # Pad latent to a 128-multiple and cast to bf16 for the MXU.
    z_pad = jnp.zeros((m, k_pad0), jnp.bfloat16).at[:, :latent_dim].set(
        z.astype(jnp.bfloat16))
    cfgs = tuple((l["use_bn"], l["act"]) for l in layers)
    flat_inputs = []
    for l in layers:
        flat_inputs += [l["w"], l["aux"]]
    n_out_pad = layers[-1]["w"].shape[1]

    kernel = functools.partial(_generator_kernel, cfgs=cfgs)
    out = pl.pallas_call(
        kernel,
        out_shape=jax.ShapeDtypeStruct((m, n_out_pad), jnp.float32),
        # No grid: one kernel invocation; every operand is a single full block
        # resident in VMEM (~4.7 MB total -- fits comfortably on v5e/v6e/v7x).
        in_specs=[pl.BlockSpec(memory_space=pltpu.MemorySpace.VMEM)]
        * (1 + len(flat_inputs)),
        out_specs=pl.BlockSpec(memory_space=pltpu.MemorySpace.VMEM),
    )(z_pad, *flat_inputs)

    out_dim = int(math.prod(img_shape))
    img = out[:, :out_dim]                    # drop alignment padding
    return img.reshape(m, *img_shape)         # img.view(N, *img_shape)


# ---------------------------------------------------------------------------
# Parameters (PyTorch default Linear init; BN gamma=1, beta=0), pre-padded.
# ---------------------------------------------------------------------------
def init_params(key, latent_dim, img_shape):
    out_dim = int(math.prod(img_shape))
    dims = [latent_dim] + HIDDEN_DIMS + [out_dim]
    # (use_bn, activation) per layer, mirroring the PyTorch Sequential.
    cfgs = [(False, "silu"), (True, "silu"), (True, "silu"),
            (True, "silu"), (True, "silu"), (False, "tanh")]
    layers = []
    for i, (use_bn, act) in enumerate(cfgs):
        fan_in, fan_out = dims[i], dims[i + 1]
        key, kw, kb = jax.random.split(key, 3)
        bound = 1.0 / (fan_in ** 0.5)
        w = jax.random.uniform(kw, (fan_in, fan_out), jnp.float32, -bound, bound)
        k_pad = _round_up(fan_in, 128)
        n_pad = _round_up(fan_out, 128)
        # Zero padding keeps padded activation columns exactly 0 through every
        # layer (zero weight cols + zero bias/gamma/beta -> 0 after BN and act).
        w_p = jnp.zeros((k_pad, n_pad), jnp.bfloat16).at[:fan_in, :fan_out].set(
            w.astype(jnp.bfloat16))
        # Packed per-feature params: one (8, n_pad) f32 block per layer.
        aux = jnp.zeros((8, n_pad), jnp.float32)
        if use_bn:
            # gamma=1 (row 0), beta=0 (row 1). The Linear bias is not created:
            # it is mathematically cancelled by BatchNorm's mean subtraction,
            # so the forward output is identical to the PyTorch module.
            aux = aux.at[0, :fan_out].set(1.0)
        else:
            b = jax.random.uniform(kb, (fan_out,), jnp.float32, -bound, bound)
            aux = aux.at[0, :fan_out].set(b)              # bias (row 0)
        layers.append(dict(w=w_p, aux=aux, use_bn=use_bn, act=act,
                           fan_in=fan_in, fan_out=fan_out))
    return layers


# ---------------------------------------------------------------------------
# Pure-JAX f32 reference (same bf16-quantized weights) for validation.
# ---------------------------------------------------------------------------
def generator_reference(layers, z, img_shape):
    m, latent_dim = z.shape
    k_pad0 = layers[0]["w"].shape[0]
    x = jnp.zeros((m, k_pad0), jnp.float32).at[:, :latent_dim].set(
        z.astype(jnp.float32))
    for l in layers:
        y = x @ l["w"].astype(jnp.float32)
        aux = l["aux"]
        if l["use_bn"]:
            mean = jnp.mean(y, axis=0, keepdims=True)
            var = jnp.mean(jnp.square(y - mean), axis=0, keepdims=True)
            y = (y - mean) * jax.lax.rsqrt(var + BN_EPS)
            y = y * aux[0:1, :] + aux[1:2, :]
        else:
            y = y + aux[0:1, :]
        y = jnp.tanh(y) if l["act"] == "tanh" else y * jax.nn.sigmoid(y)
        x = y
    out_dim = int(math.prod(img_shape))
    return x[:, :out_dim].reshape(m, *img_shape)


if __name__ == "__main__":
    key = jax.random.PRNGKey(0)
    kp, kz = jax.random.split(key)

    latent_dim = 32
    img_shape = (1, 16, 16)   # prod = 256
    batch = 8                 # multiple of 8 (sublane-aligned M), unpadded -> exact BN

    layers = init_params(kp, latent_dim, img_shape)
    z = jax.random.normal(kz, (batch, latent_dim), jnp.float32)

    img = generator_forward(layers, z, img_shape)
    img = jax.block_until_ready(img)

    assert img.shape == (batch,) + img_shape, img.shape
    assert bool(jnp.all(jnp.isfinite(img)))
    assert bool(jnp.max(jnp.abs(img)) <= 1.0 + 1e-3)  # Tanh output range

    # Compare against the f32 reference with the same bf16-quantized weights;
    # only bf16 intermediate-activation rounding differs (loose tolerance).
    ref = generator_reference(layers, z, img_shape)
    max_err = float(jnp.max(jnp.abs(img - ref)))
    assert max_err < 0.1, max_err

    # TODO(synk): BatchNorm1d running_mean/var buffers are not tracked (forward
    # uses training-mode batch statistics only, matching model.train() behavior).
    print("KERNEL_OK")
</pallas_src>

<mosaic_0001>
module attributes {stable_mosaic.version = 11 : i64} {
  func.func @_generator_kernel(%arg0: memref<8x128xbf16, #tpu.memory_space<vmem>>, %arg1: memref<128x128xbf16, #tpu.memory_space<vmem>>, %arg2: memref<8x128xf32, #tpu.memory_space<vmem>>, %arg3: memref<128x256xbf16, #tpu.memory_space<vmem>>, %arg4: memref<8x256xf32, #tpu.memory_space<vmem>>, %arg5: memref<256x512xbf16, #tpu.memory_space<vmem>>, %arg6: memref<8x512xf32, #tpu.memory_space<vmem>>, %arg7: memref<512x1024xbf16, #tpu.memory_space<vmem>>, %arg8: memref<8x1024xf32, #tpu.memory_space<vmem>>, %arg9: memref<1024x1280xbf16, #tpu.memory_space<vmem>>, %arg10: memref<8x1280xf32, #tpu.memory_space<vmem>>, %arg11: memref<1280x256xbf16, #tpu.memory_space<vmem>>, %arg12: memref<8x256xf32, #tpu.memory_space<vmem>>, %arg13: memref<8x256xf32, #tpu.memory_space<vmem>>) attributes {dimension_semantics = [], scalar_prefetch = 0 : i64, scratch_operands = 0 : i64, tpu.core_type = #tpu.core_type<tc>} {
    %c0 = arith.constant 0 : index
    %c0_0 = arith.constant 0 : index
    %0 = vector.load %arg0[%c0, %c0_0] : memref<8x128xbf16, #tpu.memory_space<vmem>>, vector<8x128xbf16>
    %c0_1 = arith.constant 0 : index
    %c0_2 = arith.constant 0 : index
    %1 = vector.load %arg2[%c0_1, %c0_2] : memref<8x128xf32, #tpu.memory_space<vmem>>, vector<8x128xf32>
    %c0_3 = arith.constant 0 : index
    %c0_4 = arith.constant 0 : index
    %2 = vector.load %arg1[%c0_3, %c0_4] : memref<128x128xbf16, #tpu.memory_space<vmem>>, vector<128x128xbf16>
    %cst = arith.constant dense<0.000000e+00> : vector<8x128xf32>
    %3 = tpu.matmul %0, %2, %cst {dimension_numbers = #tpu.dot_dimension_numbers<[1], [0], [0], [1], [0, 0, 1, 1], [], []>} : vector<8x128xbf16>, vector<128x128xbf16>, vector<8x128xf32> -> vector<8x128xf32>
    %4 = vector.extract_strided_slice %1 {offsets = [0, 0], sizes = [1, 128], strides = [1, 1]} : vector<8x128xf32> to vector<1x128xf32>
    %5 = vector.broadcast %4 : vector<1x128xf32> to vector<8x128xf32>
    %6 = arith.addf %3, %5 : vector<8x128xf32>
    %7 = arith.negf %6 : vector<8x128xf32>
    %8 = math.exp %7 : vector<8x128xf32>
    %cst_5 = arith.constant 1.000000e+00 : f32
    %9 = vector.broadcast %cst_5 : f32 to vector<8x128xf32>
    %10 = arith.addf %9, %8 : vector<8x128xf32>
    %11 = arith.divf %9, %10 : vector<8x128xf32>
    %12 = arith.mulf %6, %11 : vector<8x128xf32>
    %13 = arith.truncf %12 : vector<8x128xf32> to vector<8x128xbf16>
    %c0_6 = arith.constant 0 : index
    %c0_7 = arith.constant 0 : index
    %14 = vector.load %arg4[%c0_6, %c0_7] : memref<8x256xf32, #tpu.memory_space<vmem>>, vector<8x256xf32>
    %c0_8 = arith.constant 0 : index
    %c0_9 = arith.constant 0 : index
    %15 = vector.load %arg3[%c0_8, %c0_9] : memref<128x256xbf16, #tpu.memory_space<vmem>>, vector<128x256xbf16>
    %cst_10 = arith.constant dense<0.000000e+00> : vector<8x256xf32>
    %16 = tpu.matmul %13, %15, %cst_10 {dimension_numbers = #tpu.dot_dimension_numbers<[1], [0], [0], [1], [0, 0, 1, 1], [], []>} : vector<8x128xbf16>, vector<128x256xbf16>, vector<8x256xf32> -> vector<8x256xf32>
    %cst_11 = arith.constant dense<0.000000e+00> : vector<256xf32>
    %17 = vector.multi_reduction <add>, %16, %cst_11 [0] : vector<8x256xf32> to vector<256xf32>
    %18 = vector.shape_cast %17 : vector<256xf32> to vector<1x256xf32>
    %cst_12 = arith.constant 8.000000e+00 : f32
    %19 = vector.broadcast %cst_12 : f32 to vector<1x256xf32>
    %20 = arith.divf %18, %19 : vector<1x256xf32>
    %21 = vector.broadcast %20 : vector<1x256xf32> to vector<8x256xf32>
    %22 = arith.subf %16, %21 : vector<8x256xf32>
    %23 = arith.mulf %22, %22 : vector<8x256xf32>
    %cst_13 = arith.constant dense<0.000000e+00> : vector<256xf32>
    %24 = vector.multi_reduction <add>, %23, %cst_13 [0] : vector<8x256xf32> to vector<256xf32>
    %25 = vector.shape_cast %24 : vector<256xf32> to vector<1x256xf32>
    %cst_14 = arith.constant 8.000000e+00 : f32
    %26 = vector.broadcast %cst_14 : f32 to vector<1x256xf32>
    %27 = arith.divf %25, %26 : vector<1x256xf32>
    %28 = vector.broadcast %20 : vector<1x256xf32> to vector<8x256xf32>
    %29 = arith.subf %16, %28 : vector<8x256xf32>
    %cst_15 = arith.constant 8.000000e-01 : f32
    %30 = vector.broadcast %cst_15 : f32 to vector<1x256xf32>
    %31 = arith.addf %27, %30 : vector<1x256xf32>
    %32 = math.rsqrt %31 : vector<1x256xf32>
    %33 = vector.broadcast %32 : vector<1x256xf32> to vector<8x256xf32>
    %34 = arith.mulf %29, %33 : vector<8x256xf32>
    %35 = vector.extract_strided_slice %14 {offsets = [0, 0], sizes = [1, 256], strides = [1, 1]} : vector<8x256xf32> to vector<1x256xf32>
    %36 = vector.broadcast %35 : vector<1x256xf32> to vector<8x256xf32>
    %37 = arith.mulf %34, %36 : vector<8x256xf32>
    %38 = vector.extract_strided_slice %14 {offsets = [1, 0], sizes = [1, 256], strides = [1, 1]} : vector<8x256xf32> to vector<1x256xf32>
    %39 = vector.broadcast %38 : vector<1x256xf32> to vector<8x256xf32>
    %40 = arith.addf %37, %39 : vector<8x256xf32>
    %41 = arith.negf %40 : vector<8x256xf32>
    %42 = math.exp %41 : vector<8x256xf32>
    %cst_16 = arith.constant 1.000000e+00 : f32
    %43 = vector.broadcast %cst_16 : f32 to vector<8x256xf32>
    %44 = arith.addf %43, %42 : vector<8x256xf32>
    %45 = arith.divf %43, %44 : vector<8x256xf32>
    %46 = arith.mulf %40, %45 : vector<8x256xf32>
    %47 = arith.truncf %46 : vector<8x256xf32> to vector<8x256xbf16>
    %c0_17 = arith.constant 0 : index
    %c0_18 = arith.constant 0 : index
    %48 = vector.load %arg6[%c0_17, %c0_18] : memref<8x512xf32, #tpu.memory_space<vmem>>, vector<8x512xf32>
    %c0_19 = arith.constant 0 : index
    %c0_20 = arith.constant 0 : index
    %49 = vector.load %arg5[%c0_19, %c0_20] : memref<256x512xbf16, #tpu.memory_space<vmem>>, vector<256x512xbf16>
    %cst_21 = arith.constant dense<0.000000e+00> : vector<8x512xf32>
    %50 = tpu.matmul %47, %49, %cst_21 {dimension_numbers = #tpu.dot_dimension_numbers<[1], [0], [0], [1], [0, 0, 1, 1], [], []>} : vector<8x256xbf16>, vector<256x512xbf16>, vector<8x512xf32> -> vector<8x512xf32>
    %cst_22 = arith.constant dense<0.000000e+00> : vector<512xf32>
    %51 = vector.multi_reduction <add>, %50, %cst_22 [0] : vector<8x512xf32> to vector<512xf32>
    %52 = vector.shape_cast %51 : vector<512xf32> to vector<1x512xf32>
    %cst_23 = arith.constant 8.000000e+00 : f32
    %53 = vector.broadcast %cst_23 : f32 to vector<1x512xf32>
    %54 = arith.divf %52, %53 : vector<1x512xf32>
    %55 = vector.broadcast %54 : vector<1x512xf32> to vector<8x512xf32>
    %56 = arith.subf %50, %55 : vector<8x512xf32>
    %57 = arith.mulf %56, %56 : vector<8x512xf32>
    %cst_24 = arith.constant dense<0.000000e+00> : vector<512xf32>
    %58 = vector.multi_reduction <add>, %57, %cst_24 [0] : vector<8x512xf32> to vector<512xf32>
    %59 = vector.shape_cast %58 : vector<512xf32> to vector<1x512xf32>
    %cst_25 = arith.constant 8.000000e+00 : f32
    %60 = vector.broadcast %cst_25 : f32 to vector<1x512xf32>
    %61 = arith.divf %59, %60 : vector<1x512xf32>
    %62 = vector.broadcast %54 : vector<1x512xf32> to vector<8x512xf32>
    %63 = arith.subf %50, %62 : vector<8x512xf32>
    %cst_26 = arith.constant 8.000000e-01 : f32
    %64 = vector.broadcast %cst_26 : f32 to vector<1x512xf32>
    %65 = arith.addf %61, %64 : vector<1x512xf32>
    %66 = math.rsqrt %65 : vector<1x512xf32>
    %67 = vector.broadcast %66 : vector<1x512xf32> to vector<8x512xf32>
    %68 = arith.mulf %63, %67 : vector<8x512xf32>
    %69 = vector.extract_strided_slice %48 {offsets = [0, 0], sizes = [1, 512], strides = [1, 1]} : vector<8x512xf32> to vector<1x512xf32>
    %70 = vector.broadcast %69 : vector<1x512xf32> to vector<8x512xf32>
    %71 = arith.mulf %68, %70 : vector<8x512xf32>
    %72 = vector.extract_strided_slice %48 {offsets = [1, 0], sizes = [1, 512], strides = [1, 1]} : vector<8x512xf32> to vector<1x512xf32>
    %73 = vector.broadcast %72 : vector<1x512xf32> to vector<8x512xf32>
    %74 = arith.addf %71, %73 : vector<8x512xf32>
    %75 = arith.negf %74 : vector<8x512xf32>
    %76 = math.exp %75 : vector<8x512xf32>
    %cst_27 = arith.constant 1.000000e+00 : f32
    %77 = vector.broadcast %cst_27 : f32 to vector<8x512xf32>
    %78 = arith.addf %77, %76 : vector<8x512xf32>
    %79 = arith.divf %77, %78 : vector<8x512xf32>
    %80 = arith.mulf %74, %79 : vector<8x512xf32>
    %81 = arith.truncf %80 : vector<8x512xf32> to vector<8x512xbf16>
    %c0_28 = arith.constant 0 : index
    %c0_29 = arith.constant 0 : index
    %82 = vector.load %arg8[%c0_28, %c0_29] : memref<8x1024xf32, #tpu.memory_space<vmem>>, vector<8x1024xf32>
    %c0_30 = arith.constant 0 : index
    %c0_31 = arith.constant 0 : index
    %83 = vector.load %arg7[%c0_30, %c0_31] : memref<512x1024xbf16, #tpu.memory_space<vmem>>, vector<512x1024xbf16>
    %cst_32 = arith.constant dense<0.000000e+00> : vector<8x1024xf32>
    %84 = tpu.matmul %81, %83, %cst_32 {dimension_numbers = #tpu.dot_dimension_numbers<[1], [0], [0], [1], [0, 0, 1, 1], [], []>} : vector<8x512xbf16>, vector<512x1024xbf16>, vector<8x1024xf32> -> vector<8x1024xf32>
    %cst_33 = arith.constant dense<0.000000e+00> : vector<1024xf32>
    %85 = vector.multi_reduction <add>, %84, %cst_33 [0] : vector<8x1024xf32> to vector<1024xf32>
    %86 = vector.shape_cast %85 : vector<1024xf32> to vector<1x1024xf32>
    %cst_34 = arith.constant 8.000000e+00 : f32
    %87 = vector.broadcast %cst_34 : f32 to vector<1x1024xf32>
    %88 = arith.divf %86, %87 : vector<1x1024xf32>
    %89 = vector.broadcast %88 : vector<1x1024xf32> to vector<8x1024xf32>
    %90 = arith.subf %84, %89 : vector<8x1024xf32>
    %91 = arith.mulf %90, %90 : vector<8x1024xf32>
    %cst_35 = arith.constant dense<0.000000e+00> : vector<1024xf32>
    %92 = vector.multi_reduction <add>, %91, %cst_35 [0] : vector<8x1024xf32> to vector<1024xf32>
    %93 = vector.shape_cast %92 : vector<1024xf32> to vector<1x1024xf32>
    %cst_36 = arith.constant 8.000000e+00 : f32
    %94 = vector.broadcast %cst_36 : f32 to vector<1x1024xf32>
    %95 = arith.divf %93, %94 : vector<1x1024xf32>
    %96 = vector.broadcast %88 : vector<1x1024xf32> to vector<8x1024xf32>
    %97 = arith.subf %84, %96 : vector<8x1024xf32>
    %cst_37 = arith.constant 8.000000e-01 : f32
    %98 = vector.broadcast %cst_37 : f32 to vector<1x1024xf32>
    %99 = arith.addf %95, %98 : vector<1x1024xf32>
    %100 = math.rsqrt %99 : vector<1x1024xf32>
    %101 = vector.broadcast %100 : vector<1x1024xf32> to vector<8x1024xf32>
    %102 = arith.mulf %97, %101 : vector<8x1024xf32>
    %103 = vector.extract_strided_slice %82 {offsets = [0, 0], sizes = [1, 1024], strides = [1, 1]} : vector<8x1024xf32> to vector<1x1024xf32>
    %104 = vector.broadcast %103 : vector<1x1024xf32> to vector<8x1024xf32>
    %105 = arith.mulf %102, %104 : vector<8x1024xf32>
    %106 = vector.extract_strided_slice %82 {offsets = [1, 0], sizes = [1, 1024], strides = [1, 1]} : vector<8x1024xf32> to vector<1x1024xf32>
    %107 = vector.broadcast %106 : vector<1x1024xf32> to vector<8x1024xf32>
    %108 = arith.addf %105, %107 : vector<8x1024xf32>
    %109 = arith.negf %108 : vector<8x1024xf32>
    %110 = math.exp %109 : vector<8x1024xf32>
    %cst_38 = arith.constant 1.000000e+00 : f32
    %111 = vector.broadcast %cst_38 : f32 to vector<8x1024xf32>
    %112 = arith.addf %111, %110 : vector<8x1024xf32>
    %113 = arith.divf %111, %112 : vector<8x1024xf32>
    %114 = arith.mulf %108, %113 : vector<8x1024xf32>
    %115 = arith.truncf %114 : vector<8x1024xf32> to vector<8x1024xbf16>
    %c0_39 = arith.constant 0 : index
    %c0_40 = arith.constant 0 : index
    %116 = vector.load %arg10[%c0_39, %c0_40] : memref<8x1280xf32, #tpu.memory_space<vmem>>, vector<8x1280xf32>
    %c0_41 = arith.constant 0 : index
    %c0_42 = arith.constant 0 : index
    %117 = vector.load %arg9[%c0_41, %c0_42] : memref<1024x1280xbf16, #tpu.memory_space<vmem>>, vector<1024x1280xbf16>
    %cst_43 = arith.constant dense<0.000000e+00> : vector<8x1280xf32>
    %118 = tpu.matmul %115, %117, %cst_43 {dimension_numbers = #tpu.dot_dimension_numbers<[1], [0], [0], [1], [0, 0, 1, 1], [], []>} : vector<8x1024xbf16>, vector<1024x1280xbf16>, vector<8x1280xf32> -> vector<8x1280xf32>
    %cst_44 = arith.constant dense<0.000000e+00> : vector<1280xf32>
    %119 = vector.multi_reduction <add>, %118, %cst_44 [0] : vector<8x1280xf32> to vector<1280xf32>
    %120 = vector.shape_cast %119 : vector<1280xf32> to vector<1x1280xf32>
    %cst_45 = arith.constant 8.000000e+00 : f32
    %121 = vector.broadcast %cst_45 : f32 to vector<1x1280xf32>
    %122 = arith.divf %120, %121 : vector<1x1280xf32>
    %123 = vector.broadcast %122 : vector<1x1280xf32> to vector<8x1280xf32>
    %124 = arith.subf %118, %123 : vector<8x1280xf32>
    %125 = arith.mulf %124, %124 : vector<8x1280xf32>
    %cst_46 = arith.constant dense<0.000000e+00> : vector<1280xf32>
    %126 = vector.multi_reduction <add>, %125, %cst_46 [0] : vector<8x1280xf32> to vector<1280xf32>
    %127 = vector.shape_cast %126 : vector<1280xf32> to vector<1x1280xf32>
    %cst_47 = arith.constant 8.000000e+00 : f32
    %128 = vector.broadcast %cst_47 : f32 to vector<1x1280xf32>
    %129 = arith.divf %127, %128 : vector<1x1280xf32>
    %130 = vector.broadcast %122 : vector<1x1280xf32> to vector<8x1280xf32>
    %131 = arith.subf %118, %130 : vector<8x1280xf32>
    %cst_48 = arith.constant 8.000000e-01 : f32
    %132 = vector.broadcast %cst_48 : f32 to vector<1x1280xf32>
    %133 = arith.addf %129, %132 : vector<1x1280xf32>
    %134 = math.rsqrt %133 : vector<1x1280xf32>
    %135 = vector.broadcast %134 : vector<1x1280xf32> to vector<8x1280xf32>
    %136 = arith.mulf %131, %135 : vector<8x1280xf32>
    %137 = vector.extract_strided_slice %116 {offsets = [0, 0], sizes = [1, 1280], strides = [1, 1]} : vector<8x1280xf32> to vector<1x1280xf32>
    %138 = vector.broadcast %137 : vector<1x1280xf32> to vector<8x1280xf32>
    %139 = arith.mulf %136, %138 : vector<8x1280xf32>
    %140 = vector.extract_strided_slice %116 {offsets = [1, 0], sizes = [1, 1280], strides = [1, 1]} : vector<8x1280xf32> to vector<1x1280xf32>
    %141 = vector.broadcast %140 : vector<1x1280xf32> to vector<8x1280xf32>
    %142 = arith.addf %139, %141 : vector<8x1280xf32>
    %143 = arith.negf %142 : vector<8x1280xf32>
    %144 = math.exp %143 : vector<8x1280xf32>
    %cst_49 = arith.constant 1.000000e+00 : f32
    %145 = vector.broadcast %cst_49 : f32 to vector<8x1280xf32>
    %146 = arith.addf %145, %144 : vector<8x1280xf32>
    %147 = arith.divf %145, %146 : vector<8x1280xf32>
    %148 = arith.mulf %142, %147 : vector<8x1280xf32>
    %149 = arith.truncf %148 : vector<8x1280xf32> to vector<8x1280xbf16>
    %c0_50 = arith.constant 0 : index
    %c0_51 = arith.constant 0 : index
    %150 = vector.load %arg12[%c0_50, %c0_51] : memref<8x256xf32, #tpu.memory_space<vmem>>, vector<8x256xf32>
    %c0_52 = arith.constant 0 : index
    %c0_53 = arith.constant 0 : index
    %151 = vector.load %arg11[%c0_52, %c0_53] : memref<1280x256xbf16, #tpu.memory_space<vmem>>, vector<1280x256xbf16>
    %cst_54 = arith.constant dense<0.000000e+00> : vector<8x256xf32>
    %152 = tpu.matmul %149, %151, %cst_54 {dimension_numbers = #tpu.dot_dimension_numbers<[1], [0], [0], [1], [0, 0, 1, 1], [], []>} : vector<8x1280xbf16>, vector<1280x256xbf16>, vector<8x256xf32> -> vector<8x256xf32>
    %153 = vector.extract_strided_slice %150 {offsets = [0, 0], sizes = [1, 256], strides = [1, 1]} : vector<8x256xf32> to vector<1x256xf32>
    %154 = vector.broadcast %153 : vector<1x256xf32> to vector<8x256xf32>
    %155 = arith.addf %152, %154 : vector<8x256xf32>
    %156 = math.tanh %155 : vector<8x256xf32>
    %c0_55 = arith.constant 0 : index
    %c0_56 = arith.constant 0 : index
    %157 = vector.load %arg13[%c0_55, %c0_56] : memref<8x256xf32, #tpu.memory_space<vmem>>, vector<8x256xf32>
    tpu.vector_store %arg13[%c0_55, %c0_56], %156 {strides = array<i32>} : memref<8x256xf32, #tpu.memory_space<vmem>>, vector<8x256xf32>,
    return
  }
}

</mosaic_0001>

<bundles_post_ra>
// kernel: tpu_custom_call.1
= control target key start
LH: loop header
LB: loop body
LE: loop exit
PB: predicated region body
PF: predicated region fallthrough
CT: control target
= control target key end

     0   :  { %18 = vsyncpa [#allocation3], 0  ;;  %s13256_s0 = inlined_call_operand.hbm [shape: bf16[8,128], index: 0, kind: input, shape index: {}]   ;;  %s13257_s1 = inlined_call_operand.hbm [shape: bf16[128,128], index: 1, kind: input, shape index: {}]   ;;  %s13258_s2 = inlined_call_operand.hbm [shape: f32[8,128], index: 2, kind: input, shape index: {}]   ;;  %s13259_s3 = inlined_call_operand.hbm [shape: bf16[128,256], index: 3, kind: input, shape index: {}]   ;;  %s13260_s4 = inlined_call_operand.hbm [shape: f32[8,256], index: 4, kind: input, shape index: {}]   ;;  %s13261_s5 = inlined_call_operand.hbm [shape: bf16[256,512], index: 5, kind: input, shape index: {}]   ;;  %s13262_s6 = inlined_call_operand.hbm [shape: f32[8,512], index: 6, kind: input, shape index: {}]   ;;  %s13263_s7 = inlined_call_operand.hbm [shape: bf16[512,1024], index: 7, kind: input, shape index: {}]   ;;  %s13264_s8 = inlined_call_operand.hbm [shape: f32[8,1024], index: 8, kind: input, shape index: {}]   ;;  %s13265_s9 = inlined_call_operand.hbm [shape: bf16[1024,1280], index: 9, kind: input, shape index: {}]   ;;  %s13266_s10 = inlined_call_operand.hbm [shape: f32[8,1280], index: 10, kind: input, shape index: {}]   ;;  %s13267_s11 = inlined_call_operand.hbm [shape: bf16[1280,256], index: 11, kind: input, shape index: {}]   ;;  %s13268_s12 = inlined_call_operand.hbm [shape: f32[8,256], index: 12, kind: input, shape index: {}]   ;;  %s13269_s13 = inlined_call_operand.hbm [shape: f32[8,256], index: 13, kind: output, shape index: {}]  }
   0x1   :  { %19 = vsyncpa [#allocation6], 0 }
   0x2   :  { %20 = vsyncpa [#allocation9], 0 }
   0x3   :  { %21 = vsyncpa [#allocation12], 0 }
   0x4   :  { %22 = vsyncpa [#allocation15], 0 }
   0x5   :  { %23 = vsyncpa [#allocation18], 0 }
   0x6   :  { %24 = vsyncpa [#allocation21], 0 }
   0x7   :  { %25 = vsyncpa [#allocation4], 0  ;;  %s12689_s25 = smov [#allocation5]   ;;  %s12365_s29 = scalar_lea.hbm %s13257_s1, 1024 }
   0x8   :  { %s41_s26 = sshll.u32 %s12689_s25, 4  ;;  %p12366_p0 = scmp.ne.s32.totalorder %s13257_s1, %s12365_s29  ;;  %s42_s26 = int_to_ptr.vmem [resolvable:$true] %s41_s26 }
   0x9   :  { %p12369_p1 = scmp.lt.u32.totalorder %s12365_s29, %s13257_s1 }
   0xb   :  { %p12371_p2 = pnand %p12369_p1, %p12366_p0 }
   0xd   :  { %12374 = shalt.err (!%p12371_p2)
}
   0xe   :  { %s12375_s17 = scalar_lea.vmem %s42_s26, 1024  ;;  %p12380_p4 = scmp.lt.s32.totalorder %s42_s26, %s42_s26 }
   0xf   :  { %p12376_p3 = scmp.ne.s32.totalorder %s42_s26, %s12375_s17  ;;  %p12381_p5 = scmp.lt.s32.totalorder %s12375_s17, %s12375_s17 }
  0x11   :  { %p12382_p6 = por %p12381_p5, %p12380_p4 }
  0x13   :  { %p12383_p7 = pnand %p12382_p6, %p12376_p3 }
  0x15   :  { %12386 = shalt.err (!%p12383_p7)
}
  0x16   :  { %s12690_s18 = smov 64   ;;  %s12691_s19 = smov 4  }
  0x17   :  { %47 = dma.hbm_to_vmem [thread:$0]  %s13257_s1, 1024, %s42_s26, [#allocation6], %s12690_s18, %s12690_s18, %s12691_s19  }
  0x18   :  { %s12692_s22 = smov [#allocation8]   ;;  %s12387_s27 = scalar_lea.hbm %s13259_s3, 2048 }
  0x19   :  { %s63_s23 = sshll.u32 %s12692_s22, 4  ;;  %p12388_p8 = scmp.ne.s32.totalorder %s13259_s3, %s12387_s27  ;;  %s64_s23 = int_to_ptr.vmem [resolvable:$true] %s63_s23 }
  0x1a   :  { %p12391_p9 = scmp.lt.u32.totalorder %s12387_s27, %s13259_s3 }
  0x1c   :  { %p12393_p10 = pnand %p12391_p9, %p12388_p8 }
  0x1e   :  { %12396 = shalt.err (!%p12393_p10)
}
  0x1f   :  { %s12397_s15 = scalar_lea.vmem %s64_s23, 2048  ;;  %p12402_p12 = scmp.lt.s32.totalorder %s64_s23, %s64_s23 }
  0x20   :  { %p12398_p11 = scmp.ne.s32.totalorder %s64_s23, %s12397_s15  ;;  %p12403_p13 = scmp.lt.s32.totalorder %s12397_s15, %s12397_s15 }
  0x22   :  { %p12404_p0 = por %p12403_p13, %p12402_p12 }
  0x24   :  { %p12405_p1 = pnand %p12404_p0, %p12398_p11 }
  0x26   :  { %12408 = shalt.err (!%p12405_p1)
}
  0x27   :  { %s12693_s1 = smov 128   ;;  %s12694_s26 = smov 8  }
  0x28   :  { %69 = dma.hbm_to_vmem [thread:$0]  %s13259_s3, 2048, %s64_s23, [#allocation9], %s12693_s1, %s12693_s1, %s12694_s26  }
  0x29   :  { %s12695_s18 = smov [#allocation11]   ;;  %s12409_s22 = scalar_lea.hbm %s13261_s5, 8192 }
  0x2a   :  { %s85_s19 = sshll.u32 %s12695_s18, 4  ;;  %p12410_p2 = scmp.ne.s32.totalorder %s13261_s5, %s12409_s22  ;;  %s86_s19 = int_to_ptr.vmem [resolvable:$true] %s85_s19 }
  0x2b   :  { %p12413_p3 = scmp.lt.u32.totalorder %s12409_s22, %s13261_s5 }
  0x2d   :  { %p12415_p4 = pnand %p12413_p3, %p12410_p2 }
  0x2f   :  { %12418 = shalt.err (!%p12415_p4)
}
  0x30   :  { %s12419_s29 = scalar_lea.vmem %s86_s19, 8192  ;;  %p12424_p6 = scmp.lt.s32.totalorder %s86_s19, %s86_s19 }
  0x31   :  { %p12420_p5 = scmp.ne.s32.totalorder %s86_s19, %s12419_s29  ;;  %p12425_p7 = scmp.lt.s32.totalorder %s12419_s29, %s12419_s29 }
  0x33   :  { %p12426_p8 = por %p12425_p7, %p12424_p6 }
  0x35   :  { %p12427_p9 = pnand %p12426_p8, %p12420_p5 }
  0x37   :  { %12430 = shalt.err (!%p12427_p9)
}
  0x38   :  { %s12696_s3 = smov 256   ;;  %s12697_s23 = smov 16  }
  0x39   :  { %91 = dma.hbm_to_vmem [thread:$0]  %s13261_s5, 8192, %s86_s19, [#allocation12], %s12696_s3, %s12696_s3, %s12697_s23  }
  0x3a   :  { %s12698_s15 = smov [#allocation14]   ;;  %s12431_s20 = scalar_lea.hbm %s13263_s7, 32768 }
  0x3b   :  { %s107_s16 = sshll.u32 %s12698_s15, 4  ;;  %p12432_p10 = scmp.ne.s32.totalorder %s13263_s7, %s12431_s20  ;;  %s108_s16 = int_to_ptr.vmem [resolvable:$true] %s107_s16 }
  0x3c   :  { %p12435_p11 = scmp.lt.u32.totalorder %s12431_s20, %s13263_s7 }
  0x3e   :  { %p12437_p12 = pnand %p12435_p11, %p12432_p10 }
  0x40   :  { %12440 = shalt.err (!%p12437_p12)
}
  0x41   :  { %s12441_s27 = scalar_lea.vmem %s108_s16, 32768  ;;  %p12446_p0 = scmp.lt.s32.totalorder %s108_s16, %s108_s16 }
  0x42   :  { %p12442_p13 = scmp.ne.s32.totalorder %s108_s16, %s12441_s27  ;;  %p12447_p1 = scmp.lt.s32.totalorder %s12441_s27, %s12441_s27 }
  0x44   :  { %p12448_p2 = por %p12447_p1, %p12446_p0 }
  0x46   :  { %p12449_p3 = pnand %p12448_p2, %p12442_p13 }
  0x48   :  { %12452 = shalt.err (!%p12449_p3)
}
  0x49   :  { %s12699_s5 = smov 512   ;;  %s12700_s19 = smov 32  }
  0x4a   :  { %113 = dma.hbm_to_vmem [thread:$0]  %s13263_s7, 32768, %s108_s16, [#allocation15], %s12699_s5, %s12699_s5, %s12700_s19  }
  0x4b   :  { %s12701_s3 = smov [#allocation17]   ;;  %s12453_s15 = scalar_lea.hbm %s13265_s9, 81920 }
  0x4c   :  { %s129_s23 = sshll.u32 %s12701_s3, 4  ;;  %p12454_p4 = scmp.ne.s32.totalorder %s13265_s9, %s12453_s15  ;;  %s130_s23 = int_to_ptr.vmem [resolvable:$true] %s129_s23 }
  0x4d   :  { %p12457_p5 = scmp.lt.u32.totalorder %s12453_s15, %s13265_s9 }
  0x4f   :  { %p12459_p6 = pnand %p12457_p5, %p12454_p4 }
  0x51   :  { %12462 = shalt.err (!%p12459_p6)
}
  0x52   :  { %s12463_s22 = scalar_lea.vmem %s130_s23, 81920  ;;  %p12468_p8 = scmp.lt.s32.totalorder %s130_s23, %s130_s23 }
  0x53   :  { %p12464_p7 = scmp.ne.s32.totalorder %s130_s23, %s12463_s22  ;;  %p12469_p9 = scmp.lt.s32.totalorder %s12463_s22, %s12463_s22 }
  0x55   :  { %p12470_p10 = por %p12469_p9, %p12468_p8 }
  0x57   :  { %p12471_p11 = pnand %p12470_p10, %p12464_p7 }
  0x59   :  { %12474 = shalt.err (!%p12471_p11)
}
  0x5a   :  { %s12702_s7 = smov 640   ;;  %s12703_s16 = smov 40  }
  0x5b   :  { %135 = dma.hbm_to_vmem [thread:$0]  %s13265_s9, 81920, %s130_s23, [#allocation18], %s12702_s7, %s12702_s7, %s12703_s16  }
  0x5c   :  { %s12704_s27 = smov [#allocation20]   ;;  %s12705_s19 = smov [#allocation2]  }
  0x5d   :  { %s151_s5 = sshll.u32 %s12704_s27, 4  ;;  %s32_s28 = sshll.u32 %s12705_s19, 4  ;;  %s152_s5 = int_to_ptr.vmem [resolvable:$true] %s151_s5  ;;  %s33_s28 = int_to_ptr.vmem [resolvable:$true] %s32_s28 }
  0x5e   :  { %s12475_s30 = scalar_lea.hbm %s13267_s11, 20480 }
  0x5f   :  { %p12476_p12 = scmp.ne.s32.totalorder %s13267_s11, %s12475_s30  ;;  %p12479_p13 = scmp.lt.u32.totalorder %s12475_s30, %s13267_s11 }
  0x61   :  { %p12481_p0 = pnand %p12479_p13, %p12476_p12 }
  0x63   :  { %12484 = shalt.err (!%p12481_p0)
}
  0x64   :  { %s12485_s9 = scalar_lea.vmem %s152_s5, 20480  ;;  %p12490_p2 = scmp.lt.s32.totalorder %s152_s5, %s152_s5 }
  0x65   :  { %p12486_p1 = scmp.ne.s32.totalorder %s152_s5, %s12485_s9  ;;  %p12491_p3 = scmp.lt.s32.totalorder %s12485_s9, %s12485_s9 }
  0x67   :  { %p12492_p4 = por %p12491_p3, %p12490_p2 }
  0x69   :  { %p12493_p5 = pnand %p12492_p4, %p12486_p1 }
  0x6b   :  { %12496 = shalt.err (!%p12493_p5)
}
  0x6c   :  { %157 = dma.hbm_to_vmem [thread:$0]  %s13267_s11, 20480, %s152_s5, [#allocation21], %s12693_s1, %s12693_s1, %s12694_s26  }
  0x6d   :  { %s12497_s7 = scalar_lea.hbm %s13256_s0, 64 }
  0x6e   :  { %p12498_p6 = scmp.ne.s32.totalorder %s13256_s0, %s12497_s7  ;;  %p12501_p7 = scmp.lt.u32.totalorder %s12497_s7, %s13256_s0 }
  0x70   :  { %p12503_p8 = pnand %p12501_p7, %p12498_p6 }
  0x72   :  { %12506 = shalt.err (!%p12503_p8)
}
  0x73   :  { %s12507_s19 = scalar_lea.vmem %s33_s28, 64  ;;  %p12512_p10 = scmp.lt.s32.totalorder %s33_s28, %s33_s28 }
  0x74   :  { %p12508_p9 = scmp.ne.s32.totalorder %s33_s28, %s12507_s19  ;;  %p12513_p11 = scmp.lt.s32.totalorder %s12507_s19, %s12507_s19 }
  0x76   :  { %p12514_p12 = por %p12513_p11, %p12512_p10 }
  0x78   :  { %p12515_p13 = pnand %p12514_p12, %p12508_p9 }
  0x7a   :  { %12518 = shalt.err (!%p12515_p13)
}
  0x7b   :  { %35 = dma.hbm_to_vmem [thread:$0]  %s13256_s0, 64, %s33_s28, [#allocation3]  }
  0x7c   :  { %s12706_s26 = smov [#allocation7]   ;;  %s12707_s29 = smov [#allocation10]  }
  0x7d   :  { %s54_s5 = sshll.u32 %s12706_s26, 4  ;;  %s76_s3 = sshll.u32 %s12707_s29, 4  ;;  %s55_s5 = int_to_ptr.vmem [resolvable:$true] %s54_s5  ;;  %s77_s3 = int_to_ptr.vmem [resolvable:$true] %s76_s3 }
  0x7e   :  { %s12519_s15 = scalar_lea.hbm %s13258_s2, 128 }
  0x7f   :  { %p12520_p0 = scmp.ne.s32.totalorder %s13258_s2, %s12519_s15  ;;  %p12523_p1 = scmp.lt.u32.totalorder %s12519_s15, %s13258_s2 }
  0x81   :  { %p12525_p2 = pnand %p12523_p1, %p12520_p0 }
  0x83   :  { %12528 = shalt.err (!%p12525_p2)
}
  0x84   :  { %s12529_s0 = scalar_lea.vmem %s55_s5, 128  ;;  %p12534_p4 = scmp.lt.s32.totalorder %s55_s5, %s55_s5 }
  0x85   :  { %p12530_p3 = scmp.ne.s32.totalorder %s55_s5, %s12529_s0  ;;  %p12535_p5 = scmp.lt.s32.totalorder %s12529_s0, %s12529_s0 }
  0x87   :  { %p12536_p6 = por %p12535_p5, %p12534_p4 }
  0x89   :  { %p12537_p7 = pnand %p12536_p6, %p12530_p3 }
  0x8b   :  { %12540 = shalt.err (!%p12537_p7)
}
  0x8c   :  { %57 = dma.hbm_to_vmem [thread:$0]  %s13258_s2, 128, %s55_s5, [#allocation6]  }
  0x8d   :  { %s12541_s7 = scalar_lea.hbm %s13260_s4, 256 }
  0x8e   :  { %p12542_p8 = scmp.ne.s32.totalorder %s13260_s4, %s12541_s7  ;;  %p12545_p9 = scmp.lt.u32.totalorder %s12541_s7, %s13260_s4 }
  0x90   :  { %p12547_p10 = pnand %p12545_p9, %p12542_p8 }
  0x92   :  { %12550 = shalt.err (!%p12547_p10)
}
  0x93   :  { %s12551_s19 = scalar_lea.vmem %s77_s3, 256  ;;  %p12556_p12 = scmp.lt.s32.totalorder %s77_s3, %s77_s3 }
  0x94   :  { %p12552_p11 = scmp.ne.s32.totalorder %s77_s3, %s12551_s19  ;;  %p12557_p13 = scmp.lt.s32.totalorder %s12551_s19, %s12551_s19 }
  0x96   :  { %p12558_p0 = por %p12557_p13, %p12556_p12 }
  0x98   :  { %p12559_p1 = pnand %p12558_p0, %p12552_p11 }
  0x9a   :  { %12562 = shalt.err (!%p12559_p1)
}
  0x9b   :  { %79 = dma.hbm_to_vmem [thread:$0]  %s13260_s4, 256, %s77_s3, [#allocation9]  }
  0x9c   :  { %s12708_s1 = smov [#allocation13]   ;;  %s12709_s5 = smov [#allocation16]  }
  0x9d   :  { %s98_s26 = sshll.u32 %s12708_s1, 4  ;;  %s120_s29 = sshll.u32 %s12709_s5, 4  ;;  %s99_s26 = int_to_ptr.vmem [resolvable:$true] %s98_s26  ;;  %s121_s29 = int_to_ptr.vmem [resolvable:$true] %s120_s29 }
  0x9e   :  { %s12563_s15 = scalar_lea.hbm %s13262_s6, 512 }
  0x9f   :  { %p12564_p2 = scmp.ne.s32.totalorder %s13262_s6, %s12563_s15  ;;  %p12567_p3 = scmp.lt.u32.totalorder %s12563_s15, %s13262_s6 }
  0xa1   :  { %p12569_p4 = pnand %p12567_p3, %p12564_p2 }
  0xa3   :  { %12572 = shalt.err (!%p12569_p4)
}
  0xa4   :  { %s12573_s4 = scalar_lea.vmem %s99_s26, 512  ;;  %p12578_p6 = scmp.lt.s32.totalorder %s99_s26, %s99_s26 }
  0xa5   :  { %p12574_p5 = scmp.ne.s32.totalorder %s99_s26, %s12573_s4  ;;  %p12579_p7 = scmp.lt.s32.totalorder %s12573_s4, %s12573_s4 }
  0xa7   :  { %p12580_p8 = por %p12579_p7, %p12578_p6 }
  0xa9   :  { %p12581_p9 = pnand %p12580_p8, %p12574_p5 }
  0xab   :  { %12584 = shalt.err (!%p12581_p9)
}
  0xac   :  { %101 = dma.hbm_to_vmem [thread:$0]  %s13262_s6, 512, %s99_s26, [#allocation12]  }
  0xad   :  { %s12585_s21 = scalar_lea.hbm %s13264_s8, 1024 }
  0xae   :  { %p12586_p10 = scmp.ne.s32.totalorder %s13264_s8, %s12585_s21  ;;  %p12589_p11 = scmp.lt.u32.totalorder %s12585_s21, %s13264_s8 }
  0xb0   :  { %p12591_p12 = pnand %p12589_p11, %p12586_p10 }
  0xb2   :  { %12594 = shalt.err (!%p12591_p12)
}
  0xb3   :  { %s12595_s25 = scalar_lea.vmem %s121_s29, 1024  ;;  %p12600_p0 = scmp.lt.s32.totalorder %s121_s29, %s121_s29 }
  0xb4   :  { %p12596_p13 = scmp.ne.s32.totalorder %s121_s29, %s12595_s25  ;;  %p12601_p1 = scmp.lt.s32.totalorder %s12595_s25, %s12595_s25 }
  0xb6   :  { %p12602_p2 = por %p12601_p1, %p12600_p0 }
  0xb8   :  { %p12603_p3 = pnand %p12602_p2, %p12596_p13 }
  0xba   :  { %12606 = shalt.err (!%p12603_p3)
}
  0xbb   :  { %123 = dma.hbm_to_vmem [thread:$0]  %s13264_s8, 1024, %s121_s29, [#allocation15]  }
  0xbc   :  { %s12710_s19 = smov [#allocation19]   ;;  %s12711_s11 = smov [#allocation22]  }
  0xbd   :  { %s142_s2 = sshll.u32 %s12710_s19, 4  ;;  %s164_s1 = sshll.u32 %s12711_s11, 4  ;;  %s143_s2 = int_to_ptr.vmem [resolvable:$true] %s142_s2  ;;  %s165_s1 = int_to_ptr.vmem [resolvable:$true] %s164_s1 }
  0xbe   :  { %s12607_s30 = scalar_lea.hbm %s13266_s10, 1280 }
  0xbf   :  { %p12608_p4 = scmp.ne.s32.totalorder %s13266_s10, %s12607_s30  ;;  %p12611_p5 = scmp.lt.u32.totalorder %s12607_s30, %s13266_s10 }
  0xc1   :  { %p12613_p6 = pnand %p12611_p5, %p12608_p4 }
  0xc3   :  { %12616 = shalt.err (!%p12613_p6)
}
  0xc4   :  { %s12617_s8 = scalar_lea.vmem %s143_s2, 1280  ;;  %p12622_p8 = scmp.lt.s32.totalorder %s143_s2, %s143_s2 }
  0xc5   :  { %p12618_p7 = scmp.ne.s32.totalorder %s143_s2, %s12617_s8  ;;  %p12623_p9 = scmp.lt.s32.totalorder %s12617_s8, %s12617_s8 }
  0xc7   :  { %p12624_p10 = por %p12623_p9, %p12622_p8 }
  0xc9   :  { %p12625_p11 = pnand %p12624_p10, %p12618_p7 }
  0xcb   :  { %12628 = shalt.err (!%p12625_p11)
}
  0xcc   :  { %145 = dma.hbm_to_vmem [thread:$0]  %s13266_s10, 1280, %s143_s2, [#allocation18]  }
  0xcd   :  { %s12629_s3 = scalar_lea.hbm %s13268_s12, 256 }
  0xce   :  { %p12630_p12 = scmp.ne.s32.totalorder %s13268_s12, %s12629_s3  ;;  %p12633_p13 = scmp.lt.u32.totalorder %s12629_s3, %s13268_s12 }
  0xd0   :  { %p12635_p0 = pnand %p12633_p13, %p12630_p12 }
  0xd2   :  { %12638 = shalt.err (!%p12635_p0)
}
  0xd3   :  { %s12639_s22 = scalar_lea.vmem %s165_s1, 256  ;;  %p12644_p2 = scmp.lt.s32.totalorder %s165_s1, %s165_s1 }
  0xd4   :  { %p12640_p1 = scmp.ne.s32.totalorder %s165_s1, %s12639_s22  ;;  %p12645_p3 = scmp.lt.s32.totalorder %s12639_s22, %s12639_s22 }
  0xd6   :  { %p12646_p4 = por %p12645_p3, %p12644_p2 }
  0xd8   :  { %p12647_p5 = pnand %p12646_p4, %p12640_p1 }
  0xda   :  { %12650 = shalt.err (!%p12647_p5)
}
  0xdb   :  { %167 = dma.hbm_to_vmem [thread:$0]  %s13268_s12, 256, %s165_s1, [#allocation21]  }
  0xdc   :  { %12673 = dma.done.wait [#allocation3], 64  }
  0xdd   :  { %12674 = vsyncadd [#allocation3], 4294967232 }
  0xde   :  { %12675 = dma.done.wait [#allocation6], 1152  }
  0xdf   :  { %12676 = vsyncadd [#allocation6], 4294966144 }
  0xe0   :  { %12677 = dma.done.wait [#allocation9], 2304  }
  0xe1   :  { %12678 = vsyncadd [#allocation9], 4294964992 }
  0xe2   :  { %12679 = dma.done.wait [#allocation12], 8704  }
  0xe3   :  { %12680 = vsyncadd [#allocation12], 4294958592 }
  0xe4   :  { %12681 = dma.done.wait [#allocation15], 33792  }
  0xe5   :  { %12682 = vsyncadd [#allocation15], 4294933504 }
  0xe6   :  { %12683 = dma.done.wait [#allocation18], 83200  }
  0xe7   :  { %12684 = vsyncadd [#allocation18], 4294884096 }
  0xe8   :  { %12685 = dma.done.wait [#allocation21], 20736  }
  0xe9   :  { %12686 = vsyncadd [#allocation21], 4294946560  ;;  %v12712_v0 = vmov 0.0   ;;  %vm12713_vm0 = vmmov 0   ;;  %v10885_v1 = vld [vmem:[#allocation5] sm:$0xff]   ;;  %v10886_v2 = vld [vmem:[#allocation5 + $0x8] sm:$0xff]   ;;  %v226_v27 = vlaneseq }
  0xea   :  { %10744 = vmatprep.subr.bf16.mxu0 %v12712_v0  ;;  %10760 = vmatprep.mubr.msk.bf16.mxu0 %vm12713_vm0, %v12712_v0  ;;  %v10887_v3 = vld [vmem:[#allocation5 + $0x10] sm:$0xff]   ;;  %v10888_v4 = vld [vmem:[#allocation5 + $0x18] sm:$0xff]   ;;  %v10889_v5 = vld [vmem:[#allocation5 + $0x20] sm:$0xff]   ;;  %v12714_v26 = vmov 0   ;;  %s12715_s12 = smov [#allocation23]  }
  0xeb   :  { %10745 = vmatpush3.bf16.msra.mxu0 %v10885_v1  ;;  %v10890_v6 = vld [vmem:[#allocation5 + $0x28] sm:$0xff]   ;;  %v10891_v7 = vld [vmem:[#allocation5 + $0x30] sm:$0xff]   ;;  %v10892_v8 = vld [vmem:[#allocation5 + $0x38] sm:$0xff]   ;;  %v12948_v28 = vshrl.u32 %v226_v27, 7  ;;  %s9551_s16 = sshll.u32 %s12715_s12, 4  ;;  %s9552_s16 = int_to_ptr.vmem [resolvable:$true] %s9551_s16 }
  0xec   :  { %10746 = vmatprep.subr.bf16.mxu0 %v12712_v0  ;;  %v208_v9 = vld [vmem:[#allocation2] sm:$0xf]  ;;  %v10895_v10 = vld [vmem:[#allocation8 + $0x4] ss:$8 sps:$4 sm:$0xff]   ;;  %v10893_v11 = vld [vmem:[#allocation8] ss:$8 sps:$4 sm:$0xff]   ;;  %p12656_p7 = scmp.lt.s32.totalorder %s9552_s16, %s9552_s16 }
  0xed   :  { %v10898_v12 = vld [vmem:[#allocation8 + $0x14] ss:$8 sps:$4 sm:$0xff]   ;;  %v10896_v13 = vld [vmem:[#allocation8 + $0x10] ss:$8 sps:$4 sm:$0xff]   ;;  %v10901_v14 = vld [vmem:[#allocation8 + $0x24] ss:$8 sps:$4 sm:$0xff]  }
  0xee   :  { %v10899_v15 = vld [vmem:[#allocation8 + $0x20] ss:$8 sps:$4 sm:$0xff]   ;;  %v10904_v16 = vld [vmem:[#allocation8 + $0x34] ss:$8 sps:$4 sm:$0xff]   ;;  %v10902_v17 = vld [vmem:[#allocation8 + $0x30] ss:$8 sps:$4 sm:$0xff]  }
  0xef   :  { %10747 = vmatpush3.bf16.msra.mxu0 %v10886_v2  ;;  %v10907_v18 = vld [vmem:[#allocation8 + $0x44] ss:$8 sps:$4 sm:$0xff]   ;;  %v10905_v19 = vld [vmem:[#allocation8 + $0x40] ss:$8 sps:$4 sm:$0xff]   ;;  %v10910_v20 = vld [vmem:[#allocation8 + $0x54] ss:$8 sps:$4 sm:$0xff]  }
  0xf0   :  { %10748 = vmatprep.subr.bf16.mxu0 %v12712_v0  ;;  %v10908_v21 = vld [vmem:[#allocation8 + $0x50] ss:$8 sps:$4 sm:$0xff]   ;;  %v10913_v22 = vld [vmem:[#allocation8 + $0x64] ss:$8 sps:$4 sm:$0xff]   ;;  %v10911_v23 = vld [vmem:[#allocation8 + $0x60] ss:$8 sps:$4 sm:$0xff]  }
  0xf1   :  { %v10916_v24 = vld [vmem:[#allocation8 + $0x74] ss:$8 sps:$4 sm:$0xff]   ;;  %v10914_v25 = vld [vmem:[#allocation8 + $0x70] ss:$8 sps:$4 sm:$0xff]   ;;  %v12951_v30 = vsub.s32 0, %v12948_v28  ;;  %s12651_s24 = scalar_lea.vmem %s9552_s16, 256 }
  0xf2   :  { %v209_v29 = vld [vmem:[#allocation7] sm:$0xff]  ;;  %v10919_v43 = vld [vmem:[#allocation11 + $0x4] ss:$16 sps:$4 sm:$0xff]   ;;  %v10917_v45 = vld [vmem:[#allocation11] ss:$16 sps:$4 sm:$0xff]   ;;  %p12652_p6 = scmp.ne.s32.totalorder %s9552_s16, %s12651_s24  ;;  %p12657_p8 = scmp.lt.s32.totalorder %s12651_s24, %s12651_s24 }
  0xf3   :  { %10749 = vmatpush3.bf16.msra.mxu0 %v10887_v3  ;;  %v229_v31 = vrot.slane %v209_v29, %v12951_v30  ;;  %v10920_v44 = vld [vmem:[#allocation11 + $0xc] ss:$16 sps:$4 sm:$0xff]   ;;  %v10922_v46 = vld [vmem:[#allocation11 + $0x8] ss:$16 sps:$4 sm:$0xff]   ;;  %v10925_v47 = vld [vmem:[#allocation11 + $0x24] ss:$16 sps:$4 sm:$0xff]  }
  0xf4   :  { %10750 = vmatprep.subr.bf16.mxu0 %v12712_v0  ;;  %969 = vmatprep.subr.bf16.mxu1 %v10920_v44  ;;  %v10926_v48 = vld [vmem:[#allocation11 + $0x2c] ss:$16 sps:$4 sm:$0xff]   ;;  %v10923_v49 = vld [vmem:[#allocation11 + $0x20] ss:$16 sps:$4 sm:$0xff]   ;;  %v10928_v50 = vld [vmem:[#allocation11 + $0x28] ss:$16 sps:$4 sm:$0xff]   ;;  %p12658_p9 = por %p12657_p8, %p12656_p7 }
  0xf5   :  { %970 = vmatpush1.bf16.msra.mxu1 %v10922_v46  ;;  %v10931_v51 = vld [vmem:[#allocation11 + $0x44] ss:$16 sps:$4 sm:$0xff]   ;;  %v10932_v52 = vld [vmem:[#allocation11 + $0x4c] ss:$16 sps:$4 sm:$0xff]   ;;  %v10929_v53 = vld [vmem:[#allocation11 + $0x40] ss:$16 sps:$4 sm:$0xff]  }
  0xf6   :  { %971 = vmatprep.subr.bf16.mxu1 %v10926_v48  ;;  %v10934_v54 = vld [vmem:[#allocation11 + $0x48] ss:$16 sps:$4 sm:$0xff]   ;;  %v10937_v55 = vld [vmem:[#allocation11 + $0x64] ss:$16 sps:$4 sm:$0xff]   ;;  %v10938_v56 = vld [vmem:[#allocation11 + $0x6c] ss:$16 sps:$4 sm:$0xff]   ;;  %p12659_p10 = pnand %p12658_p9, %p12652_p6 }
  0xf7   :  { %10751 = vmatpush3.bf16.msra.mxu0 %v10888_v4  ;;  %v10935_v57 = vld [vmem:[#allocation11 + $0x60] ss:$16 sps:$4 sm:$0xff]   ;;  %v10940_v58 = vld [vmem:[#allocation11 + $0x68] ss:$16 sps:$4 sm:$0xff]   ;;  %v10943_v59 = vld [vmem:[#allocation11 + $0x84] ss:$16 sps:$4 sm:$0xff]  }
  0xf8   :  { %10752 = vmatprep.subr.bf16.mxu0 %v12712_v0  ;;  %v10944_v60 = vld [vmem:[#allocation11 + $0x8c] ss:$16 sps:$4 sm:$0xff]   ;;  %v10941_v61 = vld [vmem:[#allocation11 + $0x80] ss:$16 sps:$4 sm:$0xff]   ;;  %v10946_v62 = vld [vmem:[#allocation11 + $0x88] ss:$16 sps:$4 sm:$0xff]  }
  0xf9   :  { %972 = vmatpush1.bf16.msra.mxu1 %v10928_v50  ;;  %v10949_v63 = vld [vmem:[#allocation11 + $0xa4] ss:$16 sps:$4 sm:$0xff]   ;;  %v10947_v1 = vld [vmem:[#allocation11 + $0xa0] ss:$16 sps:$4 sm:$0xff]   ;;  %v10952_v2 = vld [vmem:[#allocation11 + $0xa8] ss:$16 sps:$4 sm:$0xff]  }
  0xfa   :  { %973 = vmatprep.subr.bf16.mxu1 %v10932_v52  ;;  %v10955_v3 = vld [vmem:[#allocation11 + $0xc4] ss:$16 sps:$4 sm:$0xff]   ;;  %v10956_v4 = vld [vmem:[#allocation11 + $0xcc] ss:$16 sps:$4 sm:$0xff]   ;;  %v11012_v44 = vld [vmem:[#allocation11 + $0x1e8] ss:$16 sps:$4 sm:$0xff]  }
  0xfb   :  { %10753 = vmatpush3.bf16.msra.mxu0 %v10889_v5  ;;  %v10953_v5 = vld [vmem:[#allocation11 + $0xc0] ss:$16 sps:$4 sm:$0xff]   ;;  %v10991_v27 = vld [vmem:[#allocation11 + $0x184] ss:$16 sps:$4 sm:$0xff]   ;;  %v10992_v29 = vld [vmem:[#allocation11 + $0x18c] ss:$16 sps:$4 sm:$0xff]  }
  0xfc   :  { %10754 = vmatprep.subr.bf16.mxu0 %v12712_v0 }
  0xfd   :  { %974 = vmatpush1.bf16.msra.mxu1 %v10934_v54 }
  0xfe   :  { %975 = vmatprep.subr.bf16.mxu1 %v10938_v56 }
  0xff   :  { %10755 = vmatpush3.bf16.msra.mxu0 %v10890_v6  ;;  %v10958_v6 = vld [vmem:[#allocation11 + $0xc8] ss:$16 sps:$4 sm:$0xff]  }
 0x100   :  { %10756 = vmatprep.subr.bf16.mxu0 %v12712_v0 }
 0x101   :  { %976 = vmatpush1.bf16.msra.mxu1 %v10940_v58 }
 0x102   :  { %977 = vmatprep.subr.bf16.mxu1 %v10944_v60 }
 0x103   :  { %10757 = vmatpush3.bf16.msra.mxu0 %v10891_v7  ;;  %v10961_v7 = vld [vmem:[#allocation11 + $0xe4] ss:$16 sps:$4 sm:$0xff]  }
 0x104   :  { %10758 = vmatprep.subr.bf16.mxu0 %v12712_v0  ;;  %v10950_v0 = vld [vmem:[#allocation11 + $0xac] ss:$16 sps:$4 sm:$0xff]  }
 0x105   :  { %978 = vmatpush1.bf16.msra.mxu1 %v10946_v62 }
 0x106   :  { %979 = vmatprep.subr.bf16.mxu1 %v10950_v0 }
 0x107   :  { %10759 = vmatpush3.bf16.msra.mxu0 %v10892_v8  ;;  %v10962_v8 = vld [vmem:[#allocation11 + $0xec] ss:$16 sps:$4 sm:$0xff]  }
 0x108   :  { %424 = vmatprep.subr.bf16.mxu0 %v10895_v10  ;;  %v10964_v10 = vld [vmem:[#allocation11 + $0xe8] ss:$16 sps:$4 sm:$0xff]  }
 0x109   :  { %980 = vmatpush1.bf16.msra.mxu1 %v10952_v2 }
 0x10a   :  { %10761 = vmatmul.mubr.bf16.vlgmr.msra.gmra.mrb[0].mxu0 %v208_v9  ;;  %981 = vmatprep.subr.bf16.mxu1 %v10956_v4  ;;  %v10959_v9 = vld [vmem:[#allocation11 + $0xe0] ss:$16 sps:$4 sm:$0xff]  }
 0x10b   :  { %425 = vmatpush1.bf16.msra.mxu0 %v10893_v11  ;;  %456 = vmatprep.mubr.bf16.mxu0 %v12714_v26  ;;  %v10967_v11 = vld [vmem:[#allocation11 + $0x104] ss:$16 sps:$4 sm:$0xff]   ;;  %v10988_v26 = vld [vmem:[#allocation11 + $0x168] ss:$16 sps:$4 sm:$0xff]  }
 0x10c   :  { %426 = vmatprep.subr.bf16.mxu0 %v10898_v12  ;;  %v10968_v12 = vld [vmem:[#allocation11 + $0x10c] ss:$16 sps:$4 sm:$0xff]  }
 0x10d   :  { %982 = vmatpush1.bf16.msra.mxu1 %v10958_v6 }
 0x10e   :  { %983 = vmatprep.subr.bf16.mxu1 %v10962_v8 }
 0x10f   :  { %427 = vmatpush1.bf16.msra.mxu0 %v10896_v13  ;;  %v10965_v13 = vld [vmem:[#allocation11 + $0x100] ss:$16 sps:$4 sm:$0xff]  }
 0x110   :  { %428 = vmatprep.subr.bf16.mxu0 %v10901_v14  ;;  %v10970_v14 = vld [vmem:[#allocation11 + $0x108] ss:$16 sps:$4 sm:$0xff]  }
 0x111   :  { %984 = vmatpush1.bf16.msra.mxu1 %v10964_v10 }
 0x112   :  { %985 = vmatprep.subr.bf16.mxu1 %v10968_v12 }
 0x113   :  { %429 = vmatpush1.bf16.msra.mxu0 %v10899_v15  ;;  %v10973_v15 = vld [vmem:[#allocation11 + $0x124] ss:$16 sps:$4 sm:$0xff]  }
 0x114   :  { %430 = vmatprep.subr.bf16.mxu0 %v10904_v16  ;;  %v10974_v16 = vld [vmem:[#allocation11 + $0x12c] ss:$16 sps:$4 sm:$0xff]  }
 0x115   :  { %986 = vmatpush1.bf16.msra.mxu1 %v10970_v14 }
 0x116   :  { %987 = vmatprep.subr.bf16.mxu1 %v10974_v16 }
 0x117   :  { %431 = vmatpush1.bf16.msra.mxu0 %v10902_v17  ;;  %v10971_v17 = vld [vmem:[#allocation11 + $0x120] ss:$16 sps:$4 sm:$0xff]  }
 0x118   :  { %432 = vmatprep.subr.bf16.mxu0 %v10907_v18  ;;  %v10976_v18 = vld [vmem:[#allocation11 + $0x128] ss:$16 sps:$4 sm:$0xff]  }
 0x119   :  { %988 = vmatpush1.bf16.msra.mxu1 %v10976_v18 }
 0x11b   :  { %433 = vmatpush1.bf16.msra.mxu0 %v10905_v19  ;;  %v10979_v19 = vld [vmem:[#allocation11 + $0x144] ss:$16 sps:$4 sm:$0xff]  }
 0x11c   :  { %434 = vmatprep.subr.bf16.mxu0 %v10910_v20  ;;  %v10980_v20 = vld [vmem:[#allocation11 + $0x14c] ss:$16 sps:$4 sm:$0xff]  }
 0x11d   :  { %989 = vmatprep.subr.bf16.mxu1 %v10980_v20  ;;  %v12955_v20 = vsub.s32 1, %v12948_v28 }
 0x11f   :  { %435 = vmatpush1.bf16.msra.mxu0 %v10908_v21  ;;  %v10977_v21 = vld [vmem:[#allocation11 + $0x140] ss:$16 sps:$4 sm:$0xff]  }
 0x120   :  { %436 = vmatprep.subr.bf16.mxu0 %v10913_v22  ;;  %v10982_v22 = vld [vmem:[#allocation11 + $0x148] ss:$16 sps:$4 sm:$0xff]  }
 0x121   :  { %990 = vmatpush1.bf16.msra.mxu1 %v10982_v22 }
 0x123   :  { %437 = vmatpush1.bf16.msra.mxu0 %v10911_v23  ;;  %v10985_v23 = vld [vmem:[#allocation11 + $0x164] ss:$16 sps:$4 sm:$0xff]  }
 0x124   :  { %438 = vmatprep.subr.bf16.mxu0 %v10916_v24  ;;  %v10986_v24 = vld [vmem:[#allocation11 + $0x16c] ss:$16 sps:$4 sm:$0xff]  }
 0x125   :  { %991 = vmatprep.subr.bf16.mxu1 %v10986_v24 }
 0x126   :  { %992 = vmatpush1.bf16.msra.mxu1 %v10988_v26 }
 0x127   :  { %439 = vmatpush1.bf16.msra.mxu0 %v10914_v25  ;;  %v10983_v25 = vld [vmem:[#allocation11 + $0x160] ss:$16 sps:$4 sm:$0xff]   ;;  %993 = vmatprep.subr.bf16.mxu1 %v10992_v29 }
 0x128   :  { %928 = vmatprep.subr.bf16.mxu0 %v10919_v43  ;;  %v11007_v43 = vld [vmem:[#allocation11 + $0x1e0] ss:$16 sps:$4 sm:$0xff]  }
 0x1dd   :  { %v312_v32 = vpop.f32.mrb[0].mxu0 }
 0x1de   :  { %v313_v33 = vadd.f32 %v312_v32, %v229_v31  ;;  %v10762_v34 = vpop.f32.mrb[1].mxu0  ;;  %v10989_v31 = vld [vmem:[#allocation11 + $0x180] ss:$16 sps:$4 sm:$0xff]   ;;  %v10994_v32 = vld [vmem:[#allocation11 + $0x188] ss:$16 sps:$4 sm:$0xff]  }
 0x1df   :  { %v315_v35 = vpop.f32.mrb[2].mxu0  ;;  %v10998_v34 = vld [vmem:[#allocation11 + $0x1ac] ss:$16 sps:$4 sm:$0xff]   ;;  %994 = vmatpush1.bf16.msra.mxu1 %v10994_v32 }
 0x1e0   :  { %v9574_v36 = vmul.f32 -1.442695, %v313_v33  ;;  %v10763_v37 = vpop.f32.mrb[3].mxu0  ;;  %v10995_v35 = vld [vmem:[#allocation11 + $0x1a0] ss:$16 sps:$4 sm:$0xff]   ;;  %995 = vmatprep.subr.bf16.mxu1 %v10998_v34 }
 0x1e1   :  { %v11003_v37 = vld [vmem:[#allocation11 + $0x1c4] ss:$16 sps:$4 sm:$0xff]  }
 0x1e2   :  { %12213 = vpow2.f32 %v9574_v36  ;;  %v11000_v36 = vld [vmem:[#allocation11 + $0x1a8] ss:$16 sps:$4 sm:$0xff]  }
 0x1e3   :  { %996 = vmatpush1.bf16.msra.mxu1 %v11000_v36 }
 0x1ec   :  { %v12214_v38 = vpop.eup %12213 }
 0x1ed   :  { %v321_v39 = vadd.f32 1.0, %v12214_v38  ;;  %v11004_v38 = vld [vmem:[#allocation11 + $0x1cc] ss:$16 sps:$4 sm:$0xff]  }
 0x1ee   :  { %997 = vmatprep.subr.bf16.mxu1 %v11004_v38 }
 0x1ef   :  { %12215 = vrcp.f32 %v321_v39  ;;  %v11001_v39 = vld [vmem:[#allocation11 + $0x1c0] ss:$16 sps:$4 sm:$0xff]  }
 0x1f9   :  { %v12216_v40 = vpop.eup %12215 }
 0x1fa   :  { %v324_v41 = vmul.f32 %v12216_v40, %v313_v33  ;;  %v10997_v33 = vld [vmem:[#allocation11 + $0x1a4] ss:$16 sps:$4 sm:$0xff]   ;;  %v11006_v40 = vld [vmem:[#allocation11 + $0x1c8] ss:$16 sps:$4 sm:$0xff]  }
 0x1fb   :  { %998 = vmatpush1.bf16.msra.mxu1 %v11006_v40 }
 0x1fc   :  { %v325_v42 = vpack.c.bf16 %v324_v41, %v324_v41  ;;  %v11009_v41 = vld [vmem:[#allocation11 + $0x1e4] ss:$16 sps:$4 sm:$0xff]  }
 0x1fe   :  { %457 = vmatmul.mubr.bf16.vlgmr.msra.gmra.mrb[4].mxu0 %v325_v42  ;;  %v11010_v42 = vld [vmem:[#allocation11 + $0x1ec] ss:$16 sps:$4 sm:$0xff]  }
 0x1ff   :  { %929 = vmatpush1.bf16.msra.mxu0 %v10917_v45  ;;  %999 = vmatprep.subr.bf16.mxu1 %v11010_v42 }
 0x200   :  { %930 = vmatprep.subr.bf16.mxu0 %v10925_v47  ;;  %1000 = vmatpush1.bf16.msra.mxu1 %v11012_v44 }
 0x203   :  { %931 = vmatpush1.bf16.msra.mxu0 %v10923_v49 }
 0x204   :  { %932 = vmatprep.subr.bf16.mxu0 %v10931_v51 }
 0x207   :  { %933 = vmatpush1.bf16.msra.mxu0 %v10929_v53 }
 0x208   :  { %934 = vmatprep.subr.bf16.mxu0 %v10937_v55 }
 0x20b   :  { %935 = vmatpush1.bf16.msra.mxu0 %v10935_v57 }
 0x20c   :  { %936 = vmatprep.subr.bf16.mxu0 %v10943_v59 }
 0x20f   :  { %937 = vmatpush1.bf16.msra.mxu0 %v10941_v61 }
 0x210   :  { %938 = vmatprep.subr.bf16.mxu0 %v10949_v63 }
 0x213   :  { %939 = vmatpush1.bf16.msra.mxu0 %v10947_v1 }
 0x214   :  { %940 = vmatprep.subr.bf16.mxu0 %v10955_v3 }
 0x217   :  { %941 = vmatpush1.bf16.msra.mxu0 %v10953_v5 }
 0x218   :  { %942 = vmatprep.subr.bf16.mxu0 %v10961_v7 }
 0x21b   :  { %943 = vmatpush1.bf16.msra.mxu0 %v10959_v9 }
 0x21c   :  { %944 = vmatprep.subr.bf16.mxu0 %v10967_v11 }
 0x21f   :  { %945 = vmatpush1.bf16.msra.mxu0 %v10965_v13 }
 0x220   :  { %946 = vmatprep.subr.bf16.mxu0 %v10973_v15 }
 0x223   :  { %947 = vmatpush1.bf16.msra.mxu0 %v10971_v17 }
 0x224   :  { %948 = vmatprep.subr.bf16.mxu0 %v10979_v19  ;;  %v326_v19 = vld [vmem:[#allocation10] sm:$0xff] }
 0x225   :  { %v507_v22 = vrot.slane %v326_v19, %v12951_v30 }
 0x227   :  { %949 = vmatpush1.bf16.msra.mxu0 %v10977_v21  ;;  %v327_v21 = vld [vmem:[#allocation10 + $0x8] sm:$0xff] }
 0x228   :  { %950 = vmatprep.subr.bf16.mxu0 %v10985_v23  ;;  %v511_v24 = vrot.slane %v327_v21, %v12951_v30 }
 0x22b   :  { %951 = vmatpush1.bf16.msra.mxu0 %v10983_v25 }
 0x22c   :  { %952 = vmatprep.subr.bf16.mxu0 %v10991_v27  ;;  %v517_v27 = vrot.slane %v326_v19, %v12955_v20  ;;  %v1203_v19 = vld [vmem:[#allocation14 + $0x128] sm:$0xff] }
 0x22f   :  { %953 = vmatpush1.bf16.msra.mxu0 %v10989_v31  ;;  %v521_v31 = vrot.slane %v327_v21, %v12955_v20 }
 0x230   :  { %954 = vmatprep.subr.bf16.mxu0 %v10997_v33 }
 0x233   :  { %955 = vmatpush1.bf16.msra.mxu0 %v10995_v35 }
 0x234   :  { %956 = vmatprep.subr.bf16.mxu0 %v11003_v37 }
 0x237   :  { %957 = vmatpush1.bf16.msra.mxu0 %v11001_v39 }
 0x238   :  { %958 = vmatprep.subr.bf16.mxu0 %v11009_v41 }
 0x23b   :  { %959 = vmatpush1.bf16.msra.mxu0 %v11007_v43 }
 0x2d1   :  { %v458_v45 = vpop.f32.mrb[4].mxu0 }
 0x2d2   :  { %v465_v46 = vrot.slane %v458_v45, 4  ;;  %v460_v47 = vpop.f32.mrb[5].mxu0 }
 0x2d3   :  { %v471_v48 = vrot.slane %v460_v47, 4  ;;  %v462_v49 = vpop.f32.mrb[6].mxu0 }
 0x2d4   :  { %v466_v50 = vadd.f32 %v465_v46, %v458_v45  ;;  %v463_v51 = vpop.f32.mrb[7].mxu0  ;;  %v1167_v49 = vld [vmem:[#allocation14 + $0x8] sm:$0xff] }
 0x2d5   :  { %v472_v52 = vadd.f32 %v471_v48, %v460_v47  ;;  %v1170_v48 = vld [vmem:[#allocation14 + $0x20] sm:$0xff]  ;;  %v1171_v51 = vld [vmem:[#allocation14 + $0x28] sm:$0xff] }
 0x2d6   :  { %v467_v53 = vrot.slane %v466_v50, 2 }
 0x2d7   :  { %v473_v54 = vrot.slane %v472_v52, 2 }
 0x2d8   :  { %v468_v55 = vadd.f32 %v467_v53, %v466_v50  ;;  %v9663_v53 = vcombine.low %v1167_v49, %v1171_v51 }
 0x2d9   :  { %v474_v56 = vadd.f32 %v473_v54, %v472_v52  ;;  %v9664_v54 = vcombine.high %v1167_v49, %v1171_v51  ;;  %v1230_v49 = vld [vmem:[#allocation14 + $0x200] sm:$0xff]  ;;  %v1231_v51 = vld [vmem:[#allocation14 + $0x208] sm:$0xff] }
 0x2da   :  { %v469_v57 = vrot.slane %v468_v55, 1 }
 0x2db   :  { %v475_v58 = vrot.slane %v474_v56, 1  ;;  %2784 = vmatprep.subr.bf16.mxu1 %v9664_v54 }
 0x2dc   :  { %v470_v59 = vadd.f32 %v469_v57, %v468_v55  ;;  %v1174_v55 = vld [vmem:[#allocation14 + $0x40] sm:$0xff]  ;;  %v1175_v57 = vld [vmem:[#allocation14 + $0x48] sm:$0xff] }
 0x2dd   :  { %v476_v60 = vadd.f32 %v475_v58, %v474_v56  ;;  %v1178_v56 = vld [vmem:[#allocation14 + $0x60] sm:$0xff] }
 0x2de   :  { %v478_v61 = vmul.f32 0.125, %v470_v59  ;;  %v9670_v58 = vcombine.high %v1174_v55, %v1178_v56  ;;  %v1179_v59 = vld [vmem:[#allocation14 + $0x68] sm:$0xff] }
 0x2df   :  { %v479_v62 = vmul.f32 0.125, %v476_v60  ;;  %v9669_v60 = vcombine.low %v1174_v55, %v1178_v56 }
 0x2e0   :  { %v480_v63 = vsub.f32 %v458_v45, %v478_v61  ;;  %v9671_v61 = vcombine.low %v1175_v57, %v1179_v59 }
 0x2e1   :  { %v481_v0 = vsub.f32 %v460_v47, %v479_v62  ;;  %v1166_v47 = vld [vmem:[#allocation14] sm:$0xff]  ;;  %v9672_v62 = vcombine.high %v1175_v57, %v1179_v59  ;;  %v1239_v59 = vld [vmem:[#allocation14 + $0x248] sm:$0xff] }
 0x2e2   :  { %v482_v1 = vmul.f32 %v480_v63, %v480_v63  ;;  %v9662_v50 = vcombine.high %v1166_v47, %v1170_v48  ;;  %v9661_v52 = vcombine.low %v1166_v47, %v1170_v48  ;;  %v1238_v57 = vld [vmem:[#allocation14 + $0x240] sm:$0xff] }
 0x2e3   :  { %v483_v2 = vmul.f32 %v481_v0, %v481_v0 }
 0x2e4   :  { %v484_v3 = vrot.slane %v482_v1, 4  ;;  %2702 = vmatprep.subr.bf16.mxu0 %v9662_v50  ;;  %v1234_v50 = vld [vmem:[#allocation14 + $0x220] sm:$0xff] }
 0x2e5   :  { %v490_v4 = vrot.slane %v483_v2, 4  ;;  %v9725_v54 = vcombine.low %v1230_v49, %v1234_v50 }
 0x2e6   :  { %v485_v5 = vadd.f32 %v484_v3, %v482_v1  ;;  %v1183_v1 = vld [vmem:[#allocation14 + $0x88] sm:$0xff] }
 0x2e7   :  { %v491_v6 = vadd.f32 %v490_v4, %v483_v2  ;;  %v1187_v3 = vld [vmem:[#allocation14 + $0xa8] sm:$0xff] }
 0x2e8   :  { %v486_v7 = vrot.slane %v485_v5, 2 }
 0x2e9   :  { %v492_v8 = vrot.slane %v491_v6, 2 }
 0x2ea   :  { %v487_v9 = vadd.f32 %v486_v7, %v485_v5  ;;  %v9679_v5 = vcombine.low %v1183_v1, %v1187_v3  ;;  %v1190_v7 = vld [vmem:[#allocation14 + $0xc0] sm:$0xff] }
 0x2eb   :  { %v493_v10 = vadd.f32 %v492_v8, %v491_v6  ;;  %v9680_v6 = vcombine.high %v1183_v1, %v1187_v3  ;;  %v1194_v8 = vld [vmem:[#allocation14 + $0xe0] sm:$0xff]  ;;  %v1247_v3 = vld [vmem:[#allocation14 + $0x288] sm:$0xff] }
 0x2ec   :  { %v488_v11 = vrot.slane %v487_v9, 1  ;;  %v1246_v1 = vld [vmem:[#allocation14 + $0x280] sm:$0xff] }
 0x2ed   :  { %v494_v12 = vrot.slane %v493_v10, 1 }
 0x2ee   :  { %v489_v13 = vadd.f32 %v488_v11, %v487_v9  ;;  %v1191_v9 = vld [vmem:[#allocation14 + $0xc8] sm:$0xff] }
 0x2ef   :  { %v495_v14 = vadd.f32 %v494_v12, %v493_v10  ;;  %v9686_v10 = vcombine.high %v1190_v7, %v1194_v8  ;;  %v1195_v11 = vld [vmem:[#allocation14 + $0xe8] sm:$0xff]  ;;  %v9685_v12 = vcombine.low %v1190_v7, %v1194_v8 }
 0x2f0   :  { %v496_v15 = vmul.f32 0.125, %v489_v13  ;;  %v9687_v13 = vcombine.low %v1191_v9, %v1195_v11 }
 0x2f1   :  { %v497_v16 = vmul.f32 0.125, %v495_v14  ;;  %v9688_v14 = vcombine.high %v1191_v9, %v1195_v11  ;;  %v1254_v9 = vld [vmem:[#allocation14 + $0x2c0] sm:$0xff]  ;;  %v1255_v11 = vld [vmem:[#allocation14 + $0x2c8] sm:$0xff] }
 0x2f2   :  { %v498_v17 = vadd.f32 0.8, %v496_v15  ;;  %v1198_v15 = vld [vmem:[#allocation14 + $0x100] sm:$0xff] }
 0x2f3   :  { %v499_v18 = vadd.f32 0.8, %v497_v16  ;;  %v1202_v16 = vld [vmem:[#allocation14 + $0x120] sm:$0xff] }
 0x2f4   :  { %12217 = vrsqrt.f32 %v498_v17  ;;  %v1199_v17 = vld [vmem:[#allocation14 + $0x108] sm:$0xff]  ;;  %v9693_v21 = vcombine.low %v1198_v15, %v1202_v16 }
 0x2f5   :  { %12219 = vrsqrt.f32 %v499_v18  ;;  %v9694_v18 = vcombine.high %v1198_v15, %v1202_v16 }
 0x2fe   :  { %v12218_v23 = vpop.eup %12217 }
 0x2ff   :  { %v12220_v25 = vpop.eup %12219  ;;  %v502_v26 = vmul.f32 %v12218_v23, %v480_v63  ;;  %v1182_v63 = vld [vmem:[#allocation14 + $0x80] sm:$0xff]  ;;  %v9696_v23 = vcombine.high %v1199_v17, %v1203_v19 }
 0x300   :  { %v503_v29 = vmul.f32 %v12220_v25, %v481_v0  ;;  %v1186_v0 = vld [vmem:[#allocation14 + $0xa0] sm:$0xff] }
 0x301   :  { %v512_v32 = vmul.f32 %v507_v22, %v502_v26  ;;  %v9678_v2 = vcombine.high %v1182_v63, %v1186_v0  ;;  %v9677_v4 = vcombine.low %v1182_v63, %v1186_v0  ;;  %v9695_v22 = vcombine.low %v1199_v17, %v1203_v19  ;;  %v1210_v25 = vld [vmem:[#allocation14 + $0x160] sm:$0xff]  ;;  %v1207_v26 = vld [vmem:[#allocation14 + $0x148] sm:$0xff] }
 0x302   :  { %v513_v33 = vmul.f32 %v511_v24, %v503_v29  ;;  %v1206_v24 = vld [vmem:[#allocation14 + $0x140] sm:$0xff]  ;;  %v1211_v29 = vld [vmem:[#allocation14 + $0x168] sm:$0xff] }
 0x303   :  { %v522_v34 = vadd.f32 %v517_v27, %v512_v32  ;;  %v9702_v27 = vcombine.high %v1206_v24, %v1210_v25  ;;  %v9703_v32 = vcombine.low %v1207_v26, %v1211_v29  ;;  %v1262_v17 = vld [vmem:[#allocation14 + $0x300] sm:$0xff]  ;;  %v1263_v19 = vld [vmem:[#allocation14 + $0x308] sm:$0xff] }
 0x304   :  { %v523_v35 = vadd.f32 %v521_v31, %v513_v33  ;;  %v9701_v31 = vcombine.low %v1206_v24, %v1210_v25  ;;  %v9704_v33 = vcombine.high %v1207_v26, %v1211_v29  ;;  %v1270_v26 = vld [vmem:[#allocation14 + $0x340] sm:$0xff]  ;;  %v1271_v29 = vld [vmem:[#allocation14 + $0x348] sm:$0xff] }
 0x305   :  { %v9591_v36 = vmul.f32 -1.442695, %v522_v34 }
 0x306   :  { %v9592_v28 = vmul.f32 -1.442695, %v523_v35 }
 0x307   :  { %12221 = vpow2.f32 %v9591_v36  ;;  %v1215_v36 = vld [vmem:[#allocation14 + $0x188] sm:$0xff] }
 0x308   :  { %12223 = vpow2.f32 %v9592_v28 }
 0x311   :  { %v12222_v37 = vpop.eup %12221 }
 0x312   :  { %v12224_v38 = vpop.eup %12223  ;;  %v530_v39 = vadd.f32 1.0, %v12222_v37  ;;  %v1219_v37 = vld [vmem:[#allocation14 + $0x1a8] sm:$0xff] }
 0x313   :  { %v531_v40 = vadd.f32 1.0, %v12224_v38 }
 0x314   :  { %12225 = vrcp.f32 %v530_v39  ;;  %v9711_v39 = vcombine.low %v1215_v36, %v1219_v37 }
 0x315   :  { %12227 = vrcp.f32 %v531_v40  ;;  %v9712_v40 = vcombine.high %v1215_v36, %v1219_v37 }
 0x31e   :  { %v12226_v41 = vpop.eup %12225 }
 0x31f   :  { %v12228_v42 = vpop.eup %12227  ;;  %v536_v43 = vmul.f32 %v12226_v41, %v522_v34  ;;  %v1214_v34 = vld [vmem:[#allocation14 + $0x180] sm:$0xff] }
 0x320   :  { %v537_v44 = vmul.f32 %v12228_v42, %v523_v35  ;;  %v1218_v35 = vld [vmem:[#allocation14 + $0x1a0] sm:$0xff] }
 0x321   :  { %v538_v46 = vpack.c.bf16 %v536_v43, %v536_v43  ;;  %v9710_v28 = vcombine.high %v1214_v34, %v1218_v35  ;;  %v9709_v38 = vcombine.low %v1214_v34, %v1218_v35  ;;  %v1222_v41 = vld [vmem:[#allocation14 + $0x1c0] sm:$0xff]  ;;  %v1223_v43 = vld [vmem:[#allocation14 + $0x1c8] sm:$0xff] }
 0x322   :  { %v539_v45 = vpack.c.bf16 %v537_v44, %v537_v44  ;;  %v1226_v42 = vld [vmem:[#allocation14 + $0x1e0] sm:$0xff] }
 0x323   :  { %v9718_v44 = vcombine.high %v1222_v41, %v1226_v42  ;;  %v1278_v34 = vld [vmem:[#allocation14 + $0x380] sm:$0xff] }
 0x324   :  { %960 = vmatprep.mubr.bf16.mxu0 %v539_v45  ;;  %1001 = vmatprep.mubr.bf16.mxu1 %v539_v45  ;;  %v1227_v45 = vld [vmem:[#allocation14 + $0x1e8] sm:$0xff]  ;;  %v1282_v35 = vld [vmem:[#allocation14 + $0x3a0] sm:$0xff] }
 0x325   :  { %961 = vmatmul.mubr.bf16.vlgmr.msra.gmra.mrb[8].mxu0 %v538_v46  ;;  %1002 = vmatmul.mubr.bf16.vlgmr.msra.gmra.mrb[0].mxu1 %v538_v46  ;;  %v9717_v46 = vcombine.low %v1222_v41, %v1226_v42  ;;  %v9719_v47 = vcombine.low %v1223_v43, %v1227_v45  ;;  %v9720_v48 = vcombine.high %v1223_v43, %v1227_v45  ;;  %v1290_v42 = vld [vmem:[#allocation14 + $0x3e0] sm:$0xff]  ;;  %v1291_v45 = vld [vmem:[#allocation14 + $0x3e8] sm:$0xff] }
 0x326   :  { %2703 = vmatpush1.bf16.msra.mxu0 %v9661_v52  ;;  %2785 = vmatpush1.bf16.msra.mxu1 %v9663_v53  ;;  %v9726_v52 = vcombine.high %v1230_v49, %v1234_v50  ;;  %v1235_v53 = vld [vmem:[#allocation14 + $0x228] sm:$0xff]  ;;  %v9774_v37 = vcombine.high %v1278_v34, %v1282_v35  ;;  %v9773_v43 = vcombine.low %v1278_v34, %v1282_v35 }
 0x327   :  { %2704 = vmatprep.subr.bf16.mxu0 %v9670_v58  ;;  %2786 = vmatprep.subr.bf16.mxu1 %v9672_v62  ;;  %v9727_v55 = vcombine.low %v1231_v51, %v1235_v53  ;;  %v9728_v56 = vcombine.high %v1231_v51, %v1235_v53  ;;  %v1242_v58 = vld [vmem:[#allocation14 + $0x260] sm:$0xff]  ;;  %v12965_v53 = vld [vmem:[#allocation14 + $0x408] sm:$0xff] }
 0x328   :  { %v9733_v62 = vcombine.low %v1238_v57, %v1242_v58  ;;  %v12961_v51 = vld [vmem:[#allocation14 + $0x400] sm:$0xff] }
 0x32a   :  { %2705 = vmatpush1.bf16.msra.mxu0 %v9669_v60  ;;  %2787 = vmatpush1.bf16.msra.mxu1 %v9671_v61  ;;  %v9734_v60 = vcombine.high %v1238_v57, %v1242_v58  ;;  %v1243_v61 = vld [vmem:[#allocation14 + $0x268] sm:$0xff] }
 0x32b   :  { %2706 = vmatprep.subr.bf16.mxu0 %v9678_v2  ;;  %2788 = vmatprep.subr.bf16.mxu1 %v9680_v6  ;;  %v9735_v63 = vcombine.low %v1239_v59, %v1243_v61  ;;  %v9736_v0 = vcombine.high %v1239_v59, %v1243_v61  ;;  %v1250_v2 = vld [vmem:[#allocation14 + $0x2a0] sm:$0xff] }
 0x32c   :  { %v9741_v6 = vcombine.low %v1246_v1, %v1250_v2 }
 0x32e   :  { %2707 = vmatpush1.bf16.msra.mxu0 %v9677_v4  ;;  %2789 = vmatpush1.bf16.msra.mxu1 %v9679_v5  ;;  %v9742_v4 = vcombine.high %v1246_v1, %v1250_v2  ;;  %v1251_v5 = vld [vmem:[#allocation14 + $0x2a8] sm:$0xff] }
 0x32f   :  { %2708 = vmatprep.subr.bf16.mxu0 %v9686_v10  ;;  %2790 = vmatprep.subr.bf16.mxu1 %v9688_v14  ;;  %v9743_v7 = vcombine.low %v1247_v3, %v1251_v5  ;;  %v9744_v8 = vcombine.high %v1247_v3, %v1251_v5  ;;  %v1258_v10 = vld [vmem:[#allocation14 + $0x2e0] sm:$0xff] }
 0x330   :  { %v9749_v14 = vcombine.low %v1254_v9, %v1258_v10 }
 0x332   :  { %2709 = vmatpush1.bf16.msra.mxu0 %v9685_v12  ;;  %2791 = vmatpush1.bf16.msra.mxu1 %v9687_v13  ;;  %v9750_v12 = vcombine.high %v1254_v9, %v1258_v10  ;;  %v1259_v13 = vld [vmem:[#allocation14 + $0x2e8] sm:$0xff] }
 0x333   :  { %2710 = vmatprep.subr.bf16.mxu0 %v9694_v18  ;;  %2792 = vmatprep.subr.bf16.mxu1 %v9696_v23  ;;  %v9751_v15 = vcombine.low %v1255_v11, %v1259_v13  ;;  %v9752_v16 = vcombine.high %v1255_v11, %v1259_v13  ;;  %v1266_v18 = vld [vmem:[#allocation14 + $0x320] sm:$0xff] }
 0x334   :  { %v9757_v23 = vcombine.low %v1262_v17, %v1266_v18 }
 0x336   :  { %2711 = vmatpush1.bf16.msra.mxu0 %v9693_v21  ;;  %2793 = vmatpush1.bf16.msra.mxu1 %v9695_v22  ;;  %v9758_v21 = vcombine.high %v1262_v17, %v1266_v18  ;;  %v1267_v22 = vld [vmem:[#allocation14 + $0x328] sm:$0xff] }
 0x337   :  { %2712 = vmatprep.subr.bf16.mxu0 %v9702_v27  ;;  %2794 = vmatprep.subr.bf16.mxu1 %v9704_v33  ;;  %v9759_v24 = vcombine.low %v1263_v19, %v1267_v22  ;;  %v9760_v25 = vcombine.high %v1263_v19, %v1267_v22  ;;  %v1274_v27 = vld [vmem:[#allocation14 + $0x360] sm:$0xff]  ;;  %v1275_v33 = vld [vmem:[#allocation14 + $0x368] sm:$0xff] }
 0x338   :  { %v9767_v36 = vcombine.low %v1271_v29, %v1275_v33 }
 0x33a   :  { %2713 = vmatpush1.bf16.msra.mxu0 %v9701_v31  ;;  %2795 = vmatpush1.bf16.msra.mxu1 %v9703_v32  ;;  %v9765_v31 = vcombine.low %v1270_v26, %v1274_v27  ;;  %v9766_v32 = vcombine.high %v1270_v26, %v1274_v27 }
 0x33b   :  { %2714 = vmatprep.subr.bf16.mxu0 %v9710_v28  ;;  %2796 = vmatprep.subr.bf16.mxu1 %v9712_v40  ;;  %v9768_v28 = vcombine.high %v1271_v29, %v1275_v33  ;;  %v1286_v40 = vld [vmem:[#allocation14 + $0x3c0] sm:$0xff] }
 0x33c   :  { %v9781_v49 = vcombine.low %v1286_v40, %v1290_v42 }
 0x33e   :  { %2715 = vmatpush1.bf16.msra.mxu0 %v9709_v38  ;;  %2797 = vmatpush1.bf16.msra.mxu1 %v9711_v39  ;;  %v1279_v38 = vld [vmem:[#allocation14 + $0x388] sm:$0xff] }
 0x33f   :  { %2716 = vmatprep.subr.bf16.mxu0 %v9718_v44  ;;  %2798 = vmatprep.subr.bf16.mxu1 %v9720_v48  ;;  %v1283_v39 = vld [vmem:[#allocation14 + $0x3a8] sm:$0xff] }
 0x340   :  { %v9776_v41 = vcombine.high %v1279_v38, %v1283_v39  ;;  %v1287_v44 = vld [vmem:[#allocation14 + $0x3c8] sm:$0xff] }
 0x341   :  { %v9784_v48 = vcombine.high %v1287_v44, %v1291_v45  ;;  %v9783_v50 = vcombine.low %v1287_v44, %v1291_v45 }
 0x342   :  { %2717 = vmatpush1.bf16.msra.mxu0 %v9717_v46  ;;  %2799 = vmatpush1.bf16.msra.mxu1 %v9719_v47  ;;  %v9782_v46 = vcombine.high %v1286_v40, %v1290_v42  ;;  %v9775_v47 = vcombine.low %v1279_v38, %v1283_v39 }
 0x343   :  { %2718 = vmatprep.subr.bf16.mxu0 %v9726_v52  ;;  %2800 = vmatprep.subr.bf16.mxu1 %v9728_v56  ;;  %v12963_v52 = vld [vmem:[#allocation14 + $0x420] sm:$0xff] }
 0x344   :  { %v9789_v56 = vcombine.low %v12961_v51, %v12963_v52 }
 0x346   :  { %2719 = vmatpush1.bf16.msra.mxu0 %v9725_v54  ;;  %2801 = vmatpush1.bf16.msra.mxu1 %v9727_v55  ;;  %v9790_v54 = vcombine.high %v12961_v51, %v12963_v52  ;;  %v12969_v55 = vld [vmem:[#allocation14 + $0x428] sm:$0xff] }
 0x347   :  { %2720 = vmatprep.subr.bf16.mxu0 %v9734_v60  ;;  %2802 = vmatprep.subr.bf16.mxu1 %v9736_v0  ;;  %v9791_v57 = vcombine.low %v12965_v53, %v12969_v55  ;;  %v9792_v58 = vcombine.high %v12965_v53, %v12969_v55 }
 0x34a   :  { %2721 = vmatpush1.bf16.msra.mxu0 %v9733_v62  ;;  %2803 = vmatpush1.bf16.msra.mxu1 %v9735_v63 }
 0x34b   :  { %2722 = vmatprep.subr.bf16.mxu0 %v9742_v4  ;;  %2804 = vmatprep.subr.bf16.mxu1 %v9744_v8 }
 0x34e   :  { %2723 = vmatpush1.bf16.msra.mxu0 %v9741_v6  ;;  %2805 = vmatpush1.bf16.msra.mxu1 %v9743_v7 }
 0x34f   :  { %2724 = vmatprep.subr.bf16.mxu0 %v9750_v12  ;;  %2806 = vmatprep.subr.bf16.mxu1 %v9752_v16 }
 0x352   :  { %2725 = vmatpush1.bf16.msra.mxu0 %v9749_v14  ;;  %2807 = vmatpush1.bf16.msra.mxu1 %v9751_v15 }
 0x353   :  { %2726 = vmatprep.subr.bf16.mxu0 %v9758_v21  ;;  %2808 = vmatprep.subr.bf16.mxu1 %v9760_v25 }
 0x356   :  { %2727 = vmatpush1.bf16.msra.mxu0 %v9757_v23  ;;  %2809 = vmatpush1.bf16.msra.mxu1 %v9759_v24 }
 0x357   :  { %2728 = vmatprep.subr.bf16.mxu0 %v9766_v32  ;;  %2810 = vmatprep.subr.bf16.mxu1 %v9768_v28 }
 0x35a   :  { %2729 = vmatpush1.bf16.msra.mxu0 %v9765_v31  ;;  %2811 = vmatpush1.bf16.msra.mxu1 %v9767_v36 }
 0x35b   :  { %2730 = vmatprep.subr.bf16.mxu0 %v9774_v37  ;;  %2812 = vmatprep.subr.bf16.mxu1 %v9776_v41 }
 0x35e   :  { %2731 = vmatpush1.bf16.msra.mxu0 %v9773_v43  ;;  %2813 = vmatpush1.bf16.msra.mxu1 %v9775_v47 }
 0x35f   :  { %2732 = vmatprep.subr.bf16.mxu0 %v9782_v46  ;;  %2814 = vmatprep.subr.bf16.mxu1 %v9784_v48 }
 0x362   :  { %2733 = vmatpush1.bf16.msra.mxu0 %v9781_v49  ;;  %2815 = vmatpush1.bf16.msra.mxu1 %v9783_v50 }
 0x363   :  { %2743 = vmatprep.subr.bf16.mxu0 %v9790_v54  ;;  %2825 = vmatprep.subr.bf16.mxu1 %v9792_v58 }
 0x3f8   :  { %v962_v59 = vpop.f32.mrb[8].mxu0  ;;  %v12977_v60 = vpop.f32.mrb[0].mxu1 }
 0x3f9   :  { %v1010_v61 = vrot.slane %v962_v59, 4  ;;  %v964_v62 = vpop.f32.mrb[9].mxu0  ;;  %v1005_v63 = vpop.f32.mrb[1].mxu1  ;;  %v1022_v26 = vrot.slane %v12977_v60, 4 }
 0x3fa   :  { %v1016_v0 = vrot.slane %v964_v62, 4  ;;  %v1028_v1 = vrot.slane %v1005_v63, 4  ;;  %v966_v2 = vpop.f32.mrb[10].mxu0  ;;  %v1007_v3 = vpop.f32.mrb[2].mxu1 }
 0x3fb   :  { %v1011_v4 = vadd.f32 %v1010_v61, %v962_v59  ;;  %v967_v5 = vpop.f32.mrb[11].mxu0  ;;  %v1008_v6 = vpop.f32.mrb[3].mxu1  ;;  %v1023_v35 = vadd.f32 %v1022_v26, %v12977_v60 }
 0x3fc   :  { %v1017_v7 = vadd.f32 %v1016_v0, %v964_v62  ;;  %v1029_v8 = vadd.f32 %v1028_v1, %v1005_v63  ;;  %v540_v6 = vld [vmem:[#allocation13] sm:$0xff] }
 0x3fd   :  { %v1012_v9 = vrot.slane %v1011_v4, 2  ;;  %v1024_v41 = vrot.slane %v1023_v35, 2 }
 0x3fe   :  { %v1018_v10 = vrot.slane %v1017_v7, 2  ;;  %v1030_v11 = vrot.slane %v1029_v8, 2 }
 0x3ff   :  { %v1013_v12 = vadd.f32 %v1012_v9, %v1011_v4  ;;  %v1025_v48 = vadd.f32 %v1024_v41, %v1023_v35 }
 0x400   :  { %v1019_v13 = vadd.f32 %v1018_v10, %v1017_v7  ;;  %v1031_v14 = vadd.f32 %v1030_v11, %v1029_v8  ;;  %v541_v7 = vld [vmem:[#allocation13 + $0x8] sm:$0xff]  ;;  %v1089_v8 = vrot.slane %v540_v6, %v12951_v30  ;;  %v543_v10 = vld [vmem:[#allocation13 + $0x18] sm:$0xff] }
 0x401   :  { %v1014_v15 = vrot.slane %v1013_v12, 1 }
 0x402   :  { %v1020_v16 = vrot.slane %v1019_v13, 1  ;;  %v1032_v17 = vrot.slane %v1031_v14, 1 }
 0x403   :  { %v1015_v18 = vadd.f32 %v1014_v15, %v1013_v12 }
 0x404   :  { %v1021_v19 = vadd.f32 %v1020_v16, %v1019_v13  ;;  %v1033_v21 = vadd.f32 %v1032_v17, %v1031_v14  ;;  %v1109_v13 = vrot.slane %v540_v6, %v12955_v20  ;;  %v1093_v14 = vrot.slane %v541_v7, %v12951_v30  ;;  %v1311_v6 = vld [vmem:[#allocation14 + $0x488] sm:$0xff] }
 0x405   :  { %v1034_v22 = vmul.f32 0.125, %v1015_v18  ;;  %v1101_v16 = vrot.slane %v543_v10, %v12951_v30 }
 0x406   :  { %v1035_v23 = vmul.f32 0.125, %v1021_v19  ;;  %v1037_v24 = vmul.f32 0.125, %v1033_v21 }
 0x407   :  { %v1038_v25 = vsub.f32 %v962_v59, %v1034_v22  ;;  %v1113_v22 = vrot.slane %v541_v7, %v12955_v20  ;;  %v1315_v7 = vld [vmem:[#allocation14 + $0x4a8] sm:$0xff] }
 0x408   :  { %v1039_v27 = vsub.f32 %v964_v62, %v1035_v23  ;;  %v1041_v29 = vsub.f32 %v1005_v63, %v1037_v24  ;;  %v1026_v62 = vrot.slane %v1025_v48, 1  ;;  %v1121_v23 = vrot.slane %v543_v10, %v12955_v20 }
 0x409   :  { %v1042_v31 = vmul.f32 %v1038_v25, %v1038_v25  ;;  %v9807_v52 = vcombine.low %v1311_v6, %v1315_v7 }
 0x40a   :  { %v1043_v32 = vmul.f32 %v1039_v27, %v1039_v27  ;;  %v1045_v33 = vmul.f32 %v1041_v29, %v1041_v29  ;;  %v1027_v4 = vadd.f32 %v1026_v62, %v1025_v48  ;;  %v1303_v62 = vld [vmem:[#allocation14 + $0x448] sm:$0xff] }
 0x40b   :  { %v1046_v34 = vrot.slane %v1042_v31, 4 }
 0x40c   :  { %v1052_v36 = vrot.slane %v1043_v32, 4  ;;  %v1064_v28 = vrot.slane %v1045_v33, 4  ;;  %v1036_v5 = vmul.f32 0.125, %v1027_v4 }
 0x40d   :  { %v1047_v37 = vadd.f32 %v1046_v34, %v1042_v31 }
 0x40e   :  { %v1053_v38 = vadd.f32 %v1052_v36, %v1043_v32  ;;  %v1065_v39 = vadd.f32 %v1064_v28, %v1045_v33  ;;  %v12983_v9 = vsub.f32 %v12977_v60, %v1036_v5  ;;  %v1314_v5 = vld [vmem:[#allocation14 + $0x4a0] sm:$0xff] }
 0x40f   :  { %v1048_v40 = vrot.slane %v1047_v37, 2 }
 0x410   :  { %v1054_v42 = vrot.slane %v1053_v38, 2  ;;  %v1066_v43 = vrot.slane %v1065_v39, 2  ;;  %v1044_v19 = vmul.f32 %v12983_v9, %v12983_v9 }
 0x411   :  { %v1049_v44 = vadd.f32 %v1048_v40, %v1047_v37 }
 0x412   :  { %v1055_v45 = vadd.f32 %v1054_v42, %v1053_v38  ;;  %v1067_v46 = vadd.f32 %v1066_v43, %v1065_v39  ;;  %v1058_v32 = vrot.slane %v1044_v19, 4 }
 0x413   :  { %v1050_v47 = vrot.slane %v1049_v44, 1 }
 0x414   :  { %v1056_v49 = vrot.slane %v1055_v45, 1  ;;  %v1068_v50 = vrot.slane %v1067_v46, 1  ;;  %v1059_v28 = vadd.f32 %v1058_v32, %v1044_v19  ;;  %v1331_v19 = vld [vmem:[#allocation14 + $0x528] sm:$0xff] }
 0x415   :  { %v1051_v54 = vadd.f32 %v1050_v47, %v1049_v44  ;;  %v1335_v32 = vld [vmem:[#allocation14 + $0x548] sm:$0xff] }
 0x416   :  { %v1057_v58 = vadd.f32 %v1056_v49, %v1055_v45  ;;  %v1069_v59 = vadd.f32 %v1068_v50, %v1067_v46  ;;  %v1060_v37 = vrot.slane %v1059_v28, 2 }
 0x417   :  { %v1070_v61 = vmul.f32 0.125, %v1051_v54 }
 0x418   :  { %v1071_v63 = vmul.f32 0.125, %v1057_v58  ;;  %v1073_v0 = vmul.f32 0.125, %v1069_v59  ;;  %v1061_v38 = vadd.f32 %v1060_v37, %v1059_v28  ;;  %v1302_v58 = vld [vmem:[#allocation14 + $0x440] sm:$0xff] }
 0x419   :  { %v1074_v1 = vadd.f32 0.8, %v1070_v61  ;;  %v1306_v61 = vld [vmem:[#allocation14 + $0x460] sm:$0xff] }
 0x41a   :  { %v1075_v2 = vadd.f32 0.8, %v1071_v63  ;;  %v1077_v3 = vadd.f32 0.8, %v1073_v0  ;;  %v1062_v42 = vrot.slane %v1061_v38, 1  ;;  %v1307_v63 = vld [vmem:[#allocation14 + $0x468] sm:$0xff]  ;;  %v9797_v10 = vcombine.low %v1302_v58, %v1306_v61 }
 0x41b   :  { %12229 = vrsqrt.f32 %v1074_v1  ;;  %v9800_v4 = vcombine.high %v1303_v62, %v1307_v63 }
 0x41c   :  { %12231 = vrsqrt.f32 %v1075_v2  ;;  %v1063_v44 = vadd.f32 %v1062_v42, %v1061_v38  ;;  %v1310_v2 = vld [vmem:[#allocation14 + $0x480] sm:$0xff] }
 0x41d   :  { %12233 = vrsqrt.f32 %v1077_v3  ;;  %v9798_v3 = vcombine.high %v1302_v58, %v1306_v61  ;;  %v9805_v51 = vcombine.low %v1310_v2, %v1314_v5  ;;  %v1342_v38 = vld [vmem:[#allocation14 + $0x580] sm:$0xff] }
 0x41e   :  { %v1072_v45 = vmul.f32 0.125, %v1063_v44 }
 0x420   :  { %v1076_v50 = vadd.f32 0.8, %v1072_v45 }
 0x425   :  { %v12230_v11 = vpop.eup %12229 }
 0x426   :  { %v1082_v12 = vmul.f32 %v12230_v11, %v1038_v25  ;;  %v12232_v15 = vpop.eup %12231  ;;  %v9799_v11 = vcombine.low %v1303_v62, %v1307_v63  ;;  %v1358_v62 = vld [vmem:[#allocation14 + $0x600] sm:$0xff] }
 0x427   :  { %v12234_v17 = vpop.eup %12233  ;;  %v1083_v21 = vmul.f32 %v12232_v15, %v1039_v27  ;;  %v1322_v15 = vld [vmem:[#allocation14 + $0x4e0] sm:$0xff] }
 0x428   :  { %v1102_v18 = vmul.f32 %v1089_v8, %v1082_v12  ;;  %v1085_v60 = vmul.f32 %v12234_v17, %v1041_v29  ;;  %v9806_v12 = vcombine.high %v1310_v2, %v1314_v5  ;;  %v1323_v17 = vld [vmem:[#allocation14 + $0x4e8] sm:$0xff]  ;;  %v1362_v63 = vld [vmem:[#allocation14 + $0x620] sm:$0xff] }
 0x429   :  { %v1103_v25 = vmul.f32 %v1093_v14, %v1083_v21  ;;  %v1318_v14 = vld [vmem:[#allocation14 + $0x4c0] sm:$0xff]  ;;  %v1359_v2 = vld [vmem:[#allocation14 + $0x608] sm:$0xff] }
 0x42a   :  { %v1122_v24 = vadd.f32 %v1109_v13, %v1102_v18  ;;  %v1105_v26 = vmul.f32 %v1101_v16, %v1085_v60  ;;  %v9808_v13 = vcombine.high %v1311_v6, %v1315_v7  ;;  %v1319_v16 = vld [vmem:[#allocation14 + $0x4c8] sm:$0xff]  ;;  %v9814_v53 = vcombine.high %v1318_v14, %v1322_v15 }
 0x42b   :  { %v1123_v33 = vadd.f32 %v1113_v22, %v1103_v25  ;;  %v9816_v55 = vcombine.high %v1319_v16, %v1323_v17  ;;  %v1327_v18 = vld [vmem:[#allocation14 + $0x508] sm:$0xff]  ;;  %v542_v22 = vld [vmem:[#allocation13 + $0x10] sm:$0xff]  ;;  %v9813_v60 = vcombine.low %v1318_v14, %v1322_v15  ;;  %v9854_v7 = vcombine.high %v1358_v62, %v1362_v63 }
 0x42c   :  { %v9657_v31 = vmul.f32 -1.442695, %v1122_v24  ;;  %v1125_v34 = vadd.f32 %v1121_v23, %v1105_v26  ;;  %v9815_v23 = vcombine.low %v1319_v16, %v1323_v17  ;;  %v9824_v25 = vcombine.high %v1327_v18, %v1331_v19  ;;  %v1334_v26 = vld [vmem:[#allocation14 + $0x540] sm:$0xff]  ;;  %v1371_v14 = vld [vmem:[#allocation14 + $0x668] sm:$0xff] }
 0x42d   :  { %v9658_v35 = vmul.f32 -1.442695, %v1123_v33  ;;  %v9823_v28 = vcombine.low %v1327_v18, %v1331_v19  ;;  %v1117_v42 = vrot.slane %v542_v22, %v12955_v20  ;;  %v9853_v15 = vcombine.low %v1358_v62, %v1362_v63  ;;  %v1414_v63 = vld [vmem:[#allocation14 + $0x7c0] sm:$0xff] }
 0x42e   :  { %12235 = vpow2.f32 %v9657_v31  ;;  %v9660_v36 = vmul.f32 -1.442695, %v1125_v34  ;;  %v1338_v31 = vld [vmem:[#allocation14 + $0x560] sm:$0xff] }
 0x42f   :  { %12237 = vpow2.f32 %v9658_v35  ;;  %v1097_v35 = vrot.slane %v542_v22, %v12951_v30  ;;  %v9830_v37 = vcombine.high %v1334_v26, %v1338_v31  ;;  %v1382_v22 = vld [vmem:[#allocation14 + $0x6c0] sm:$0xff] }
 0x430   :  { %12239 = vpow2.f32 %v9660_v36 }
 0x438   :  { %v12236_v27 = vpop.eup %12235 }
 0x439   :  { %v1138_v39 = vadd.f32 1.0, %v12236_v27  ;;  %v12238_v29 = vpop.eup %12237 }
 0x43a   :  { %v12240_v40 = vpop.eup %12239  ;;  %v1139_v41 = vadd.f32 1.0, %v12238_v29  ;;  %v1343_v29 = vld [vmem:[#allocation14 + $0x588] sm:$0xff] }
 0x43b   :  { %12241 = vrcp.f32 %v1138_v39  ;;  %v1141_v43 = vadd.f32 1.0, %v12240_v40  ;;  %v1346_v39 = vld [vmem:[#allocation14 + $0x5a0] sm:$0xff]  ;;  %v1347_v40 = vld [vmem:[#allocation14 + $0x5a8] sm:$0xff] }
 0x43c   :  { %12243 = vrcp.f32 %v1139_v41  ;;  %v9838_v44 = vcombine.high %v1342_v38, %v1346_v39  ;;  %v9840_v45 = vcombine.high %v1343_v29, %v1347_v40  ;;  %v9839_v58 = vcombine.low %v1343_v29, %v1347_v40  ;;  %v1398_v40 = vld [vmem:[#allocation14 + $0x740] sm:$0xff] }
 0x43d   :  { %12245 = vrcp.f32 %v1141_v43 }
 0x43e   :  { %12247 = vrsqrt.f32 %v1076_v50 }
 0x445   :  { %v12242_v46 = vpop.eup %12241 }
 0x446   :  { %v12244_v47 = vpop.eup %12243  ;;  %v1150_v48 = vmul.f32 %v12242_v46, %v1122_v24  ;;  %v1350_v46 = vld [vmem:[#allocation14 + $0x5c0] sm:$0xff] }
 0x447   :  { %v12246_v49 = vpop.eup %12245  ;;  %v1151_v54 = vmul.f32 %v12244_v47, %v1123_v33  ;;  %v1339_v33 = vld [vmem:[#allocation14 + $0x568] sm:$0xff]  ;;  %v1354_v47 = vld [vmem:[#allocation14 + $0x5e0] sm:$0xff] }
 0x448   :  { %v1153_v59 = vmul.f32 %v12246_v49, %v1125_v34  ;;  %v12994_v1 = vpack.c.bf16 %v1150_v48, %v1150_v48  ;;  %v12248_v21 = vpop.eup %12247  ;;  %v9832_v27 = vcombine.high %v1335_v32, %v1339_v33  ;;  %v9831_v43 = vcombine.low %v1335_v32, %v1339_v33  ;;  %v1351_v48 = vld [vmem:[#allocation14 + $0x5c8] sm:$0xff] }
 0x449   :  { %v12992_v0 = vpack.c.bf16 %v1151_v54, %v1151_v54  ;;  %v1084_v34 = vmul.f32 %v12248_v21, %v12983_v9  ;;  %v9829_v9 = vcombine.low %v1334_v26, %v1338_v31  ;;  %v1355_v49 = vld [vmem:[#allocation14 + $0x5e8] sm:$0xff]  ;;  %v9837_v54 = vcombine.low %v1342_v38, %v1346_v39 }
 0x44a   :  { %v13000_v8 = vpack.c.bf16 %v1153_v59, %v1153_v59  ;;  %v9846_v59 = vcombine.high %v1350_v46, %v1354_v47  ;;  %v9848_v61 = vcombine.high %v1351_v48, %v1355_v49  ;;  %v9845_v5 = vcombine.low %v1350_v46, %v1354_v47  ;;  %v1406_v47 = vld [vmem:[#allocation14 + $0x780] sm:$0xff] }
 0x44b   :  { %2734 = vmatprep.mubr.bf16.mxu0 %v12992_v0  ;;  %2816 = vmatprep.mubr.bf16.mxu1 %v12992_v0  ;;  %v1104_v41 = vmul.f32 %v1097_v35, %v1084_v34  ;;  %v9847_v6 = vcombine.low %v1351_v48, %v1355_v49  ;;  %v1390_v34 = vld [vmem:[#allocation14 + $0x700] sm:$0xff]  ;;  %v1407_v49 = vld [vmem:[#allocation14 + $0x788] sm:$0xff] }
 0x44c   :  { %2735 = vmatmul.mubr.bf16.vlgmr.msra.gmra.mrb[12].mxu0 %v12994_v1  ;;  %2817 = vmatmul.mubr.bf16.vlgmr.msra.gmra.mrb[4].mxu1 %v12994_v1  ;;  %v1394_v35 = vld [vmem:[#allocation14 + $0x720] sm:$0xff] }
 0x44d   :  { %2744 = vmatpush1.bf16.msra.mxu0 %v9789_v56  ;;  %2826 = vmatpush1.bf16.msra.mxu1 %v9791_v57  ;;  %v1326_v56 = vld [vmem:[#allocation14 + $0x500] sm:$0xff]  ;;  %v13013_v50 = vadd.f32 %v1117_v42, %v1104_v41  ;;  %v9886_v39 = vcombine.high %v1390_v34, %v1394_v35  ;;  %v1399_v42 = vld [vmem:[#allocation14 + $0x748] sm:$0xff] }
 0x44e   :  { %2775 = vmatprep.mubr.bf16.mxu0 %v13000_v8  ;;  %2857 = vmatprep.mubr.bf16.mxu1 %v13000_v8  ;;  %v1330_v57 = vld [vmem:[#allocation14 + $0x520] sm:$0xff] }
 0x44f   :  { %2745 = vmatprep.subr.bf16.mxu0 %v9798_v3  ;;  %2827 = vmatprep.subr.bf16.mxu1 %v9800_v4  ;;  %v9822_v24 = vcombine.high %v1326_v56, %v1330_v57  ;;  %v9821_v36 = vcombine.low %v1326_v56, %v1330_v57  ;;  %v1363_v3 = vld [vmem:[#allocation14 + $0x628] sm:$0xff]  ;;  %v9659_v4 = vmul.f32 -1.442695, %v13013_v50  ;;  %v1402_v41 = vld [vmem:[#allocation14 + $0x760] sm:$0xff] }
 0x450   :  { %v9855_v16 = vcombine.low %v1359_v2, %v1363_v3  ;;  %v1379_v56 = vld [vmem:[#allocation14 + $0x6a8] sm:$0xff]  ;;  %v1410_v48 = vld [vmem:[#allocation14 + $0x7a0] sm:$0xff] }
 0x451   :  { %2746 = vmatpush1.bf16.msra.mxu0 %v9797_v10  ;;  %2828 = vmatpush1.bf16.msra.mxu1 %v9799_v11  ;;  %v9856_v10 = vcombine.high %v1359_v2, %v1363_v3  ;;  %v1366_v11 = vld [vmem:[#allocation14 + $0x640] sm:$0xff]  ;;  %12249 = vpow2.f32 %v9659_v4  ;;  %v1415_v3 = vld [vmem:[#allocation14 + $0x7c8] sm:$0xff] }
 0x452   :  { %2747 = vmatprep.subr.bf16.mxu0 %v9806_v12  ;;  %2829 = vmatprep.subr.bf16.mxu1 %v9808_v13  ;;  %v1370_v12 = vld [vmem:[#allocation14 + $0x660] sm:$0xff]  ;;  %v1367_v13 = vld [vmem:[#allocation14 + $0x648] sm:$0xff] }
 0x453   :  { %v9862_v17 = vcombine.high %v1366_v11, %v1370_v12  ;;  %v9861_v57 = vcombine.low %v1366_v11, %v1370_v12  ;;  %v9863_v18 = vcombine.low %v1367_v13, %v1371_v14  ;;  %v1418_v2 = vld [vmem:[#allocation14 + $0x7e0] sm:$0xff]  ;;  %v1419_v4 = vld [vmem:[#allocation14 + $0x7e8] sm:$0xff]  ;;  %v1168_v11 = vld [vmem:[#allocation14 + $0x10] sm:$0xff] }
 0x455   :  { %2748 = vmatpush1.bf16.msra.mxu0 %v9805_v51  ;;  %2830 = vmatpush1.bf16.msra.mxu1 %v9807_v52  ;;  %v9864_v51 = vcombine.high %v1367_v13, %v1371_v14  ;;  %v1374_v52 = vld [vmem:[#allocation14 + $0x680] sm:$0xff]  ;;  %v1172_v13 = vld [vmem:[#allocation14 + $0x30] sm:$0xff]  ;;  %v1169_v14 = vld [vmem:[#allocation14 + $0x18] sm:$0xff] }
 0x456   :  { %2749 = vmatprep.subr.bf16.mxu0 %v9814_v53  ;;  %2831 = vmatprep.subr.bf16.mxu1 %v9816_v55  ;;  %v1378_v53 = vld [vmem:[#allocation14 + $0x6a0] sm:$0xff]  ;;  %v1375_v55 = vld [vmem:[#allocation14 + $0x688] sm:$0xff] }
 0x457   :  { %v9870_v19 = vcombine.high %v1374_v52, %v1378_v53  ;;  %v9872_v21 = vcombine.high %v1375_v55, %v1379_v56  ;;  %v9871_v26 = vcombine.low %v1375_v55, %v1379_v56  ;;  %v1176_v55 = vld [vmem:[#allocation14 + $0x50] sm:$0xff] }
 0x458   :  { %v1180_v56 = vld [vmem:[#allocation14 + $0x70] sm:$0xff] }
 0x459   :  { %2750 = vmatpush1.bf16.msra.mxu0 %v9813_v60  ;;  %2832 = vmatpush1.bf16.msra.mxu1 %v9815_v23  ;;  %v1386_v60 = vld [vmem:[#allocation14 + $0x6e0] sm:$0xff]  ;;  %v1383_v23 = vld [vmem:[#allocation14 + $0x6c8] sm:$0xff] }
 0x45a   :  { %2751 = vmatprep.subr.bf16.mxu0 %v9822_v24  ;;  %2833 = vmatprep.subr.bf16.mxu1 %v9824_v25  ;;  %v1387_v24 = vld [vmem:[#allocation14 + $0x6e8] sm:$0xff]  ;;  %v9869_v25 = vcombine.low %v1374_v52, %v1378_v53  ;;  %v9878_v32 = vcombine.high %v1382_v22, %v1386_v60  ;;  %v9666_v52 = vcombine.high %v1168_v11, %v1172_v13 }
 0x45b   :  { %v12250_v31 = vpop.eup %12249  ;;  %v9880_v33 = vcombine.high %v1383_v23, %v1387_v24  ;;  %v9879_v38 = vcombine.low %v1383_v23, %v1387_v24  ;;  %v1184_v24 = vld [vmem:[#allocation14 + $0x90] sm:$0xff] }
 0x45d   :  { %2752 = vmatpush1.bf16.msra.mxu0 %v9821_v36  ;;  %2834 = vmatpush1.bf16.msra.mxu1 %v9823_v28  ;;  %v1391_v36 = vld [vmem:[#allocation14 + $0x708] sm:$0xff] }
 0x45e   :  { %2753 = vmatprep.subr.bf16.mxu0 %v9830_v37  ;;  %2835 = vmatprep.subr.bf16.mxu1 %v9832_v27  ;;  %v1395_v28 = vld [vmem:[#allocation14 + $0x728] sm:$0xff]  ;;  %v1140_v37 = vadd.f32 1.0, %v12250_v31  ;;  %v9877_v27 = vcombine.low %v1382_v22, %v1386_v60  ;;  %v9674_v60 = vcombine.high %v1176_v55, %v1180_v56  ;;  %v9673_v31 = vcombine.low %v1176_v55, %v1180_v56  ;;  %v1237_v55 = vld [vmem:[#allocation14 + $0x238] sm:$0xff] }
 0x45f   :  { %v9888_v29 = vcombine.high %v1391_v36, %v1395_v28 }
 0x460   :  { %12251 = vrcp.f32 %v1140_v37  ;;  %v1197_v37 = vld [vmem:[#allocation14 + $0xf8] sm:$0xff] }
 0x461   :  { %2754 = vmatpush1.bf16.msra.mxu0 %v9829_v9  ;;  %2836 = vmatpush1.bf16.msra.mxu1 %v9831_v43  ;;  %v1403_v9 = vld [vmem:[#allocation14 + $0x768] sm:$0xff]  ;;  %v9885_v43 = vcombine.low %v1390_v34, %v1394_v35  ;;  %v1192_v35 = vld [vmem:[#allocation14 + $0xd0] sm:$0xff] }
 0x462   :  { %2755 = vmatprep.subr.bf16.mxu0 %v9838_v44  ;;  %2837 = vmatprep.subr.bf16.mxu1 %v9840_v45  ;;  %v9887_v44 = vcombine.low %v1391_v36, %v1395_v28  ;;  %v9894_v45 = vcombine.high %v1398_v40, %v1402_v41  ;;  %v9896_v46 = vcombine.high %v1399_v42, %v1403_v9  ;;  %v1196_v36 = vld [vmem:[#allocation14 + $0xf0] sm:$0xff]  ;;  %v1193_v28 = vld [vmem:[#allocation14 + $0xd8] sm:$0xff] }
 0x465   :  { %2756 = vmatpush1.bf16.msra.mxu0 %v9837_v54  ;;  %2838 = vmatpush1.bf16.msra.mxu1 %v9839_v58  ;;  %v1411_v54 = vld [vmem:[#allocation14 + $0x7a8] sm:$0xff]  ;;  %v9893_v58 = vcombine.low %v1398_v40, %v1402_v41  ;;  %v1200_v40 = vld [vmem:[#allocation14 + $0x110] sm:$0xff] }
 0x466   :  { %2757 = vmatprep.subr.bf16.mxu0 %v9846_v59  ;;  %2839 = vmatprep.subr.bf16.mxu1 %v9848_v61  ;;  %v9895_v59 = vcombine.low %v1399_v42, %v1403_v9  ;;  %v9902_v61 = vcombine.high %v1406_v47, %v1410_v48  ;;  %v9904_v62 = vcombine.high %v1407_v49, %v1411_v54  ;;  %v1204_v41 = vld [vmem:[#allocation14 + $0x130] sm:$0xff]  ;;  %v1205_v42 = vld [vmem:[#allocation14 + $0x138] sm:$0xff] }
 0x467   :  { %v9689_v9 = vcombine.low %v1192_v35, %v1196_v36 }
 0x469   :  { %2758 = vmatpush1.bf16.msra.mxu0 %v9845_v5  ;;  %2840 = vmatpush1.bf16.msra.mxu1 %v9847_v6  ;;  %v9901_v5 = vcombine.low %v1406_v47, %v1410_v48  ;;  %v9903_v6 = vcombine.low %v1407_v49, %v1411_v54  ;;  %v1212_v47 = vld [vmem:[#allocation14 + $0x170] sm:$0xff]  ;;  %v1209_v48 = vld [vmem:[#allocation14 + $0x158] sm:$0xff]  ;;  %v9697_v54 = vcombine.low %v1200_v40, %v1204_v41 }
 0x46a   :  { %2759 = vmatprep.subr.bf16.mxu0 %v9854_v7  ;;  %2841 = vmatprep.subr.bf16.mxu1 %v9856_v10  ;;  %v9910_v7 = vcombine.high %v1414_v63, %v1418_v2  ;;  %v9912_v10 = vcombine.high %v1415_v3, %v1419_v4  ;;  %v12252_v12 = vpop.eup %12251  ;;  %v1213_v49 = vld [vmem:[#allocation14 + $0x178] sm:$0xff] }
 0x46d   :  { %2760 = vmatpush1.bf16.msra.mxu0 %v9853_v15  ;;  %2842 = vmatpush1.bf16.msra.mxu1 %v9855_v16  ;;  %v1173_v15 = vld [vmem:[#allocation14 + $0x38] sm:$0xff]  ;;  %v9909_v16 = vcombine.low %v1414_v63, %v1418_v2  ;;  %v1220_v63 = vld [vmem:[#allocation14 + $0x1b0] sm:$0xff] }
 0x46e   :  { %2761 = vmatprep.subr.bf16.mxu0 %v9862_v17  ;;  %2843 = vmatprep.subr.bf16.mxu1 %v9864_v51  ;;  %v9911_v17 = vcombine.low %v1415_v3, %v1419_v4  ;;  %v1152_v51 = vmul.f32 %v12252_v12, %v13013_v50  ;;  %v9668_v53 = vcombine.high %v1169_v14, %v1173_v15  ;;  %v1185_v50 = vld [vmem:[#allocation14 + $0x98] sm:$0xff] }
 0x46f   :  { %v9667_v22 = vcombine.low %v1169_v14, %v1173_v15  ;;  %v1217_v2 = vld [vmem:[#allocation14 + $0x198] sm:$0xff] }
 0x470   :  { %v1221_v3 = vld [vmem:[#allocation14 + $0x1b8] sm:$0xff] }
 0x471   :  { %2762 = vmatpush1.bf16.msra.mxu0 %v9861_v57  ;;  %2844 = vmatpush1.bf16.msra.mxu1 %v9863_v18  ;;  %v1177_v57 = vld [vmem:[#allocation14 + $0x58] sm:$0xff]  ;;  %v9715_v15 = vcombine.low %v1217_v2, %v1221_v3 }
 0x472   :  { %2763 = vmatprep.subr.bf16.mxu0 %v9870_v19  ;;  %2845 = vmatprep.subr.bf16.mxu1 %v9872_v21  ;;  %v1181_v18 = vld [vmem:[#allocation14 + $0x78] sm:$0xff]  ;;  %v9665_v19 = vcombine.low %v1168_v11, %v1172_v13  ;;  %v13017_v21 = vpack.c.bf16 %v1152_v51, %v1152_v51  ;;  %v1228_v11 = vld [vmem:[#allocation14 + $0x1f0] sm:$0xff] }
 0x473   :  { %v9676_v23 = vcombine.high %v1177_v57, %v1181_v18  ;;  %v1225_v12 = vld [vmem:[#allocation14 + $0x1d8] sm:$0xff]  ;;  %v1232_v51 = vld [vmem:[#allocation14 + $0x210] sm:$0xff] }
 0x474   :  { %v1229_v13 = vld [vmem:[#allocation14 + $0x1f8] sm:$0xff] }
 0x475   :  { %2764 = vmatpush1.bf16.msra.mxu0 %v9869_v25  ;;  %2846 = vmatpush1.bf16.msra.mxu1 %v9871_v26  ;;  %v1188_v25 = vld [vmem:[#allocation14 + $0xb0] sm:$0xff]  ;;  %v1189_v26 = vld [vmem:[#allocation14 + $0xb8] sm:$0xff] }
 0x476   :  { %2765 = vmatprep.subr.bf16.mxu0 %v9878_v32  ;;  %2847 = vmatprep.subr.bf16.mxu1 %v9880_v33  ;;  %v9675_v32 = vcombine.low %v1177_v57, %v1181_v18  ;;  %v9682_v33 = vcombine.high %v1184_v24, %v1188_v25  ;;  %v9684_v34 = vcombine.high %v1185_v50, %v1189_v26 }
 0x477   :  { %v9723_v57 = vcombine.low %v1225_v12, %v1229_v13 }
 0x479   :  { %2766 = vmatpush1.bf16.msra.mxu0 %v9877_v27  ;;  %2848 = vmatpush1.bf16.msra.mxu1 %v9879_v38  ;;  %v9681_v27 = vcombine.low %v1184_v24, %v1188_v25  ;;  %v9683_v38 = vcombine.low %v1185_v50, %v1189_v26  ;;  %v1245_v24 = vld [vmem:[#allocation14 + $0x278] sm:$0xff] }
 0x47a   :  { %2767 = vmatprep.subr.bf16.mxu0 %v9886_v39  ;;  %2849 = vmatprep.subr.bf16.mxu1 %v9888_v29  ;;  %v9690_v39 = vcombine.high %v1192_v35, %v1196_v36  ;;  %v9692_v29 = vcombine.high %v1193_v28, %v1197_v37  ;;  %v1253_v35 = vld [vmem:[#allocation14 + $0x2b8] sm:$0xff] }
 0x47d   :  { %2768 = vmatpush1.bf16.msra.mxu0 %v9885_v43  ;;  %2850 = vmatpush1.bf16.msra.mxu1 %v9887_v44  ;;  %v9691_v43 = vcombine.low %v1193_v28, %v1197_v37  ;;  %v9698_v44 = vcombine.high %v1200_v40, %v1204_v41  ;;  %v1261_v40 = vld [vmem:[#allocation14 + $0x2f8] sm:$0xff] }
 0x47e   :  { %2769 = vmatprep.subr.bf16.mxu0 %v9894_v45  ;;  %2851 = vmatprep.subr.bf16.mxu1 %v9896_v46  ;;  %v1208_v46 = vld [vmem:[#allocation14 + $0x150] sm:$0xff] }
 0x47f   :  { %v9705_v4 = vcombine.low %v1208_v46, %v1212_v47 }
 0x481   :  { %2770 = vmatpush1.bf16.msra.mxu0 %v9893_v58  ;;  %2852 = vmatpush1.bf16.msra.mxu1 %v9895_v59  ;;  %v9706_v59 = vcombine.high %v1208_v46, %v1212_v47  ;;  %v1269_v46 = vld [vmem:[#allocation14 + $0x338] sm:$0xff] }
 0x482   :  { %2771 = vmatprep.subr.bf16.mxu0 %v9902_v61  ;;  %2853 = vmatprep.subr.bf16.mxu1 %v9904_v62  ;;  %v9708_v61 = vcombine.high %v1209_v48, %v1213_v49  ;;  %v1216_v62 = vld [vmem:[#allocation14 + $0x190] sm:$0xff] }
 0x483   :  { %v9713_v14 = vcombine.low %v1216_v62, %v1220_v63 }
 0x485   :  { %2772 = vmatpush1.bf16.msra.mxu0 %v9901_v5  ;;  %2854 = vmatpush1.bf16.msra.mxu1 %v9903_v6  ;;  %v9707_v5 = vcombine.low %v1209_v48, %v1213_v49  ;;  %v9714_v6 = vcombine.high %v1216_v62, %v1220_v63  ;;  %v1277_v62 = vld [vmem:[#allocation14 + $0x378] sm:$0xff] }
 0x486   :  { %2773 = vmatprep.subr.bf16.mxu0 %v9910_v7  ;;  %2855 = vmatprep.subr.bf16.mxu1 %v9912_v10  ;;  %v9716_v7 = vcombine.high %v1217_v2, %v1221_v3  ;;  %v1224_v10 = vld [vmem:[#allocation14 + $0x1d0] sm:$0xff] }
 0x487   :  { %v9721_v56 = vcombine.low %v1224_v10, %v1228_v11 }
 0x489   :  { %2774 = vmatpush1.bf16.msra.mxu0 %v9909_v16  ;;  %2856 = vmatpush1.bf16.msra.mxu1 %v9911_v17  ;;  %v9722_v16 = vcombine.high %v1224_v10, %v1228_v11  ;;  %v9724_v17 = vcombine.high %v1225_v12, %v1229_v13  ;;  %v1285_v10 = vld [vmem:[#allocation14 + $0x3b8] sm:$0xff] }
 0x48a   :  { %2866 = vmatprep.subr.bf16.mxu0 %v9666_v52  ;;  %2948 = vmatprep.subr.bf16.mxu1 %v9668_v53  ;;  %v1236_v52 = vld [vmem:[#allocation14 + $0x230] sm:$0xff]  ;;  %v1233_v53 = vld [vmem:[#allocation14 + $0x218] sm:$0xff] }
 0x48b   :  { %v9730_v18 = vcombine.high %v1232_v51, %v1236_v52  ;;  %v9729_v25 = vcombine.low %v1232_v51, %v1236_v52  ;;  %v9731_v50 = vcombine.low %v1233_v53, %v1237_v55  ;;  %v1293_v51 = vld [vmem:[#allocation14 + $0x3f8] sm:$0xff] }
 0x48c   :  { %2776 = vmatmul.mubr.bf16.vlgmr.msra.gmra.mrb[12].mxu0 %v13017_v21  ;;  %2858 = vmatmul.mubr.bf16.vlgmr.msra.gmra.mrb[4].mxu1 %v13017_v21 }
 0x48d   :  { %2867 = vmatpush1.bf16.msra.mxu0 %v9665_v19  ;;  %2898 = vmatprep.mubr.bf16.mxu0 %v12992_v0  ;;  %v9732_v19 = vcombine.high %v1233_v53, %v1237_v55 }
 0x48e   :  { %2949 = vmatpush1.bf16.msra.mxu1 %v9667_v22  ;;  %2980 = vmatprep.mubr.bf16.mxu1 %v12992_v0  ;;  %v1201_v0 = vld [vmem:[#allocation14 + $0x118] sm:$0xff]  ;;  %v1240_v22 = vld [vmem:[#allocation14 + $0x250] sm:$0xff] }
 0x48f   :  { %2868 = vmatprep.subr.bf16.mxu0 %v9674_v60  ;;  %2950 = vmatprep.subr.bf16.mxu1 %v9676_v23  ;;  %v9700_v45 = vcombine.high %v1201_v0, %v1205_v42  ;;  %v9699_v58 = vcombine.low %v1201_v0, %v1205_v42  ;;  %v1244_v60 = vld [vmem:[#allocation14 + $0x270] sm:$0xff]  ;;  %v1241_v23 = vld [vmem:[#allocation14 + $0x258] sm:$0xff] }
 0x490   :  { %v9738_v26 = vcombine.high %v1240_v22, %v1244_v60  ;;  %v9737_v36 = vcombine.low %v1240_v22, %v1244_v60  ;;  %v9739_v28 = vcombine.low %v1241_v23, %v1245_v24  ;;  %v1301_v22 = vld [vmem:[#allocation14 + $0x438] sm:$0xff] }
 0x491   :  { %2869 = vmatpush1.bf16.msra.mxu0 %v9673_v31  ;;  %v9740_v31 = vcombine.high %v1241_v23, %v1245_v24 }
 0x492   :  { %2951 = vmatpush1.bf16.msra.mxu1 %v9675_v32  ;;  %2870 = vmatprep.subr.bf16.mxu0 %v9682_v33  ;;  %v1248_v32 = vld [vmem:[#allocation14 + $0x290] sm:$0xff] }
 0x493   :  { %2952 = vmatprep.subr.bf16.mxu1 %v9684_v34  ;;  %v1252_v33 = vld [vmem:[#allocation14 + $0x2b0] sm:$0xff]  ;;  %v1249_v34 = vld [vmem:[#allocation14 + $0x298] sm:$0xff] }
 0x494   :  { %v9746_v37 = vcombine.high %v1248_v32, %v1252_v33  ;;  %v9745_v41 = vcombine.low %v1248_v32, %v1252_v33  ;;  %v9747_v0 = vcombine.low %v1249_v34, %v1253_v35  ;;  %v1305_v32 = vld [vmem:[#allocation14 + $0x458] sm:$0xff] }
 0x495   :  { %2871 = vmatpush1.bf16.msra.mxu0 %v9681_v27  ;;  %v9748_v27 = vcombine.high %v1249_v34, %v1253_v35  ;;  %v1309_v33 = vld [vmem:[#allocation14 + $0x478] sm:$0xff] }
 0x496   :  { %2953 = vmatpush1.bf16.msra.mxu1 %v9683_v38  ;;  %2872 = vmatprep.subr.bf16.mxu0 %v9690_v39  ;;  %v1256_v38 = vld [vmem:[#allocation14 + $0x2d0] sm:$0xff] }
 0x497   :  { %2954 = vmatprep.subr.bf16.mxu1 %v9692_v29  ;;  %v1260_v39 = vld [vmem:[#allocation14 + $0x2f0] sm:$0xff]  ;;  %v1257_v29 = vld [vmem:[#allocation14 + $0x2d8] sm:$0xff] }
 0x498   :  { %v9754_v42 = vcombine.high %v1256_v38, %v1260_v39  ;;  %v9753_v47 = vcombine.low %v1256_v38, %v1260_v39  ;;  %v9755_v48 = vcombine.low %v1257_v29, %v1261_v40  ;;  %v1317_v38 = vld [vmem:[#allocation14 + $0x4b8] sm:$0xff] }
 0x499   :  { %2873 = vmatpush1.bf16.msra.mxu0 %v9689_v9  ;;  %v9756_v9 = vcombine.high %v1257_v29, %v1261_v40  ;;  %v9803_v29 = vcombine.low %v1305_v32, %v1309_v33 }
 0x49a   :  { %2955 = vmatpush1.bf16.msra.mxu1 %v9691_v43  ;;  %2874 = vmatprep.subr.bf16.mxu0 %v9698_v44  ;;  %v1264_v43 = vld [vmem:[#allocation14 + $0x310] sm:$0xff] }
 0x49b   :  { %2956 = vmatprep.subr.bf16.mxu1 %v9700_v45  ;;  %v1268_v44 = vld [vmem:[#allocation14 + $0x330] sm:$0xff]  ;;  %v1265_v45 = vld [vmem:[#allocation14 + $0x318] sm:$0xff] }
 0x49c   :  { %v9762_v49 = vcombine.high %v1264_v43, %v1268_v44  ;;  %v9761_v63 = vcombine.low %v1264_v43, %v1268_v44  ;;  %v9763_v2 = vcombine.low %v1265_v45, %v1269_v46  ;;  %v1325_v43 = vld [vmem:[#allocation14 + $0x4f8] sm:$0xff] }
 0x49d   :  { %2875 = vmatpush1.bf16.msra.mxu0 %v9697_v54  ;;  %v9764_v54 = vcombine.high %v1265_v45, %v1269_v46 }
 0x49e   :  { %2957 = vmatpush1.bf16.msra.mxu1 %v9699_v58  ;;  %2876 = vmatprep.subr.bf16.mxu0 %v9706_v59  ;;  %v1272_v58 = vld [vmem:[#allocation14 + $0x350] sm:$0xff] }
 0x49f   :  { %2958 = vmatprep.subr.bf16.mxu1 %v9708_v61  ;;  %v1276_v59 = vld [vmem:[#allocation14 + $0x370] sm:$0xff]  ;;  %v1273_v61 = vld [vmem:[#allocation14 + $0x358] sm:$0xff] }
 0x4a0   :  { %v9770_v3 = vcombine.high %v1272_v58, %v1276_v59  ;;  %v9769_v11 = vcombine.low %v1272_v58, %v1276_v59  ;;  %v9771_v12 = vcombine.low %v1273_v61, %v1277_v62 }
 0x4a1   :  { %2877 = vmatpush1.bf16.msra.mxu0 %v9705_v4  ;;  %v9772_v4 = vcombine.high %v1273_v61, %v1277_v62  ;;  %v1336_v62 = vld [vmem:[#allocation14 + $0x550] sm:$0xff] }
 0x4a2   :  { %2959 = vmatpush1.bf16.msra.mxu1 %v9707_v5  ;;  %2878 = vmatprep.subr.bf16.mxu0 %v9714_v6  ;;  %v1280_v5 = vld [vmem:[#allocation14 + $0x390] sm:$0xff] }
 0x4a3   :  { %2960 = vmatprep.subr.bf16.mxu1 %v9716_v7  ;;  %v1284_v6 = vld [vmem:[#allocation14 + $0x3b0] sm:$0xff]  ;;  %v1281_v7 = vld [vmem:[#allocation14 + $0x398] sm:$0xff] }
 0x4a4   :  { %v9778_v13 = vcombine.high %v1280_v5, %v1284_v6  ;;  %v9777_v52 = vcombine.low %v1280_v5, %v1284_v6  ;;  %v9779_v53 = vcombine.low %v1281_v7, %v1285_v10 }
 0x4a5   :  { %2879 = vmatpush1.bf16.msra.mxu0 %v9713_v14  ;;  %v9780_v14 = vcombine.high %v1281_v7, %v1285_v10  ;;  %v1344_v10 = vld [vmem:[#allocation14 + $0x590] sm:$0xff] }
 0x4a6   :  { %2961 = vmatpush1.bf16.msra.mxu1 %v9715_v15  ;;  %2880 = vmatprep.subr.bf16.mxu0 %v9722_v16  ;;  %v1288_v15 = vld [vmem:[#allocation14 + $0x3d0] sm:$0xff] }
 0x4a7   :  { %2962 = vmatprep.subr.bf16.mxu1 %v9724_v17  ;;  %v1292_v16 = vld [vmem:[#allocation14 + $0x3f0] sm:$0xff]  ;;  %v1289_v17 = vld [vmem:[#allocation14 + $0x3d8] sm:$0xff] }
 0x4a8   :  { %v9786_v55 = vcombine.high %v1288_v15, %v1292_v16  ;;  %v9785_v60 = vcombine.low %v1288_v15, %v1292_v16  ;;  %v9787_v23 = vcombine.low %v1289_v17, %v1293_v51 }
 0x4a9   :  { %2881 = vmatpush1.bf16.msra.mxu0 %v9721_v56  ;;  %v9788_v56 = vcombine.high %v1289_v17, %v1293_v51  ;;  %v1352_v51 = vld [vmem:[#allocation14 + $0x5d0] sm:$0xff] }
 0x4aa   :  { %2963 = vmatpush1.bf16.msra.mxu1 %v9723_v57  ;;  %2882 = vmatprep.subr.bf16.mxu0 %v9730_v18  ;;  %v1296_v57 = vld [vmem:[#allocation14 + $0x410] sm:$0xff] }
 0x4ab   :  { %2964 = vmatprep.subr.bf16.mxu1 %v9732_v19  ;;  %v1300_v18 = vld [vmem:[#allocation14 + $0x430] sm:$0xff]  ;;  %v1297_v19 = vld [vmem:[#allocation14 + $0x418] sm:$0xff] }
 0x4ac   :  { %v9794_v24 = vcombine.high %v1296_v57, %v1300_v18  ;;  %v9795_v34 = vcombine.low %v1297_v19, %v1301_v22 }
 0x4ad   :  { %2883 = vmatpush1.bf16.msra.mxu0 %v9729_v25  ;;  %v9796_v25 = vcombine.high %v1297_v19, %v1301_v22  ;;  %v1360_v22 = vld [vmem:[#allocation14 + $0x610] sm:$0xff] }
 0x4ae   :  { %2965 = vmatpush1.bf16.msra.mxu1 %v9731_v50  ;;  %2884 = vmatprep.subr.bf16.mxu0 %v9738_v26  ;;  %v1304_v50 = vld [vmem:[#allocation14 + $0x450] sm:$0xff] }
 0x4af   :  { %2966 = vmatprep.subr.bf16.mxu1 %v9740_v31  ;;  %v1308_v26 = vld [vmem:[#allocation14 + $0x470] sm:$0xff]  ;;  %v9793_v31 = vcombine.low %v1296_v57, %v1300_v18 }
 0x4b0   :  { %v9802_v35 = vcombine.high %v1304_v50, %v1308_v26  ;;  %v9801_v39 = vcombine.low %v1304_v50, %v1308_v26 }
 0x4b1   :  { %2885 = vmatpush1.bf16.msra.mxu0 %v9737_v36  ;;  %v1312_v36 = vld [vmem:[#allocation14 + $0x490] sm:$0xff] }
 0x4b2   :  { %2967 = vmatpush1.bf16.msra.mxu1 %v9739_v28  ;;  %2886 = vmatprep.subr.bf16.mxu0 %v9746_v37  ;;  %v1316_v28 = vld [vmem:[#allocation14 + $0x4b0] sm:$0xff]  ;;  %v9804_v37 = vcombine.high %v1305_v32, %v1309_v33 }
 0x4b3   :  { %2968 = vmatprep.subr.bf16.mxu1 %v9748_v27  ;;  %v1313_v27 = vld [vmem:[#allocation14 + $0x498] sm:$0xff]  ;;  %v9810_v40 = vcombine.high %v1312_v36, %v1316_v28  ;;  %v9809_v44 = vcombine.low %v1312_v36, %v1316_v28  ;;  %v1368_v32 = vld [vmem:[#allocation14 + $0x650] sm:$0xff] }
 0x4b4   :  { %v1372_v33 = vld [vmem:[#allocation14 + $0x670] sm:$0xff] }
 0x4b5   :  { %2887 = vmatpush1.bf16.msra.mxu0 %v9745_v41  ;;  %v9812_v41 = vcombine.high %v1313_v27, %v1317_v38 }
 0x4b6   :  { %2969 = vmatpush1.bf16.msra.mxu1 %v9747_v0  ;;  %2888 = vmatprep.subr.bf16.mxu0 %v9754_v42  ;;  %v1320_v0 = vld [vmem:[#allocation14 + $0x4d0] sm:$0xff] }
 0x4b7   :  { %2970 = vmatprep.subr.bf16.mxu1 %v9756_v9  ;;  %v1324_v42 = vld [vmem:[#allocation14 + $0x4f0] sm:$0xff]  ;;  %v1321_v9 = vld [vmem:[#allocation14 + $0x4d8] sm:$0xff] }
 0x4b8   :  { %v9818_v45 = vcombine.high %v1320_v0, %v1324_v42  ;;  %v9820_v46 = vcombine.high %v1321_v9, %v1325_v43  ;;  %v9819_v58 = vcombine.low %v1321_v9, %v1325_v43  ;;  %v1384_v43 = vld [vmem:[#allocation14 + $0x6d0] sm:$0xff] }
 0x4b9   :  { %2889 = vmatpush1.bf16.msra.mxu0 %v9753_v47  ;;  %v1328_v47 = vld [vmem:[#allocation14 + $0x510] sm:$0xff] }
 0x4ba   :  { %2971 = vmatpush1.bf16.msra.mxu1 %v9755_v48  ;;  %2890 = vmatprep.subr.bf16.mxu0 %v9762_v49  ;;  %v1332_v48 = vld [vmem:[#allocation14 + $0x530] sm:$0xff]  ;;  %v1329_v49 = vld [vmem:[#allocation14 + $0x518] sm:$0xff] }
 0x4bb   :  { %2972 = vmatprep.subr.bf16.mxu1 %v9764_v54  ;;  %v1333_v54 = vld [vmem:[#allocation14 + $0x538] sm:$0xff]  ;;  %v9826_v59 = vcombine.high %v1328_v47, %v1332_v48 }
 0x4bc   :  { %v9828_v61 = vcombine.high %v1329_v49, %v1333_v54  ;;  %v9827_v5 = vcombine.low %v1329_v49, %v1333_v54  ;;  %v1392_v54 = vld [vmem:[#allocation14 + $0x710] sm:$0xff] }
 0x4bd   :  { %2891 = vmatpush1.bf16.msra.mxu0 %v9761_v63  ;;  %v1340_v63 = vld [vmem:[#allocation14 + $0x570] sm:$0xff] }
 0x4be   :  { %2973 = vmatpush1.bf16.msra.mxu1 %v9763_v2  ;;  %2892 = vmatprep.subr.bf16.mxu0 %v9770_v3  ;;  %v1337_v2 = vld [vmem:[#allocation14 + $0x558] sm:$0xff]  ;;  %v9834_v6 = vcombine.high %v1336_v62, %v1340_v63 }
 0x4bf   :  { %2974 = vmatprep.subr.bf16.mxu1 %v9772_v4  ;;  %v1341_v3 = vld [vmem:[#allocation14 + $0x578] sm:$0xff]  ;;  %v9825_v4 = vcombine.low %v1328_v47, %v1332_v48 }
 0x4c0   :  { %v9836_v7 = vcombine.high %v1337_v2, %v1341_v3  ;;  %v9835_v15 = vcombine.low %v1337_v2, %v1341_v3  ;;  %v1400_v3 = vld [vmem:[#allocation14 + $0x750] sm:$0xff] }
 0x4c1   :  { %2893 = vmatpush1.bf16.msra.mxu0 %v9769_v11  ;;  %v1348_v11 = vld [vmem:[#allocation14 + $0x5b0] sm:$0xff] }
 0x4c2   :  { %2975 = vmatpush1.bf16.msra.mxu1 %v9771_v12  ;;  %2894 = vmatprep.subr.bf16.mxu0 %v9778_v13  ;;  %v1345_v12 = vld [vmem:[#allocation14 + $0x598] sm:$0xff]  ;;  %v9842_v16 = vcombine.high %v1344_v10, %v1348_v11 }
 0x4c3   :  { %2976 = vmatprep.subr.bf16.mxu1 %v9780_v14  ;;  %v1349_v13 = vld [vmem:[#allocation14 + $0x5b8] sm:$0xff]  ;;  %v9833_v14 = vcombine.low %v1336_v62, %v1340_v63 }
 0x4c4   :  { %v9844_v17 = vcombine.high %v1345_v12, %v1349_v13  ;;  %v9843_v57 = vcombine.low %v1345_v12, %v1349_v13  ;;  %v1408_v13 = vld [vmem:[#allocation14 + $0x790] sm:$0xff] }
 0x4c5   :  { %2895 = vmatpush1.bf16.msra.mxu0 %v9777_v52  ;;  %v1356_v52 = vld [vmem:[#allocation14 + $0x5f0] sm:$0xff] }
 0x4c6   :  { %2977 = vmatpush1.bf16.msra.mxu1 %v9779_v53  ;;  %2896 = vmatprep.subr.bf16.mxu0 %v9786_v55  ;;  %v1353_v53 = vld [vmem:[#allocation14 + $0x5d8] sm:$0xff]  ;;  %v9850_v18 = vcombine.high %v1352_v51, %v1356_v52 }
 0x4c7   :  { %2978 = vmatprep.subr.bf16.mxu1 %v9788_v56  ;;  %v1357_v55 = vld [vmem:[#allocation14 + $0x5f8] sm:$0xff]  ;;  %v9841_v56 = vcombine.low %v1344_v10, %v1348_v11 }
 0x4c8   :  { %v9852_v19 = vcombine.high %v1353_v53, %v1357_v55  ;;  %v9851_v50 = vcombine.low %v1353_v53, %v1357_v55  ;;  %v1416_v55 = vld [vmem:[#allocation14 + $0x7d0] sm:$0xff] }
 0x4c9   :  { %2897 = vmatpush1.bf16.msra.mxu0 %v9785_v60  ;;  %v1364_v60 = vld [vmem:[#allocation14 + $0x630] sm:$0xff] }
 0x4ca   :  { %2979 = vmatpush1.bf16.msra.mxu1 %v9787_v23  ;;  %2907 = vmatprep.subr.bf16.mxu0 %v9794_v24  ;;  %v1361_v23 = vld [vmem:[#allocation14 + $0x618] sm:$0xff]  ;;  %v9858_v26 = vcombine.high %v1360_v22, %v1364_v60  ;;  %v9857_v36 = vcombine.low %v1360_v22, %v1364_v60 }
 0x4cb   :  { %2989 = vmatprep.subr.bf16.mxu1 %v9796_v25  ;;  %v1365_v24 = vld [vmem:[#allocation14 + $0x638] sm:$0xff]  ;;  %v9849_v25 = vcombine.low %v1352_v51, %v1356_v52 }
 0x4cc   :  { %2899 = vmatmul.mubr.bf16.vlgmr.msra.gmra.mrb[16].mxu0 %v12994_v1  ;;  %v9859_v28 = vcombine.low %v1361_v23, %v1365_v24 }
 0x4cd   :  { %2981 = vmatmul.mubr.bf16.vlgmr.msra.gmra.mrb[8].mxu1 %v12994_v1  ;;  %2908 = vmatpush1.bf16.msra.mxu0 %v9793_v31  ;;  %v9811_v1 = vcombine.low %v1313_v27, %v1317_v38  ;;  %v9860_v31 = vcombine.high %v1361_v23, %v1365_v24  ;;  %v1376_v38 = vld [vmem:[#allocation14 + $0x690] sm:$0xff] }
 0x4ce   :  { %2939 = vmatprep.mubr.bf16.mxu0 %v13000_v8  ;;  %2990 = vmatpush1.bf16.msra.mxu1 %v9795_v34  ;;  %v1369_v34 = vld [vmem:[#allocation14 + $0x658] sm:$0xff] }
 0x4cf   :  { %3021 = vmatprep.mubr.bf16.mxu1 %v13000_v8  ;;  %2909 = vmatprep.subr.bf16.mxu0 %v9802_v35  ;;  %v9817_v8 = vcombine.low %v1320_v0, %v1324_v42  ;;  %v1373_v35 = vld [vmem:[#allocation14 + $0x678] sm:$0xff] }
 0x4d0   :  { %2991 = vmatprep.subr.bf16.mxu1 %v9804_v37  ;;  %v9866_v37 = vcombine.high %v1368_v32, %v1372_v33  ;;  %v9868_v27 = vcombine.high %v1369_v34, %v1373_v35  ;;  %v9867_v0 = vcombine.low %v1369_v34, %v1373_v35  ;;  %v11024_v34 = vld [vmem:[#allocation17 + $0x5c] ss:$40 sps:$4 sm:$0xff]   ;;  %v11019_v35 = vld [vmem:[#allocation17 + $0x50] ss:$40 sps:$4 sm:$0xff]  }
 0x4d1   :  { %2910 = vmatpush1.bf16.msra.mxu0 %v9801_v39  ;;  %v1380_v39 = vld [vmem:[#allocation14 + $0x6b0] sm:$0xff] }
 0x4d2   :  { %2992 = vmatpush1.bf16.msra.mxu1 %v9803_v29  ;;  %2911 = vmatprep.subr.bf16.mxu0 %v9810_v40  ;;  %v1377_v29 = vld [vmem:[#allocation14 + $0x698] sm:$0xff]  ;;  %v9874_v42 = vcombine.high %v1376_v38, %v1380_v39 }
 0x4d3   :  { %2993 = vmatprep.subr.bf16.mxu1 %v9812_v41  ;;  %v1381_v40 = vld [vmem:[#allocation14 + $0x6b8] sm:$0xff]  ;;  %v9865_v41 = vcombine.low %v1368_v32, %v1372_v33  ;;  %v11016_v32 = vld [vmem:[#allocation17 + $0x8] ss:$40 sps:$4 sm:$0xff]  }
 0x4d4   :  { %v9876_v9 = vcombine.high %v1377_v29, %v1381_v40  ;;  %v9875_v47 = vcombine.low %v1377_v29, %v1381_v40  ;;  %v11021_v33 = vld [vmem:[#allocation17 + $0x54] ss:$40 sps:$4 sm:$0xff]   ;;  %v11031_v40 = vld [vmem:[#allocation17 + $0xf0] ss:$40 sps:$4 sm:$0xff]  }
 0x4d5   :  { %2912 = vmatpush1.bf16.msra.mxu0 %v9809_v44  ;;  %v1388_v44 = vld [vmem:[#allocation14 + $0x6f0] sm:$0xff]  ;;  %v11036_v29 = vld [vmem:[#allocation17 + $0xfc] ss:$40 sps:$4 sm:$0xff]  }
 0x4d6   :  { %2994 = vmatpush1.bf16.msra.mxu1 %v9811_v1  ;;  %2913 = vmatprep.subr.bf16.mxu0 %v9818_v45  ;;  %v1385_v1 = vld [vmem:[#allocation14 + $0x6d8] sm:$0xff]  ;;  %v9882_v48 = vcombine.high %v1384_v43, %v1388_v44 }
 0x4d7   :  { %2995 = vmatprep.subr.bf16.mxu1 %v9820_v46  ;;  %v1389_v45 = vld [vmem:[#allocation14 + $0x6f8] sm:$0xff]  ;;  %v9873_v46 = vcombine.low %v1376_v38, %v1380_v39  ;;  %v11028_v38 = vld [vmem:[#allocation17 + $0xa8] ss:$40 sps:$4 sm:$0xff]  }
 0x4d8   :  { %v9884_v49 = vcombine.high %v1385_v1, %v1389_v45  ;;  %v9883_v62 = vcombine.low %v1385_v1, %v1389_v45  ;;  %v11033_v39 = vld [vmem:[#allocation17 + $0xf4] ss:$40 sps:$4 sm:$0xff]   ;;  %v11043_v1 = vld [vmem:[#allocation17 + $0x190] ss:$40 sps:$4 sm:$0xff]  }
 0x4d9   :  { %2914 = vmatpush1.bf16.msra.mxu0 %v9817_v8  ;;  %v1396_v8 = vld [vmem:[#allocation14 + $0x730] sm:$0xff]  ;;  %v11046_v45 = vld [vmem:[#allocation17 + $0x198] ss:$40 sps:$4 sm:$0xff]  }
 0x4da   :  { %2996 = vmatpush1.bf16.msra.mxu1 %v9819_v58  ;;  %2915 = vmatprep.subr.bf16.mxu0 %v9826_v59  ;;  %v1393_v58 = vld [vmem:[#allocation14 + $0x718] sm:$0xff]  ;;  %v9890_v63 = vcombine.high %v1392_v54, %v1396_v8 }
 0x4db   :  { %2997 = vmatprep.subr.bf16.mxu1 %v9828_v61  ;;  %v1397_v59 = vld [vmem:[#allocation14 + $0x738] sm:$0xff]  ;;  %v9881_v61 = vcombine.low %v1384_v43, %v1388_v44 }
 0x4dc   :  { %v9892_v2 = vcombine.high %v1393_v58, %v1397_v59  ;;  %v9891_v10 = vcombine.low %v1393_v58, %v1397_v59  ;;  %v11045_v43 = vld [vmem:[#allocation17 + $0x194] ss:$40 sps:$4 sm:$0xff]   ;;  %v11055_v58 = vld [vmem:[#allocation17 + $0x230] ss:$40 sps:$4 sm:$0xff]  }
 0x4dd   :  { %2916 = vmatpush1.bf16.msra.mxu0 %v9825_v4  ;;  %v1404_v4 = vld [vmem:[#allocation14 + $0x770] sm:$0xff]  ;;  %v11048_v44 = vld [vmem:[#allocation17 + $0x19c] ss:$40 sps:$4 sm:$0xff]   ;;  %v11058_v59 = vld [vmem:[#allocation17 + $0x238] ss:$40 sps:$4 sm:$0xff]  }
 0x4de   :  { %2998 = vmatpush1.bf16.msra.mxu1 %v9827_v5  ;;  %2917 = vmatprep.subr.bf16.mxu0 %v9834_v6  ;;  %v1401_v5 = vld [vmem:[#allocation14 + $0x758] sm:$0xff]  ;;  %v9898_v11 = vcombine.high %v1400_v3, %v1404_v4 }
 0x4df   :  { %2999 = vmatprep.subr.bf16.mxu1 %v9836_v7  ;;  %v1405_v6 = vld [vmem:[#allocation14 + $0x778] sm:$0xff]  ;;  %v9889_v7 = vcombine.low %v1392_v54, %v1396_v8 }
 0x4e0   :  { %v9900_v12 = vcombine.high %v1401_v5, %v1405_v6  ;;  %v9899_v51 = vcombine.low %v1401_v5, %v1405_v6  ;;  %v11057_v54 = vld [vmem:[#allocation17 + $0x234] ss:$40 sps:$4 sm:$0xff]   ;;  %v11067_v5 = vld [vmem:[#allocation17 + $0x2d0] ss:$40 sps:$4 sm:$0xff]  }
 0x4e1   :  { %2918 = vmatpush1.bf16.msra.mxu0 %v9833_v14  ;;  %v1412_v14 = vld [vmem:[#allocation14 + $0x7b0] sm:$0xff]  ;;  %v11060_v8 = vld [vmem:[#allocation17 + $0x23c] ss:$40 sps:$4 sm:$0xff]   ;;  %v11070_v6 = vld [vmem:[#allocation17 + $0x2d8] ss:$40 sps:$4 sm:$0xff]  }
 0x4e2   :  { %3000 = vmatpush1.bf16.msra.mxu1 %v9835_v15  ;;  %2919 = vmatprep.subr.bf16.mxu0 %v9842_v16  ;;  %v1409_v15 = vld [vmem:[#allocation14 + $0x798] sm:$0xff]  ;;  %v9906_v52 = vcombine.high %v1408_v13, %v1412_v14 }
 0x4e3   :  { %3001 = vmatprep.subr.bf16.mxu1 %v9844_v17  ;;  %v1413_v16 = vld [vmem:[#allocation14 + $0x7b8] sm:$0xff]  ;;  %v9897_v17 = vcombine.low %v1400_v3, %v1404_v4 }
 0x4e4   :  { %v9908_v53 = vcombine.high %v1409_v15, %v1413_v16  ;;  %v9907_v22 = vcombine.low %v1409_v15, %v1413_v16  ;;  %v11069_v3 = vld [vmem:[#allocation17 + $0x2d4] ss:$40 sps:$4 sm:$0xff]   ;;  %v11079_v15 = vld [vmem:[#allocation17 + $0x370] ss:$40 sps:$4 sm:$0xff]  }
 0x4e5   :  { %2920 = vmatpush1.bf16.msra.mxu0 %v9841_v56  ;;  %v1420_v56 = vld [vmem:[#allocation14 + $0x7f0] sm:$0xff]  ;;  %v11072_v4 = vld [vmem:[#allocation17 + $0x2dc] ss:$40 sps:$4 sm:$0xff]   ;;  %v11082_v16 = vld [vmem:[#allocation17 + $0x378] ss:$40 sps:$4 sm:$0xff]  }
 0x4e6   :  { %3002 = vmatpush1.bf16.msra.mxu1 %v9843_v57  ;;  %2921 = vmatprep.subr.bf16.mxu0 %v9850_v18  ;;  %v1417_v57 = vld [vmem:[#allocation14 + $0x7d8] sm:$0xff]  ;;  %v9914_v60 = vcombine.high %v1416_v55, %v1420_v56  ;;  %v9913_v24 = vcombine.low %v1416_v55, %v1420_v56 }
 0x4e7   :  { %3003 = vmatprep.subr.bf16.mxu1 %v9852_v19  ;;  %v1421_v18 = vld [vmem:[#allocation14 + $0x7f8] sm:$0xff]  ;;  %v9905_v19 = vcombine.low %v1408_v13, %v1412_v14 }
 0x4e8   :  { %v9916_v23 = vcombine.high %v1417_v57, %v1421_v18  ;;  %v11081_v13 = vld [vmem:[#allocation17 + $0x374] ss:$40 sps:$4 sm:$0xff]  }
 0x4e9   :  { %2922 = vmatpush1.bf16.msra.mxu0 %v9849_v25  ;;  %v9915_v25 = vcombine.low %v1417_v57, %v1421_v18  ;;  %v11084_v14 = vld [vmem:[#allocation17 + $0x37c] ss:$40 sps:$4 sm:$0xff]   ;;  %v11091_v57 = vld [vmem:[#allocation17 + $0x410] ss:$40 sps:$4 sm:$0xff]  }
 0x4ea   :  { %3004 = vmatpush1.bf16.msra.mxu1 %v9851_v50  ;;  %2923 = vmatprep.subr.bf16.mxu0 %v9858_v26  ;;  %v11015_v50 = vld [vmem:[#allocation17 + $0x4] ss:$40 sps:$4 sm:$0xff]   ;;  %v11093_v55 = vld [vmem:[#allocation17 + $0x414] ss:$40 sps:$4 sm:$0xff]   ;;  %v11094_v18 = vld [vmem:[#allocation17 + $0x418] ss:$40 sps:$4 sm:$0xff]  }
 0x4eb   :  { %3005 = vmatprep.subr.bf16.mxu1 %v9860_v31  ;;  %v11018_v26 = vld [vmem:[#allocation17 + $0xc] ss:$40 sps:$4 sm:$0xff]   ;;  %v11013_v31 = vld [vmem:[#allocation17] ss:$40 sps:$4 sm:$0xff]   ;;  %v11096_v56 = vld [vmem:[#allocation17 + $0x41c] ss:$40 sps:$4 sm:$0xff]  }
 0x4ed   :  { %2924 = vmatpush1.bf16.msra.mxu0 %v9857_v36  ;;  %v11022_v36 = vld [vmem:[#allocation17 + $0x58] ss:$40 sps:$4 sm:$0xff]  }
 0x4ee   :  { %3006 = vmatpush1.bf16.msra.mxu1 %v9859_v28  ;;  %2925 = vmatprep.subr.bf16.mxu0 %v9866_v37  ;;  %v11027_v28 = vld [vmem:[#allocation17 + $0xa4] ss:$40 sps:$4 sm:$0xff]  }
 0x4ef   :  { %3007 = vmatprep.subr.bf16.mxu1 %v9868_v27  ;;  %v11030_v37 = vld [vmem:[#allocation17 + $0xac] ss:$40 sps:$4 sm:$0xff]   ;;  %v11025_v27 = vld [vmem:[#allocation17 + $0xa0] ss:$40 sps:$4 sm:$0xff]  }
 0x4f1   :  { %2926 = vmatpush1.bf16.msra.mxu0 %v9865_v41  ;;  %v11039_v41 = vld [vmem:[#allocation17 + $0x144] ss:$40 sps:$4 sm:$0xff]  }
 0x4f2   :  { %3008 = vmatpush1.bf16.msra.mxu1 %v9867_v0  ;;  %2927 = vmatprep.subr.bf16.mxu0 %v9874_v42  ;;  %v11042_v0 = vld [vmem:[#allocation17 + $0x14c] ss:$40 sps:$4 sm:$0xff]   ;;  %v11037_v42 = vld [vmem:[#allocation17 + $0x140] ss:$40 sps:$4 sm:$0xff]  }
 0x4f3   :  { %3009 = vmatprep.subr.bf16.mxu1 %v9876_v9  ;;  %v11040_v9 = vld [vmem:[#allocation17 + $0x148] ss:$40 sps:$4 sm:$0xff]  }
 0x4f5   :  { %2928 = vmatpush1.bf16.msra.mxu0 %v9873_v46  ;;  %v11051_v46 = vld [vmem:[#allocation17 + $0x1e4] ss:$40 sps:$4 sm:$0xff]  }
 0x4f6   :  { %3010 = vmatpush1.bf16.msra.mxu1 %v9875_v47  ;;  %2929 = vmatprep.subr.bf16.mxu0 %v9882_v48  ;;  %v11054_v47 = vld [vmem:[#allocation17 + $0x1ec] ss:$40 sps:$4 sm:$0xff]   ;;  %v11049_v48 = vld [vmem:[#allocation17 + $0x1e0] ss:$40 sps:$4 sm:$0xff]  }
 0x4f7   :  { %3011 = vmatprep.subr.bf16.mxu1 %v9884_v49  ;;  %v11052_v49 = vld [vmem:[#allocation17 + $0x1e8] ss:$40 sps:$4 sm:$0xff]  }
 0x4f9   :  { %2930 = vmatpush1.bf16.msra.mxu0 %v9881_v61  ;;  %v11063_v61 = vld [vmem:[#allocation17 + $0x284] ss:$40 sps:$4 sm:$0xff]  }
 0x4fa   :  { %3012 = vmatpush1.bf16.msra.mxu1 %v9883_v62  ;;  %2931 = vmatprep.subr.bf16.mxu0 %v9890_v63  ;;  %v11066_v62 = vld [vmem:[#allocation17 + $0x28c] ss:$40 sps:$4 sm:$0xff]   ;;  %v11061_v63 = vld [vmem:[#allocation17 + $0x280] ss:$40 sps:$4 sm:$0xff]  }
 0x4fb   :  { %3013 = vmatprep.subr.bf16.mxu1 %v9892_v2  ;;  %v11064_v2 = vld [vmem:[#allocation17 + $0x288] ss:$40 sps:$4 sm:$0xff]  }
 0x4fd   :  { %2932 = vmatpush1.bf16.msra.mxu0 %v9889_v7  ;;  %v11075_v7 = vld [vmem:[#allocation17 + $0x324] ss:$40 sps:$4 sm:$0xff]  }
 0x4fe   :  { %3014 = vmatpush1.bf16.msra.mxu1 %v9891_v10  ;;  %2933 = vmatprep.subr.bf16.mxu0 %v9898_v11  ;;  %v11078_v10 = vld [vmem:[#allocation17 + $0x32c] ss:$40 sps:$4 sm:$0xff]   ;;  %v11073_v11 = vld [vmem:[#allocation17 + $0x320] ss:$40 sps:$4 sm:$0xff]  }
 0x4ff   :  { %3015 = vmatprep.subr.bf16.mxu1 %v9900_v12  ;;  %v11076_v12 = vld [vmem:[#allocation17 + $0x328] ss:$40 sps:$4 sm:$0xff]  }
 0x501   :  { %2934 = vmatpush1.bf16.msra.mxu0 %v9897_v17  ;;  %v11087_v17 = vld [vmem:[#allocation17 + $0x3c4] ss:$40 sps:$4 sm:$0xff]  }
 0x502   :  { %3016 = vmatpush1.bf16.msra.mxu1 %v9899_v51  ;;  %2935 = vmatprep.subr.bf16.mxu0 %v9906_v52  ;;  %v11090_v51 = vld [vmem:[#allocation17 + $0x3cc] ss:$40 sps:$4 sm:$0xff]   ;;  %v11085_v52 = vld [vmem:[#allocation17 + $0x3c0] ss:$40 sps:$4 sm:$0xff]  }
 0x503   :  { %3017 = vmatprep.subr.bf16.mxu1 %v9908_v53  ;;  %v11088_v53 = vld [vmem:[#allocation17 + $0x3c8] ss:$40 sps:$4 sm:$0xff]  }
 0x505   :  { %2936 = vmatpush1.bf16.msra.mxu0 %v9905_v19  ;;  %v11099_v19 = vld [vmem:[#allocation17 + $0x464] ss:$40 sps:$4 sm:$0xff]  }
 0x506   :  { %3018 = vmatpush1.bf16.msra.mxu1 %v9907_v22  ;;  %2937 = vmatprep.subr.bf16.mxu0 %v9914_v60  ;;  %v11102_v22 = vld [vmem:[#allocation17 + $0x46c] ss:$40 sps:$4 sm:$0xff]   ;;  %v11097_v60 = vld [vmem:[#allocation17 + $0x460] ss:$40 sps:$4 sm:$0xff]  }
 0x507   :  { %3019 = vmatprep.subr.bf16.mxu1 %v9916_v23  ;;  %v11100_v23 = vld [vmem:[#allocation17 + $0x468] ss:$40 sps:$4 sm:$0xff]  }
 0x509   :  { %2938 = vmatpush1.bf16.msra.mxu0 %v9913_v24  ;;  %v11105_v24 = vld [vmem:[#allocation17 + $0x4b4] ss:$40 sps:$4 sm:$0xff]  }
 0x50a   :  { %3020 = vmatpush1.bf16.msra.mxu1 %v9915_v25  ;;  %7176 = vmatprep.subr.bf16.mxu0 %v11015_v50  ;;  %v11108_v25 = vld [vmem:[#allocation17 + $0x4bc] ss:$40 sps:$4 sm:$0xff]   ;;  %v11103_v50 = vld [vmem:[#allocation17 + $0x4b0] ss:$40 sps:$4 sm:$0xff]  }
 0x50b   :  { %7340 = vmatprep.subr.bf16.mxu1 %v11018_v26  ;;  %v11106_v26 = vld [vmem:[#allocation17 + $0x4b8] ss:$40 sps:$4 sm:$0xff]  }
 0x50c   :  { %2940 = vmatmul.mubr.bf16.vlgmr.msra.gmra.mrb[16].mxu0 %v13017_v21 }
 0x50d   :  { %3022 = vmatmul.mubr.bf16.vlgmr.msra.gmra.mrb[8].mxu1 %v13017_v21  ;;  %7177 = vmatpush1.bf16.msra.mxu0 %v11013_v31  ;;  %v11034_v21 = vld [vmem:[#allocation17 + $0xf8] ss:$40 sps:$4 sm:$0xff]   ;;  %v11111_v31 = vld [vmem:[#allocation17 + $0x504] ss:$40 sps:$4 sm:$0xff]  }
 0x50e   :  { %7341 = vmatpush1.bf16.msra.mxu1 %v11016_v32  ;;  %7178 = vmatprep.subr.bf16.mxu0 %v11021_v33  ;;  %v11114_v32 = vld [vmem:[#allocation17 + $0x50c] ss:$40 sps:$4 sm:$0xff]  }
 0x50f   :  { %7342 = vmatprep.subr.bf16.mxu1 %v11024_v34 }
 0x511   :  { %7179 = vmatpush1.bf16.msra.mxu0 %v11019_v35 }
 0x512   :  { %7343 = vmatpush1.bf16.msra.mxu1 %v11022_v36  ;;  %7180 = vmatprep.subr.bf16.mxu0 %v11027_v28 }
 0x513   :  { %7344 = vmatprep.subr.bf16.mxu1 %v11030_v37 }
 0x515   :  { %7181 = vmatpush1.bf16.msra.mxu0 %v11025_v27 }
 0x516   :  { %7345 = vmatpush1.bf16.msra.mxu1 %v11028_v38  ;;  %7182 = vmatprep.subr.bf16.mxu0 %v11033_v39 }
 0x517   :  { %7346 = vmatprep.subr.bf16.mxu1 %v11036_v29 }
 0x519   :  { %7183 = vmatpush1.bf16.msra.mxu0 %v11031_v40 }
 0x51a   :  { %7347 = vmatpush1.bf16.msra.mxu1 %v11034_v21  ;;  %7184 = vmatprep.subr.bf16.mxu0 %v11039_v41 }
 0x51b   :  { %7348 = vmatprep.subr.bf16.mxu1 %v11042_v0 }
 0x51d   :  { %7185 = vmatpush1.bf16.msra.mxu0 %v11037_v42 }
 0x51e   :  { %7349 = vmatpush1.bf16.msra.mxu1 %v11040_v9  ;;  %7186 = vmatprep.subr.bf16.mxu0 %v11045_v43 }
 0x51f   :  { %7350 = vmatprep.subr.bf16.mxu1 %v11048_v44 }
 0x521   :  { %7187 = vmatpush1.bf16.msra.mxu0 %v11043_v1 }
 0x522   :  { %7351 = vmatpush1.bf16.msra.mxu1 %v11046_v45  ;;  %7188 = vmatprep.subr.bf16.mxu0 %v11051_v46 }
 0x523   :  { %7352 = vmatprep.subr.bf16.mxu1 %v11054_v47 }
 0x525   :  { %7189 = vmatpush1.bf16.msra.mxu0 %v11049_v48 }
 0x526   :  { %7353 = vmatpush1.bf16.msra.mxu1 %v11052_v49  ;;  %7190 = vmatprep.subr.bf16.mxu0 %v11057_v54 }
 0x527   :  { %7354 = vmatprep.subr.bf16.mxu1 %v11060_v8 }
 0x529   :  { %7191 = vmatpush1.bf16.msra.mxu0 %v11055_v58 }
 0x52a   :  { %7355 = vmatpush1.bf16.msra.mxu1 %v11058_v59  ;;  %7192 = vmatprep.subr.bf16.mxu0 %v11063_v61 }
 0x52b   :  { %7356 = vmatprep.subr.bf16.mxu1 %v11066_v62 }
 0x52d   :  { %7193 = vmatpush1.bf16.msra.mxu0 %v11061_v63 }
 0x52e   :  { %7357 = vmatpush1.bf16.msra.mxu1 %v11064_v2  ;;  %7194 = vmatprep.subr.bf16.mxu0 %v11069_v3 }
 0x52f   :  { %7358 = vmatprep.subr.bf16.mxu1 %v11072_v4 }
 0x531   :  { %7195 = vmatpush1.bf16.msra.mxu0 %v11067_v5 }
 0x532   :  { %7359 = vmatpush1.bf16.msra.mxu1 %v11070_v6  ;;  %7196 = vmatprep.subr.bf16.mxu0 %v11075_v7 }
 0x533   :  { %7360 = vmatprep.subr.bf16.mxu1 %v11078_v10 }
 0x535   :  { %7197 = vmatpush1.bf16.msra.mxu0 %v11073_v11 }
 0x536   :  { %7361 = vmatpush1.bf16.msra.mxu1 %v11076_v12  ;;  %7198 = vmatprep.subr.bf16.mxu0 %v11081_v13 }
 0x537   :  { %7362 = vmatprep.subr.bf16.mxu1 %v11084_v14 }
 0x539   :  { %7199 = vmatpush1.bf16.msra.mxu0 %v11079_v15 }
 0x53a   :  { %7363 = vmatpush1.bf16.msra.mxu1 %v11082_v16  ;;  %7200 = vmatprep.subr.bf16.mxu0 %v11087_v17 }
 0x53b   :  { %7364 = vmatprep.subr.bf16.mxu1 %v11090_v51 }
 0x53d   :  { %7201 = vmatpush1.bf16.msra.mxu0 %v11085_v52 }
 0x53e   :  { %7365 = vmatpush1.bf16.msra.mxu1 %v11088_v53  ;;  %7202 = vmatprep.subr.bf16.mxu0 %v11093_v55 }
 0x53f   :  { %7366 = vmatprep.subr.bf16.mxu1 %v11096_v56 }
 0x541   :  { %7203 = vmatpush1.bf16.msra.mxu0 %v11091_v57 }
 0x542   :  { %7367 = vmatpush1.bf16.msra.mxu1 %v11094_v18  ;;  %7204 = vmatprep.subr.bf16.mxu0 %v11099_v19 }
 0x543   :  { %7368 = vmatprep.subr.bf16.mxu1 %v11102_v22 }
 0x545   :  { %7205 = vmatpush1.bf16.msra.mxu0 %v11097_v60 }
 0x546   :  { %7369 = vmatpush1.bf16.msra.mxu1 %v11100_v23  ;;  %7206 = vmatprep.subr.bf16.mxu0 %v11105_v24 }
 0x547   :  { %7370 = vmatprep.subr.bf16.mxu1 %v11108_v25 }
 0x549   :  { %7207 = vmatpush1.bf16.msra.mxu0 %v11103_v50 }
 0x54a   :  { %7371 = vmatpush1.bf16.msra.mxu1 %v11106_v26  ;;  %7217 = vmatprep.subr.bf16.mxu0 %v11111_v31 }
 0x54b   :  { %7381 = vmatprep.subr.bf16.mxu1 %v11114_v32 }
 0x55f   :  { %v2777_v33 = vpop.f32.mrb[12].mxu0  ;;  %v13029_v34 = vpop.f32.mrb[4].mxu1 }
 0x560   :  { %v3030_v35 = vrot.slane %v2777_v33, 4  ;;  %v2779_v36 = vpop.f32.mrb[13].mxu0  ;;  %v2861_v28 = vpop.f32.mrb[5].mxu1  ;;  %v3042_v63 = vrot.slane %v13029_v34, 4 }
 0x561   :  { %v3036_v37 = vrot.slane %v2779_v36, 4  ;;  %v3048_v27 = vrot.slane %v2861_v28, 4  ;;  %v2781_v38 = vpop.f32.mrb[14].mxu0  ;;  %v2863_v39 = vpop.f32.mrb[6].mxu1 }
 0x562   :  { %v3031_v29 = vadd.f32 %v3030_v35, %v2777_v33  ;;  %v2782_v40 = vpop.f32.mrb[15].mxu0  ;;  %v2864_v21 = vpop.f32.mrb[7].mxu1  ;;  %v3043_v10 = vadd.f32 %v3042_v63, %v13029_v34 }
 0x563   :  { %v3037_v41 = vadd.f32 %v3036_v37, %v2779_v36  ;;  %v3049_v0 = vadd.f32 %v3048_v27, %v2861_v28  ;;  %v1158_v37 = vld [vmem:[#allocation16] sm:$0xff]  ;;  %v1159_v27 = vld [vmem:[#allocation16 + $0x8] sm:$0xff] }
 0x564   :  { %v3032_v42 = vrot.slane %v3031_v29, 2  ;;  %v3044_v17 = vrot.slane %v3043_v10, 2  ;;  %v3185_v38 = vrot.slane %v1158_v37, %v12951_v30 }
 0x565   :  { %v3038_v9 = vrot.slane %v3037_v41, 2  ;;  %v3050_v43 = vrot.slane %v3049_v0, 2 }
 0x566   :  { %v3033_v44 = vadd.f32 %v3032_v42, %v3031_v29  ;;  %v3045_v18 = vadd.f32 %v3044_v17, %v3043_v10  ;;  %v1161_v29 = vld [vmem:[#allocation16 + $0x18] sm:$0xff] }
 0x567   :  { %v3039_v1 = vadd.f32 %v3038_v9, %v3037_v41  ;;  %v3051_v45 = vadd.f32 %v3050_v43, %v3049_v0  ;;  %v3225_v41 = vrot.slane %v1158_v37, %v12955_v20  ;;  %v3189_v0 = vrot.slane %v1159_v27, %v12951_v30  ;;  %v1160_v37 = vld [vmem:[#allocation16 + $0x10] sm:$0xff] }
 0x568   :  { %v3034_v46 = vrot.slane %v3033_v44, 1  ;;  %v3046_v50 = vrot.slane %v3045_v18, 1  ;;  %v3197_v9 = vrot.slane %v1161_v29, %v12951_v30 }
 0x569   :  { %v3040_v47 = vrot.slane %v3039_v1, 1  ;;  %v3052_v48 = vrot.slane %v3051_v45, 1 }
 0x56a   :  { %v3035_v49 = vadd.f32 %v3034_v46, %v3033_v44  ;;  %v3229_v46 = vrot.slane %v1159_v27, %v12955_v20  ;;  %v11127_v27 = vld [vmem:[#allocation17 + $0x5f0] ss:$40 sps:$4 sm:$0xff]  }
 0x56b   :  { %v3041_v54 = vadd.f32 %v3040_v47, %v3039_v1  ;;  %v3053_v8 = vadd.f32 %v3052_v48, %v3051_v45  ;;  %v3237_v47 = vrot.slane %v1161_v29, %v12955_v20  ;;  %v11135_v29 = vld [vmem:[#allocation17 + $0x644] ss:$40 sps:$4 sm:$0xff]  }
 0x56c   :  { %v3078_v58 = vmul.f32 0.125, %v3035_v49 }
 0x56d   :  { %v3079_v59 = vmul.f32 0.125, %v3041_v54  ;;  %v3081_v61 = vmul.f32 0.125, %v3053_v8 }
 0x56e   :  { %v3086_v62 = vsub.f32 %v2777_v33, %v3078_v58 }
 0x56f   :  { %v3087_v2 = vsub.f32 %v2779_v36, %v3079_v59  ;;  %v3089_v3 = vsub.f32 %v2861_v28, %v3081_v61  ;;  %v3047_v36 = vadd.f32 %v3046_v50, %v3045_v18  ;;  %v11109_v18 = vld [vmem:[#allocation17 + $0x500] ss:$40 sps:$4 sm:$0xff]  }
 0x570   :  { %v3094_v4 = vmul.f32 %v3086_v62, %v3086_v62  ;;  %v11118_v50 = vld [vmem:[#allocation17 + $0x558] ss:$40 sps:$4 sm:$0xff]  }
 0x571   :  { %v3095_v5 = vmul.f32 %v3087_v2, %v3087_v2  ;;  %v3097_v6 = vmul.f32 %v3089_v3, %v3089_v3  ;;  %v3080_v28 = vmul.f32 0.125, %v3047_v36  ;;  %v11132_v36 = vld [vmem:[#allocation17 + $0x5fc] ss:$40 sps:$4 sm:$0xff]  }
 0x572   :  { %v3102_v7 = vrot.slane %v3094_v4, 4 }
 0x573   :  { %v3108_v11 = vrot.slane %v3095_v5, 4  ;;  %v3120_v12 = vrot.slane %v3097_v6, 4  ;;  %v13035_v39 = vsub.f32 %v13029_v34, %v3080_v28 }
 0x574   :  { %v3103_v13 = vadd.f32 %v3102_v7, %v3094_v4 }
 0x575   :  { %v3109_v14 = vadd.f32 %v3108_v11, %v3095_v5  ;;  %v3121_v15 = vadd.f32 %v3120_v12, %v3097_v6  ;;  %v3096_v1 = vmul.f32 %v13035_v39, %v13035_v39 }
 0x576   :  { %v3104_v16 = vrot.slane %v3103_v13, 2 }
 0x577   :  { %v3110_v51 = vrot.slane %v3109_v14, 2  ;;  %v3122_v52 = vrot.slane %v3121_v15, 2  ;;  %v3114_v58 = vrot.slane %v3096_v1, 4 }
 0x578   :  { %v3105_v53 = vadd.f32 %v3104_v16, %v3103_v13 }
 0x579   :  { %v3111_v55 = vadd.f32 %v3110_v51, %v3109_v14  ;;  %v3123_v56 = vadd.f32 %v3122_v52, %v3121_v15  ;;  %v3115_v4 = vadd.f32 %v3114_v58, %v3096_v1  ;;  %v3233_v1 = vrot.slane %v1160_v37, %v12955_v20 }
 0x57a   :  { %v3106_v57 = vrot.slane %v3105_v53, 1 }
 0x57b   :  { %v3112_v19 = vrot.slane %v3111_v55, 1  ;;  %v3124_v22 = vrot.slane %v3123_v56, 1  ;;  %v3116_v5 = vrot.slane %v3115_v4, 2 }
 0x57c   :  { %v3107_v60 = vadd.f32 %v3106_v57, %v3105_v53 }
 0x57d   :  { %v3113_v23 = vadd.f32 %v3112_v19, %v3111_v55  ;;  %v3125_v24 = vadd.f32 %v3124_v22, %v3123_v56  ;;  %v3117_v6 = vadd.f32 %v3116_v5, %v3115_v4  ;;  %v11112_v19 = vld [vmem:[#allocation17 + $0x508] ss:$40 sps:$4 sm:$0xff]  }
 0x57e   :  { %v3150_v25 = vmul.f32 0.125, %v3107_v60  ;;  %v11117_v60 = vld [vmem:[#allocation17 + $0x554] ss:$40 sps:$4 sm:$0xff]   ;;  %v11157_v4 = vld [vmem:[#allocation17 + $0x780] ss:$40 sps:$4 sm:$0xff]  }
 0x57f   :  { %v3151_v26 = vmul.f32 0.125, %v3113_v23  ;;  %v3153_v31 = vmul.f32 0.125, %v3125_v24  ;;  %v3118_v12 = vrot.slane %v3117_v6, 1  ;;  %v11120_v23 = vld [vmem:[#allocation17 + $0x55c] ss:$40 sps:$4 sm:$0xff]  }
 0x580   :  { %v3158_v32 = vadd.f32 0.8, %v3150_v25  ;;  %v11115_v25 = vld [vmem:[#allocation17 + $0x550] ss:$40 sps:$4 sm:$0xff]  }
 0x581   :  { %v3159_v33 = vadd.f32 0.8, %v3151_v26  ;;  %v3161_v35 = vadd.f32 0.8, %v3153_v31  ;;  %v3119_v14 = vadd.f32 %v3118_v12, %v3117_v6  ;;  %v11123_v26 = vld [vmem:[#allocation17 + $0x5a4] ss:$40 sps:$4 sm:$0xff]  }
 0x582   :  { %12253 = vrsqrt.f32 %v3158_v32  ;;  %v11126_v31 = vld [vmem:[#allocation17 + $0x5ac] ss:$40 sps:$4 sm:$0xff]   ;;  %v11121_v32 = vld [vmem:[#allocation17 + $0x5a0] ss:$40 sps:$4 sm:$0xff]   ;;  %v11168_v6 = vld [vmem:[#allocation17 + $0x7dc] ss:$40 sps:$4 sm:$0xff]  }
 0x583   :  { %12255 = vrsqrt.f32 %v3159_v33  ;;  %v3152_v15 = vmul.f32 0.125, %v3119_v14  ;;  %v11124_v33 = vld [vmem:[#allocation17 + $0x5a8] ss:$40 sps:$4 sm:$0xff]  }
 0x584   :  { %12257 = vrsqrt.f32 %v3161_v35  ;;  %v11129_v35 = vld [vmem:[#allocation17 + $0x5f4] ss:$40 sps:$4 sm:$0xff]   ;;  %v11160_v5 = vld [vmem:[#allocation17 + $0x788] ss:$40 sps:$4 sm:$0xff]  }
 0x585   :  { %v3160_v53 = vadd.f32 0.8, %v3152_v15  ;;  %v11169_v12 = vld [vmem:[#allocation17 + $0x820] ss:$40 sps:$4 sm:$0xff]   ;;  %v11177_v15 = vld [vmem:[#allocation17 + $0x874] ss:$40 sps:$4 sm:$0xff]  }
 0x58c   :  { %v12254_v40 = vpop.eup %12253 }
 0x58d   :  { %v3174_v21 = vmul.f32 %v12254_v40, %v3086_v62  ;;  %v12256_v42 = vpop.eup %12255  ;;  %v11138_v40 = vld [vmem:[#allocation17 + $0x64c] ss:$40 sps:$4 sm:$0xff]  }
 0x58e   :  { %v12258_v43 = vpop.eup %12257  ;;  %v3175_v45 = vmul.f32 %v12256_v42, %v3087_v2  ;;  %v11136_v42 = vld [vmem:[#allocation17 + $0x648] ss:$40 sps:$4 sm:$0xff]  }
 0x58f   :  { %v3214_v44 = vmul.f32 %v3185_v38, %v3174_v21  ;;  %v3177_v34 = vmul.f32 %v12258_v43, %v3089_v3  ;;  %v11130_v38 = vld [vmem:[#allocation17 + $0x5f8] ss:$40 sps:$4 sm:$0xff]   ;;  %v11144_v43 = vld [vmem:[#allocation17 + $0x69c] ss:$40 sps:$4 sm:$0xff]  }
 0x590   :  { %v3215_v49 = vmul.f32 %v3189_v0, %v3175_v45  ;;  %v11133_v0 = vld [vmem:[#allocation17 + $0x640] ss:$40 sps:$4 sm:$0xff]   ;;  %v11139_v45 = vld [vmem:[#allocation17 + $0x690] ss:$40 sps:$4 sm:$0xff]  }
 0x591   :  { %v3254_v48 = vadd.f32 %v3225_v41, %v3214_v44  ;;  %v3217_v54 = vmul.f32 %v3197_v9, %v3177_v34  ;;  %v3193_v41 = vrot.slane %v1160_v37, %v12951_v30  ;;  %v11141_v9 = vld [vmem:[#allocation17 + $0x694] ss:$40 sps:$4 sm:$0xff]  }
 0x592   :  { %v3255_v59 = vadd.f32 %v3229_v46, %v3215_v49  ;;  %v11142_v46 = vld [vmem:[#allocation17 + $0x698] ss:$40 sps:$4 sm:$0xff]   ;;  %v11150_v34 = vld [vmem:[#allocation17 + $0x6ec] ss:$40 sps:$4 sm:$0xff]   ;;  %v11148_v49 = vld [vmem:[#allocation17 + $0x6e8] ss:$40 sps:$4 sm:$0xff]  }
 0x593   :  { %v9917_v8 = vmul.f32 -1.442695, %v3254_v48  ;;  %v3257_v61 = vadd.f32 %v3237_v47, %v3217_v54  ;;  %v11153_v54 = vld [vmem:[#allocation17 + $0x734] ss:$40 sps:$4 sm:$0xff]  }
 0x594   :  { %v9918_v62 = vmul.f32 -1.442695, %v3255_v59  ;;  %v11192_v37 = vld [vmem:[#allocation17 + $0x91c] ss:$40 sps:$4 sm:$0xff]  }
 0x595   :  { %12259 = vpow2.f32 %v9917_v8  ;;  %v9920_v63 = vmul.f32 -1.442695, %v3257_v61  ;;  %v11156_v8 = vld [vmem:[#allocation17 + $0x73c] ss:$40 sps:$4 sm:$0xff]  }
 0x596   :  { %12261 = vpow2.f32 %v9918_v62  ;;  %v11159_v62 = vld [vmem:[#allocation17 + $0x784] ss:$40 sps:$4 sm:$0xff]  }
 0x597   :  { %12263 = vpow2.f32 %v9920_v63  ;;  %v11162_v63 = vld [vmem:[#allocation17 + $0x78c] ss:$40 sps:$4 sm:$0xff]  }
 0x59f   :  { %v12260_v2 = vpop.eup %12259 }
 0x5a0   :  { %v3286_v7 = vadd.f32 1.0, %v12260_v2  ;;  %v12262_v3 = vpop.eup %12261  ;;  %v11165_v2 = vld [vmem:[#allocation17 + $0x7d4] ss:$40 sps:$4 sm:$0xff]  }
 0x5a1   :  { %v12264_v10 = vpop.eup %12263  ;;  %v3287_v11 = vadd.f32 1.0, %v12262_v3  ;;  %v11166_v3 = vld [vmem:[#allocation17 + $0x7d8] ss:$40 sps:$4 sm:$0xff]  }
 0x5a2   :  { %12265 = vrcp.f32 %v3286_v7  ;;  %v3289_v13 = vadd.f32 1.0, %v12264_v10  ;;  %v11163_v7 = vld [vmem:[#allocation17 + $0x7d0] ss:$40 sps:$4 sm:$0xff]   ;;  %v11171_v10 = vld [vmem:[#allocation17 + $0x824] ss:$40 sps:$4 sm:$0xff]  }
 0x5a3   :  { %12267 = vrcp.f32 %v3287_v11  ;;  %v11174_v11 = vld [vmem:[#allocation17 + $0x82c] ss:$40 sps:$4 sm:$0xff]  }
 0x5a4   :  { %12269 = vrcp.f32 %v3289_v13  ;;  %v11172_v13 = vld [vmem:[#allocation17 + $0x828] ss:$40 sps:$4 sm:$0xff]  }
 0x5a5   :  { %12271 = vrsqrt.f32 %v3160_v53  ;;  %v11183_v53 = vld [vmem:[#allocation17 + $0x8c4] ss:$40 sps:$4 sm:$0xff]  }
 0x5ac   :  { %v12266_v16 = vpop.eup %12265 }
 0x5ad   :  { %v12268_v17 = vpop.eup %12267  ;;  %v3310_v51 = vmul.f32 %v12266_v16, %v3254_v48  ;;  %v11145_v48 = vld [vmem:[#allocation17 + $0x6e0] ss:$40 sps:$4 sm:$0xff]   ;;  %v11180_v16 = vld [vmem:[#allocation17 + $0x87c] ss:$40 sps:$4 sm:$0xff]  }
 0x5ae   :  { %v12270_v52 = vpop.eup %12269  ;;  %v3311_v55 = vmul.f32 %v12268_v17, %v3255_v59  ;;  %v11151_v59 = vld [vmem:[#allocation17 + $0x730] ss:$40 sps:$4 sm:$0xff]  }
 0x5af   :  { %v3313_v56 = vmul.f32 %v12270_v52, %v3257_v61  ;;  %v13046_v22 = vpack.c.bf16 %v3310_v51, %v3310_v51  ;;  %v12272_v28 = vpop.eup %12271  ;;  %v11154_v61 = vld [vmem:[#allocation17 + $0x738] ss:$40 sps:$4 sm:$0xff]  }
 0x5b0   :  { %v13044_v57 = vpack.c.bf16 %v3311_v55, %v3311_v55  ;;  %v3176_v21 = vmul.f32 %v12272_v28, %v13035_v39  ;;  %v11147_v39 = vld [vmem:[#allocation17 + $0x6e4] ss:$40 sps:$4 sm:$0xff]   ;;  %v11175_v51 = vld [vmem:[#allocation17 + $0x870] ss:$40 sps:$4 sm:$0xff]  }
 0x5b1   :  { %v13052_v24 = vpack.c.bf16 %v3313_v56, %v3313_v56  ;;  %v11178_v52 = vld [vmem:[#allocation17 + $0x878] ss:$40 sps:$4 sm:$0xff]   ;;  %v11186_v55 = vld [vmem:[#allocation17 + $0x8cc] ss:$40 sps:$4 sm:$0xff]  }
 0x5b2   :  { %7208 = vmatprep.mubr.bf16.mxu0 %v13044_v57  ;;  %7372 = vmatprep.mubr.bf16.mxu1 %v13044_v57  ;;  %v3216_v44 = vmul.f32 %v3193_v41, %v3176_v21  ;;  %v11187_v41 = vld [vmem:[#allocation17 + $0x910] ss:$40 sps:$4 sm:$0xff]  }
 0x5b3   :  { %7209 = vmatmul.mubr.bf16.vlgmr.msra.gmra.mrb[20].mxu0 %v13046_v22  ;;  %7373 = vmatmul.mubr.bf16.vlgmr.msra.gmra.mrb[12].mxu1 %v13046_v22 }
 0x5b4   :  { %7218 = vmatpush1.bf16.msra.mxu0 %v11109_v18  ;;  %7382 = vmatpush1.bf16.msra.mxu1 %v11112_v19  ;;  %v13059_v47 = vadd.f32 %v3233_v1, %v3216_v44  ;;  %v11181_v18 = vld [vmem:[#allocation17 + $0x8c0] ss:$40 sps:$4 sm:$0xff]   ;;  %v11198_v44 = vld [vmem:[#allocation17 + $0x96c] ss:$40 sps:$4 sm:$0xff]  }
 0x5b5   :  { %7249 = vmatprep.mubr.bf16.mxu0 %v13052_v24  ;;  %7413 = vmatprep.mubr.bf16.mxu1 %v13052_v24 }
 0x5b6   :  { %7219 = vmatprep.subr.bf16.mxu0 %v11117_v60  ;;  %7383 = vmatprep.subr.bf16.mxu1 %v11120_v23  ;;  %v9919_v58 = vmul.f32 -1.442695, %v13059_v47 }
 0x5b8   :  { %7220 = vmatpush1.bf16.msra.mxu0 %v11115_v25  ;;  %7384 = vmatpush1.bf16.msra.mxu1 %v11118_v50  ;;  %12273 = vpow2.f32 %v9919_v58  ;;  %v11184_v25 = vld [vmem:[#allocation17 + $0x8c8] ss:$40 sps:$4 sm:$0xff]   ;;  %v11204_v58 = vld [vmem:[#allocation17 + $0x9bc] ss:$40 sps:$4 sm:$0xff]  }
 0x5b9   :  { %7221 = vmatprep.subr.bf16.mxu0 %v11123_v26  ;;  %7385 = vmatprep.subr.bf16.mxu1 %v11126_v31 }
 0x5bc   :  { %7222 = vmatpush1.bf16.msra.mxu0 %v11121_v32  ;;  %7386 = vmatpush1.bf16.msra.mxu1 %v11124_v33  ;;  %v11189_v32 = vld [vmem:[#allocation17 + $0x914] ss:$40 sps:$4 sm:$0xff]  }
 0x5bd   :  { %7223 = vmatprep.subr.bf16.mxu0 %v11129_v35  ;;  %7387 = vmatprep.subr.bf16.mxu1 %v11132_v36 }
 0x5c0   :  { %7224 = vmatpush1.bf16.msra.mxu0 %v11127_v27  ;;  %7388 = vmatpush1.bf16.msra.mxu1 %v11130_v38 }
 0x5c1   :  { %7225 = vmatprep.subr.bf16.mxu0 %v11135_v29  ;;  %7389 = vmatprep.subr.bf16.mxu1 %v11138_v40 }
 0x5c2   :  { %v12274_v14 = vpop.eup %12273 }
 0x5c3   :  { %v3288_v17 = vadd.f32 1.0, %v12274_v14 }
 0x5c4   :  { %7226 = vmatpush1.bf16.msra.mxu0 %v11133_v0  ;;  %7390 = vmatpush1.bf16.msra.mxu1 %v11136_v42  ;;  %v11190_v0 = vld [vmem:[#allocation17 + $0x918] ss:$40 sps:$4 sm:$0xff]  }
 0x5c5   :  { %7227 = vmatprep.subr.bf16.mxu0 %v11141_v9  ;;  %7391 = vmatprep.subr.bf16.mxu1 %v11144_v43  ;;  %12275 = vrcp.f32 %v3288_v17  ;;  %v11195_v43 = vld [vmem:[#allocation17 + $0x964] ss:$40 sps:$4 sm:$0xff]   ;;  %v11208_v17 = vld [vmem:[#allocation17 + $0xa08] ss:$40 sps:$4 sm:$0xff]  }
 0x5c8   :  { %7228 = vmatpush1.bf16.msra.mxu0 %v11139_v45  ;;  %7392 = vmatpush1.bf16.msra.mxu1 %v11142_v46 }
 0x5c9   :  { %7229 = vmatprep.subr.bf16.mxu0 %v11147_v39  ;;  %7393 = vmatprep.subr.bf16.mxu1 %v11150_v34  ;;  %v11193_v34 = vld [vmem:[#allocation17 + $0x960] ss:$40 sps:$4 sm:$0xff]  }
 0x5cc   :  { %7230 = vmatpush1.bf16.msra.mxu0 %v11145_v48  ;;  %7394 = vmatpush1.bf16.msra.mxu1 %v11148_v49  ;;  %v11196_v48 = vld [vmem:[#allocation17 + $0x968] ss:$40 sps:$4 sm:$0xff]  }
 0x5cd   :  { %7231 = vmatprep.subr.bf16.mxu0 %v11153_v54  ;;  %7395 = vmatprep.subr.bf16.mxu1 %v11156_v8  ;;  %v11201_v8 = vld [vmem:[#allocation17 + $0x9b4] ss:$40 sps:$4 sm:$0xff]  }
 0x5d0   :  { %7232 = vmatpush1.bf16.msra.mxu0 %v11151_v59  ;;  %7396 = vmatpush1.bf16.msra.mxu1 %v11154_v61  ;;  %v12276_v59 = vpop.eup %12275 }
 0x5d1   :  { %7233 = vmatprep.subr.bf16.mxu0 %v11159_v62  ;;  %7397 = vmatprep.subr.bf16.mxu1 %v11162_v63 }
 0x5d4   :  { %7234 = vmatpush1.bf16.msra.mxu0 %v11157_v4  ;;  %7398 = vmatpush1.bf16.msra.mxu1 %v11160_v5  ;;  %v11199_v5 = vld [vmem:[#allocation17 + $0x9b0] ss:$40 sps:$4 sm:$0xff]  }
 0x5d5   :  { %7235 = vmatprep.subr.bf16.mxu0 %v11165_v2  ;;  %7399 = vmatprep.subr.bf16.mxu1 %v11168_v6  ;;  %v11202_v2 = vld [vmem:[#allocation17 + $0x9b8] ss:$40 sps:$4 sm:$0xff]   ;;  %v3312_v6 = vmul.f32 %v12276_v59, %v13059_v47 }
 0x5d6   :  { %v11205_v47 = vld [vmem:[#allocation17 + $0xa00] ss:$40 sps:$4 sm:$0xff]  }
 0x5d8   :  { %7236 = vmatpush1.bf16.msra.mxu0 %v11163_v7  ;;  %7400 = vmatpush1.bf16.msra.mxu1 %v11166_v3 }
 0x5d9   :  { %7237 = vmatprep.subr.bf16.mxu0 %v11171_v10  ;;  %7401 = vmatprep.subr.bf16.mxu1 %v11174_v11  ;;  %v11207_v10 = vld [vmem:[#allocation17 + $0xa04] ss:$40 sps:$4 sm:$0xff]  }
 0x5da   :  { %v11210_v11 = vld [vmem:[#allocation17 + $0xa0c] ss:$40 sps:$4 sm:$0xff]  }
 0x5dc   :  { %7238 = vmatpush1.bf16.msra.mxu0 %v11169_v12  ;;  %7402 = vmatpush1.bf16.msra.mxu1 %v11172_v13 }
 0x5dd   :  { %7239 = vmatprep.subr.bf16.mxu0 %v11177_v15  ;;  %7403 = vmatprep.subr.bf16.mxu1 %v11180_v16 }
 0x5df   :  { %v2941_v56 = vpop.f32.mrb[16].mxu0 }
 0x5e0   :  { %v3054_v19 = vrot.slane %v2941_v56, 4  ;;  %v13062_v60 = vpop.f32.mrb[8].mxu1  ;;  %v2943_v23 = vpop.f32.mrb[17].mxu0  ;;  %7240 = vmatpush1.bf16.msra.mxu0 %v11175_v51  ;;  %7404 = vmatpush1.bf16.msra.mxu1 %v11178_v52 }
 0x5e1   :  { %v3060_v50 = vrot.slane %v2943_v23, 4  ;;  %v3025_v26 = vpop.f32.mrb[9].mxu1  ;;  %v2945_v31 = vpop.f32.mrb[18].mxu0  ;;  %7241 = vmatprep.subr.bf16.mxu0 %v11183_v53  ;;  %7405 = vmatprep.subr.bf16.mxu1 %v11186_v55  ;;  %v3066_v12 = vrot.slane %v13062_v60, 4  ;;  %v13078_v53 = vpack.c.bf16 %v3312_v6, %v3312_v6  ;;  %v11213_v55 = vld [vmem:[#allocation17 + $0xa54] ss:$40 sps:$4 sm:$0xff]  }
 0x5e2   :  { %v3055_v33 = vadd.f32 %v3054_v19, %v2941_v56  ;;  %v3072_v35 = vrot.slane %v3025_v26, 4  ;;  %v3027_v36 = vpop.f32.mrb[10].mxu1  ;;  %v2946_v28 = vpop.f32.mrb[19].mxu0  ;;  %v11214_v31 = vld [vmem:[#allocation17 + $0xa58] ss:$40 sps:$4 sm:$0xff]  }
 0x5e3   :  { %v3061_v27 = vadd.f32 %v3060_v50, %v2943_v23  ;;  %v3028_v38 = vpop.f32.mrb[11].mxu1  ;;  %v11222_v36 = vld [vmem:[#allocation17 + $0xaac] ss:$40 sps:$4 sm:$0xff]  }
 0x5e4   :  { %v3056_v29 = vrot.slane %v3055_v33, 2  ;;  %v3073_v40 = vadd.f32 %v3072_v35, %v3025_v26  ;;  %7242 = vmatpush1.bf16.msra.mxu0 %v11181_v18  ;;  %7406 = vmatpush1.bf16.msra.mxu1 %v11184_v25  ;;  %v3067_v18 = vadd.f32 %v3066_v12, %v13062_v60  ;;  %v11219_v35 = vld [vmem:[#allocation17 + $0xaa4] ss:$40 sps:$4 sm:$0xff]   ;;  %v11237_v6 = vld [vmem:[#allocation17 + $0xb94] ss:$40 sps:$4 sm:$0xff]  }
 0x5e5   :  { %v3062_v21 = vrot.slane %v3061_v27, 2  ;;  %7243 = vmatprep.subr.bf16.mxu0 %v11189_v32  ;;  %7407 = vmatprep.subr.bf16.mxu1 %v11192_v37  ;;  %v11238_v12 = vld [vmem:[#allocation17 + $0xb98] ss:$40 sps:$4 sm:$0xff]  }
 0x5e6   :  { %v3057_v42 = vadd.f32 %v3056_v29, %v3055_v33  ;;  %v3074_v9 = vrot.slane %v3073_v40, 2  ;;  %v3068_v28 = vrot.slane %v3067_v18, 2 }
 0x5e7   :  { %v3063_v1 = vadd.f32 %v3062_v21, %v3061_v27  ;;  %v11220_v21 = vld [vmem:[#allocation17 + $0xaa8] ss:$40 sps:$4 sm:$0xff]  }
 0x5e8   :  { %v3058_v45 = vrot.slane %v3057_v42, 1  ;;  %v3075_v46 = vadd.f32 %v3074_v9, %v3073_v40  ;;  %7244 = vmatpush1.bf16.msra.mxu0 %v11187_v41  ;;  %7408 = vmatpush1.bf16.msra.mxu1 %v11190_v0  ;;  %v11217_v40 = vld [vmem:[#allocation17 + $0xaa0] ss:$40 sps:$4 sm:$0xff]   ;;  %v11228_v9 = vld [vmem:[#allocation17 + $0xafc] ss:$40 sps:$4 sm:$0xff]  }
 0x5e9   :  { %v3064_v39 = vrot.slane %v3063_v1, 1  ;;  %7245 = vmatprep.subr.bf16.mxu0 %v11195_v43  ;;  %7409 = vmatprep.subr.bf16.mxu1 %v11198_v44  ;;  %v3069_v43 = vadd.f32 %v3068_v28, %v3067_v18  ;;  %v11252_v18 = vld [vmem:[#allocation17 + $0xc3c] ss:$40 sps:$4 sm:$0xff]  }
 0x5ea   :  { %v3059_v49 = vadd.f32 %v3058_v45, %v3057_v42  ;;  %v3076_v54 = vrot.slane %v3075_v46, 1  ;;  %v11225_v42 = vld [vmem:[#allocation17 + $0xaf4] ss:$40 sps:$4 sm:$0xff]  }
 0x5eb   :  { %v3065_v61 = vadd.f32 %v3064_v39, %v3063_v1  ;;  %v11223_v39 = vld [vmem:[#allocation17 + $0xaf0] ss:$40 sps:$4 sm:$0xff]  }
 0x5ec   :  { %v3082_v62 = vmul.f32 0.125, %v3059_v49  ;;  %v3077_v63 = vadd.f32 %v3076_v54, %v3075_v46  ;;  %7246 = vmatpush1.bf16.msra.mxu0 %v11193_v34  ;;  %7410 = vmatpush1.bf16.msra.mxu1 %v11196_v48  ;;  %v11226_v34 = vld [vmem:[#allocation17 + $0xaf8] ss:$40 sps:$4 sm:$0xff]   ;;  %v11231_v54 = vld [vmem:[#allocation17 + $0xb44] ss:$40 sps:$4 sm:$0xff]  }
 0x5ed   :  { %v3083_v4 = vmul.f32 0.125, %v3065_v61  ;;  %7247 = vmatprep.subr.bf16.mxu0 %v11201_v8  ;;  %7411 = vmatprep.subr.bf16.mxu1 %v11204_v58  ;;  %v11234_v8 = vld [vmem:[#allocation17 + $0xb4c] ss:$40 sps:$4 sm:$0xff]   ;;  %v3070_v58 = vrot.slane %v3069_v43, 1 }
 0x5ee   :  { %v13065_v7 = vsub.f32 %v2941_v56, %v3082_v62  ;;  %v3085_v3 = vmul.f32 0.125, %v3077_v63  ;;  %v11216_v56 = vld [vmem:[#allocation17 + $0xa5c] ss:$40 sps:$4 sm:$0xff]  }
 0x5ef   :  { %v13068_v13 = vsub.f32 %v2943_v23, %v3083_v4  ;;  %v11229_v4 = vld [vmem:[#allocation17 + $0xb40] ss:$40 sps:$4 sm:$0xff]  }
 0x5f0   :  { %v3098_v14 = vmul.f32 %v13065_v7, %v13065_v7  ;;  %v13072_v15 = vsub.f32 %v3025_v26, %v3085_v3  ;;  %7248 = vmatpush1.bf16.msra.mxu0 %v11199_v5  ;;  %7412 = vmatpush1.bf16.msra.mxu1 %v11202_v2  ;;  %v11211_v26 = vld [vmem:[#allocation17 + $0xa50] ss:$40 sps:$4 sm:$0xff]   ;;  %v11240_v3 = vld [vmem:[#allocation17 + $0xb9c] ss:$40 sps:$4 sm:$0xff]  }
 0x5f1   :  { %v3099_v16 = vmul.f32 %v13068_v13, %v13068_v13  ;;  %7258 = vmatprep.subr.bf16.mxu0 %v11207_v10  ;;  %7422 = vmatprep.subr.bf16.mxu1 %v11210_v11  ;;  %v11232_v5 = vld [vmem:[#allocation17 + $0xb48] ss:$40 sps:$4 sm:$0xff]   ;;  %v3071_v10 = vadd.f32 %v3070_v58, %v3069_v43  ;;  %v11270_v58 = vld [vmem:[#allocation17 + $0xd2c] ss:$40 sps:$4 sm:$0xff]  }
 0x5f2   :  { %v3126_v51 = vrot.slane %v3098_v14, 4  ;;  %v3101_v52 = vmul.f32 %v13072_v15, %v13072_v15  ;;  %v11235_v11 = vld [vmem:[#allocation17 + $0xb90] ss:$40 sps:$4 sm:$0xff]  }
 0x5f3   :  { %v3132_v19 = vrot.slane %v3099_v16, 4  ;;  %7250 = vmatmul.mubr.bf16.vlgmr.msra.gmra.mrb[20].mxu0 %v13078_v53  ;;  %7414 = vmatmul.mubr.bf16.vlgmr.msra.gmra.mrb[12].mxu1 %v13078_v53  ;;  %v11256_v43 = vld [vmem:[#allocation17 + $0xc88] ss:$40 sps:$4 sm:$0xff]  }
 0x5f4   :  { %v3127_v23 = vadd.f32 %v3126_v51, %v3098_v14  ;;  %v3144_v25 = vrot.slane %v3101_v52, 4  ;;  %7259 = vmatpush1.bf16.msra.mxu0 %v11205_v47  ;;  %7423 = vmatpush1.bf16.msra.mxu1 %v11208_v17  ;;  %v11243_v14 = vld [vmem:[#allocation17 + $0xbe4] ss:$40 sps:$4 sm:$0xff]   ;;  %v3084_v47 = vmul.f32 0.125, %v3071_v10  ;;  %v11241_v51 = vld [vmem:[#allocation17 + $0xbe0] ss:$40 sps:$4 sm:$0xff]  }
 0x5f5   :  { %v3133_v50 = vadd.f32 %v3132_v19, %v3099_v16  ;;  %7260 = vmatprep.subr.bf16.mxu0 %v11213_v55  ;;  %7424 = vmatprep.subr.bf16.mxu1 %v11216_v56  ;;  %v11246_v16 = vld [vmem:[#allocation17 + $0xbec] ss:$40 sps:$4 sm:$0xff]   ;;  %v1162_v17 = vld [vmem:[#allocation16 + $0x20] sm:$0xff] }
 0x5f6   :  { %v3128_v32 = vrot.slane %v3127_v23, 2  ;;  %v3145_v33 = vadd.f32 %v3144_v25, %v3101_v52  ;;  %v11244_v52 = vld [vmem:[#allocation17 + $0xbe8] ss:$40 sps:$4 sm:$0xff]   ;;  %v11249_v56 = vld [vmem:[#allocation17 + $0xc34] ss:$40 sps:$4 sm:$0xff]   ;;  %v3201_v19 = vrot.slane %v1162_v17, %v12951_v30 }
 0x5f7   :  { %v3134_v37 = vrot.slane %v3133_v50, 2  ;;  %v1163_v55 = vld [vmem:[#allocation16 + $0x28] sm:$0xff]  ;;  %v1165_v25 = vld [vmem:[#allocation16 + $0x38] sm:$0xff] }
 0x5f8   :  { %v3129_v27 = vadd.f32 %v3128_v32, %v3127_v23  ;;  %v3146_v38 = vrot.slane %v3145_v33, 2  ;;  %7261 = vmatpush1.bf16.msra.mxu0 %v11211_v26  ;;  %7425 = vmatpush1.bf16.msra.mxu1 %v11214_v31  ;;  %v13085_v23 = vsub.f32 %v13062_v60, %v3084_v47  ;;  %v3241_v31 = vrot.slane %v1162_v17, %v12955_v20  ;;  %v11258_v60 = vld [vmem:[#allocation17 + $0xc8c] ss:$40 sps:$4 sm:$0xff]   ;;  %v11277_v47 = vld [vmem:[#allocation17 + $0xdc0] ss:$40 sps:$4 sm:$0xff]  }
 0x5f9   :  { %v3135_v29 = vadd.f32 %v3134_v37, %v3133_v50  ;;  %7262 = vmatprep.subr.bf16.mxu0 %v11219_v35  ;;  %7426 = vmatprep.subr.bf16.mxu1 %v11222_v36  ;;  %v3205_v32 = vrot.slane %v1163_v55, %v12951_v30  ;;  %v11250_v35 = vld [vmem:[#allocation17 + $0xc38] ss:$40 sps:$4 sm:$0xff]   ;;  %v3213_v28 = vrot.slane %v1165_v25, %v12951_v30  ;;  %v11255_v37 = vld [vmem:[#allocation17 + $0xc84] ss:$40 sps:$4 sm:$0xff]   ;;  %v11280_v17 = vld [vmem:[#allocation17 + $0xdc8] ss:$40 sps:$4 sm:$0xff]  }
 0x5fa   :  { %v3130_v41 = vrot.slane %v3129_v27, 1  ;;  %v3147_v0 = vadd.f32 %v3146_v38, %v3145_v33  ;;  %v11247_v33 = vld [vmem:[#allocation17 + $0xc30] ss:$40 sps:$4 sm:$0xff]   ;;  %v11282_v10 = vld [vmem:[#allocation17 + $0xdcc] ss:$40 sps:$4 sm:$0xff]  }
 0x5fb   :  { %v3136_v44 = vrot.slane %v3135_v29, 1 }
 0x5fc   :  { %v3131_v1 = vadd.f32 %v3130_v41, %v3129_v27  ;;  %v3148_v45 = vrot.slane %v3147_v0, 1  ;;  %7263 = vmatpush1.bf16.msra.mxu0 %v11217_v40  ;;  %7427 = vmatpush1.bf16.msra.mxu1 %v11220_v21  ;;  %v3245_v40 = vrot.slane %v1163_v55, %v12955_v20  ;;  %v3253_v41 = vrot.slane %v1165_v25, %v12955_v20  ;;  %v11285_v55 = vld [vmem:[#allocation17 + $0xe14] ss:$40 sps:$4 sm:$0xff]   ;;  %v11283_v25 = vld [vmem:[#allocation17 + $0xe10] ss:$40 sps:$4 sm:$0xff]  }
 0x5fd   :  { %v3137_v46 = vadd.f32 %v3136_v44, %v3135_v29  ;;  %7264 = vmatprep.subr.bf16.mxu0 %v11225_v42  ;;  %7428 = vmatprep.subr.bf16.mxu1 %v11228_v9  ;;  %v11253_v9 = vld [vmem:[#allocation17 + $0xc80] ss:$40 sps:$4 sm:$0xff]  }
 0x5fe   :  { %v3154_v48 = vmul.f32 0.125, %v3131_v1  ;;  %v3149_v49 = vadd.f32 %v3148_v45, %v3147_v0  ;;  %v11261_v1 = vld [vmem:[#allocation17 + $0xcd4] ss:$40 sps:$4 sm:$0xff]  }
 0x5ff   :  { %v3155_v59 = vmul.f32 0.125, %v3137_v46  ;;  %v11264_v45 = vld [vmem:[#allocation17 + $0xcdc] ss:$40 sps:$4 sm:$0xff]  }
 0x600   :  { %v3162_v61 = vadd.f32 0.8, %v3154_v48  ;;  %v3157_v62 = vmul.f32 0.125, %v3149_v49  ;;  %7265 = vmatpush1.bf16.msra.mxu0 %v11223_v39  ;;  %7429 = vmatpush1.bf16.msra.mxu1 %v11226_v34  ;;  %v11259_v48 = vld [vmem:[#allocation17 + $0xcd0] ss:$40 sps:$4 sm:$0xff]  }
 0x601   :  { %v3163_v63 = vadd.f32 0.8, %v3155_v59  ;;  %7266 = vmatprep.subr.bf16.mxu0 %v11231_v54  ;;  %7430 = vmatprep.subr.bf16.mxu1 %v11234_v8  ;;  %v11262_v49 = vld [vmem:[#allocation17 + $0xcd8] ss:$40 sps:$4 sm:$0xff]   ;;  %v11267_v8 = vld [vmem:[#allocation17 + $0xd24] ss:$40 sps:$4 sm:$0xff]  }
 0x602   :  { %12277 = vrsqrt.f32 %v3162_v61  ;;  %v3165_v2 = vadd.f32 0.8, %v3157_v62  ;;  %v11265_v61 = vld [vmem:[#allocation17 + $0xd20] ss:$40 sps:$4 sm:$0xff]  }
 0x603   :  { %12279 = vrsqrt.f32 %v3163_v63  ;;  %v11268_v62 = vld [vmem:[#allocation17 + $0xd28] ss:$40 sps:$4 sm:$0xff]   ;;  %v11273_v63 = vld [vmem:[#allocation17 + $0xd74] ss:$40 sps:$4 sm:$0xff]  }
 0x604   :  { %12281 = vrsqrt.f32 %v3165_v2  ;;  %7267 = vmatpush1.bf16.msra.mxu0 %v11229_v4  ;;  %7431 = vmatpush1.bf16.msra.mxu1 %v11232_v5  ;;  %v11276_v4 = vld [vmem:[#allocation17 + $0xd7c] ss:$40 sps:$4 sm:$0xff]   ;;  %v11271_v2 = vld [vmem:[#allocation17 + $0xd70] ss:$40 sps:$4 sm:$0xff]  }
 0x605   :  { %7268 = vmatprep.subr.bf16.mxu0 %v11237_v6  ;;  %7432 = vmatprep.subr.bf16.mxu1 %v11240_v3  ;;  %v11274_v6 = vld [vmem:[#allocation17 + $0xd78] ss:$40 sps:$4 sm:$0xff]   ;;  %v11279_v3 = vld [vmem:[#allocation17 + $0xdc4] ss:$40 sps:$4 sm:$0xff]  }
 0x608   :  { %7269 = vmatpush1.bf16.msra.mxu0 %v11235_v11  ;;  %7433 = vmatpush1.bf16.msra.mxu1 %v11238_v12 }
 0x609   :  { %7270 = vmatprep.subr.bf16.mxu0 %v11243_v14  ;;  %7434 = vmatprep.subr.bf16.mxu1 %v11246_v16 }
 0x60c   :  { %v12278_v50 = vpop.eup %12277  ;;  %7271 = vmatpush1.bf16.msra.mxu0 %v11241_v51  ;;  %7435 = vmatpush1.bf16.msra.mxu1 %v11244_v52 }
 0x60d   :  { %v3178_v26 = vmul.f32 %v12278_v50, %v13065_v7  ;;  %v12280_v36 = vpop.eup %12279  ;;  %7272 = vmatprep.subr.bf16.mxu0 %v11249_v56  ;;  %7436 = vmatprep.subr.bf16.mxu1 %v11252_v18  ;;  %v3100_v7 = vmul.f32 %v13085_v23, %v13085_v23  ;;  %v11288_v56 = vld [vmem:[#allocation17 + $0xe1c] ss:$40 sps:$4 sm:$0xff]   ;;  %v11286_v50 = vld [vmem:[#allocation17 + $0xe18] ss:$40 sps:$4 sm:$0xff]  }
 0x60e   :  { %v12282_v27 = vpop.eup %12281  ;;  %v3179_v29 = vmul.f32 %v12280_v36, %v13068_v13  ;;  %v11297_v36 = vld [vmem:[#allocation17 + $0xeb4] ss:$40 sps:$4 sm:$0xff]  }
 0x60f   :  { %v3218_v38 = vmul.f32 %v3201_v19, %v3178_v26  ;;  %v3181_v21 = vmul.f32 %v12282_v27, %v13072_v15  ;;  %v3138_v46 = vrot.slane %v3100_v7, 4  ;;  %v11291_v26 = vld [vmem:[#allocation17 + $0xe64] ss:$40 sps:$4 sm:$0xff]   ;;  %v11295_v27 = vld [vmem:[#allocation17 + $0xeb0] ss:$40 sps:$4 sm:$0xff]  }
 0x610   :  { %v3219_v42 = vmul.f32 %v3205_v32, %v3179_v29  ;;  %7273 = vmatpush1.bf16.msra.mxu0 %v11247_v33  ;;  %7437 = vmatpush1.bf16.msra.mxu1 %v11250_v35  ;;  %v11289_v33 = vld [vmem:[#allocation17 + $0xe60] ss:$40 sps:$4 sm:$0xff]  }
 0x611   :  { %v13097_v0 = vadd.f32 %v3241_v31, %v3218_v38  ;;  %v3221_v44 = vmul.f32 %v3213_v28, %v3181_v21  ;;  %7274 = vmatprep.subr.bf16.mxu0 %v11255_v37  ;;  %7438 = vmatprep.subr.bf16.mxu1 %v11258_v60  ;;  %v3139_v59 = vadd.f32 %v3138_v46, %v3100_v7  ;;  %v11294_v31 = vld [vmem:[#allocation17 + $0xe6c] ss:$40 sps:$4 sm:$0xff]   ;;  %v11292_v35 = vld [vmem:[#allocation17 + $0xe68] ss:$40 sps:$4 sm:$0xff]   ;;  %v11300_v28 = vld [vmem:[#allocation17 + $0xebc] ss:$40 sps:$4 sm:$0xff]  }
 0x612   :  { %v13100_v39 = vadd.f32 %v3245_v40, %v3219_v42  ;;  %v11298_v38 = vld [vmem:[#allocation17 + $0xeb8] ss:$40 sps:$4 sm:$0xff]   ;;  %v11303_v40 = vld [vmem:[#allocation17 + $0xf04] ss:$40 sps:$4 sm:$0xff]  }
 0x613   :  { %v9921_v13 = vmul.f32 -1.442695, %v13097_v0  ;;  %v13102_v15 = vadd.f32 %v3253_v41, %v3221_v44  ;;  %v3140_v5 = vrot.slane %v3139_v59, 2  ;;  %v11306_v21 = vld [vmem:[#allocation17 + $0xf0c] ss:$40 sps:$4 sm:$0xff]  }
 0x614   :  { %v9922_v34 = vmul.f32 -1.442695, %v13100_v39  ;;  %7275 = vmatpush1.bf16.msra.mxu0 %v11253_v9  ;;  %7439 = vmatpush1.bf16.msra.mxu1 %v11256_v43  ;;  %v11312_v46 = vld [vmem:[#allocation17 + $0xf5c] ss:$40 sps:$4 sm:$0xff]  }
 0x615   :  { %12283 = vpow2.f32 %v9921_v13  ;;  %v9924_v54 = vmul.f32 -1.442695, %v13102_v15  ;;  %7276 = vmatprep.subr.bf16.mxu0 %v11261_v1  ;;  %7440 = vmatprep.subr.bf16.mxu1 %v11264_v45  ;;  %v3141_v12 = vadd.f32 %v3140_v5, %v3139_v59  ;;  %v11301_v1 = vld [vmem:[#allocation17 + $0xf00] ss:$40 sps:$4 sm:$0xff]   ;;  %v11324_v59 = vld [vmem:[#allocation17 + $0xffc] ss:$40 sps:$4 sm:$0xff]  }
 0x616   :  { %12285 = vpow2.f32 %v9922_v34  ;;  %v11304_v45 = vld [vmem:[#allocation17 + $0xf08] ss:$40 sps:$4 sm:$0xff]   ;;  %v11310_v34 = vld [vmem:[#allocation17 + $0xf58] ss:$40 sps:$4 sm:$0xff]   ;;  %v11327_v5 = vld [vmem:[#allocation17 + $0x1044] ss:$40 sps:$4 sm:$0xff]  }
 0x617   :  { %12287 = vpow2.f32 %v9924_v54  ;;  %v3142_v18 = vrot.slane %v3141_v12, 1  ;;  %v11313_v54 = vld [vmem:[#allocation17 + $0xfa0] ss:$40 sps:$4 sm:$0xff]  }
 0x618   :  { %7277 = vmatpush1.bf16.msra.mxu0 %v11259_v48  ;;  %7441 = vmatpush1.bf16.msra.mxu1 %v11262_v49  ;;  %v11315_v48 = vld [vmem:[#allocation17 + $0xfa4] ss:$40 sps:$4 sm:$0xff]  }
 0x619   :  { %7278 = vmatprep.subr.bf16.mxu0 %v11267_v8  ;;  %7442 = vmatprep.subr.bf16.mxu1 %v11270_v58  ;;  %v3143_v32 = vadd.f32 %v3142_v18, %v3141_v12  ;;  %v11318_v49 = vld [vmem:[#allocation17 + $0xfac] ss:$40 sps:$4 sm:$0xff]   ;;  %v11316_v8 = vld [vmem:[#allocation17 + $0xfa8] ss:$40 sps:$4 sm:$0xff]  }
 0x61a   :  { %v11321_v58 = vld [vmem:[#allocation17 + $0xff4] ss:$40 sps:$4 sm:$0xff]   ;;  %v11340_v18 = vld [vmem:[#allocation17 + $0x10e8] ss:$40 sps:$4 sm:$0xff]  }
 0x61b   :  { %v3156_v37 = vmul.f32 0.125, %v3143_v32  ;;  %v11333_v12 = vld [vmem:[#allocation17 + $0x1094] ss:$40 sps:$4 sm:$0xff]   ;;  %v11351_v32 = vld [vmem:[#allocation17 + $0x1184] ss:$40 sps:$4 sm:$0xff]  }
 0x61c   :  { %7279 = vmatpush1.bf16.msra.mxu0 %v11265_v61  ;;  %7443 = vmatpush1.bf16.msra.mxu1 %v11268_v62  ;;  %v1164_v62 = vld [vmem:[#allocation16 + $0x30] sm:$0xff] }
 0x61d   :  { %7280 = vmatprep.subr.bf16.mxu0 %v11273_v63  ;;  %7444 = vmatprep.subr.bf16.mxu1 %v11276_v4  ;;  %v3164_v42 = vadd.f32 0.8, %v3156_v37  ;;  %v11319_v63 = vld [vmem:[#allocation17 + $0xff0] ss:$40 sps:$4 sm:$0xff]   ;;  %v11360_v37 = vld [vmem:[#allocation17 + $0x11dc] ss:$40 sps:$4 sm:$0xff]  }
 0x61e   :  { %v11322_v4 = vld [vmem:[#allocation17 + $0xff8] ss:$40 sps:$4 sm:$0xff]  }
 0x61f   :  { %v12284_v11 = vpop.eup %12283 }
 0x620   :  { %v3290_v14 = vadd.f32 1.0, %v12284_v11  ;;  %v12286_v16 = vpop.eup %12285  ;;  %7281 = vmatpush1.bf16.msra.mxu0 %v11271_v2  ;;  %7445 = vmatpush1.bf16.msra.mxu1 %v11274_v6  ;;  %v11330_v2 = vld [vmem:[#allocation17 + $0x104c] ss:$40 sps:$4 sm:$0xff]   ;;  %v11328_v11 = vld [vmem:[#allocation17 + $0x1048] ss:$40 sps:$4 sm:$0xff]  }
 0x621   :  { %v12288_v51 = vpop.eup %12287  ;;  %v3291_v52 = vadd.f32 1.0, %v12286_v16  ;;  %7282 = vmatprep.subr.bf16.mxu0 %v11279_v3  ;;  %7446 = vmatprep.subr.bf16.mxu1 %v11282_v10  ;;  %v3209_v3 = vrot.slane %v1164_v62, %v12951_v30  ;;  %v11325_v10 = vld [vmem:[#allocation17 + $0x1040] ss:$40 sps:$4 sm:$0xff]  }
 0x622   :  { %12289 = vrcp.f32 %v3290_v14  ;;  %v3293_v19 = vadd.f32 1.0, %v12288_v51  ;;  %v11336_v14 = vld [vmem:[#allocation17 + $0x109c] ss:$40 sps:$4 sm:$0xff]   ;;  %v11334_v51 = vld [vmem:[#allocation17 + $0x1098] ss:$40 sps:$4 sm:$0xff]  }
 0x623   :  { %12291 = vrcp.f32 %v3291_v52  ;;  %v11342_v52 = vld [vmem:[#allocation17 + $0x10ec] ss:$40 sps:$4 sm:$0xff]  }
 0x624   :  { %12293 = vrcp.f32 %v3293_v19  ;;  %7283 = vmatpush1.bf16.msra.mxu0 %v11277_v47  ;;  %7447 = vmatpush1.bf16.msra.mxu1 %v11280_v17  ;;  %v3249_v47 = vrot.slane %v1164_v62, %v12955_v20  ;;  %v11331_v17 = vld [vmem:[#allocation17 + $0x1090] ss:$40 sps:$4 sm:$0xff]   ;;  %v11345_v19 = vld [vmem:[#allocation17 + $0x1134] ss:$40 sps:$4 sm:$0xff]  }
 0x625   :  { %7284 = vmatprep.subr.bf16.mxu0 %v11285_v55  ;;  %7448 = vmatprep.subr.bf16.mxu1 %v11288_v56  ;;  %12295 = vrsqrt.f32 %v3164_v42  ;;  %v11337_v56 = vld [vmem:[#allocation17 + $0x10e0] ss:$40 sps:$4 sm:$0xff]   ;;  %v11372_v42 = vld [vmem:[#allocation17 + $0x127c] ss:$40 sps:$4 sm:$0xff]  }
 0x626   :  { %v11393_v62 = vld [vmem:[#allocation17 + $0x13b4] ss:$40 sps:$4 sm:$0xff]  }
 0x628   :  { %7285 = vmatpush1.bf16.msra.mxu0 %v11283_v25  ;;  %7449 = vmatpush1.bf16.msra.mxu1 %v11286_v50  ;;  %v11348_v25 = vld [vmem:[#allocation17 + $0x113c] ss:$40 sps:$4 sm:$0xff]  }
 0x629   :  { %7286 = vmatprep.subr.bf16.mxu0 %v11291_v26  ;;  %7450 = vmatprep.subr.bf16.mxu1 %v11294_v31  ;;  %v11343_v26 = vld [vmem:[#allocation17 + $0x1130] ss:$40 sps:$4 sm:$0xff]  }
 0x62a   :  { %v11346_v31 = vld [vmem:[#allocation17 + $0x1138] ss:$40 sps:$4 sm:$0xff]  }
 0x62c   :  { %v12290_v60 = vpop.eup %12289  ;;  %7287 = vmatpush1.bf16.msra.mxu0 %v11289_v33  ;;  %7451 = vmatpush1.bf16.msra.mxu1 %v11292_v35  ;;  %v11354_v33 = vld [vmem:[#allocation17 + $0x118c] ss:$40 sps:$4 sm:$0xff]   ;;  %v11349_v35 = vld [vmem:[#allocation17 + $0x1180] ss:$40 sps:$4 sm:$0xff]  }
 0x62d   :  { %v12292_v7 = vpop.eup %12291  ;;  %v3314_v29 = vmul.f32 %v12290_v60, %v13097_v0  ;;  %7288 = vmatprep.subr.bf16.mxu0 %v11297_v36  ;;  %7452 = vmatprep.subr.bf16.mxu1 %v11300_v28  ;;  %v11309_v0 = vld [vmem:[#allocation17 + $0xf54] ss:$40 sps:$4 sm:$0xff]   ;;  %v11352_v36 = vld [vmem:[#allocation17 + $0x1188] ss:$40 sps:$4 sm:$0xff]  }
 0x62e   :  { %v12294_v41 = vpop.eup %12293  ;;  %v3315_v9 = vmul.f32 %v12292_v7, %v13100_v39  ;;  %v11357_v28 = vld [vmem:[#allocation17 + $0x11d4] ss:$40 sps:$4 sm:$0xff]   ;;  %v11355_v60 = vld [vmem:[#allocation17 + $0x11d0] ss:$40 sps:$4 sm:$0xff]  }
 0x62f   :  { %v3317_v43 = vmul.f32 %v12294_v41, %v13102_v15  ;;  %v13111_v13 = vpack.c.bf16 %v3314_v29, %v3314_v29  ;;  %v11307_v15 = vld [vmem:[#allocation17 + $0xf50] ss:$40 sps:$4 sm:$0xff]   ;;  %v12296_v61 = vpop.eup %12295  ;;  %v11366_v7 = vld [vmem:[#allocation17 + $0x122c] ss:$40 sps:$4 sm:$0xff]   ;;  %v11361_v29 = vld [vmem:[#allocation17 + $0x1220] ss:$40 sps:$4 sm:$0xff]  }
 0x630   :  { %7289 = vmatpush1.bf16.msra.mxu0 %v11295_v27  ;;  %7453 = vmatpush1.bf16.msra.mxu1 %v11298_v38  ;;  %v13109_v44 = vpack.c.bf16 %v3315_v9, %v3315_v9  ;;  %v3180_v6 = vmul.f32 %v12296_v61, %v13085_v23  ;;  %v11339_v23 = vld [vmem:[#allocation17 + $0x10e4] ss:$40 sps:$4 sm:$0xff]   ;;  %v11358_v27 = vld [vmem:[#allocation17 + $0x11d8] ss:$40 sps:$4 sm:$0xff]   ;;  %v11369_v41 = vld [vmem:[#allocation17 + $0x1274] ss:$40 sps:$4 sm:$0xff]  }
 0x631   :  { %7299 = vmatprep.subr.bf16.mxu0 %v11303_v40  ;;  %7463 = vmatprep.subr.bf16.mxu1 %v11306_v21  ;;  %v13117_v39 = vpack.c.bf16 %v3317_v43, %v3317_v43  ;;  %v11363_v38 = vld [vmem:[#allocation17 + $0x1224] ss:$40 sps:$4 sm:$0xff]   ;;  %v11364_v40 = vld [vmem:[#allocation17 + $0x1228] ss:$40 sps:$4 sm:$0xff]  }
 0x632   :  { %7290 = vmatprep.mubr.bf16.mxu0 %v13109_v44  ;;  %7454 = vmatprep.mubr.bf16.mxu1 %v13109_v44  ;;  %v3220_v16 = vmul.f32 %v3209_v3, %v3180_v6  ;;  %v11367_v43 = vld [vmem:[#allocation17 + $0x1270] ss:$40 sps:$4 sm:$0xff]   ;;  %v11399_v3 = vld [vmem:[#allocation17 + $0x14] ss:$40 sps:$4 sm:$0xff]  }
 0x633   :  { %7291 = vmatmul.mubr.bf16.vlgmr.msra.gmra.mrb[20].mxu0 %v13111_v13  ;;  %7455 = vmatmul.mubr.bf16.vlgmr.msra.gmra.mrb[12].mxu1 %v13111_v13  ;;  %v11388_v61 = vld [vmem:[#allocation17 + $0x1368] ss:$40 sps:$4 sm:$0xff]  }
 0x634   :  { %7300 = vmatpush1.bf16.msra.mxu0 %v11301_v1  ;;  %7464 = vmatpush1.bf16.msra.mxu1 %v11304_v45  ;;  %v13124_v55 = vadd.f32 %v3249_v47, %v3220_v16  ;;  %v11370_v1 = vld [vmem:[#allocation17 + $0x1278] ss:$40 sps:$4 sm:$0xff]   ;;  %v11375_v45 = vld [vmem:[#allocation17 + $0x12c4] ss:$40 sps:$4 sm:$0xff]  }
 0x635   :  { %7331 = vmatprep.mubr.bf16.mxu0 %v13117_v39  ;;  %7495 = vmatprep.mubr.bf16.mxu1 %v13117_v39  ;;  %v11405_v16 = vld [vmem:[#allocation17 + $0x64] ss:$40 sps:$4 sm:$0xff]  }
 0x636   :  { %7301 = vmatprep.subr.bf16.mxu0 %v11309_v0  ;;  %7465 = vmatprep.subr.bf16.mxu1 %v11312_v46  ;;  %v9923_v50 = vmul.f32 -1.442695, %v13124_v55  ;;  %v11378_v0 = vld [vmem:[#allocation17 + $0x12cc] ss:$40 sps:$4 sm:$0xff]   ;;  %v11373_v46 = vld [vmem:[#allocation17 + $0x12c0] ss:$40 sps:$4 sm:$0xff]  }
 0x637   :  { %v11408_v47 = vld [vmem:[#allocation17 + $0x6c] ss:$40 sps:$4 sm:$0xff]  }
 0x638   :  { %7302 = vmatpush1.bf16.msra.mxu0 %v11307_v15  ;;  %7466 = vmatpush1.bf16.msra.mxu1 %v11310_v34  ;;  %12297 = vpow2.f32 %v9923_v50  ;;  %v11376_v15 = vld [vmem:[#allocation17 + $0x12c8] ss:$40 sps:$4 sm:$0xff]   ;;  %v11381_v34 = vld [vmem:[#allocation17 + $0x1314] ss:$40 sps:$4 sm:$0xff]  }
 0x639   :  { %7303 = vmatprep.subr.bf16.mxu0 %v11315_v48  ;;  %7467 = vmatprep.subr.bf16.mxu1 %v11318_v49  ;;  %v11384_v48 = vld [vmem:[#allocation17 + $0x131c] ss:$40 sps:$4 sm:$0xff]   ;;  %v11379_v49 = vld [vmem:[#allocation17 + $0x1310] ss:$40 sps:$4 sm:$0xff]  }
 0x63a   :  { %v11418_v50 = vld [vmem:[#allocation17 + $0x108] ss:$40 sps:$4 sm:$0xff]  }
 0x63c   :  { %7304 = vmatpush1.bf16.msra.mxu0 %v11313_v54  ;;  %7468 = vmatpush1.bf16.msra.mxu1 %v11316_v8  ;;  %v11382_v54 = vld [vmem:[#allocation17 + $0x1318] ss:$40 sps:$4 sm:$0xff]   ;;  %v11387_v8 = vld [vmem:[#allocation17 + $0x1364] ss:$40 sps:$4 sm:$0xff]  }
 0x63d   :  { %7305 = vmatprep.subr.bf16.mxu0 %v11321_v58  ;;  %7469 = vmatprep.subr.bf16.mxu1 %v11324_v59  ;;  %v11390_v58 = vld [vmem:[#allocation17 + $0x136c] ss:$40 sps:$4 sm:$0xff]   ;;  %v11385_v59 = vld [vmem:[#allocation17 + $0x1360] ss:$40 sps:$4 sm:$0xff]  }
 0x640   :  { %7306 = vmatpush1.bf16.msra.mxu0 %v11319_v63  ;;  %7470 = vmatpush1.bf16.msra.mxu1 %v11322_v4  ;;  %v11396_v63 = vld [vmem:[#allocation17 + $0x13bc] ss:$40 sps:$4 sm:$0xff]  }
 0x641   :  { %7307 = vmatprep.subr.bf16.mxu0 %v11327_v5  ;;  %7471 = vmatprep.subr.bf16.mxu1 %v11330_v2  ;;  %v11391_v5 = vld [vmem:[#allocation17 + $0x13b0] ss:$40 sps:$4 sm:$0xff]  }
 0x642   :  { %v12298_v21 = vpop.eup %12297  ;;  %v11394_v2 = vld [vmem:[#allocation17 + $0x13b8] ss:$40 sps:$4 sm:$0xff]  }
 0x643   :  { %v3292_v9 = vadd.f32 1.0, %v12298_v21  ;;  %v11439_v21 = vld [vmem:[#allocation17 + $0x240] ss:$40 sps:$4 sm:$0xff]  }
 0x644   :  { %7308 = vmatpush1.bf16.msra.mxu0 %v11325_v10  ;;  %7472 = vmatpush1.bf16.msra.mxu1 %v11328_v11  ;;  %v11402_v10 = vld [vmem:[#allocation17 + $0x1c] ss:$40 sps:$4 sm:$0xff]   ;;  %v11397_v11 = vld [vmem:[#allocation17 + $0x10] ss:$40 sps:$4 sm:$0xff]  }
 0x645   :  { %7309 = vmatprep.subr.bf16.mxu0 %v11333_v12  ;;  %7473 = vmatprep.subr.bf16.mxu1 %v11336_v14  ;;  %12299 = vrcp.f32 %v3292_v9  ;;  %v11400_v14 = vld [vmem:[#allocation17 + $0x18] ss:$40 sps:$4 sm:$0xff]   ;;  %v11450_v9 = vld [vmem:[#allocation17 + $0x29c] ss:$40 sps:$4 sm:$0xff]  }
 0x648   :  { %7310 = vmatpush1.bf16.msra.mxu0 %v11331_v17  ;;  %7474 = vmatpush1.bf16.msra.mxu1 %v11334_v51  ;;  %v11403_v17 = vld [vmem:[#allocation17 + $0x60] ss:$40 sps:$4 sm:$0xff]  }
 0x649   :  { %7311 = vmatprep.subr.bf16.mxu0 %v11339_v23  ;;  %7475 = vmatprep.subr.bf16.mxu1 %v11342_v52  ;;  %v11406_v51 = vld [vmem:[#allocation17 + $0x68] ss:$40 sps:$4 sm:$0xff]   ;;  %v11411_v23 = vld [vmem:[#allocation17 + $0xb4] ss:$40 sps:$4 sm:$0xff]  }
 0x64a   :  { %v11414_v52 = vld [vmem:[#allocation17 + $0xbc] ss:$40 sps:$4 sm:$0xff]  }
 0x64c   :  { %7312 = vmatpush1.bf16.msra.mxu0 %v11337_v56  ;;  %7476 = vmatpush1.bf16.msra.mxu1 %v11340_v18  ;;  %v11412_v56 = vld [vmem:[#allocation17 + $0xb8] ss:$40 sps:$4 sm:$0xff]   ;;  %v11417_v18 = vld [vmem:[#allocation17 + $0x104] ss:$40 sps:$4 sm:$0xff]  }
 0x64d   :  { %7313 = vmatprep.subr.bf16.mxu0 %v11345_v19  ;;  %7477 = vmatprep.subr.bf16.mxu1 %v11348_v25  ;;  %v11420_v19 = vld [vmem:[#allocation17 + $0x10c] ss:$40 sps:$4 sm:$0xff]   ;;  %v11415_v25 = vld [vmem:[#allocation17 + $0x100] ss:$40 sps:$4 sm:$0xff]  }
 0x64f   :  { %v12300_v4 = vpop.eup %12299 }
 0x650   :  { %7314 = vmatpush1.bf16.msra.mxu0 %v11343_v26  ;;  %7478 = vmatpush1.bf16.msra.mxu1 %v11346_v31  ;;  %v3316_v6 = vmul.f32 %v12300_v4, %v13124_v55  ;;  %v11409_v55 = vld [vmem:[#allocation17 + $0xb0] ss:$40 sps:$4 sm:$0xff]   ;;  %v11423_v26 = vld [vmem:[#allocation17 + $0x154] ss:$40 sps:$4 sm:$0xff]  }
 0x651   :  { %7315 = vmatprep.subr.bf16.mxu0 %v11351_v32  ;;  %7479 = vmatprep.subr.bf16.mxu1 %v11354_v33  ;;  %v11426_v31 = vld [vmem:[#allocation17 + $0x15c] ss:$40 sps:$4 sm:$0xff]   ;;  %v11421_v32 = vld [vmem:[#allocation17 + $0x150] ss:$40 sps:$4 sm:$0xff]  }
 0x652   :  { %v13128_v12 = vpack.c.bf16 %v3316_v6, %v3316_v6  ;;  %v11424_v33 = vld [vmem:[#allocation17 + $0x158] ss:$40 sps:$4 sm:$0xff]   ;;  %v11480_v6 = vld [vmem:[#allocation17 + $0x42c] ss:$40 sps:$4 sm:$0xff]  }
 0x653   :  { %v11469_v4 = vld [vmem:[#allocation17 + $0x3d0] ss:$40 sps:$4 sm:$0xff]  }
 0x654   :  { %7316 = vmatpush1.bf16.msra.mxu0 %v11349_v35  ;;  %7480 = vmatpush1.bf16.msra.mxu1 %v11352_v36  ;;  %v11429_v35 = vld [vmem:[#allocation17 + $0x1a4] ss:$40 sps:$4 sm:$0xff]  }
 0x655   :  { %7317 = vmatprep.subr.bf16.mxu0 %v11357_v28  ;;  %7481 = vmatprep.subr.bf16.mxu1 %v11360_v37  ;;  %v11432_v36 = vld [vmem:[#allocation17 + $0x1ac] ss:$40 sps:$4 sm:$0xff]   ;;  %v11427_v28 = vld [vmem:[#allocation17 + $0x1a0] ss:$40 sps:$4 sm:$0xff]  }
 0x656   :  { %v11430_v37 = vld [vmem:[#allocation17 + $0x1a8] ss:$40 sps:$4 sm:$0xff]  }
 0x658   :  { %7318 = vmatpush1.bf16.msra.mxu0 %v11355_v60  ;;  %7482 = vmatpush1.bf16.msra.mxu1 %v11358_v27  ;;  %v11435_v60 = vld [vmem:[#allocation17 + $0x1f4] ss:$40 sps:$4 sm:$0xff]  }
 0x659   :  { %7319 = vmatprep.subr.bf16.mxu0 %v11363_v38  ;;  %7483 = vmatprep.subr.bf16.mxu1 %v11366_v7  ;;  %v11438_v27 = vld [vmem:[#allocation17 + $0x1fc] ss:$40 sps:$4 sm:$0xff]   ;;  %v11433_v38 = vld [vmem:[#allocation17 + $0x1f0] ss:$40 sps:$4 sm:$0xff]  }
 0x65a   :  { %v11436_v7 = vld [vmem:[#allocation17 + $0x1f8] ss:$40 sps:$4 sm:$0xff]  }
 0x65c   :  { %7320 = vmatpush1.bf16.msra.mxu0 %v11361_v29  ;;  %7484 = vmatpush1.bf16.msra.mxu1 %v11364_v40  ;;  %v11441_v29 = vld [vmem:[#allocation17 + $0x244] ss:$40 sps:$4 sm:$0xff]  }
 0x65d   :  { %7321 = vmatprep.subr.bf16.mxu0 %v11369_v41  ;;  %7485 = vmatprep.subr.bf16.mxu1 %v11372_v42  ;;  %v11444_v40 = vld [vmem:[#allocation17 + $0x24c] ss:$40 sps:$4 sm:$0xff]   ;;  %v11442_v41 = vld [vmem:[#allocation17 + $0x248] ss:$40 sps:$4 sm:$0xff]  }
 0x65e   :  { %v11447_v42 = vld [vmem:[#allocation17 + $0x294] ss:$40 sps:$4 sm:$0xff]  }
 0x660   :  { %7322 = vmatpush1.bf16.msra.mxu0 %v11367_v43  ;;  %7486 = vmatpush1.bf16.msra.mxu1 %v11370_v1  ;;  %v11445_v43 = vld [vmem:[#allocation17 + $0x290] ss:$40 sps:$4 sm:$0xff]  }
 0x661   :  { %7323 = vmatprep.subr.bf16.mxu0 %v11375_v45  ;;  %7487 = vmatprep.subr.bf16.mxu1 %v11378_v0  ;;  %v11448_v1 = vld [vmem:[#allocation17 + $0x298] ss:$40 sps:$4 sm:$0xff]   ;;  %v11453_v45 = vld [vmem:[#allocation17 + $0x2e4] ss:$40 sps:$4 sm:$0xff]  }
 0x662   :  { %v11456_v0 = vld [vmem:[#allocation17 + $0x2ec] ss:$40 sps:$4 sm:$0xff]  }
 0x664   :  { %7324 = vmatpush1.bf16.msra.mxu0 %v11373_v46  ;;  %7488 = vmatpush1.bf16.msra.mxu1 %v11376_v15  ;;  %v11451_v46 = vld [vmem:[#allocation17 + $0x2e0] ss:$40 sps:$4 sm:$0xff]  }
 0x665   :  { %7325 = vmatprep.subr.bf16.mxu0 %v11381_v34  ;;  %7489 = vmatprep.subr.bf16.mxu1 %v11384_v48  ;;  %v11454_v15 = vld [vmem:[#allocation17 + $0x2e8] ss:$40 sps:$4 sm:$0xff]   ;;  %v11459_v34 = vld [vmem:[#allocation17 + $0x334] ss:$40 sps:$4 sm:$0xff]  }
 0x666   :  { %v11462_v48 = vld [vmem:[#allocation17 + $0x33c] ss:$40 sps:$4 sm:$0xff]  }
 0x668   :  { %7326 = vmatpush1.bf16.msra.mxu0 %v11379_v49  ;;  %7490 = vmatpush1.bf16.msra.mxu1 %v11382_v54  ;;  %v11457_v49 = vld [vmem:[#allocation17 + $0x330] ss:$40 sps:$4 sm:$0xff]  }
 0x669   :  { %7327 = vmatprep.subr.bf16.mxu0 %v11387_v8  ;;  %7491 = vmatprep.subr.bf16.mxu1 %v11390_v58  ;;  %v11460_v54 = vld [vmem:[#allocation17 + $0x338] ss:$40 sps:$4 sm:$0xff]   ;;  %v11465_v8 = vld [vmem:[#allocation17 + $0x384] ss:$40 sps:$4 sm:$0xff]  }
 0x66a   :  { %v11468_v58 = vld [vmem:[#allocation17 + $0x38c] ss:$40 sps:$4 sm:$0xff]  }
 0x66c   :  { %7328 = vmatpush1.bf16.msra.mxu0 %v11385_v59  ;;  %7492 = vmatpush1.bf16.msra.mxu1 %v11388_v61  ;;  %v11463_v59 = vld [vmem:[#allocation17 + $0x380] ss:$40 sps:$4 sm:$0xff]  }
 0x66d   :  { %7329 = vmatprep.subr.bf16.mxu0 %v11393_v62  ;;  %7493 = vmatprep.subr.bf16.mxu1 %v11396_v63  ;;  %v11466_v61 = vld [vmem:[#allocation17 + $0x388] ss:$40 sps:$4 sm:$0xff]   ;;  %v11471_v62 = vld [vmem:[#allocation17 + $0x3d4] ss:$40 sps:$4 sm:$0xff]  }
 0x66e   :  { %v11474_v63 = vld [vmem:[#allocation17 + $0x3dc] ss:$40 sps:$4 sm:$0xff]  }
 0x670   :  { %7330 = vmatpush1.bf16.msra.mxu0 %v11391_v5  ;;  %7494 = vmatpush1.bf16.msra.mxu1 %v11394_v2  ;;  %v11472_v5 = vld [vmem:[#allocation17 + $0x3d8] ss:$40 sps:$4 sm:$0xff]   ;;  %v11477_v2 = vld [vmem:[#allocation17 + $0x424] ss:$40 sps:$4 sm:$0xff]  }
 0x671   :  { %7504 = vmatprep.subr.bf16.mxu0 %v11399_v3  ;;  %7668 = vmatprep.subr.bf16.mxu1 %v11402_v10  ;;  %v11475_v3 = vld [vmem:[#allocation17 + $0x420] ss:$40 sps:$4 sm:$0xff]  }
 0x672   :  { %v11478_v10 = vld [vmem:[#allocation17 + $0x428] ss:$40 sps:$4 sm:$0xff]  }
 0x673   :  { %7332 = vmatmul.mubr.bf16.vlgmr.msra.gmra.mrb[20].mxu0 %v13128_v12  ;;  %7496 = vmatmul.mubr.bf16.vlgmr.msra.gmra.mrb[12].mxu1 %v13128_v12 }
 0x674   :  { %7505 = vmatpush1.bf16.msra.mxu0 %v11397_v11  ;;  %7536 = vmatprep.mubr.bf16.mxu0 %v13044_v57  ;;  %v11483_v11 = vld [vmem:[#allocation17 + $0x474] ss:$40 sps:$4 sm:$0xff]  }
 0x675   :  { %7669 = vmatpush1.bf16.msra.mxu1 %v11400_v14  ;;  %7700 = vmatprep.mubr.bf16.mxu1 %v13044_v57  ;;  %v11486_v14 = vld [vmem:[#allocation17 + $0x47c] ss:$40 sps:$4 sm:$0xff]  }
 0x676   :  { %7506 = vmatprep.subr.bf16.mxu0 %v11405_v16  ;;  %7670 = vmatprep.subr.bf16.mxu1 %v11408_v47  ;;  %v11481_v16 = vld [vmem:[#allocation17 + $0x470] ss:$40 sps:$4 sm:$0xff]  }
 0x677   :  { %v11484_v47 = vld [vmem:[#allocation17 + $0x478] ss:$40 sps:$4 sm:$0xff]  }
 0x678   :  { %7507 = vmatpush1.bf16.msra.mxu0 %v11403_v17  ;;  %v11489_v17 = vld [vmem:[#allocation17 + $0x4c4] ss:$40 sps:$4 sm:$0xff]  }
 0x679   :  { %7671 = vmatpush1.bf16.msra.mxu1 %v11406_v51  ;;  %7508 = vmatprep.subr.bf16.mxu0 %v11411_v23  ;;  %v11492_v51 = vld [vmem:[#allocation17 + $0x4cc] ss:$40 sps:$4 sm:$0xff]   ;;  %v11487_v23 = vld [vmem:[#allocation17 + $0x4c0] ss:$40 sps:$4 sm:$0xff]  }
 0x67a   :  { %7672 = vmatprep.subr.bf16.mxu1 %v11414_v52  ;;  %v11490_v52 = vld [vmem:[#allocation17 + $0x4c8] ss:$40 sps:$4 sm:$0xff]  }
 0x67c   :  { %7509 = vmatpush1.bf16.msra.mxu0 %v11409_v55  ;;  %v11495_v55 = vld [vmem:[#allocation17 + $0x514] ss:$40 sps:$4 sm:$0xff]  }
 0x67d   :  { %7673 = vmatpush1.bf16.msra.mxu1 %v11412_v56  ;;  %7510 = vmatprep.subr.bf16.mxu0 %v11417_v18  ;;  %v11498_v56 = vld [vmem:[#allocation17 + $0x51c] ss:$40 sps:$4 sm:$0xff]   ;;  %v11493_v18 = vld [vmem:[#allocation17 + $0x510] ss:$40 sps:$4 sm:$0xff]  }
 0x67e   :  { %7674 = vmatprep.subr.bf16.mxu1 %v11420_v19  ;;  %v11496_v19 = vld [vmem:[#allocation17 + $0x518] ss:$40 sps:$4 sm:$0xff]  }
 0x680   :  { %7511 = vmatpush1.bf16.msra.mxu0 %v11415_v25  ;;  %v11501_v25 = vld [vmem:[#allocation17 + $0x564] ss:$40 sps:$4 sm:$0xff]  }
 0x681   :  { %7675 = vmatpush1.bf16.msra.mxu1 %v11418_v50  ;;  %7512 = vmatprep.subr.bf16.mxu0 %v11423_v26  ;;  %v11504_v50 = vld [vmem:[#allocation17 + $0x56c] ss:$40 sps:$4 sm:$0xff]   ;;  %v11499_v26 = vld [vmem:[#allocation17 + $0x560] ss:$40 sps:$4 sm:$0xff]  }
 0x682   :  { %7676 = vmatprep.subr.bf16.mxu1 %v11426_v31  ;;  %v11502_v31 = vld [vmem:[#allocation17 + $0x568] ss:$40 sps:$4 sm:$0xff]  }
 0x684   :  { %7513 = vmatpush1.bf16.msra.mxu0 %v11421_v32  ;;  %v11507_v32 = vld [vmem:[#allocation17 + $0x5b4] ss:$40 sps:$4 sm:$0xff]  }
 0x685   :  { %7677 = vmatpush1.bf16.msra.mxu1 %v11424_v33  ;;  %7514 = vmatprep.subr.bf16.mxu0 %v11429_v35  ;;  %v11510_v33 = vld [vmem:[#allocation17 + $0x5bc] ss:$40 sps:$4 sm:$0xff]   ;;  %v11505_v35 = vld [vmem:[#allocation17 + $0x5b0] ss:$40 sps:$4 sm:$0xff]  }
 0x686   :  { %7678 = vmatprep.subr.bf16.mxu1 %v11432_v36  ;;  %v11508_v36 = vld [vmem:[#allocation17 + $0x5b8] ss:$40 sps:$4 sm:$0xff]  }
 0x688   :  { %7515 = vmatpush1.bf16.msra.mxu0 %v11427_v28  ;;  %v11513_v28 = vld [vmem:[#allocation17 + $0x604] ss:$40 sps:$4 sm:$0xff]  }
 0x689   :  { %7679 = vmatpush1.bf16.msra.mxu1 %v11430_v37  ;;  %7516 = vmatprep.subr.bf16.mxu0 %v11435_v60  ;;  %v11516_v37 = vld [vmem:[#allocation17 + $0x60c] ss:$40 sps:$4 sm:$0xff]   ;;  %v11511_v60 = vld [vmem:[#allocation17 + $0x600] ss:$40 sps:$4 sm:$0xff]  }
 0x68a   :  { %7680 = vmatprep.subr.bf16.mxu1 %v11438_v27  ;;  %v11514_v27 = vld [vmem:[#allocation17 + $0x608] ss:$40 sps:$4 sm:$0xff]  }
 0x68c   :  { %7517 = vmatpush1.bf16.msra.mxu0 %v11433_v38  ;;  %v11519_v38 = vld [vmem:[#allocation17 + $0x654] ss:$40 sps:$4 sm:$0xff]  }
 0x68d   :  { %7681 = vmatpush1.bf16.msra.mxu1 %v11436_v7  ;;  %7518 = vmatprep.subr.bf16.mxu0 %v11441_v29  ;;  %v11522_v7 = vld [vmem:[#allocation17 + $0x65c] ss:$40 sps:$4 sm:$0xff]   ;;  %v11517_v29 = vld [vmem:[#allocation17 + $0x650] ss:$40 sps:$4 sm:$0xff]  }
 0x68e   :  { %7682 = vmatprep.subr.bf16.mxu1 %v11444_v40  ;;  %v11520_v40 = vld [vmem:[#allocation17 + $0x658] ss:$40 sps:$4 sm:$0xff]  }
 0x690   :  { %7519 = vmatpush1.bf16.msra.mxu0 %v11439_v21  ;;  %v11525_v21 = vld [vmem:[#allocation17 + $0x6a4] ss:$40 sps:$4 sm:$0xff]  }
 0x691   :  { %7683 = vmatpush1.bf16.msra.mxu1 %v11442_v41  ;;  %7520 = vmatprep.subr.bf16.mxu0 %v11447_v42  ;;  %v11528_v41 = vld [vmem:[#allocation17 + $0x6ac] ss:$40 sps:$4 sm:$0xff]   ;;  %v11523_v42 = vld [vmem:[#allocation17 + $0x6a0] ss:$40 sps:$4 sm:$0xff]  }
 0x692   :  { %7684 = vmatprep.subr.bf16.mxu1 %v11450_v9  ;;  %v11526_v9 = vld [vmem:[#allocation17 + $0x6a8] ss:$40 sps:$4 sm:$0xff]  }
 0x694   :  { %7521 = vmatpush1.bf16.msra.mxu0 %v11445_v43  ;;  %v11531_v43 = vld [vmem:[#allocation17 + $0x6f4] ss:$40 sps:$4 sm:$0xff]  }
 0x695   :  { %7685 = vmatpush1.bf16.msra.mxu1 %v11448_v1  ;;  %7522 = vmatprep.subr.bf16.mxu0 %v11453_v45  ;;  %v11534_v1 = vld [vmem:[#allocation17 + $0x6fc] ss:$40 sps:$4 sm:$0xff]   ;;  %v11529_v45 = vld [vmem:[#allocation17 + $0x6f0] ss:$40 sps:$4 sm:$0xff]  }
 0x696   :  { %7686 = vmatprep.subr.bf16.mxu1 %v11456_v0  ;;  %v11532_v0 = vld [vmem:[#allocation17 + $0x6f8] ss:$40 sps:$4 sm:$0xff]  }
 0x698   :  { %7523 = vmatpush1.bf16.msra.mxu0 %v11451_v46  ;;  %v11537_v46 = vld [vmem:[#allocation17 + $0x744] ss:$40 sps:$4 sm:$0xff]  }
 0x699   :  { %7687 = vmatpush1.bf16.msra.mxu1 %v11454_v15  ;;  %7524 = vmatprep.subr.bf16.mxu0 %v11459_v34  ;;  %v11540_v15 = vld [vmem:[#allocation17 + $0x74c] ss:$40 sps:$4 sm:$0xff]   ;;  %v11535_v34 = vld [vmem:[#allocation17 + $0x740] ss:$40 sps:$4 sm:$0xff]  }
 0x69a   :  { %7688 = vmatprep.subr.bf16.mxu1 %v11462_v48  ;;  %v11538_v48 = vld [vmem:[#allocation17 + $0x748] ss:$40 sps:$4 sm:$0xff]  }
 0x69c   :  { %7525 = vmatpush1.bf16.msra.mxu0 %v11457_v49  ;;  %v11543_v49 = vld [vmem:[#allocation17 + $0x794] ss:$40 sps:$4 sm:$0xff]  }
 0x69d   :  { %7689 = vmatpush1.bf16.msra.mxu1 %v11460_v54  ;;  %7526 = vmatprep.subr.bf16.mxu0 %v11465_v8  ;;  %v11546_v54 = vld [vmem:[#allocation17 + $0x79c] ss:$40 sps:$4 sm:$0xff]   ;;  %v11541_v8 = vld [vmem:[#allocation17 + $0x790] ss:$40 sps:$4 sm:$0xff]  }
 0x69e   :  { %7690 = vmatprep.subr.bf16.mxu1 %v11468_v58  ;;  %v11544_v58 = vld [vmem:[#allocation17 + $0x798] ss:$40 sps:$4 sm:$0xff]  }
 0x6a0   :  { %7527 = vmatpush1.bf16.msra.mxu0 %v11463_v59  ;;  %v11549_v59 = vld [vmem:[#allocation17 + $0x7e4] ss:$40 sps:$4 sm:$0xff]  }
 0x6a1   :  { %7691 = vmatpush1.bf16.msra.mxu1 %v11466_v61  ;;  %7528 = vmatprep.subr.bf16.mxu0 %v11471_v62  ;;  %v11552_v61 = vld [vmem:[#allocation17 + $0x7ec] ss:$40 sps:$4 sm:$0xff]   ;;  %v11547_v62 = vld [vmem:[#allocation17 + $0x7e0] ss:$40 sps:$4 sm:$0xff]  }
 0x6a2   :  { %7692 = vmatprep.subr.bf16.mxu1 %v11474_v63  ;;  %v11550_v63 = vld [vmem:[#allocation17 + $0x7e8] ss:$40 sps:$4 sm:$0xff]  }
 0x6a4   :  { %7529 = vmatpush1.bf16.msra.mxu0 %v11469_v4  ;;  %v11555_v4 = vld [vmem:[#allocation17 + $0x834] ss:$40 sps:$4 sm:$0xff]  }
 0x6a5   :  { %7693 = vmatpush1.bf16.msra.mxu1 %v11472_v5  ;;  %7530 = vmatprep.subr.bf16.mxu0 %v11477_v2  ;;  %v11558_v5 = vld [vmem:[#allocation17 + $0x83c] ss:$40 sps:$4 sm:$0xff]   ;;  %v11553_v2 = vld [vmem:[#allocation17 + $0x830] ss:$40 sps:$4 sm:$0xff]  }
 0x6a6   :  { %7694 = vmatprep.subr.bf16.mxu1 %v11480_v6  ;;  %v11556_v6 = vld [vmem:[#allocation17 + $0x838] ss:$40 sps:$4 sm:$0xff]  }
 0x6a8   :  { %7531 = vmatpush1.bf16.msra.mxu0 %v11475_v3  ;;  %v11561_v3 = vld [vmem:[#allocation17 + $0x884] ss:$40 sps:$4 sm:$0xff]  }
 0x6a9   :  { %7695 = vmatpush1.bf16.msra.mxu1 %v11478_v10  ;;  %7532 = vmatprep.subr.bf16.mxu0 %v11483_v11  ;;  %v11564_v10 = vld [vmem:[#allocation17 + $0x88c] ss:$40 sps:$4 sm:$0xff]   ;;  %v11559_v11 = vld [vmem:[#allocation17 + $0x880] ss:$40 sps:$4 sm:$0xff]  }
 0x6aa   :  { %7696 = vmatprep.subr.bf16.mxu1 %v11486_v14  ;;  %v11562_v14 = vld [vmem:[#allocation17 + $0x888] ss:$40 sps:$4 sm:$0xff]  }
 0x6ac   :  { %7533 = vmatpush1.bf16.msra.mxu0 %v11481_v16  ;;  %v11567_v16 = vld [vmem:[#allocation17 + $0x8d4] ss:$40 sps:$4 sm:$0xff]  }
 0x6ad   :  { %7697 = vmatpush1.bf16.msra.mxu1 %v11484_v47  ;;  %7534 = vmatprep.subr.bf16.mxu0 %v11489_v17  ;;  %v11570_v47 = vld [vmem:[#allocation17 + $0x8dc] ss:$40 sps:$4 sm:$0xff]   ;;  %v11565_v17 = vld [vmem:[#allocation17 + $0x8d0] ss:$40 sps:$4 sm:$0xff]  }
 0x6ae   :  { %7698 = vmatprep.subr.bf16.mxu1 %v11492_v51  ;;  %v11568_v51 = vld [vmem:[#allocation17 + $0x8d8] ss:$40 sps:$4 sm:$0xff]  }
 0x6b0   :  { %7535 = vmatpush1.bf16.msra.mxu0 %v11487_v23  ;;  %v11573_v23 = vld [vmem:[#allocation17 + $0x924] ss:$40 sps:$4 sm:$0xff]  }
 0x6b1   :  { %7699 = vmatpush1.bf16.msra.mxu1 %v11490_v52  ;;  %7545 = vmatprep.subr.bf16.mxu0 %v11495_v55  ;;  %v11576_v52 = vld [vmem:[#allocation17 + $0x92c] ss:$40 sps:$4 sm:$0xff]   ;;  %v11571_v55 = vld [vmem:[#allocation17 + $0x920] ss:$40 sps:$4 sm:$0xff]  }
 0x6b2   :  { %7709 = vmatprep.subr.bf16.mxu1 %v11498_v56  ;;  %v11574_v56 = vld [vmem:[#allocation17 + $0x928] ss:$40 sps:$4 sm:$0xff]  }
 0x6b3   :  { %7537 = vmatmul.mubr.bf16.vlgmr.msra.gmra.mrb[24].mxu0 %v13046_v22 }
 0x6b4   :  { %7701 = vmatmul.mubr.bf16.vlgmr.msra.gmra.mrb[16].mxu1 %v13046_v22  ;;  %7546 = vmatpush1.bf16.msra.mxu0 %v11493_v18  ;;  %v11579_v18 = vld [vmem:[#allocation17 + $0x974] ss:$40 sps:$4 sm:$0xff]  }
 0x6b5   :  { %7577 = vmatprep.mubr.bf16.mxu0 %v13052_v24  ;;  %7710 = vmatpush1.bf16.msra.mxu1 %v11496_v19  ;;  %v11582_v19 = vld [vmem:[#allocation17 + $0x97c] ss:$40 sps:$4 sm:$0xff]  }
 0x6b6   :  { %7741 = vmatprep.mubr.bf16.mxu1 %v13052_v24  ;;  %7547 = vmatprep.subr.bf16.mxu0 %v11501_v25  ;;  %v11577_v25 = vld [vmem:[#allocation17 + $0x970] ss:$40 sps:$4 sm:$0xff]  }
 0x6b7   :  { %7711 = vmatprep.subr.bf16.mxu1 %v11504_v50  ;;  %v11580_v50 = vld [vmem:[#allocation17 + $0x978] ss:$40 sps:$4 sm:$0xff]  }
 0x6b8   :  { %7548 = vmatpush1.bf16.msra.mxu0 %v11499_v26  ;;  %v11585_v26 = vld [vmem:[#allocation17 + $0x9c4] ss:$40 sps:$4 sm:$0xff]  }
 0x6b9   :  { %7712 = vmatpush1.bf16.msra.mxu1 %v11502_v31  ;;  %7549 = vmatprep.subr.bf16.mxu0 %v11507_v32  ;;  %v11588_v31 = vld [vmem:[#allocation17 + $0x9cc] ss:$40 sps:$4 sm:$0xff]   ;;  %v11583_v32 = vld [vmem:[#allocation17 + $0x9c0] ss:$40 sps:$4 sm:$0xff]  }
 0x6ba   :  { %7713 = vmatprep.subr.bf16.mxu1 %v11510_v33  ;;  %v11586_v33 = vld [vmem:[#allocation17 + $0x9c8] ss:$40 sps:$4 sm:$0xff]  }
 0x6bc   :  { %7550 = vmatpush1.bf16.msra.mxu0 %v11505_v35  ;;  %v11591_v35 = vld [vmem:[#allocation17 + $0xa14] ss:$40 sps:$4 sm:$0xff]  }
 0x6bd   :  { %7714 = vmatpush1.bf16.msra.mxu1 %v11508_v36  ;;  %7551 = vmatprep.subr.bf16.mxu0 %v11513_v28  ;;  %v11594_v36 = vld [vmem:[#allocation17 + $0xa1c] ss:$40 sps:$4 sm:$0xff]   ;;  %v11589_v28 = vld [vmem:[#allocation17 + $0xa10] ss:$40 sps:$4 sm:$0xff]  }
 0x6be   :  { %7715 = vmatprep.subr.bf16.mxu1 %v11516_v37  ;;  %v11592_v37 = vld [vmem:[#allocation17 + $0xa18] ss:$40 sps:$4 sm:$0xff]  }
 0x6c0   :  { %7552 = vmatpush1.bf16.msra.mxu0 %v11511_v60  ;;  %v11597_v60 = vld [vmem:[#allocation17 + $0xa64] ss:$40 sps:$4 sm:$0xff]  }
 0x6c1   :  { %7716 = vmatpush1.bf16.msra.mxu1 %v11514_v27  ;;  %7553 = vmatprep.subr.bf16.mxu0 %v11519_v38  ;;  %v11600_v27 = vld [vmem:[#allocation17 + $0xa6c] ss:$40 sps:$4 sm:$0xff]   ;;  %v11595_v38 = vld [vmem:[#allocation17 + $0xa60] ss:$40 sps:$4 sm:$0xff]  }
 0x6c2   :  { %7717 = vmatprep.subr.bf16.mxu1 %v11522_v7  ;;  %v11598_v7 = vld [vmem:[#allocation17 + $0xa68] ss:$40 sps:$4 sm:$0xff]  }
 0x6c4   :  { %7554 = vmatpush1.bf16.msra.mxu0 %v11517_v29  ;;  %v11603_v29 = vld [vmem:[#allocation17 + $0xab4] ss:$40 sps:$4 sm:$0xff]  }
 0x6c5   :  { %7718 = vmatpush1.bf16.msra.mxu1 %v11520_v40  ;;  %7555 = vmatprep.subr.bf16.mxu0 %v11525_v21  ;;  %v11606_v40 = vld [vmem:[#allocation17 + $0xabc] ss:$40 sps:$4 sm:$0xff]   ;;  %v11601_v21 = vld [vmem:[#allocation17 + $0xab0] ss:$40 sps:$4 sm:$0xff]  }
 0x6c6   :  { %7719 = vmatprep.subr.bf16.mxu1 %v11528_v41  ;;  %v11604_v41 = vld [vmem:[#allocation17 + $0xab8] ss:$40 sps:$4 sm:$0xff]  }
 0x6c8   :  { %7556 = vmatpush1.bf16.msra.mxu0 %v11523_v42  ;;  %v11609_v42 = vld [vmem:[#allocation17 + $0xb04] ss:$40 sps:$4 sm:$0xff]  }
 0x6c9   :  { %7720 = vmatpush1.bf16.msra.mxu1 %v11526_v9  ;;  %7557 = vmatprep.subr.bf16.mxu0 %v11531_v43  ;;  %v11612_v9 = vld [vmem:[#allocation17 + $0xb0c] ss:$40 sps:$4 sm:$0xff]   ;;  %v11607_v43 = vld [vmem:[#allocation17 + $0xb00] ss:$40 sps:$4 sm:$0xff]  }
 0x6ca   :  { %7721 = vmatprep.subr.bf16.mxu1 %v11534_v1  ;;  %v11610_v1 = vld [vmem:[#allocation17 + $0xb08] ss:$40 sps:$4 sm:$0xff]  }
 0x6cc   :  { %7558 = vmatpush1.bf16.msra.mxu0 %v11529_v45  ;;  %v11615_v45 = vld [vmem:[#allocation17 + $0xb54] ss:$40 sps:$4 sm:$0xff]  }
 0x6cd   :  { %7722 = vmatpush1.bf16.msra.mxu1 %v11532_v0  ;;  %7559 = vmatprep.subr.bf16.mxu0 %v11537_v46  ;;  %v11618_v0 = vld [vmem:[#allocation17 + $0xb5c] ss:$40 sps:$4 sm:$0xff]   ;;  %v11613_v46 = vld [vmem:[#allocation17 + $0xb50] ss:$40 sps:$4 sm:$0xff]  }
 0x6ce   :  { %7723 = vmatprep.subr.bf16.mxu1 %v11540_v15  ;;  %v11616_v15 = vld [vmem:[#allocation17 + $0xb58] ss:$40 sps:$4 sm:$0xff]  }
 0x6d0   :  { %7560 = vmatpush1.bf16.msra.mxu0 %v11535_v34  ;;  %v11621_v34 = vld [vmem:[#allocation17 + $0xba4] ss:$40 sps:$4 sm:$0xff]  }
 0x6d1   :  { %7724 = vmatpush1.bf16.msra.mxu1 %v11538_v48  ;;  %7561 = vmatprep.subr.bf16.mxu0 %v11543_v49  ;;  %v11624_v48 = vld [vmem:[#allocation17 + $0xbac] ss:$40 sps:$4 sm:$0xff]   ;;  %v11619_v49 = vld [vmem:[#allocation17 + $0xba0] ss:$40 sps:$4 sm:$0xff]  }
 0x6d2   :  { %7725 = vmatprep.subr.bf16.mxu1 %v11546_v54  ;;  %v11622_v54 = vld [vmem:[#allocation17 + $0xba8] ss:$40 sps:$4 sm:$0xff]  }
 0x6d4   :  { %7562 = vmatpush1.bf16.msra.mxu0 %v11541_v8  ;;  %v11627_v8 = vld [vmem:[#allocation17 + $0xbf4] ss:$40 sps:$4 sm:$0xff]  }
 0x6d5   :  { %7726 = vmatpush1.bf16.msra.mxu1 %v11544_v58  ;;  %7563 = vmatprep.subr.bf16.mxu0 %v11549_v59  ;;  %v11630_v58 = vld [vmem:[#allocation17 + $0xbfc] ss:$40 sps:$4 sm:$0xff]   ;;  %v11625_v59 = vld [vmem:[#allocation17 + $0xbf0] ss:$40 sps:$4 sm:$0xff]  }
 0x6d6   :  { %7727 = vmatprep.subr.bf16.mxu1 %v11552_v61  ;;  %v11628_v61 = vld [vmem:[#allocation17 + $0xbf8] ss:$40 sps:$4 sm:$0xff]  }
 0x6d8   :  { %7564 = vmatpush1.bf16.msra.mxu0 %v11547_v62  ;;  %v11633_v62 = vld [vmem:[#allocation17 + $0xc44] ss:$40 sps:$4 sm:$0xff]  }
 0x6d9   :  { %7728 = vmatpush1.bf16.msra.mxu1 %v11550_v63  ;;  %7565 = vmatprep.subr.bf16.mxu0 %v11555_v4  ;;  %v11636_v63 = vld [vmem:[#allocation17 + $0xc4c] ss:$40 sps:$4 sm:$0xff]   ;;  %v11631_v4 = vld [vmem:[#allocation17 + $0xc40] ss:$40 sps:$4 sm:$0xff]  }
 0x6da   :  { %7729 = vmatprep.subr.bf16.mxu1 %v11558_v5  ;;  %v11634_v5 = vld [vmem:[#allocation17 + $0xc48] ss:$40 sps:$4 sm:$0xff]  }
 0x6dc   :  { %7566 = vmatpush1.bf16.msra.mxu0 %v11553_v2  ;;  %v11639_v2 = vld [vmem:[#allocation17 + $0xc94] ss:$40 sps:$4 sm:$0xff]  }
 0x6dd   :  { %7730 = vmatpush1.bf16.msra.mxu1 %v11556_v6  ;;  %7567 = vmatprep.subr.bf16.mxu0 %v11561_v3  ;;  %v11642_v6 = vld [vmem:[#allocation17 + $0xc9c] ss:$40 sps:$4 sm:$0xff]   ;;  %v11637_v3 = vld [vmem:[#allocation17 + $0xc90] ss:$40 sps:$4 sm:$0xff]  }
 0x6de   :  { %7731 = vmatprep.subr.bf16.mxu1 %v11564_v10  ;;  %v11640_v10 = vld [vmem:[#allocation17 + $0xc98] ss:$40 sps:$4 sm:$0xff]  }
 0x6e0   :  { %7568 = vmatpush1.bf16.msra.mxu0 %v11559_v11  ;;  %v11645_v11 = vld [vmem:[#allocation17 + $0xce4] ss:$40 sps:$4 sm:$0xff]  }
 0x6e1   :  { %7732 = vmatpush1.bf16.msra.mxu1 %v11562_v14  ;;  %7569 = vmatprep.subr.bf16.mxu0 %v11567_v16  ;;  %v11648_v14 = vld [vmem:[#allocation17 + $0xcec] ss:$40 sps:$4 sm:$0xff]   ;;  %v11643_v16 = vld [vmem:[#allocation17 + $0xce0] ss:$40 sps:$4 sm:$0xff]  }
 0x6e2   :  { %7733 = vmatprep.subr.bf16.mxu1 %v11570_v47  ;;  %v11646_v47 = vld [vmem:[#allocation17 + $0xce8] ss:$40 sps:$4 sm:$0xff]  }
 0x6e4   :  { %7570 = vmatpush1.bf16.msra.mxu0 %v11565_v17  ;;  %v11651_v17 = vld [vmem:[#allocation17 + $0xd34] ss:$40 sps:$4 sm:$0xff]  }
 0x6e5   :  { %7734 = vmatpush1.bf16.msra.mxu1 %v11568_v51  ;;  %7571 = vmatprep.subr.bf16.mxu0 %v11573_v23  ;;  %v11654_v51 = vld [vmem:[#allocation17 + $0xd3c] ss:$40 sps:$4 sm:$0xff]   ;;  %v11649_v23 = vld [vmem:[#allocation17 + $0xd30] ss:$40 sps:$4 sm:$0xff]  }
 0x6e6   :  { %7735 = vmatprep.subr.bf16.mxu1 %v11576_v52  ;;  %v11652_v52 = vld [vmem:[#allocation17 + $0xd38] ss:$40 sps:$4 sm:$0xff]  }
 0x6e8   :  { %7572 = vmatpush1.bf16.msra.mxu0 %v11571_v55  ;;  %v11657_v55 = vld [vmem:[#allocation17 + $0xd84] ss:$40 sps:$4 sm:$0xff]  }
 0x6e9   :  { %7736 = vmatpush1.bf16.msra.mxu1 %v11574_v56  ;;  %7573 = vmatprep.subr.bf16.mxu0 %v11579_v18  ;;  %v11660_v56 = vld [vmem:[#allocation17 + $0xd8c] ss:$40 sps:$4 sm:$0xff]   ;;  %v11655_v18 = vld [vmem:[#allocation17 + $0xd80] ss:$40 sps:$4 sm:$0xff]  }
 0x6ea   :  { %7737 = vmatprep.subr.bf16.mxu1 %v11582_v19  ;;  %v11658_v19 = vld [vmem:[#allocation17 + $0xd88] ss:$40 sps:$4 sm:$0xff]  }
 0x6ec   :  { %7574 = vmatpush1.bf16.msra.mxu0 %v11577_v25  ;;  %v11663_v25 = vld [vmem:[#allocation17 + $0xdd4] ss:$40 sps:$4 sm:$0xff]  }
 0x6ed   :  { %7738 = vmatpush1.bf16.msra.mxu1 %v11580_v50  ;;  %7575 = vmatprep.subr.bf16.mxu0 %v11585_v26  ;;  %v11666_v50 = vld [vmem:[#allocation17 + $0xddc] ss:$40 sps:$4 sm:$0xff]   ;;  %v11661_v26 = vld [vmem:[#allocation17 + $0xdd0] ss:$40 sps:$4 sm:$0xff]  }
 0x6ee   :  { %7739 = vmatprep.subr.bf16.mxu1 %v11588_v31  ;;  %v11664_v31 = vld [vmem:[#allocation17 + $0xdd8] ss:$40 sps:$4 sm:$0xff]  }
 0x6f0   :  { %7576 = vmatpush1.bf16.msra.mxu0 %v11583_v32  ;;  %v11669_v32 = vld [vmem:[#allocation17 + $0xe24] ss:$40 sps:$4 sm:$0xff]  }
 0x6f1   :  { %7740 = vmatpush1.bf16.msra.mxu1 %v11586_v33  ;;  %7586 = vmatprep.subr.bf16.mxu0 %v11591_v35  ;;  %v11672_v33 = vld [vmem:[#allocation17 + $0xe2c] ss:$40 sps:$4 sm:$0xff]   ;;  %v11667_v35 = vld [vmem:[#allocation17 + $0xe20] ss:$40 sps:$4 sm:$0xff]  }
 0x6f2   :  { %7750 = vmatprep.subr.bf16.mxu1 %v11594_v36  ;;  %v11670_v36 = vld [vmem:[#allocation17 + $0xe28] ss:$40 sps:$4 sm:$0xff]  }
 0x6f3   :  { %7578 = vmatmul.mubr.bf16.vlgmr.msra.gmra.mrb[24].mxu0 %v13078_v53 }
 0x6f4   :  { %7742 = vmatmul.mubr.bf16.vlgmr.msra.gmra.mrb[16].mxu1 %v13078_v53  ;;  %7587 = vmatpush1.bf16.msra.mxu0 %v11589_v28  ;;  %v11675_v28 = vld [vmem:[#allocation17 + $0xe74] ss:$40 sps:$4 sm:$0xff]  }
 0x6f5   :  { %7618 = vmatprep.mubr.bf16.mxu0 %v13109_v44  ;;  %7751 = vmatpush1.bf16.msra.mxu1 %v11592_v37  ;;  %v11678_v37 = vld [vmem:[#allocation17 + $0xe7c] ss:$40 sps:$4 sm:$0xff]  }
 0x6f6   :  { %7782 = vmatprep.mubr.bf16.mxu1 %v13109_v44  ;;  %7588 = vmatprep.subr.bf16.mxu0 %v11597_v60  ;;  %v11673_v60 = vld [vmem:[#allocation17 + $0xe70] ss:$40 sps:$4 sm:$0xff]  }
 0x6f7   :  { %7752 = vmatprep.subr.bf16.mxu1 %v11600_v27  ;;  %v11676_v27 = vld [vmem:[#allocation17 + $0xe78] ss:$40 sps:$4 sm:$0xff]  }
 0x6f8   :  { %7589 = vmatpush1.bf16.msra.mxu0 %v11595_v38  ;;  %v11681_v38 = vld [vmem:[#allocation17 + $0xec4] ss:$40 sps:$4 sm:$0xff]  }
 0x6f9   :  { %7753 = vmatpush1.bf16.msra.mxu1 %v11598_v7  ;;  %7590 = vmatprep.subr.bf16.mxu0 %v11603_v29  ;;  %v11684_v7 = vld [vmem:[#allocation17 + $0xecc] ss:$40 sps:$4 sm:$0xff]   ;;  %v11679_v29 = vld [vmem:[#allocation17 + $0xec0] ss:$40 sps:$4 sm:$0xff]  }
 0x6fa   :  { %7754 = vmatprep.subr.bf16.mxu1 %v11606_v40  ;;  %v11682_v40 = vld [vmem:[#allocation17 + $0xec8] ss:$40 sps:$4 sm:$0xff]  }
 0x6fc   :  { %7591 = vmatpush1.bf16.msra.mxu0 %v11601_v21  ;;  %v11687_v21 = vld [vmem:[#allocation17 + $0xf14] ss:$40 sps:$4 sm:$0xff]  }
 0x6fd   :  { %7755 = vmatpush1.bf16.msra.mxu1 %v11604_v41  ;;  %7592 = vmatprep.subr.bf16.mxu0 %v11609_v42  ;;  %v11690_v41 = vld [vmem:[#allocation17 + $0xf1c] ss:$40 sps:$4 sm:$0xff]   ;;  %v11685_v42 = vld [vmem:[#allocation17 + $0xf10] ss:$40 sps:$4 sm:$0xff]  }
 0x6fe   :  { %7756 = vmatprep.subr.bf16.mxu1 %v11612_v9  ;;  %v11688_v9 = vld [vmem:[#allocation17 + $0xf18] ss:$40 sps:$4 sm:$0xff]  }
 0x700   :  { %7593 = vmatpush1.bf16.msra.mxu0 %v11607_v43  ;;  %v11693_v43 = vld [vmem:[#allocation17 + $0xf64] ss:$40 sps:$4 sm:$0xff]  }
 0x701   :  { %7757 = vmatpush1.bf16.msra.mxu1 %v11610_v1  ;;  %7594 = vmatprep.subr.bf16.mxu0 %v11615_v45  ;;  %v11696_v1 = vld [vmem:[#allocation17 + $0xf6c] ss:$40 sps:$4 sm:$0xff]   ;;  %v11691_v45 = vld [vmem:[#allocation17 + $0xf60] ss:$40 sps:$4 sm:$0xff]  }
 0x702   :  { %7758 = vmatprep.subr.bf16.mxu1 %v11618_v0  ;;  %v11694_v0 = vld [vmem:[#allocation17 + $0xf68] ss:$40 sps:$4 sm:$0xff]  }
 0x704   :  { %7595 = vmatpush1.bf16.msra.mxu0 %v11613_v46  ;;  %v11699_v46 = vld [vmem:[#allocation17 + $0xfb4] ss:$40 sps:$4 sm:$0xff]  }
 0x705   :  { %7759 = vmatpush1.bf16.msra.mxu1 %v11616_v15  ;;  %7596 = vmatprep.subr.bf16.mxu0 %v11621_v34  ;;  %v11702_v15 = vld [vmem:[#allocation17 + $0xfbc] ss:$40 sps:$4 sm:$0xff]   ;;  %v11697_v34 = vld [vmem:[#allocation17 + $0xfb0] ss:$40 sps:$4 sm:$0xff]  }
 0x706   :  { %7760 = vmatprep.subr.bf16.mxu1 %v11624_v48  ;;  %v11700_v48 = vld [vmem:[#allocation17 + $0xfb8] ss:$40 sps:$4 sm:$0xff]  }
 0x708   :  { %7597 = vmatpush1.bf16.msra.mxu0 %v11619_v49  ;;  %v11705_v49 = vld [vmem:[#allocation17 + $0x1004] ss:$40 sps:$4 sm:$0xff]  }
 0x709   :  { %7761 = vmatpush1.bf16.msra.mxu1 %v11622_v54  ;;  %7598 = vmatprep.subr.bf16.mxu0 %v11627_v8  ;;  %v11708_v54 = vld [vmem:[#allocation17 + $0x100c] ss:$40 sps:$4 sm:$0xff]   ;;  %v11703_v8 = vld [vmem:[#allocation17 + $0x1000] ss:$40 sps:$4 sm:$0xff]  }
 0x70a   :  { %7762 = vmatprep.subr.bf16.mxu1 %v11630_v58  ;;  %v11706_v58 = vld [vmem:[#allocation17 + $0x1008] ss:$40 sps:$4 sm:$0xff]  }
 0x70c   :  { %7599 = vmatpush1.bf16.msra.mxu0 %v11625_v59  ;;  %v11711_v59 = vld [vmem:[#allocation17 + $0x1054] ss:$40 sps:$4 sm:$0xff]  }
 0x70d   :  { %7763 = vmatpush1.bf16.msra.mxu1 %v11628_v61  ;;  %7600 = vmatprep.subr.bf16.mxu0 %v11633_v62  ;;  %v11714_v61 = vld [vmem:[#allocation17 + $0x105c] ss:$40 sps:$4 sm:$0xff]   ;;  %v11709_v62 = vld [vmem:[#allocation17 + $0x1050] ss:$40 sps:$4 sm:$0xff]  }
 0x70e   :  { %7764 = vmatprep.subr.bf16.mxu1 %v11636_v63  ;;  %v11712_v63 = vld [vmem:[#allocation17 + $0x1058] ss:$40 sps:$4 sm:$0xff]  }
 0x710   :  { %7601 = vmatpush1.bf16.msra.mxu0 %v11631_v4  ;;  %v11717_v4 = vld [vmem:[#allocation17 + $0x10a4] ss:$40 sps:$4 sm:$0xff]  }
 0x711   :  { %7765 = vmatpush1.bf16.msra.mxu1 %v11634_v5  ;;  %7602 = vmatprep.subr.bf16.mxu0 %v11639_v2  ;;  %v11720_v5 = vld [vmem:[#allocation17 + $0x10ac] ss:$40 sps:$4 sm:$0xff]   ;;  %v11715_v2 = vld [vmem:[#allocation17 + $0x10a0] ss:$40 sps:$4 sm:$0xff]  }
 0x712   :  { %7766 = vmatprep.subr.bf16.mxu1 %v11642_v6  ;;  %v11718_v6 = vld [vmem:[#allocation17 + $0x10a8] ss:$40 sps:$4 sm:$0xff]  }
 0x714   :  { %7603 = vmatpush1.bf16.msra.mxu0 %v11637_v3  ;;  %v11723_v3 = vld [vmem:[#allocation17 + $0x10f4] ss:$40 sps:$4 sm:$0xff]  }
 0x715   :  { %7767 = vmatpush1.bf16.msra.mxu1 %v11640_v10  ;;  %7604 = vmatprep.subr.bf16.mxu0 %v11645_v11 }
 0x716   :  { %7768 = vmatprep.subr.bf16.mxu1 %v11648_v14  ;;  %v11726_v14 = vld [vmem:[#allocation17 + $0x10fc] ss:$40 sps:$4 sm:$0xff]  }
 0x718   :  { %7605 = vmatpush1.bf16.msra.mxu0 %v11643_v16 }
 0x719   :  { %7769 = vmatpush1.bf16.msra.mxu1 %v11646_v47  ;;  %7606 = vmatprep.subr.bf16.mxu0 %v11651_v17 }
 0x71a   :  { %7770 = vmatprep.subr.bf16.mxu1 %v11654_v51 }
 0x71c   :  { %7607 = vmatpush1.bf16.msra.mxu0 %v11649_v23 }
 0x71d   :  { %7771 = vmatpush1.bf16.msra.mxu1 %v11652_v52  ;;  %7608 = vmatprep.subr.bf16.mxu0 %v11657_v55 }
 0x71e   :  { %7772 = vmatprep.subr.bf16.mxu1 %v11660_v56  ;;  %v11721_v56 = vld [vmem:[#allocation17 + $0x10f0] ss:$40 sps:$4 sm:$0xff]  }
 0x720   :  { %7609 = vmatpush1.bf16.msra.mxu0 %v11655_v18 }
 0x721   :  { %7773 = vmatpush1.bf16.msra.mxu1 %v11658_v19  ;;  %7610 = vmatprep.subr.bf16.mxu0 %v11663_v25 }
 0x722   :  { %7774 = vmatprep.subr.bf16.mxu1 %v11666_v50  ;;  %v11724_v50 = vld [vmem:[#allocation17 + $0x10f8] ss:$40 sps:$4 sm:$0xff]  }
 0x724   :  { %7611 = vmatpush1.bf16.msra.mxu0 %v11661_v26  ;;  %v11729_v26 = vld [vmem:[#allocation17 + $0x1144] ss:$40 sps:$4 sm:$0xff]  }
 0x725   :  { %7775 = vmatpush1.bf16.msra.mxu1 %v11664_v31  ;;  %7612 = vmatprep.subr.bf16.mxu0 %v11669_v32 }
 0x726   :  { %7776 = vmatprep.subr.bf16.mxu1 %v11672_v33  ;;  %v11732_v33 = vld [vmem:[#allocation17 + $0x114c] ss:$40 sps:$4 sm:$0xff]  }
 0x728   :  { %7613 = vmatpush1.bf16.msra.mxu0 %v11667_v35 }
 0x729   :  { %7777 = vmatpush1.bf16.msra.mxu1 %v11670_v36  ;;  %7614 = vmatprep.subr.bf16.mxu0 %v11675_v28 }
 0x72a   :  { %7778 = vmatprep.subr.bf16.mxu1 %v11678_v37  ;;  %v11727_v37 = vld [vmem:[#allocation17 + $0x1140] ss:$40 sps:$4 sm:$0xff]  }
 0x72c   :  { %7615 = vmatpush1.bf16.msra.mxu0 %v11673_v60 }
 0x72d   :  { %7779 = vmatpush1.bf16.msra.mxu1 %v11676_v27  ;;  %7616 = vmatprep.subr.bf16.mxu0 %v11681_v38  ;;  %v11730_v27 = vld [vmem:[#allocation17 + $0x1148] ss:$40 sps:$4 sm:$0xff]   ;;  %v11735_v38 = vld [vmem:[#allocation17 + $0x1194] ss:$40 sps:$4 sm:$0xff]  }
 0x72e   :  { %7780 = vmatprep.subr.bf16.mxu1 %v11684_v7 }
 0x730   :  { %7617 = vmatpush1.bf16.msra.mxu0 %v11679_v29 }
 0x731   :  { %7781 = vmatpush1.bf16.msra.mxu1 %v11682_v40  ;;  %7627 = vmatprep.subr.bf16.mxu0 %v11687_v21  ;;  %v11738_v40 = vld [vmem:[#allocation17 + $0x119c] ss:$40 sps:$4 sm:$0xff]  }
 0x732   :  { %7791 = vmatprep.subr.bf16.mxu1 %v11690_v41 }
 0x733   :  { %7619 = vmatmul.mubr.bf16.vlgmr.msra.gmra.mrb[24].mxu0 %v13111_v13 }
 0x734   :  { %7783 = vmatmul.mubr.bf16.vlgmr.msra.gmra.mrb[16].mxu1 %v13111_v13  ;;  %7628 = vmatpush1.bf16.msra.mxu0 %v11685_v42 }
 0x735   :  { %7659 = vmatprep.mubr.bf16.mxu0 %v13117_v39  ;;  %7792 = vmatpush1.bf16.msra.mxu1 %v11688_v9  ;;  %v11733_v9 = vld [vmem:[#allocation17 + $0x1190] ss:$40 sps:$4 sm:$0xff]  }
 0x736   :  { %7823 = vmatprep.mubr.bf16.mxu1 %v13117_v39  ;;  %7629 = vmatprep.subr.bf16.mxu0 %v11693_v43 }
 0x737   :  { %7793 = vmatprep.subr.bf16.mxu1 %v11696_v1  ;;  %v11736_v1 = vld [vmem:[#allocation17 + $0x1198] ss:$40 sps:$4 sm:$0xff]  }
 0x738   :  { %7630 = vmatpush1.bf16.msra.mxu0 %v11691_v45  ;;  %v11741_v45 = vld [vmem:[#allocation17 + $0x11e4] ss:$40 sps:$4 sm:$0xff]  }
 0x739   :  { %7794 = vmatpush1.bf16.msra.mxu1 %v11694_v0  ;;  %7631 = vmatprep.subr.bf16.mxu0 %v11699_v46 }
 0x73a   :  { %7795 = vmatprep.subr.bf16.mxu1 %v11702_v15  ;;  %v11744_v15 = vld [vmem:[#allocation17 + $0x11ec] ss:$40 sps:$4 sm:$0xff]  }
 0x73c   :  { %7632 = vmatpush1.bf16.msra.mxu0 %v11697_v34 }
 0x73d   :  { %7796 = vmatpush1.bf16.msra.mxu1 %v11700_v48  ;;  %7633 = vmatprep.subr.bf16.mxu0 %v11705_v49 }
 0x73e   :  { %7797 = vmatprep.subr.bf16.mxu1 %v11708_v54  ;;  %v11739_v54 = vld [vmem:[#allocation17 + $0x11e0] ss:$40 sps:$4 sm:$0xff]  }
 0x740   :  { %7634 = vmatpush1.bf16.msra.mxu0 %v11703_v8 }
 0x741   :  { %7798 = vmatpush1.bf16.msra.mxu1 %v11706_v58  ;;  %7635 = vmatprep.subr.bf16.mxu0 %v11711_v59  ;;  %v11742_v58 = vld [vmem:[#allocation17 + $0x11e8] ss:$40 sps:$4 sm:$0xff]   ;;  %v11747_v59 = vld [vmem:[#allocation17 + $0x1234] ss:$40 sps:$4 sm:$0xff]  }
 0x742   :  { %7799 = vmatprep.subr.bf16.mxu1 %v11714_v61 }
 0x744   :  { %7636 = vmatpush1.bf16.msra.mxu0 %v11709_v62 }
 0x745   :  { %7800 = vmatpush1.bf16.msra.mxu1 %v11712_v63  ;;  %7637 = vmatprep.subr.bf16.mxu0 %v11717_v4  ;;  %v11750_v63 = vld [vmem:[#allocation17 + $0x123c] ss:$40 sps:$4 sm:$0xff]  }
 0x746   :  { %v7333_v10 = vpop.f32.mrb[20].mxu0  ;;  %v13146_v11 = vpop.f32.mrb[12].mxu1  ;;  %7801 = vmatprep.subr.bf16.mxu1 %v11720_v5 }
 0x747   :  { %v7996_v16 = vrot.slane %v7333_v10, 4  ;;  %v7335_v47 = vpop.f32.mrb[21].mxu0  ;;  %v7499_v17 = vpop.f32.mrb[13].mxu1 }
 0x748   :  { %v8002_v51 = vrot.slane %v7335_v47, 4  ;;  %v8014_v23 = vrot.slane %v7499_v17, 4  ;;  %v7337_v52 = vpop.f32.mrb[22].mxu0  ;;  %v7501_v55 = vpop.f32.mrb[14].mxu1  ;;  %7638 = vmatpush1.bf16.msra.mxu0 %v11715_v2 }
 0x749   :  { %v7997_v18 = vadd.f32 %v7996_v16, %v7333_v10  ;;  %7802 = vmatpush1.bf16.msra.mxu1 %v11718_v6  ;;  %v7338_v19 = vpop.f32.mrb[23].mxu0  ;;  %v7502_v25 = vpop.f32.mrb[15].mxu1  ;;  %7639 = vmatprep.subr.bf16.mxu0 %v11723_v3  ;;  %v11745_v6 = vld [vmem:[#allocation17 + $0x1230] ss:$40 sps:$4 sm:$0xff]   ;;  %v11751_v55 = vld [vmem:[#allocation17 + $0x1280] ss:$40 sps:$4 sm:$0xff]  }
 0x74a   :  { %v8003_v31 = vadd.f32 %v8002_v51, %v7335_v47  ;;  %v8015_v32 = vadd.f32 %v8014_v23, %v7499_v17  ;;  %7803 = vmatprep.subr.bf16.mxu1 %v11726_v14  ;;  %v11753_v14 = vld [vmem:[#allocation17 + $0x1284] ss:$40 sps:$4 sm:$0xff]   ;;  %v11759_v19 = vld [vmem:[#allocation17 + $0x12d4] ss:$40 sps:$4 sm:$0xff]  }
 0x74b   :  { %v7998_v35 = vrot.slane %v7997_v18, 2 }
 0x74c   :  { %v8004_v36 = vrot.slane %v8003_v31, 2  ;;  %v8016_v28 = vrot.slane %v8015_v32, 2  ;;  %7640 = vmatpush1.bf16.msra.mxu0 %v11721_v56 }
 0x74d   :  { %v7999_v60 = vadd.f32 %v7998_v35, %v7997_v18  ;;  %7804 = vmatpush1.bf16.msra.mxu1 %v11724_v50  ;;  %7641 = vmatprep.subr.bf16.mxu0 %v11729_v26  ;;  %v11754_v18 = vld [vmem:[#allocation17 + $0x1288] ss:$40 sps:$4 sm:$0xff]   ;;  %v11762_v26 = vld [vmem:[#allocation17 + $0x12dc] ss:$40 sps:$4 sm:$0xff]  }
 0x74e   :  { %v8005_v7 = vadd.f32 %v8004_v36, %v8003_v31  ;;  %v8017_v29 = vadd.f32 %v8016_v28, %v8015_v32  ;;  %7805 = vmatprep.subr.bf16.mxu1 %v11732_v33  ;;  %v11757_v33 = vld [vmem:[#allocation17 + $0x12d0] ss:$40 sps:$4 sm:$0xff]   ;;  %v11765_v28 = vld [vmem:[#allocation17 + $0x1324] ss:$40 sps:$4 sm:$0xff]  }
 0x74f   :  { %v8000_v21 = vrot.slane %v7999_v60, 1  ;;  %v11760_v36 = vld [vmem:[#allocation17 + $0x12d8] ss:$40 sps:$4 sm:$0xff]  }
 0x750   :  { %v8006_v41 = vrot.slane %v8005_v7, 1  ;;  %v8018_v42 = vrot.slane %v8017_v29, 1  ;;  %7642 = vmatpush1.bf16.msra.mxu0 %v11727_v37 }
 0x751   :  { %v8001_v43 = vadd.f32 %v8000_v21, %v7999_v60  ;;  %7806 = vmatpush1.bf16.msra.mxu1 %v11730_v27  ;;  %7643 = vmatprep.subr.bf16.mxu0 %v11735_v38  ;;  %v11768_v60 = vld [vmem:[#allocation17 + $0x132c] ss:$40 sps:$4 sm:$0xff]  }
 0x752   :  { %v8007_v0 = vadd.f32 %v8006_v41, %v8005_v7  ;;  %v8019_v46 = vadd.f32 %v8018_v42, %v8017_v29  ;;  %7807 = vmatprep.subr.bf16.mxu1 %v11738_v40  ;;  %v11763_v7 = vld [vmem:[#allocation17 + $0x1320] ss:$40 sps:$4 sm:$0xff]   ;;  %v11771_v21 = vld [vmem:[#allocation17 + $0x1374] ss:$40 sps:$4 sm:$0xff]  }
 0x753   :  { %v8056_v34 = vmul.f32 0.125, %v8001_v43  ;;  %v11766_v40 = vld [vmem:[#allocation17 + $0x1328] ss:$40 sps:$4 sm:$0xff]   ;;  %v11774_v42 = vld [vmem:[#allocation17 + $0x137c] ss:$40 sps:$4 sm:$0xff]  }
 0x754   :  { %v8057_v48 = vmul.f32 0.125, %v8007_v0  ;;  %v8059_v49 = vmul.f32 0.125, %v8019_v46  ;;  %7644 = vmatpush1.bf16.msra.mxu0 %v11733_v9  ;;  %v11772_v0 = vld [vmem:[#allocation17 + $0x1378] ss:$40 sps:$4 sm:$0xff]   ;;  %v11777_v46 = vld [vmem:[#allocation17 + $0x13c4] ss:$40 sps:$4 sm:$0xff]  }
 0x755   :  { %v13148_v8 = vsub.f32 %v7333_v10, %v8056_v34  ;;  %7808 = vmatpush1.bf16.msra.mxu1 %v11736_v1  ;;  %7645 = vmatprep.subr.bf16.mxu0 %v11741_v45  ;;  %v11748_v10 = vld [vmem:[#allocation17 + $0x1238] ss:$40 sps:$4 sm:$0xff]  }
 0x756   :  { %v13150_v61 = vsub.f32 %v7335_v47, %v8057_v48  ;;  %v13152_v62 = vsub.f32 %v7499_v17, %v8059_v49  ;;  %7809 = vmatprep.subr.bf16.mxu1 %v11744_v15  ;;  %v11756_v17 = vld [vmem:[#allocation17 + $0x128c] ss:$40 sps:$4 sm:$0xff]   ;;  %v11769_v1 = vld [vmem:[#allocation17 + $0x1370] ss:$40 sps:$4 sm:$0xff]   ;;  %v11775_v48 = vld [vmem:[#allocation17 + $0x13c0] ss:$40 sps:$4 sm:$0xff]  }
 0x757   :  { %v8076_v4 = vmul.f32 %v13148_v8, %v13148_v8  ;;  %v11780_v15 = vld [vmem:[#allocation17 + $0x13cc] ss:$40 sps:$4 sm:$0xff]  }
 0x758   :  { %v8077_v5 = vmul.f32 %v13150_v61, %v13150_v61  ;;  %v8079_v2 = vmul.f32 %v13152_v62, %v13152_v62  ;;  %7646 = vmatpush1.bf16.msra.mxu0 %v11739_v54  ;;  %v11778_v54 = vld [vmem:[#allocation17 + $0x13c8] ss:$40 sps:$4 sm:$0xff]  }
 0x759   :  { %v8086_v3 = vrot.slane %v8076_v4, 4  ;;  %7810 = vmatpush1.bf16.msra.mxu1 %v11742_v58  ;;  %7647 = vmatprep.subr.bf16.mxu0 %v11747_v59  ;;  %v11783_v58 = vld [vmem:[#allocation17 + $0x24] ss:$40 sps:$4 sm:$0xff]   ;;  %v11786_v59 = vld [vmem:[#allocation20 + $0x4] ss:$8 sps:$4 sm:$0xff]  }
 0x75a   :  { %v8092_v16 = vrot.slane %v8077_v5, 4  ;;  %v8104_v47 = vrot.slane %v8079_v2, 4  ;;  %7811 = vmatprep.subr.bf16.mxu1 %v11750_v63 }
 0x75b   :  { %v8087_v51 = vadd.f32 %v8086_v3, %v8076_v4  ;;  %v8008_v4 = vrot.slane %v13146_v11, 4  ;;  %v11784_v3 = vld [vmem:[#allocation20] ss:$8 sps:$4 sm:$0xff]  }
 0x75c   :  { %v8093_v23 = vadd.f32 %v8092_v16, %v8077_v5  ;;  %v8105_v52 = vadd.f32 %v8104_v47, %v8079_v2  ;;  %7648 = vmatpush1.bf16.msra.mxu0 %v11745_v6  ;;  %v11781_v5 = vld [vmem:[#allocation17 + $0x20] ss:$40 sps:$4 sm:$0xff]  }
 0x75d   :  { %v8088_v56 = vrot.slane %v8087_v51, 2  ;;  %7812 = vmatpush1.bf16.msra.mxu1 %v11748_v10  ;;  %7649 = vmatprep.subr.bf16.mxu0 %v11753_v14  ;;  %v3327_v2 = vld [vmem:[#allocation19 + $0x8] sm:$0xff]  ;;  %v11789_v10 = vld [vmem:[#allocation17 + $0x74] ss:$40 sps:$4 sm:$0xff]   ;;  %v8009_v16 = vadd.f32 %v8008_v4, %v13146_v11 }
 0x75e   :  { %v8094_v25 = vrot.slane %v8093_v23, 2  ;;  %v8106_v50 = vrot.slane %v8105_v52, 2  ;;  %7813 = vmatprep.subr.bf16.mxu1 %v11756_v17  ;;  %v11792_v14 = vld [vmem:[#allocation20 + $0x14] ss:$8 sps:$4 sm:$0xff]   ;;  %v8193_v47 = vrot.slane %v3327_v2, %v12951_v30  ;;  %v11787_v17 = vld [vmem:[#allocation17 + $0x70] ss:$40 sps:$4 sm:$0xff]  }
 0x75f   :  { %v8089_v31 = vadd.f32 %v8088_v56, %v8087_v51  ;;  %v11798_v56 = vld [vmem:[#allocation20 + $0x24] ss:$8 sps:$4 sm:$0xff]   ;;  %v11817_v4 = vld [vmem:[#allocation17 + $0x200] ss:$40 sps:$4 sm:$0xff]  }
 0x760   :  { %v8095_v32 = vadd.f32 %v8094_v25, %v8093_v23  ;;  %7650 = vmatpush1.bf16.msra.mxu0 %v11751_v55  ;;  %v8107_v35 = vadd.f32 %v8106_v50, %v8105_v52  ;;  %v11790_v23 = vld [vmem:[#allocation20 + $0x10] ss:$8 sps:$4 sm:$0xff]   ;;  %v11795_v52 = vld [vmem:[#allocation17 + $0xc4] ss:$40 sps:$4 sm:$0xff]  }
 0x761   :  { %7814 = vmatpush1.bf16.msra.mxu1 %v11754_v18  ;;  %7651 = vmatprep.subr.bf16.mxu0 %v11759_v19  ;;  %v8090_v27 = vrot.slane %v8089_v31, 1  ;;  %v8243_v18 = vrot.slane %v3327_v2, %v12955_v20  ;;  %v8010_v19 = vrot.slane %v8009_v16, 2  ;;  %v11793_v50 = vld [vmem:[#allocation17 + $0xc0] ss:$40 sps:$4 sm:$0xff]   ;;  %v11825_v2 = vld [vmem:[#allocation17 + $0x254] ss:$40 sps:$4 sm:$0xff]  }
 0x762   :  { %v8096_v37 = vrot.slane %v8095_v32, 1  ;;  %7815 = vmatprep.subr.bf16.mxu1 %v11762_v26  ;;  %v8108_v29 = vrot.slane %v8107_v35, 1  ;;  %v11796_v26 = vld [vmem:[#allocation20 + $0x20] ss:$8 sps:$4 sm:$0xff]  }
 0x763   :  { %v8091_v9 = vadd.f32 %v8090_v27, %v8089_v31  ;;  %v11801_v31 = vld [vmem:[#allocation17 + $0x114] ss:$40 sps:$4 sm:$0xff]  }
 0x764   :  { %v8097_v38 = vadd.f32 %v8096_v37, %v8095_v32  ;;  %7652 = vmatpush1.bf16.msra.mxu0 %v11757_v33  ;;  %v8109_v45 = vadd.f32 %v8108_v29, %v8107_v35  ;;  %v8011_v33 = vadd.f32 %v8010_v19, %v8009_v16  ;;  %v11802_v37 = vld [vmem:[#allocation20 + $0x30] ss:$8 sps:$4 sm:$0xff]   ;;  %v11810_v27 = vld [vmem:[#allocation20 + $0x44] ss:$8 sps:$4 sm:$0xff]   ;;  %v11840_v19 = vld [vmem:[#allocation20 + $0x94] ss:$8 sps:$4 sm:$0xff]  }
 0x765   :  { %7816 = vmatpush1.bf16.msra.mxu1 %v11760_v36  ;;  %7653 = vmatprep.subr.bf16.mxu0 %v11765_v28  ;;  %v8146_v34 = vmul.f32 0.125, %v8091_v9  ;;  %v3326_v28 = vld [vmem:[#allocation19] sm:$0xff]  ;;  %v3329_v29 = vld [vmem:[#allocation19 + $0x18] sm:$0xff] }
 0x766   :  { %v8147_v41 = vmul.f32 0.125, %v8097_v38  ;;  %7817 = vmatprep.subr.bf16.mxu1 %v11768_v60  ;;  %v8149_v49 = vmul.f32 0.125, %v8109_v45  ;;  %v11807_v60 = vld [vmem:[#allocation17 + $0x164] ss:$40 sps:$4 sm:$0xff]   ;;  %v11813_v9 = vld [vmem:[#allocation17 + $0x1b4] ss:$40 sps:$4 sm:$0xff]  }
 0x767   :  { %v8156_v63 = vadd.f32 0.8, %v8146_v34  ;;  %v11816_v45 = vld [vmem:[#allocation20 + $0x54] ss:$8 sps:$4 sm:$0xff]   ;;  %v11814_v34 = vld [vmem:[#allocation20 + $0x50] ss:$8 sps:$4 sm:$0xff]  }
 0x768   :  { %v8157_v43 = vadd.f32 0.8, %v8147_v41  ;;  %7654 = vmatpush1.bf16.msra.mxu0 %v11763_v7  ;;  %v8159_v6 = vadd.f32 0.8, %v8149_v49  ;;  %v8012_v7 = vrot.slane %v8011_v33, 1 }
 0x769   :  { %7818 = vmatpush1.bf16.msra.mxu1 %v11766_v40  ;;  %7655 = vmatprep.subr.bf16.mxu0 %v11771_v21  ;;  %v8189_v21 = vrot.slane %v3326_v28, %v12951_v30  ;;  %v11805_v41 = vld [vmem:[#allocation17 + $0x160] ss:$40 sps:$4 sm:$0xff]  }
 0x76a   :  { %7819 = vmatprep.subr.bf16.mxu1 %v11774_v42  ;;  %12301 = vrsqrt.f32 %v8157_v43  ;;  %v11808_v42 = vld [vmem:[#allocation20 + $0x40] ss:$8 sps:$4 sm:$0xff]  }
 0x76b   :  { %12303 = vrsqrt.f32 %v8156_v63 }
 0x76c   :  { %7656 = vmatpush1.bf16.msra.mxu0 %v11769_v1  ;;  %12305 = vrsqrt.f32 %v8159_v6  ;;  %v8201_v1 = vrot.slane %v3329_v29, %v12951_v30 }
 0x76d   :  { %7820 = vmatpush1.bf16.msra.mxu1 %v11772_v0  ;;  %7657 = vmatprep.subr.bf16.mxu0 %v11777_v46  ;;  %v8013_v0 = vadd.f32 %v8012_v7, %v8011_v33 }
 0x76e   :  { %7821 = vmatprep.subr.bf16.mxu1 %v11780_v15  ;;  %v8239_v15 = vrot.slane %v3326_v28, %v12955_v20  ;;  %v11841_v28 = vld [vmem:[#allocation17 + $0x340] ss:$40 sps:$4 sm:$0xff]  }
 0x770   :  { %7658 = vmatpush1.bf16.msra.mxu0 %v11775_v48  ;;  %v11819_v48 = vld [vmem:[#allocation17 + $0x204] ss:$40 sps:$4 sm:$0xff]  }
 0x771   :  { %7822 = vmatpush1.bf16.msra.mxu1 %v11778_v54  ;;  %7832 = vmatprep.subr.bf16.mxu0 %v11783_v58  ;;  %v11822_v54 = vld [vmem:[#allocation20 + $0x64] ss:$8 sps:$4 sm:$0xff]   ;;  %v8251_v58 = vrot.slane %v3329_v29, %v12955_v20 }
 0x772   :  { %9336 = vmatprep.subr.bf16.mxu1 %v11786_v59 }
 0x773   :  { %7660 = vmatmul.mubr.bf16.vlgmr.msra.gmra.mrb[24].mxu0 %v13128_v12 }
 0x774   :  { %7824 = vmatmul.mubr.bf16.vlgmr.msra.gmra.mrb[16].mxu1 %v13128_v12  ;;  %7833 = vmatpush1.bf16.msra.mxu0 %v11781_v5  ;;  %v12302_v51 = vpop.eup %12301  ;;  %v11820_v5 = vld [vmem:[#allocation20 + $0x60] ss:$8 sps:$4 sm:$0xff]  }
 0x775   :  { %7864 = vmatprep.mubr.bf16.mxu0 %v13044_v57  ;;  %9337 = vmatpush1.bf16.msra.mxu1 %v11784_v3  ;;  %v8177_v55 = vmul.f32 %v12302_v51, %v13150_v61  ;;  %v11804_v57 = vld [vmem:[#allocation20 + $0x34] ss:$8 sps:$4 sm:$0xff]   ;;  %v11799_v61 = vld [vmem:[#allocation17 + $0x110] ss:$40 sps:$4 sm:$0xff]   ;;  %v12304_v36 = vpop.eup %12303 }
 0x776   :  { %7834 = vmatprep.subr.bf16.mxu0 %v11789_v10  ;;  %9338 = vmatprep.subr.bf16.mxu1 %v11792_v14  ;;  %v12306_v38 = vpop.eup %12305  ;;  %v8176_v40 = vmul.f32 %v12304_v36, %v13148_v8  ;;  %v11811_v8 = vld [vmem:[#allocation17 + $0x1b0] ss:$40 sps:$4 sm:$0xff]   ;;  %v11828_v3 = vld [vmem:[#allocation20 + $0x74] ss:$8 sps:$4 sm:$0xff]  }
 0x777   :  { %v8227_v25 = vmul.f32 %v8193_v47, %v8177_v55  ;;  %v8179_v43 = vmul.f32 %v12306_v38, %v13152_v62  ;;  %v8058_v62 = vmul.f32 0.125, %v8013_v0  ;;  %v11823_v47 = vld [vmem:[#allocation17 + $0x250] ss:$40 sps:$4 sm:$0xff]   ;;  %v11831_v51 = vld [vmem:[#allocation17 + $0x2a4] ss:$40 sps:$4 sm:$0xff]  }
 0x778   :  { %7835 = vmatpush1.bf16.msra.mxu0 %v11787_v17  ;;  %v8226_v46 = vmul.f32 %v8189_v21, %v8176_v40  ;;  %v11826_v17 = vld [vmem:[#allocation20 + $0x70] ss:$8 sps:$4 sm:$0xff]   ;;  %v11852_v38 = vld [vmem:[#allocation20 + $0xb4] ss:$8 sps:$4 sm:$0xff]   ;;  %v11847_v40 = vld [vmem:[#allocation17 + $0x390] ss:$40 sps:$4 sm:$0xff]  }
 0x779   :  { %9339 = vmatpush1.bf16.msra.mxu1 %v11790_v23  ;;  %7836 = vmatprep.subr.bf16.mxu0 %v11795_v52  ;;  %v13168_v32 = vadd.f32 %v8243_v18, %v8227_v25  ;;  %v8229_v49 = vmul.f32 %v8201_v1, %v8179_v43  ;;  %v13182_v14 = vsub.f32 %v13146_v11, %v8058_v62  ;;  %v11834_v23 = vld [vmem:[#allocation20 + $0x84] ss:$8 sps:$4 sm:$0xff]   ;;  %v11829_v11 = vld [vmem:[#allocation17 + $0x2a0] ss:$40 sps:$4 sm:$0xff]   ;;  %v11868_v62 = vld [vmem:[#allocation20 + $0xe0] ss:$8 sps:$4 sm:$0xff]  }
 0x77a   :  { %9340 = vmatprep.subr.bf16.mxu1 %v11798_v56  ;;  %v13177_v63 = vadd.f32 %v8239_v15, %v8226_v46  ;;  %v11832_v56 = vld [vmem:[#allocation20 + $0x80] ss:$8 sps:$4 sm:$0xff]   ;;  %v11837_v18 = vld [vmem:[#allocation17 + $0x2f4] ss:$40 sps:$4 sm:$0xff]   ;;  %v11853_v1 = vld [vmem:[#allocation17 + $0x3e0] ss:$40 sps:$4 sm:$0xff]  }
 0x77b   :  { %v10566_v35 = vmul.f32 -1.442695, %v13168_v32  ;;  %v13179_v10 = vadd.f32 %v8251_v58, %v8229_v49  ;;  %v8078_v55 = vmul.f32 %v13182_v14, %v13182_v14  ;;  %v11861_v0 = vld [vmem:[#allocation17 + $0x434] ss:$40 sps:$4 sm:$0xff]   ;;  %v11864_v46 = vld [vmem:[#allocation20 + $0xd4] ss:$8 sps:$4 sm:$0xff]  }
 0x77c   :  { %7837 = vmatpush1.bf16.msra.mxu0 %v11793_v50  ;;  %v10565_v16 = vmul.f32 -1.442695, %v13177_v63  ;;  %v11835_v50 = vld [vmem:[#allocation17 + $0x2f0] ss:$40 sps:$4 sm:$0xff]   ;;  %v11870_v49 = vld [vmem:[#allocation20 + $0xe4] ss:$8 sps:$4 sm:$0xff]  }
 0x77d   :  { %9341 = vmatpush1.bf16.msra.mxu1 %v11796_v26  ;;  %7838 = vmatprep.subr.bf16.mxu0 %v11801_v31  ;;  %12307 = vpow2.f32 %v10566_v35  ;;  %v10568_v52 = vmul.f32 -1.442695, %v13179_v10  ;;  %v8098_v25 = vrot.slane %v8078_v55, 4  ;;  %v11838_v31 = vld [vmem:[#allocation20 + $0x90] ss:$8 sps:$4 sm:$0xff]  }
 0x77e   :  { %9342 = vmatprep.subr.bf16.mxu1 %v11804_v57  ;;  %v11843_v57 = vld [vmem:[#allocation17 + $0x344] ss:$40 sps:$4 sm:$0xff]   ;;  %v11865_v58 = vld [vmem:[#allocation17 + $0x480] ss:$40 sps:$4 sm:$0xff]  }
 0x77f   :  { %v8099_v35 = vadd.f32 %v8098_v25, %v8078_v55 }
 0x780   :  { %7839 = vmatpush1.bf16.msra.mxu0 %v11799_v61  ;;  %v11846_v61 = vld [vmem:[#allocation20 + $0xa4] ss:$8 sps:$4 sm:$0xff]  }
 0x781   :  { %9343 = vmatpush1.bf16.msra.mxu1 %v11802_v37  ;;  %7840 = vmatprep.subr.bf16.mxu0 %v11807_v60  ;;  %v11844_v37 = vld [vmem:[#allocation20 + $0xa0] ss:$8 sps:$4 sm:$0xff]   ;;  %v11849_v60 = vld [vmem:[#allocation17 + $0x394] ss:$40 sps:$4 sm:$0xff]   ;;  %v8100_v7 = vrot.slane %v8099_v35, 2 }
 0x782   :  { %9344 = vmatprep.subr.bf16.mxu1 %v11810_v27 }
 0x784   :  { %7841 = vmatpush1.bf16.msra.mxu0 %v11805_v41  ;;  %v11855_v41 = vld [vmem:[#allocation17 + $0x3e4] ss:$40 sps:$4 sm:$0xff]  }
 0x785   :  { %9345 = vmatpush1.bf16.msra.mxu1 %v11808_v42  ;;  %7842 = vmatprep.subr.bf16.mxu0 %v11813_v9  ;;  %v11858_v42 = vld [vmem:[#allocation20 + $0xc4] ss:$8 sps:$4 sm:$0xff]   ;;  %v8101_v9 = vadd.f32 %v8100_v7, %v8099_v35  ;;  %v11904_v7 = vld [vmem:[#allocation20 + $0x140] ss:$8 sps:$4 sm:$0xff]  }
 0x786   :  { %9346 = vmatprep.subr.bf16.mxu1 %v11816_v45  ;;  %v11856_v45 = vld [vmem:[#allocation20 + $0xc0] ss:$8 sps:$4 sm:$0xff]  }
 0x787   :  { %v12308_v59 = vpop.eup %12307  ;;  %v8102_v15 = vrot.slane %v8101_v9, 1 }
 0x788   :  { %7843 = vmatpush1.bf16.msra.mxu0 %v11811_v8  ;;  %v8317_v6 = vadd.f32 1.0, %v12308_v59  ;;  %v11859_v8 = vld [vmem:[#allocation17 + $0x430] ss:$40 sps:$4 sm:$0xff]   ;;  %v11873_v59 = vld [vmem:[#allocation17 + $0x4d4] ss:$40 sps:$4 sm:$0xff]  }
 0x789   :  { %9347 = vmatpush1.bf16.msra.mxu1 %v11814_v34  ;;  %7844 = vmatprep.subr.bf16.mxu0 %v11819_v48  ;;  %v11862_v34 = vld [vmem:[#allocation20 + $0xd0] ss:$8 sps:$4 sm:$0xff]   ;;  %v11867_v48 = vld [vmem:[#allocation17 + $0x484] ss:$40 sps:$4 sm:$0xff]  }
 0x78a   :  { %9348 = vmatprep.subr.bf16.mxu1 %v11822_v54  ;;  %12309 = vrcp.f32 %v8317_v6  ;;  %v8103_v54 = vadd.f32 %v8102_v15, %v8101_v9  ;;  %v11871_v6 = vld [vmem:[#allocation17 + $0x4d0] ss:$40 sps:$4 sm:$0xff]   ;;  %v11915_v9 = vld [vmem:[#allocation17 + $0x704] ss:$40 sps:$4 sm:$0xff]  }
 0x78b   :  { %12311 = vpow2.f32 %v10565_v16  ;;  %v11874_v16 = vld [vmem:[#allocation20 + $0xf0] ss:$8 sps:$4 sm:$0xff]  }
 0x78c   :  { %7845 = vmatpush1.bf16.msra.mxu0 %v11817_v4  ;;  %12313 = vpow2.f32 %v10568_v52  ;;  %v11876_v4 = vld [vmem:[#allocation20 + $0xf4] ss:$8 sps:$4 sm:$0xff]   ;;  %v11877_v52 = vld [vmem:[#allocation17 + $0x520] ss:$40 sps:$4 sm:$0xff]  }
 0x78d   :  { %9349 = vmatpush1.bf16.msra.mxu1 %v11820_v5  ;;  %7846 = vmatprep.subr.bf16.mxu0 %v11825_v2  ;;  %v8148_v2 = vmul.f32 0.125, %v8103_v54  ;;  %v11925_v54 = vld [vmem:[#allocation17 + $0x7a0] ss:$40 sps:$4 sm:$0xff]  }
 0x78e   :  { %9350 = vmatprep.subr.bf16.mxu1 %v11828_v3 }
 0x790   :  { %7847 = vmatpush1.bf16.msra.mxu0 %v11823_v47  ;;  %v11879_v47 = vld [vmem:[#allocation17 + $0x524] ss:$40 sps:$4 sm:$0xff]  }
 0x791   :  { %9351 = vmatpush1.bf16.msra.mxu1 %v11826_v17  ;;  %7848 = vmatprep.subr.bf16.mxu0 %v11831_v51  ;;  %v11882_v51 = vld [vmem:[#allocation20 + $0x104] ss:$8 sps:$4 sm:$0xff]  }
 0x792   :  { %9352 = vmatprep.subr.bf16.mxu1 %v11834_v23  ;;  %v8158_v23 = vadd.f32 0.8, %v8148_v2  ;;  %v11939_v2 = vld [vmem:[#allocation17 + $0x844] ss:$40 sps:$4 sm:$0xff]  }
 0x794   :  { %7849 = vmatpush1.bf16.msra.mxu0 %v11829_v11  ;;  %v12310_v26 = vpop.eup %12309  ;;  %v11880_v11 = vld [vmem:[#allocation20 + $0x100] ss:$8 sps:$4 sm:$0xff]  }
 0x795   :  { %9353 = vmatpush1.bf16.msra.mxu1 %v11832_v56  ;;  %7850 = vmatprep.subr.bf16.mxu0 %v11837_v18  ;;  %v8347_v33 = vmul.f32 %v12310_v26, %v13168_v32  ;;  %v12312_v27 = vpop.eup %12311  ;;  %v11850_v32 = vld [vmem:[#allocation20 + $0xb0] ss:$8 sps:$4 sm:$0xff]   ;;  %v11885_v18 = vld [vmem:[#allocation17 + $0x574] ss:$40 sps:$4 sm:$0xff]   ;;  %v11891_v26 = vld [vmem:[#allocation17 + $0x5c4] ss:$40 sps:$4 sm:$0xff]  }
 0x796   :  { %9354 = vmatprep.subr.bf16.mxu1 %v11840_v19  ;;  %v12314_v29 = vpop.eup %12313  ;;  %v8316_v21 = vadd.f32 1.0, %v12312_v27  ;;  %v11888_v19 = vld [vmem:[#allocation20 + $0x114] ss:$8 sps:$4 sm:$0xff]  }
 0x797   :  { %v8357_v36 = vpack.c.bf16 %v8347_v33, %v8347_v33  ;;  %v8319_v43 = vadd.f32 1.0, %v12314_v29  ;;  %v11900_v33 = vld [vmem:[#allocation20 + $0x134] ss:$8 sps:$4 sm:$0xff]   ;;  %v11909_v29 = vld [vmem:[#allocation17 + $0x6b4] ss:$40 sps:$4 sm:$0xff]  }
 0x798   :  { %7851 = vmatpush1.bf16.msra.mxu0 %v11835_v50  ;;  %12315 = vrcp.f32 %v8316_v21  ;;  %v11886_v50 = vld [vmem:[#allocation20 + $0x110] ss:$8 sps:$4 sm:$0xff]  }
 0x799   :  { %9355 = vmatpush1.bf16.msra.mxu1 %v11838_v31  ;;  %7852 = vmatprep.subr.bf16.mxu0 %v11843_v57  ;;  %12317 = vrcp.f32 %v8319_v43  ;;  %v11889_v31 = vld [vmem:[#allocation17 + $0x5c0] ss:$40 sps:$4 sm:$0xff]   ;;  %v11892_v57 = vld [vmem:[#allocation20 + $0x120] ss:$8 sps:$4 sm:$0xff]  }
 0x79a   :  { %9368 = vmatprep.mubr.bf16.mxu1 %v8357_v36  ;;  %9356 = vmatprep.subr.bf16.mxu1 %v11846_v61  ;;  %12319 = vrsqrt.f32 %v8158_v23  ;;  %v11895_v61 = vld [vmem:[#allocation17 + $0x610] ss:$40 sps:$4 sm:$0xff]  }
 0x79b   :  { %v3328_v36 = vld [vmem:[#allocation19 + $0x10] sm:$0xff] }
 0x79c   :  { %7853 = vmatpush1.bf16.msra.mxu0 %v11841_v28  ;;  %v11903_v28 = vld [vmem:[#allocation17 + $0x664] ss:$40 sps:$4 sm:$0xff]   ;;  %v8197_v27 = vrot.slane %v3328_v36, %v12951_v30  ;;  %v11943_v23 = vld [vmem:[#allocation17 + $0x890] ss:$40 sps:$4 sm:$0xff]  }
 0x79d   :  { %9357 = vmatpush1.bf16.msra.mxu1 %v11844_v37  ;;  %7854 = vmatprep.subr.bf16.mxu0 %v11849_v60  ;;  %v11906_v37 = vld [vmem:[#allocation20 + $0x144] ss:$8 sps:$4 sm:$0xff]  }
 0x79e   :  { %9358 = vmatprep.subr.bf16.mxu1 %v11852_v38  ;;  %v11901_v38 = vld [vmem:[#allocation17 + $0x660] ss:$40 sps:$4 sm:$0xff]  }
 0x7a0   :  { %7855 = vmatpush1.bf16.msra.mxu0 %v11847_v40  ;;  %v11912_v40 = vld [vmem:[#allocation20 + $0x154] ss:$8 sps:$4 sm:$0xff]  }
 0x7a1   :  { %9359 = vmatpush1.bf16.msra.mxu1 %v11850_v32  ;;  %7856 = vmatprep.subr.bf16.mxu0 %v11855_v41  ;;  %v8247_v32 = vrot.slane %v3328_v36, %v12955_v20  ;;  %v11907_v41 = vld [vmem:[#allocation17 + $0x6b0] ss:$40 sps:$4 sm:$0xff]  }
 0x7a2   :  { %9360 = vmatprep.subr.bf16.mxu1 %v11858_v42  ;;  %v12316_v5 = vpop.eup %12315  ;;  %v11910_v42 = vld [vmem:[#allocation20 + $0x150] ss:$8 sps:$4 sm:$0xff]   ;;  %v11967_v36 = vld [vmem:[#allocation17 + $0x9d0] ss:$40 sps:$4 sm:$0xff]  }
 0x7a3   :  { %v12318_v3 = vpop.eup %12317  ;;  %v8346_v17 = vmul.f32 %v12316_v5, %v13177_v63  ;;  %v11883_v63 = vld [vmem:[#allocation17 + $0x570] ss:$40 sps:$4 sm:$0xff]   ;;  %v11934_v5 = vld [vmem:[#allocation20 + $0x190] ss:$8 sps:$4 sm:$0xff]  }
 0x7a4   :  { %7857 = vmatpush1.bf16.msra.mxu0 %v11853_v1  ;;  %v8349_v55 = vmul.f32 %v12318_v3, %v13179_v10  ;;  %v11894_v10 = vld [vmem:[#allocation20 + $0x124] ss:$8 sps:$4 sm:$0xff]   ;;  %v12320_v35 = vpop.eup %12319  ;;  %v11913_v1 = vld [vmem:[#allocation17 + $0x700] ss:$40 sps:$4 sm:$0xff]  }
 0x7a5   :  { %9361 = vmatpush1.bf16.msra.mxu1 %v11856_v45  ;;  %7858 = vmatprep.subr.bf16.mxu0 %v11861_v0  ;;  %v8356_v56 = vpack.c.bf16 %v8346_v17, %v8346_v17  ;;  %v8178_v60 = vmul.f32 %v12320_v35, %v13182_v14  ;;  %v11918_v14 = vld [vmem:[#allocation20 + $0x164] ss:$8 sps:$4 sm:$0xff]   ;;  %v11916_v45 = vld [vmem:[#allocation20 + $0x160] ss:$8 sps:$4 sm:$0xff]   ;;  %v11937_v3 = vld [vmem:[#allocation17 + $0x840] ss:$40 sps:$4 sm:$0xff]  }
 0x7a6   :  { %9362 = vmatprep.subr.bf16.mxu1 %v11864_v46  ;;  %v8359_v25 = vpack.c.bf16 %v8349_v55, %v8349_v55  ;;  %v11921_v0 = vld [vmem:[#allocation17 + $0x754] ss:$40 sps:$4 sm:$0xff]   ;;  %v11924_v46 = vld [vmem:[#allocation20 + $0x174] ss:$8 sps:$4 sm:$0xff]   ;;  %v11946_v55 = vld [vmem:[#allocation20 + $0x1b0] ss:$8 sps:$4 sm:$0xff]  }
 0x7a7   :  { %v8228_v21 = vmul.f32 %v8197_v27, %v8178_v60  ;;  %v12053_v60 = vld [vmem:[#allocation20 + $0x204] ss:$8 sps:$4 sm:$0xff]   ;;  %v11973_v27 = vld [vmem:[#allocation17 + $0xa20] ss:$40 sps:$4 sm:$0xff]  }
 0x7a8   :  { %7859 = vmatpush1.bf16.msra.mxu0 %v11859_v8  ;;  %v11919_v8 = vld [vmem:[#allocation17 + $0x750] ss:$40 sps:$4 sm:$0xff]  }
 0x7a9   :  { %9363 = vmatpush1.bf16.msra.mxu1 %v11862_v34  ;;  %7860 = vmatprep.subr.bf16.mxu0 %v11867_v48  ;;  %v13196_v43 = vadd.f32 %v8247_v32, %v8228_v21  ;;  %v11922_v34 = vld [vmem:[#allocation20 + $0x170] ss:$8 sps:$4 sm:$0xff]   ;;  %v11927_v48 = vld [vmem:[#allocation17 + $0x7a4] ss:$40 sps:$4 sm:$0xff]   ;;  %v11976_v21 = vld [vmem:[#allocation17 + $0xa70] ss:$40 sps:$4 sm:$0xff]  }
 0x7aa   :  { %9364 = vmatprep.subr.bf16.mxu1 %v11870_v49  ;;  %v11930_v49 = vld [vmem:[#allocation20 + $0x184] ss:$8 sps:$4 sm:$0xff]   ;;  %v11981_v32 = vld [vmem:[#allocation17 + $0xac4] ss:$40 sps:$4 sm:$0xff]  }
 0x7ab   :  { %v10567_v15 = vmul.f32 -1.442695, %v13196_v43 }
 0x7ac   :  { %7861 = vmatpush1.bf16.msra.mxu0 %v11865_v58  ;;  %v11928_v58 = vld [vmem:[#allocation20 + $0x180] ss:$8 sps:$4 sm:$0xff]  }
 0x7ad   :  { %9365 = vmatpush1.bf16.msra.mxu1 %v11868_v62  ;;  %7862 = vmatprep.subr.bf16.mxu0 %v11873_v59  ;;  %12321 = vpow2.f32 %v10567_v15  ;;  %v11933_v62 = vld [vmem:[#allocation17 + $0x7f4] ss:$40 sps:$4 sm:$0xff]   ;;  %v11936_v59 = vld [vmem:[#allocation20 + $0x194] ss:$8 sps:$4 sm:$0xff]  }
 0x7ae   :  { %9366 = vmatprep.subr.bf16.mxu1 %v11876_v4  ;;  %v11931_v4 = vld [vmem:[#allocation17 + $0x7f0] ss:$40 sps:$4 sm:$0xff]   ;;  %v11990_v15 = vld [vmem:[#allocation17 + $0xbb4] ss:$40 sps:$4 sm:$0xff]  }
 0x7b0   :  { %7863 = vmatpush1.bf16.msra.mxu0 %v11871_v6  ;;  %v11942_v6 = vld [vmem:[#allocation20 + $0x1a4] ss:$8 sps:$4 sm:$0xff]  }
 0x7b1   :  { %9367 = vmatpush1.bf16.msra.mxu1 %v11874_v16  ;;  %7873 = vmatprep.subr.bf16.mxu0 %v11879_v47  ;;  %v11940_v16 = vld [vmem:[#allocation20 + $0x1a0] ss:$8 sps:$4 sm:$0xff]   ;;  %v11945_v47 = vld [vmem:[#allocation17 + $0x894] ss:$40 sps:$4 sm:$0xff]  }
 0x7b2   :  { %9377 = vmatprep.subr.bf16.mxu1 %v11882_v51  ;;  %v11948_v51 = vld [vmem:[#allocation20 + $0x1b4] ss:$8 sps:$4 sm:$0xff]  }
 0x7b3   :  { %7865 = vmatmul.mubr.bf16.vlgmr.msra.gmra.mrb[28].mxu0 %v13046_v22  ;;  %v11897_v22 = vld [vmem:[#allocation17 + $0x614] ss:$40 sps:$4 sm:$0xff]  }
 0x7b4   :  { %9369 = vmatmul.mubr.bf16.vlgmr.msra.gmra.mrb[20].mxu1 %v8356_v56  ;;  %7874 = vmatpush1.bf16.msra.mxu0 %v11877_v52  ;;  %v11954_v56 = vld [vmem:[#allocation20 + $0x1c4] ss:$8 sps:$4 sm:$0xff]  }
 0x7b5   :  { %7905 = vmatprep.mubr.bf16.mxu0 %v13052_v24  ;;  %9378 = vmatpush1.bf16.msra.mxu1 %v11880_v11  ;;  %v11898_v24 = vld [vmem:[#allocation20 + $0x130] ss:$8 sps:$4 sm:$0xff]   ;;  %v11951_v11 = vld [vmem:[#allocation17 + $0x8e4] ss:$40 sps:$4 sm:$0xff]  }
 0x7b6   :  { %9409 = vmatprep.mubr.bf16.mxu1 %v8359_v25  ;;  %7875 = vmatprep.subr.bf16.mxu0 %v11885_v18  ;;  %v11949_v18 = vld [vmem:[#allocation17 + $0x8e0] ss:$40 sps:$4 sm:$0xff]   ;;  %v11957_v25 = vld [vmem:[#allocation17 + $0x934] ss:$40 sps:$4 sm:$0xff]  }
 0x7b7   :  { %9379 = vmatprep.subr.bf16.mxu1 %v11888_v19  ;;  %v12322_v17 = vpop.eup %12321  ;;  %v11952_v19 = vld [vmem:[#allocation20 + $0x1c0] ss:$8 sps:$4 sm:$0xff]  }
 0x7b8   :  { %7876 = vmatpush1.bf16.msra.mxu0 %v11883_v63  ;;  %v8318_v52 = vadd.f32 1.0, %v12322_v17  ;;  %v11960_v63 = vld [vmem:[#allocation20 + $0x1d4] ss:$8 sps:$4 sm:$0xff]   ;;  %v12002_v17 = vld [vmem:[#allocation17 + $0xcf4] ss:$40 sps:$4 sm:$0xff]  }
 0x7b9   :  { %9380 = vmatpush1.bf16.msra.mxu1 %v11886_v50  ;;  %7877 = vmatprep.subr.bf16.mxu0 %v11891_v26  ;;  %v11955_v50 = vld [vmem:[#allocation17 + $0x930] ss:$40 sps:$4 sm:$0xff]   ;;  %v11958_v26 = vld [vmem:[#allocation20 + $0x1d0] ss:$8 sps:$4 sm:$0xff]  }
 0x7ba   :  { %9381 = vmatprep.subr.bf16.mxu1 %v11894_v10  ;;  %12323 = vrcp.f32 %v8318_v52  ;;  %v11963_v10 = vld [vmem:[#allocation17 + $0x984] ss:$40 sps:$4 sm:$0xff]   ;;  %v12000_v52 = vld [vmem:[#allocation17 + $0xcf0] ss:$40 sps:$4 sm:$0xff]  }
 0x7bc   :  { %7878 = vmatpush1.bf16.msra.mxu0 %v11889_v31  ;;  %v11966_v31 = vld [vmem:[#allocation20 + $0x1e4] ss:$8 sps:$4 sm:$0xff]  }
 0x7bd   :  { %9382 = vmatpush1.bf16.msra.mxu1 %v11892_v57  ;;  %7879 = vmatprep.subr.bf16.mxu0 %v11897_v22  ;;  %v11961_v57 = vld [vmem:[#allocation17 + $0x980] ss:$40 sps:$4 sm:$0xff]   ;;  %v11964_v22 = vld [vmem:[#allocation20 + $0x1e0] ss:$8 sps:$4 sm:$0xff]  }
 0x7be   :  { %9383 = vmatprep.subr.bf16.mxu1 %v11900_v33  ;;  %v11969_v33 = vld [vmem:[#allocation17 + $0x9d4] ss:$40 sps:$4 sm:$0xff]  }
 0x7c0   :  { %7880 = vmatpush1.bf16.msra.mxu0 %v11895_v61  ;;  %v11972_v61 = vld [vmem:[#allocation20 + $0x1f4] ss:$8 sps:$4 sm:$0xff]  }
 0x7c1   :  { %9384 = vmatpush1.bf16.msra.mxu1 %v11898_v24  ;;  %7881 = vmatprep.subr.bf16.mxu0 %v11903_v28  ;;  %v11970_v24 = vld [vmem:[#allocation20 + $0x1f0] ss:$8 sps:$4 sm:$0xff]   ;;  %v11975_v28 = vld [vmem:[#allocation17 + $0xa24] ss:$40 sps:$4 sm:$0xff]  }
 0x7c2   :  { %9385 = vmatprep.subr.bf16.mxu1 %v11906_v37 }
 0x7c4   :  { %7882 = vmatpush1.bf16.msra.mxu0 %v11901_v38  ;;  %v12324_v35 = vpop.eup %12323  ;;  %v11978_v38 = vld [vmem:[#allocation17 + $0xa74] ss:$40 sps:$4 sm:$0xff]  }
 0x7c5   :  { %9386 = vmatpush1.bf16.msra.mxu1 %v11904_v7  ;;  %7883 = vmatprep.subr.bf16.mxu0 %v11909_v29  ;;  %v8348_v37 = vmul.f32 %v12324_v35, %v13196_v43  ;;  %v12051_v29 = vld [vmem:[#allocation20 + $0x200] ss:$8 sps:$4 sm:$0xff]  }
 0x7c6   :  { %9387 = vmatprep.subr.bf16.mxu1 %v11912_v40  ;;  %v12059_v40 = vld [vmem:[#allocation20 + $0x214] ss:$8 sps:$4 sm:$0xff]   ;;  %v12063_v43 = vld [vmem:[#allocation20 + $0x220] ss:$8 sps:$4 sm:$0xff]  }
 0x7c7   :  { %v8358_v7 = vpack.c.bf16 %v8348_v37, %v8348_v37  ;;  %v12012_v35 = vld [vmem:[#allocation17 + $0xe30] ss:$40 sps:$4 sm:$0xff]   ;;  %v12015_v37 = vld [vmem:[#allocation17 + $0xe80] ss:$40 sps:$4 sm:$0xff]  }
 0x7c8   :  { %7884 = vmatpush1.bf16.msra.mxu0 %v11907_v41  ;;  %v12057_v41 = vld [vmem:[#allocation20 + $0x210] ss:$8 sps:$4 sm:$0xff]  }
 0x7c9   :  { %9388 = vmatpush1.bf16.msra.mxu1 %v11910_v42  ;;  %7885 = vmatprep.subr.bf16.mxu0 %v11915_v9  ;;  %v12065_v42 = vld [vmem:[#allocation20 + $0x224] ss:$8 sps:$4 sm:$0xff]   ;;  %v11979_v9 = vld [vmem:[#allocation17 + $0xac0] ss:$40 sps:$4 sm:$0xff]  }
 0x7ca   :  { %9389 = vmatprep.subr.bf16.mxu1 %v11918_v14  ;;  %v11984_v14 = vld [vmem:[#allocation17 + $0xb14] ss:$40 sps:$4 sm:$0xff]  }
 0x7cc   :  { %7886 = vmatpush1.bf16.msra.mxu0 %v11913_v1  ;;  %v11982_v1 = vld [vmem:[#allocation17 + $0xb10] ss:$40 sps:$4 sm:$0xff]  }
 0x7cd   :  { %9390 = vmatpush1.bf16.msra.mxu1 %v11916_v45  ;;  %7887 = vmatprep.subr.bf16.mxu0 %v11921_v0  ;;  %v11987_v45 = vld [vmem:[#allocation17 + $0xb64] ss:$40 sps:$4 sm:$0xff]   ;;  %v12077_v0 = vld [vmem:[#allocation20 + $0x244] ss:$8 sps:$4 sm:$0xff]  }
 0x7ce   :  { %9391 = vmatprep.subr.bf16.mxu1 %v11924_v46  ;;  %v11985_v46 = vld [vmem:[#allocation17 + $0xb60] ss:$40 sps:$4 sm:$0xff]  }
 0x7d0   :  { %7888 = vmatpush1.bf16.msra.mxu0 %v11919_v8  ;;  %v12075_v8 = vld [vmem:[#allocation20 + $0x240] ss:$8 sps:$4 sm:$0xff]  }
 0x7d1   :  { %9392 = vmatpush1.bf16.msra.mxu1 %v11922_v34  ;;  %7889 = vmatprep.subr.bf16.mxu0 %v11927_v48  ;;  %v12083_v34 = vld [vmem:[#allocation20 + $0x254] ss:$8 sps:$4 sm:$0xff]   ;;  %v11988_v48 = vld [vmem:[#allocation17 + $0xbb0] ss:$40 sps:$4 sm:$0xff]  }
 0x7d2   :  { %9393 = vmatprep.subr.bf16.mxu1 %v11930_v49  ;;  %v11993_v49 = vld [vmem:[#allocation17 + $0xc04] ss:$40 sps:$4 sm:$0xff]  }
 0x7d4   :  { %7890 = vmatpush1.bf16.msra.mxu0 %v11925_v54  ;;  %v12081_v54 = vld [vmem:[#allocation20 + $0x250] ss:$8 sps:$4 sm:$0xff]  }
 0x7d5   :  { %9394 = vmatpush1.bf16.msra.mxu1 %v11928_v58  ;;  %7891 = vmatprep.subr.bf16.mxu0 %v11933_v62  ;;  %v12089_v58 = vld [vmem:[#allocation20 + $0x264] ss:$8 sps:$4 sm:$0xff]   ;;  %v11991_v62 = vld [vmem:[#allocation17 + $0xc00] ss:$40 sps:$4 sm:$0xff]  }
 0x7d6   :  { %9395 = vmatprep.subr.bf16.mxu1 %v11936_v59  ;;  %v11996_v59 = vld [vmem:[#allocation17 + $0xc54] ss:$40 sps:$4 sm:$0xff]  }
 0x7d8   :  { %7892 = vmatpush1.bf16.msra.mxu0 %v11931_v4  ;;  %v12087_v4 = vld [vmem:[#allocation20 + $0x260] ss:$8 sps:$4 sm:$0xff]  }
 0x7d9   :  { %9396 = vmatpush1.bf16.msra.mxu1 %v11934_v5  ;;  %7893 = vmatprep.subr.bf16.mxu0 %v11939_v2  ;;  %v12092_v5 = vld [vmem:[#allocation20 + $0x274] ss:$8 sps:$4 sm:$0xff]   ;;  %v11994_v2 = vld [vmem:[#allocation17 + $0xc50] ss:$40 sps:$4 sm:$0xff]  }
 0x7da   :  { %9397 = vmatprep.subr.bf16.mxu1 %v11942_v6  ;;  %v11999_v6 = vld [vmem:[#allocation17 + $0xca4] ss:$40 sps:$4 sm:$0xff]  }
 0x7dc   :  { %7894 = vmatpush1.bf16.msra.mxu0 %v11937_v3  ;;  %v12090_v3 = vld [vmem:[#allocation20 + $0x270] ss:$8 sps:$4 sm:$0xff]  }
 0x7dd   :  { %9398 = vmatpush1.bf16.msra.mxu1 %v11940_v16  ;;  %7895 = vmatprep.subr.bf16.mxu0 %v11945_v47  ;;  %v12095_v16 = vld [vmem:[#allocation20 + $0x284] ss:$8 sps:$4 sm:$0xff]   ;;  %v11997_v47 = vld [vmem:[#allocation17 + $0xca0] ss:$40 sps:$4 sm:$0xff]  }
 0x7de   :  { %9399 = vmatprep.subr.bf16.mxu1 %v11948_v51  ;;  %v12093_v51 = vld [vmem:[#allocation20 + $0x280] ss:$8 sps:$4 sm:$0xff]  }
 0x7e0   :  { %7896 = vmatpush1.bf16.msra.mxu0 %v11943_v23  ;;  %v12098_v23 = vld [vmem:[#allocation20 + $0x294] ss:$8 sps:$4 sm:$0xff]  }
 0x7e1   :  { %9400 = vmatpush1.bf16.msra.mxu1 %v11946_v55  ;;  %7897 = vmatprep.subr.bf16.mxu0 %v11951_v11  ;;  %v12005_v55 = vld [vmem:[#allocation17 + $0xd44] ss:$40 sps:$4 sm:$0xff]   ;;  %v12096_v11 = vld [vmem:[#allocation20 + $0x290] ss:$8 sps:$4 sm:$0xff]  }
 0x7e2   :  { %9401 = vmatprep.subr.bf16.mxu1 %v11954_v56  ;;  %v12101_v56 = vld [vmem:[#allocation20 + $0x2a4] ss:$8 sps:$4 sm:$0xff]  }
 0x7e4   :  { %7898 = vmatpush1.bf16.msra.mxu0 %v11949_v18  ;;  %v12003_v18 = vld [vmem:[#allocation17 + $0xd40] ss:$40 sps:$4 sm:$0xff]  }
 0x7e5   :  { %9402 = vmatpush1.bf16.msra.mxu1 %v11952_v19  ;;  %7899 = vmatprep.subr.bf16.mxu0 %v11957_v25  ;;  %v12008_v19 = vld [vmem:[#allocation17 + $0xd94] ss:$40 sps:$4 sm:$0xff]   ;;  %v12099_v25 = vld [vmem:[#allocation20 + $0x2a0] ss:$8 sps:$4 sm:$0xff]  }
 0x7e6   :  { %9403 = vmatprep.subr.bf16.mxu1 %v11960_v63  ;;  %v12104_v63 = vld [vmem:[#allocation20 + $0x2b4] ss:$8 sps:$4 sm:$0xff]  }
 0x7e8   :  { %7900 = vmatpush1.bf16.msra.mxu0 %v11955_v50  ;;  %v12006_v50 = vld [vmem:[#allocation17 + $0xd90] ss:$40 sps:$4 sm:$0xff]  }
 0x7e9   :  { %9404 = vmatpush1.bf16.msra.mxu1 %v11958_v26  ;;  %7901 = vmatprep.subr.bf16.mxu0 %v11963_v10  ;;  %v12011_v26 = vld [vmem:[#allocation17 + $0xde4] ss:$40 sps:$4 sm:$0xff]   ;;  %v12102_v10 = vld [vmem:[#allocation20 + $0x2b0] ss:$8 sps:$4 sm:$0xff]  }
 0x7ea   :  { %9405 = vmatprep.subr.bf16.mxu1 %v11966_v31  ;;  %v12107_v31 = vld [vmem:[#allocation20 + $0x2c4] ss:$8 sps:$4 sm:$0xff]  }
 0x7ec   :  { %7902 = vmatpush1.bf16.msra.mxu0 %v11961_v57  ;;  %v12009_v57 = vld [vmem:[#allocation17 + $0xde0] ss:$40 sps:$4 sm:$0xff]  }
 0x7ed   :  { %9406 = vmatpush1.bf16.msra.mxu1 %v11964_v22  ;;  %7903 = vmatprep.subr.bf16.mxu0 %v11969_v33  ;;  %v12014_v22 = vld [vmem:[#allocation17 + $0xe34] ss:$40 sps:$4 sm:$0xff]   ;;  %v12105_v33 = vld [vmem:[#allocation20 + $0x2c0] ss:$8 sps:$4 sm:$0xff]  }
 0x7ee   :  { %9407 = vmatprep.subr.bf16.mxu1 %v11972_v61  ;;  %v12110_v61 = vld [vmem:[#allocation20 + $0x2d4] ss:$8 sps:$4 sm:$0xff]  }
 0x7f0   :  { %7904 = vmatpush1.bf16.msra.mxu0 %v11967_v36  ;;  %v12017_v36 = vld [vmem:[#allocation17 + $0xe84] ss:$40 sps:$4 sm:$0xff]  }
 0x7f1   :  { %9408 = vmatpush1.bf16.msra.mxu1 %v11970_v24  ;;  %7914 = vmatprep.subr.bf16.mxu0 %v11975_v28  ;;  %v12108_v24 = vld [vmem:[#allocation20 + $0x2d0] ss:$8 sps:$4 sm:$0xff]   ;;  %v12113_v28 = vld [vmem:[#allocation20 + $0x2e4] ss:$8 sps:$4 sm:$0xff]  }
 0x7f2   :  { %9418 = vmatprep.subr.bf16.mxu1 %v12053_v60  ;;  %v12020_v60 = vld [vmem:[#allocation17 + $0xed4] ss:$40 sps:$4 sm:$0xff]  }
 0x7f3   :  { %7906 = vmatmul.mubr.bf16.vlgmr.msra.gmra.mrb[28].mxu0 %v13078_v53  ;;  %v12071_v53 = vld [vmem:[#allocation20 + $0x234] ss:$8 sps:$4 sm:$0xff]  }
 0x7f4   :  { %9410 = vmatmul.mubr.bf16.vlgmr.msra.gmra.mrb[20].mxu1 %v8358_v7  ;;  %7915 = vmatpush1.bf16.msra.mxu0 %v11973_v27  ;;  %v12111_v27 = vld [vmem:[#allocation20 + $0x2e0] ss:$8 sps:$4 sm:$0xff]  }
 0x7f5   :  { %7946 = vmatprep.mubr.bf16.mxu0 %v13109_v44  ;;  %7916 = vmatprep.subr.bf16.mxu0 %v11978_v38  ;;  %v12069_v44 = vld [vmem:[#allocation20 + $0x230] ss:$8 sps:$4 sm:$0xff]   ;;  %v12116_v38 = vld [vmem:[#allocation20 + $0x2f4] ss:$8 sps:$4 sm:$0xff]   ;;  %v12018_v7 = vld [vmem:[#allocation17 + $0xed0] ss:$40 sps:$4 sm:$0xff]  }
 0x7f6   :  { %9419 = vmatpush1.bf16.msra.mxu1 %v12051_v29  ;;  %v12023_v29 = vld [vmem:[#allocation17 + $0xf24] ss:$40 sps:$4 sm:$0xff]  }
 0x7f7   :  { %9420 = vmatprep.subr.bf16.mxu1 %v12059_v40  ;;  %v12114_v40 = vld [vmem:[#allocation20 + $0x2f0] ss:$8 sps:$4 sm:$0xff]  }
 0x7f8   :  { %7917 = vmatpush1.bf16.msra.mxu0 %v11976_v21  ;;  %v12119_v21 = vld [vmem:[#allocation20 + $0x304] ss:$8 sps:$4 sm:$0xff]  }
 0x7f9   :  { %7918 = vmatprep.subr.bf16.mxu0 %v11981_v32  ;;  %v12021_v32 = vld [vmem:[#allocation17 + $0xf20] ss:$40 sps:$4 sm:$0xff]  }
 0x7fa   :  { %9421 = vmatpush1.bf16.msra.mxu1 %v12057_v41  ;;  %v12026_v41 = vld [vmem:[#allocation17 + $0xf74] ss:$40 sps:$4 sm:$0xff]  }
 0x7fb   :  { %9422 = vmatprep.subr.bf16.mxu1 %v12065_v42  ;;  %v12024_v42 = vld [vmem:[#allocation17 + $0xf70] ss:$40 sps:$4 sm:$0xff]  }
 0x7fc   :  { %7919 = vmatpush1.bf16.msra.mxu0 %v11979_v9  ;;  %v12029_v9 = vld [vmem:[#allocation17 + $0xfc4] ss:$40 sps:$4 sm:$0xff]  }
 0x7fd   :  { %7920 = vmatprep.subr.bf16.mxu0 %v11984_v14  ;;  %v12027_v14 = vld [vmem:[#allocation17 + $0xfc0] ss:$40 sps:$4 sm:$0xff]  }
 0x7fe   :  { %9423 = vmatpush1.bf16.msra.mxu1 %v12063_v43  ;;  %v12032_v43 = vld [vmem:[#allocation17 + $0x1014] ss:$40 sps:$4 sm:$0xff]  }
 0x7ff   :  { %9424 = vmatprep.subr.bf16.mxu1 %v12071_v53  ;;  %v12030_v53 = vld [vmem:[#allocation17 + $0x1010] ss:$40 sps:$4 sm:$0xff]  }
 0x800   :  { %7921 = vmatpush1.bf16.msra.mxu0 %v11982_v1  ;;  %v12035_v1 = vld [vmem:[#allocation17 + $0x1064] ss:$40 sps:$4 sm:$0xff]  }
 0x801   :  { %7922 = vmatprep.subr.bf16.mxu0 %v11987_v45  ;;  %v12033_v45 = vld [vmem:[#allocation17 + $0x1060] ss:$40 sps:$4 sm:$0xff]  }
 0x802   :  { %9425 = vmatpush1.bf16.msra.mxu1 %v12069_v44  ;;  %v12038_v44 = vld [vmem:[#allocation17 + $0x10b4] ss:$40 sps:$4 sm:$0xff]  }
 0x803   :  { %9426 = vmatprep.subr.bf16.mxu1 %v12077_v0  ;;  %v12041_v0 = vld [vmem:[#allocation17 + $0x1104] ss:$40 sps:$4 sm:$0xff]  }
 0x804   :  { %7923 = vmatpush1.bf16.msra.mxu0 %v11985_v46 }
 0x805   :  { %7924 = vmatprep.subr.bf16.mxu0 %v11990_v15 }
 0x806   :  { %9427 = vmatpush1.bf16.msra.mxu1 %v12075_v8 }
 0x807   :  { %9428 = vmatprep.subr.bf16.mxu1 %v12083_v34 }
 0x808   :  { %7925 = vmatpush1.bf16.msra.mxu0 %v11988_v48 }
 0x809   :  { %7926 = vmatprep.subr.bf16.mxu0 %v11993_v49 }
 0x80a   :  { %9429 = vmatpush1.bf16.msra.mxu1 %v12081_v54  ;;  %v12039_v54 = vld [vmem:[#allocation17 + $0x1100] ss:$40 sps:$4 sm:$0xff]  }
 0x80b   :  { %9430 = vmatprep.subr.bf16.mxu1 %v12089_v58 }
 0x80c   :  { %7927 = vmatpush1.bf16.msra.mxu0 %v11991_v62 }
 0x80d   :  { %7928 = vmatprep.subr.bf16.mxu0 %v11996_v59 }
 0x80e   :  { %9431 = vmatpush1.bf16.msra.mxu1 %v12087_v4 }
 0x80f   :  { %9432 = vmatprep.subr.bf16.mxu1 %v12092_v5  ;;  %v12044_v5 = vld [vmem:[#allocation17 + $0x1154] ss:$40 sps:$4 sm:$0xff]  }
 0x810   :  { %7929 = vmatpush1.bf16.msra.mxu0 %v11994_v2 }
 0x811   :  { %7930 = vmatprep.subr.bf16.mxu0 %v11999_v6 }
 0x812   :  { %9433 = vmatpush1.bf16.msra.mxu1 %v12090_v3 }
 0x813   :  { %9434 = vmatprep.subr.bf16.mxu1 %v12095_v16 }
 0x814   :  { %7931 = vmatpush1.bf16.msra.mxu0 %v11997_v47 }
 0x815   :  { %7932 = vmatprep.subr.bf16.mxu0 %v12002_v17  ;;  %v12042_v17 = vld [vmem:[#allocation17 + $0x1150] ss:$40 sps:$4 sm:$0xff]  }
 0x816   :  { %9435 = vmatpush1.bf16.msra.mxu1 %v12093_v51 }
 0x817   :  { %9436 = vmatprep.subr.bf16.mxu1 %v12098_v23 }
 0x818   :  { %7933 = vmatpush1.bf16.msra.mxu0 %v12000_v52  ;;  %v12047_v52 = vld [vmem:[#allocation17 + $0x11a4] ss:$40 sps:$4 sm:$0xff]  }
 0x819   :  { %7934 = vmatprep.subr.bf16.mxu0 %v12005_v55 }
 0x81a   :  { %9437 = vmatpush1.bf16.msra.mxu1 %v12096_v11 }
 0x81b   :  { %9438 = vmatprep.subr.bf16.mxu1 %v12101_v56 }
 0x81c   :  { %7935 = vmatpush1.bf16.msra.mxu0 %v12003_v18 }
 0x81d   :  { %7936 = vmatprep.subr.bf16.mxu0 %v12008_v19  ;;  %v12045_v19 = vld [vmem:[#allocation17 + $0x11a0] ss:$40 sps:$4 sm:$0xff]  }
 0x81e   :  { %9439 = vmatpush1.bf16.msra.mxu1 %v12099_v25 }
 0x81f   :  { %9440 = vmatprep.subr.bf16.mxu1 %v12104_v63 }
 0x820   :  { %7937 = vmatpush1.bf16.msra.mxu0 %v12006_v50  ;;  %v12050_v50 = vld [vmem:[#allocation17 + $0x11f4] ss:$40 sps:$4 sm:$0xff]  }
 0x821   :  { %7938 = vmatprep.subr.bf16.mxu0 %v12011_v26 }
 0x822   :  { %9441 = vmatpush1.bf16.msra.mxu1 %v12102_v10 }
 0x823   :  { %9442 = vmatprep.subr.bf16.mxu1 %v12107_v31 }
 0x824   :  { %7939 = vmatpush1.bf16.msra.mxu0 %v12009_v57 }
 0x825   :  { %7940 = vmatprep.subr.bf16.mxu0 %v12014_v22  ;;  %v12048_v22 = vld [vmem:[#allocation17 + $0x11f0] ss:$40 sps:$4 sm:$0xff]  }
 0x826   :  { %9443 = vmatpush1.bf16.msra.mxu1 %v12105_v33 }
 0x827   :  { %9444 = vmatprep.subr.bf16.mxu1 %v12110_v61 }
 0x828   :  { %7941 = vmatpush1.bf16.msra.mxu0 %v12012_v35  ;;  %v12056_v35 = vld [vmem:[#allocation17 + $0x1244] ss:$40 sps:$4 sm:$0xff]  }
 0x829   :  { %7942 = vmatprep.subr.bf16.mxu0 %v12017_v36 }
 0x82a   :  { %9445 = vmatpush1.bf16.msra.mxu1 %v12108_v24 }
 0x82b   :  { %9446 = vmatprep.subr.bf16.mxu1 %v12113_v28 }
 0x82c   :  { %7943 = vmatpush1.bf16.msra.mxu0 %v12015_v37 }
 0x82d   :  { %7944 = vmatprep.subr.bf16.mxu0 %v12020_v60 }
 0x82e   :  { %9447 = vmatpush1.bf16.msra.mxu1 %v12111_v27  ;;  %v12054_v27 = vld [vmem:[#allocation17 + $0x1240] ss:$40 sps:$4 sm:$0xff]  }
 0x82f   :  { %9448 = vmatprep.subr.bf16.mxu1 %v12116_v38 }
 0x830   :  { %7945 = vmatpush1.bf16.msra.mxu0 %v12018_v7 }
 0x831   :  { %7955 = vmatprep.subr.bf16.mxu0 %v12023_v29  ;;  %v12062_v29 = vld [vmem:[#allocation17 + $0x1294] ss:$40 sps:$4 sm:$0xff]  }
 0x832   :  { %9449 = vmatpush1.bf16.msra.mxu1 %v12114_v40 }
 0x833   :  { %7947 = vmatmul.mubr.bf16.vlgmr.msra.gmra.mrb[28].mxu0 %v13111_v13  ;;  %9459 = vmatprep.subr.bf16.mxu1 %v12119_v21  ;;  %v12036_v13 = vld [vmem:[#allocation17 + $0x10b0] ss:$40 sps:$4 sm:$0xff]  }
 0x834   :  { %7956 = vmatpush1.bf16.msra.mxu0 %v12021_v32  ;;  %7987 = vmatprep.mubr.bf16.mxu0 %v13117_v39 }
 0x835   :  { %7957 = vmatprep.subr.bf16.mxu0 %v12026_v41 }
 0x838   :  { %7958 = vmatpush1.bf16.msra.mxu0 %v12024_v42 }
 0x839   :  { %7959 = vmatprep.subr.bf16.mxu0 %v12029_v9  ;;  %v12060_v9 = vld [vmem:[#allocation17 + $0x1290] ss:$40 sps:$4 sm:$0xff]  }
 0x83c   :  { %7960 = vmatpush1.bf16.msra.mxu0 %v12027_v14 }
 0x83d   :  { %7961 = vmatprep.subr.bf16.mxu0 %v12032_v43 }
 0x840   :  { %7962 = vmatpush1.bf16.msra.mxu0 %v12030_v53  ;;  %v12068_v53 = vld [vmem:[#allocation17 + $0x12e4] ss:$40 sps:$4 sm:$0xff]  }
 0x841   :  { %7963 = vmatprep.subr.bf16.mxu0 %v12035_v1 }
 0x844   :  { %7964 = vmatpush1.bf16.msra.mxu0 %v12033_v45 }
 0x845   :  { %7965 = vmatprep.subr.bf16.mxu0 %v12038_v44 }
 0x846   :  { %v7661_v39 = vpop.f32.mrb[24].mxu0 }
 0x847   :  { %v8020_v46 = vrot.slane %v7661_v39, 4  ;;  %v13204_v15 = vpop.f32.mrb[16].mxu1  ;;  %v7663_v8 = vpop.f32.mrb[25].mxu0 }
 0x848   :  { %v8026_v34 = vrot.slane %v7663_v8, 4  ;;  %v7827_v48 = vpop.f32.mrb[17].mxu1  ;;  %v7665_v49 = vpop.f32.mrb[26].mxu0  ;;  %7966 = vmatpush1.bf16.msra.mxu0 %v12036_v13  ;;  %v8032_v36 = vrot.slane %v13204_v15, 4 }
 0x849   :  { %v8021_v58 = vadd.f32 %v8020_v46, %v7661_v39  ;;  %v8038_v62 = vrot.slane %v7827_v48, 4  ;;  %v7829_v59 = vpop.f32.mrb[18].mxu1  ;;  %v7666_v4 = vpop.f32.mrb[27].mxu0  ;;  %7967 = vmatprep.subr.bf16.mxu0 %v12041_v0 }
 0x84a   :  { %v8027_v2 = vadd.f32 %v8026_v34, %v7663_v8  ;;  %v7830_v6 = vpop.f32.mrb[19].mxu1  ;;  %v8033_v40 = vadd.f32 %v8032_v36, %v13204_v15  ;;  %v12074_v34 = vld [vmem:[#allocation17 + $0x1334] ss:$40 sps:$4 sm:$0xff]   ;;  %v12072_v59 = vld [vmem:[#allocation17 + $0x1330] ss:$40 sps:$4 sm:$0xff]  }
 0x84b   :  { %v8022_v3 = vrot.slane %v8021_v58, 2  ;;  %v8039_v16 = vadd.f32 %v8038_v62, %v7827_v48 }
 0x84c   :  { %v8028_v47 = vrot.slane %v8027_v2, 2  ;;  %7968 = vmatpush1.bf16.msra.mxu0 %v12039_v54  ;;  %v8034_v1 = vrot.slane %v8033_v40, 2 }
 0x84d   :  { %v8023_v51 = vadd.f32 %v8022_v3, %v8021_v58  ;;  %v8040_v23 = vrot.slane %v8039_v16, 2  ;;  %7969 = vmatprep.subr.bf16.mxu0 %v12044_v5 }
 0x84e   :  { %v8029_v55 = vadd.f32 %v8028_v47, %v8027_v2  ;;  %v12080_v2 = vld [vmem:[#allocation17 + $0x1384] ss:$40 sps:$4 sm:$0xff]  }
 0x84f   :  { %v8024_v11 = vrot.slane %v8023_v51, 1  ;;  %v8041_v56 = vadd.f32 %v8040_v23, %v8039_v16 }
 0x850   :  { %v8030_v18 = vrot.slane %v8029_v55, 1  ;;  %7970 = vmatpush1.bf16.msra.mxu0 %v12042_v17 }
 0x851   :  { %v8025_v25 = vadd.f32 %v8024_v11, %v8023_v51  ;;  %v8042_v63 = vrot.slane %v8041_v56, 1  ;;  %7971 = vmatprep.subr.bf16.mxu0 %v12047_v52  ;;  %v12078_v51 = vld [vmem:[#allocation17 + $0x1380] ss:$40 sps:$4 sm:$0xff]   ;;  %v12086_v52 = vld [vmem:[#allocation17 + $0x13d4] ss:$40 sps:$4 sm:$0xff]  }
 0x852   :  { %v8031_v26 = vadd.f32 %v8030_v18, %v8029_v55  ;;  %v12084_v11 = vld [vmem:[#allocation17 + $0x13d0] ss:$40 sps:$4 sm:$0xff]   ;;  %v3330_v18 = vld [vmem:[#allocation19 + $0x20] sm:$0xff] }
 0x853   :  { %v8060_v10 = vmul.f32 0.125, %v8025_v25  ;;  %v8043_v31 = vadd.f32 %v8042_v63, %v8041_v56  ;;  %v8205_v25 = vrot.slane %v3330_v18, %v12951_v30 }
 0x854   :  { %v8061_v57 = vmul.f32 0.125, %v8031_v26  ;;  %7972 = vmatpush1.bf16.msra.mxu0 %v12045_v19  ;;  %v3331_v19 = vld [vmem:[#allocation19 + $0x28] sm:$0xff] }
 0x855   :  { %v13206_v33 = vsub.f32 %v7661_v39, %v8060_v10  ;;  %v8063_v61 = vmul.f32 0.125, %v8043_v31  ;;  %7973 = vmatprep.subr.bf16.mxu0 %v12050_v50  ;;  %v12066_v39 = vld [vmem:[#allocation17 + $0x12e0] ss:$40 sps:$4 sm:$0xff]   ;;  %v3333_v50 = vld [vmem:[#allocation19 + $0x38] sm:$0xff]  ;;  %v8255_v31 = vrot.slane %v3330_v18, %v12955_v20  ;;  %v12134_v18 = vld [vmem:[#allocation20 + $0x354] ss:$8 sps:$4 sm:$0xff]  }
 0x856   :  { %v13209_v24 = vsub.f32 %v7663_v8, %v8061_v57  ;;  %v8209_v57 = vrot.slane %v3331_v19, %v12951_v30 }
 0x857   :  { %v8080_v28 = vmul.f32 %v13206_v33, %v13206_v33  ;;  %v13213_v37 = vsub.f32 %v7827_v48, %v8063_v61  ;;  %v8035_v48 = vadd.f32 %v8034_v1, %v8033_v40  ;;  %v8217_v61 = vrot.slane %v3333_v50, %v12951_v30 }
 0x858   :  { %v8081_v60 = vmul.f32 %v13209_v24, %v13209_v24  ;;  %7974 = vmatpush1.bf16.msra.mxu0 %v12048_v22 }
 0x859   :  { %v8110_v38 = vrot.slane %v8080_v28, 4  ;;  %v8083_v7 = vmul.f32 %v13213_v37, %v13213_v37  ;;  %7975 = vmatprep.subr.bf16.mxu0 %v12056_v35  ;;  %v8036_v6 = vrot.slane %v8035_v48, 1 }
 0x85a   :  { %v8116_v21 = vrot.slane %v8081_v60, 4 }
 0x85b   :  { %v8111_v32 = vadd.f32 %v8110_v38, %v8080_v28  ;;  %v8128_v41 = vrot.slane %v8083_v7, 4  ;;  %v8037_v55 = vadd.f32 %v8036_v6, %v8035_v48  ;;  %v12120_v6 = vld [vmem:[#allocation20 + $0x310] ss:$8 sps:$4 sm:$0xff]  }
 0x85c   :  { %v8117_v42 = vadd.f32 %v8116_v21, %v8081_v60  ;;  %7976 = vmatpush1.bf16.msra.mxu0 %v12054_v27  ;;  %v8259_v60 = vrot.slane %v3331_v19, %v12955_v20 }
 0x85d   :  { %v8112_v14 = vrot.slane %v8111_v32, 2  ;;  %v8129_v43 = vadd.f32 %v8128_v41, %v8083_v7  ;;  %7977 = vmatprep.subr.bf16.mxu0 %v12062_v29  ;;  %v8062_v56 = vmul.f32 0.125, %v8037_v55 }
 0x85e   :  { %v8118_v45 = vrot.slane %v8117_v42, 2 }
 0x85f   :  { %v8113_v44 = vadd.f32 %v8112_v14, %v8111_v32  ;;  %v8130_v13 = vrot.slane %v8129_v43, 2  ;;  %v13222_v63 = vsub.f32 %v13204_v15, %v8062_v56  ;;  %v12129_v56 = vld [vmem:[#allocation20 + $0x340] ss:$8 sps:$4 sm:$0xff]  }
 0x860   :  { %v8119_v0 = vadd.f32 %v8118_v45, %v8117_v42  ;;  %7978 = vmatpush1.bf16.msra.mxu0 %v12060_v9 }
 0x861   :  { %v8114_v46 = vrot.slane %v8113_v44, 1  ;;  %v8131_v8 = vadd.f32 %v8130_v13, %v8129_v43  ;;  %7979 = vmatprep.subr.bf16.mxu0 %v12068_v53  ;;  %v8082_v28 = vmul.f32 %v13222_v63, %v13222_v63 }
 0x862   :  { %v8120_v49 = vrot.slane %v8119_v0, 1 }
 0x863   :  { %v8115_v54 = vadd.f32 %v8114_v46, %v8113_v44  ;;  %v8132_v58 = vrot.slane %v8131_v8, 1  ;;  %v8122_v40 = vrot.slane %v8082_v28, 4 }
 0x864   :  { %v8121_v62 = vadd.f32 %v8120_v49, %v8119_v0  ;;  %7980 = vmatpush1.bf16.msra.mxu0 %v12066_v39 }
 0x865   :  { %v8150_v4 = vmul.f32 0.125, %v8115_v54  ;;  %v8133_v5 = vadd.f32 %v8132_v58, %v8131_v8  ;;  %7981 = vmatprep.subr.bf16.mxu0 %v12074_v34  ;;  %v8123_v9 = vadd.f32 %v8122_v40, %v8082_v28  ;;  %v12144_v28 = vld [vmem:[#allocation20 + $0x390] ss:$8 sps:$4 sm:$0xff]   ;;  %v12158_v40 = vld [vmem:[#allocation20 + $0x3d4] ss:$8 sps:$4 sm:$0xff]  }
 0x866   :  { %v8151_v3 = vmul.f32 0.125, %v8121_v62 }
 0x867   :  { %v8160_v16 = vadd.f32 0.8, %v8150_v4  ;;  %v8153_v47 = vmul.f32 0.125, %v8133_v5  ;;  %v12122_v5 = vld [vmem:[#allocation20 + $0x314] ss:$8 sps:$4 sm:$0xff]  }
 0x868   :  { %v8161_v17 = vadd.f32 0.8, %v8151_v3  ;;  %7982 = vmatpush1.bf16.msra.mxu0 %v12072_v59  ;;  %v12117_v59 = vld [vmem:[#allocation20 + $0x300] ss:$8 sps:$4 sm:$0xff]   ;;  %v12125_v3 = vld [vmem:[#allocation20 + $0x324] ss:$8 sps:$4 sm:$0xff]  }
 0x869   :  { %12325 = vrsqrt.f32 %v8160_v16  ;;  %v8163_v23 = vadd.f32 0.8, %v8153_v47  ;;  %7983 = vmatprep.subr.bf16.mxu0 %v12080_v2  ;;  %v12123_v16 = vld [vmem:[#allocation20 + $0x320] ss:$8 sps:$4 sm:$0xff]   ;;  %v12128_v47 = vld [vmem:[#allocation20 + $0x334] ss:$8 sps:$4 sm:$0xff]  }
 0x86a   :  { %12327 = vrsqrt.f32 %v8161_v17 }
 0x86b   :  { %12329 = vrsqrt.f32 %v8163_v23  ;;  %v12126_v23 = vld [vmem:[#allocation20 + $0x330] ss:$8 sps:$4 sm:$0xff]  }
 0x86c   :  { %7984 = vmatpush1.bf16.msra.mxu0 %v12078_v51  ;;  %v3332_v51 = vld [vmem:[#allocation19 + $0x30] sm:$0xff] }
 0x86d   :  { %7985 = vmatprep.subr.bf16.mxu0 %v12086_v52  ;;  %v12131_v52 = vld [vmem:[#allocation20 + $0x344] ss:$8 sps:$4 sm:$0xff]  }
 0x870   :  { %7986 = vmatpush1.bf16.msra.mxu0 %v12084_v11  ;;  %v8213_v11 = vrot.slane %v3332_v51, %v12951_v30 }
 0x873   :  { %v12326_v26 = vpop.eup %12325  ;;  %7988 = vmatmul.mubr.bf16.vlgmr.msra.gmra.mrb[28].mxu0 %v13128_v12 }
 0x874   :  { %v8180_v10 = vmul.f32 %v12326_v26, %v13206_v33  ;;  %v12328_v22 = vpop.eup %12327  ;;  %v8267_v33 = vrot.slane %v3333_v50, %v12955_v20  ;;  %v12132_v50 = vld [vmem:[#allocation20 + $0x350] ss:$8 sps:$4 sm:$0xff]   ;;  %v12137_v26 = vld [vmem:[#allocation20 + $0x364] ss:$8 sps:$4 sm:$0xff]  }
 0x875   :  { %v12330_v35 = vpop.eup %12329  ;;  %v8181_v15 = vmul.f32 %v12328_v22, %v13209_v24  ;;  %v8124_v24 = vrot.slane %v8123_v9, 2 }
 0x876   :  { %v8230_v36 = vmul.f32 %v8205_v25, %v8180_v10  ;;  %v8183_v12 = vmul.f32 %v12330_v35, %v13213_v37  ;;  %v8263_v25 = vrot.slane %v3332_v51, %v12955_v20  ;;  %v12141_v35 = vld [vmem:[#allocation20 + $0x380] ss:$8 sps:$4 sm:$0xff]   ;;  %v12203_v51 = vld [vmem:[#allocation20 + $0x4c4] ss:$8 sps:$4 sm:$0xff]  }
 0x877   :  { %v8231_v38 = vmul.f32 %v8209_v57, %v8181_v15  ;;  %v8125_v43 = vadd.f32 %v8124_v24, %v8123_v9  ;;  %v12140_v57 = vld [vmem:[#allocation20 + $0x374] ss:$8 sps:$4 sm:$0xff]   ;;  %v12149_v15 = vld [vmem:[#allocation20 + $0x3a4] ss:$8 sps:$4 sm:$0xff]   ;;  %v12162_v24 = vld [vmem:[#allocation20 + $0x3f0] ss:$8 sps:$4 sm:$0xff]  }
 0x878   :  { %v8280_v27 = vadd.f32 %v8255_v31, %v8230_v36  ;;  %v8233_v7 = vmul.f32 %v8217_v61, %v8183_v12  ;;  %v12135_v31 = vld [vmem:[#allocation20 + $0x360] ss:$8 sps:$4 sm:$0xff]   ;;  %v12143_v61 = vld [vmem:[#allocation20 + $0x384] ss:$8 sps:$4 sm:$0xff]   ;;  %v12146_v36 = vld [vmem:[#allocation20 + $0x394] ss:$8 sps:$4 sm:$0xff]  }
 0x879   :  { %v8281_v21 = vadd.f32 %v8259_v60, %v8231_v38  ;;  %v8126_v44 = vrot.slane %v8125_v43, 1  ;;  %v12147_v60 = vld [vmem:[#allocation20 + $0x3a0] ss:$8 sps:$4 sm:$0xff]   ;;  %v12150_v38 = vld [vmem:[#allocation20 + $0x3b0] ss:$8 sps:$4 sm:$0xff]  }
 0x87a   :  { %v10569_v29 = vmul.f32 -1.442695, %v8280_v27  ;;  %v8283_v32 = vadd.f32 %v8267_v33, %v8233_v7  ;;  %v12152_v33 = vld [vmem:[#allocation20 + $0x3b4] ss:$8 sps:$4 sm:$0xff]   ;;  %v12155_v7 = vld [vmem:[#allocation20 + $0x3c4] ss:$8 sps:$4 sm:$0xff]  }
 0x87b   :  { %v10570_v41 = vmul.f32 -1.442695, %v8281_v21  ;;  %v8127_v0 = vadd.f32 %v8126_v44, %v8125_v43  ;;  %v12173_v44 = vld [vmem:[#allocation20 + $0x424] ss:$8 sps:$4 sm:$0xff]  }
 0x87c   :  { %12331 = vpow2.f32 %v10569_v29  ;;  %v10572_v42 = vmul.f32 -1.442695, %v8283_v32  ;;  %v12153_v29 = vld [vmem:[#allocation20 + $0x3c0] ss:$8 sps:$4 sm:$0xff]  }
 0x87d   :  { %12333 = vpow2.f32 %v10570_v41  ;;  %v8152_v39 = vmul.f32 0.125, %v8127_v0  ;;  %v12159_v41 = vld [vmem:[#allocation20 + $0x3e0] ss:$8 sps:$4 sm:$0xff]   ;;  %v12176_v0 = vld [vmem:[#allocation20 + $0x434] ss:$8 sps:$4 sm:$0xff]  }
 0x87e   :  { %12335 = vpow2.f32 %v10572_v42  ;;  %v12164_v42 = vld [vmem:[#allocation20 + $0x3f4] ss:$8 sps:$4 sm:$0xff]  }
 0x87f   :  { %v8162_v49 = vadd.f32 0.8, %v8152_v39  ;;  %v12174_v39 = vld [vmem:[#allocation20 + $0x430] ss:$8 sps:$4 sm:$0xff]  }
 0x886   :  { %v12332_v14 = vpop.eup %12331 }
 0x887   :  { %v8320_v53 = vadd.f32 1.0, %v12332_v14  ;;  %v12334_v37 = vpop.eup %12333 }
 0x888   :  { %v12336_v1 = vpop.eup %12335  ;;  %v8321_v45 = vadd.f32 1.0, %v12334_v37  ;;  %v12165_v37 = vld [vmem:[#allocation20 + $0x400] ss:$8 sps:$4 sm:$0xff]  }
 0x889   :  { %12337 = vrcp.f32 %v8320_v53  ;;  %v8323_v13 = vadd.f32 1.0, %v12336_v1  ;;  %v12167_v53 = vld [vmem:[#allocation20 + $0x404] ss:$8 sps:$4 sm:$0xff]   ;;  %v12170_v1 = vld [vmem:[#allocation20 + $0x414] ss:$8 sps:$4 sm:$0xff]  }
 0x88a   :  { %12339 = vrcp.f32 %v8321_v45  ;;  %v12168_v45 = vld [vmem:[#allocation20 + $0x410] ss:$8 sps:$4 sm:$0xff]  }
 0x88b   :  { %12341 = vrcp.f32 %v8323_v13  ;;  %v12171_v13 = vld [vmem:[#allocation20 + $0x420] ss:$8 sps:$4 sm:$0xff]  }
 0x88c   :  { %12343 = vrsqrt.f32 %v8162_v49  ;;  %v12185_v49 = vld [vmem:[#allocation20 + $0x464] ss:$8 sps:$4 sm:$0xff]  }
 0x893   :  { %v12338_v46 = vpop.eup %12337 }
 0x894   :  { %v12340_v8 = vpop.eup %12339  ;;  %v8350_v34 = vmul.f32 %v12338_v46, %v8280_v27  ;;  %v12179_v46 = vld [vmem:[#allocation20 + $0x444] ss:$8 sps:$4 sm:$0xff]  }
 0x895   :  { %v12342_v48 = vpop.eup %12341  ;;  %v8351_v54 = vmul.f32 %v12340_v8, %v8281_v21  ;;  %v12156_v21 = vld [vmem:[#allocation20 + $0x3d0] ss:$8 sps:$4 sm:$0xff]   ;;  %v12177_v8 = vld [vmem:[#allocation20 + $0x440] ss:$8 sps:$4 sm:$0xff]  }
 0x896   :  { %v8353_v58 = vmul.f32 %v12342_v48, %v8283_v32  ;;  %v8360_v4 = vpack.c.bf16 %v8350_v34, %v8350_v34  ;;  %v12344_v17 = vpop.eup %12343  ;;  %v12161_v32 = vld [vmem:[#allocation20 + $0x3e4] ss:$8 sps:$4 sm:$0xff]   ;;  %v12182_v34 = vld [vmem:[#allocation20 + $0x454] ss:$8 sps:$4 sm:$0xff]   ;;  %v12180_v48 = vld [vmem:[#allocation20 + $0x450] ss:$8 sps:$4 sm:$0xff]  }
 0x897   :  { %v8361_v62 = vpack.c.bf16 %v8351_v54, %v8351_v54  ;;  %v8182_v55 = vmul.f32 %v12344_v17, %v13222_v63  ;;  %v12138_v63 = vld [vmem:[#allocation20 + $0x370] ss:$8 sps:$4 sm:$0xff]   ;;  %v12183_v54 = vld [vmem:[#allocation20 + $0x460] ss:$8 sps:$4 sm:$0xff]  }
 0x898   :  { %v8363_v2 = vpack.c.bf16 %v8353_v58, %v8353_v58  ;;  %v12188_v58 = vld [vmem:[#allocation20 + $0x474] ss:$8 sps:$4 sm:$0xff]   ;;  %v12201_v17 = vld [vmem:[#allocation20 + $0x4c0] ss:$8 sps:$4 sm:$0xff]  }
 0x899   :  { %9450 = vmatprep.mubr.bf16.mxu1 %v8361_v62  ;;  %v8232_v19 = vmul.f32 %v8213_v11, %v8182_v55  ;;  %v12186_v62 = vld [vmem:[#allocation20 + $0x470] ss:$8 sps:$4 sm:$0xff]   ;;  %v12209_v55 = vld [vmem:[#allocation20 + $0x4e4] ss:$8 sps:$4 sm:$0xff]   ;;  %v12207_v11 = vld [vmem:[#allocation20 + $0x4e0] ss:$8 sps:$4 sm:$0xff]  }
 0x89a   :  { %9451 = vmatmul.mubr.bf16.vlgmr.msra.gmra.mrb[20].mxu1 %v8360_v4  ;;  %v12189_v4 = vld [vmem:[#allocation20 + $0x480] ss:$8 sps:$4 sm:$0xff]  }
 0x89b   :  { %9460 = vmatpush1.bf16.msra.mxu1 %v12117_v59  ;;  %9491 = vmatprep.mubr.bf16.mxu1 %v8363_v2  ;;  %v8282_v10 = vadd.f32 %v8263_v25, %v8232_v19  ;;  %v12191_v59 = vld [vmem:[#allocation20 + $0x484] ss:$8 sps:$4 sm:$0xff]   ;;  %v12192_v2 = vld [vmem:[#allocation20 + $0x490] ss:$8 sps:$4 sm:$0xff]  }
 0x89c   :  { %9461 = vmatprep.subr.bf16.mxu1 %v12122_v5  ;;  %v12194_v5 = vld [vmem:[#allocation20 + $0x494] ss:$8 sps:$4 sm:$0xff]  }
 0x89d   :  { %v10571_v22 = vmul.f32 -1.442695, %v8282_v10 }
 0x89f   :  { %9462 = vmatpush1.bf16.msra.mxu1 %v12120_v6  ;;  %12345 = vpow2.f32 %v10571_v22  ;;  %v12197_v6 = vld [vmem:[#allocation20 + $0x4a4] ss:$8 sps:$4 sm:$0xff]  }
 0x8a0   :  { %9463 = vmatprep.subr.bf16.mxu1 %v12125_v3  ;;  %v12195_v3 = vld [vmem:[#allocation20 + $0x4a0] ss:$8 sps:$4 sm:$0xff]  }
 0x8a3   :  { %9464 = vmatpush1.bf16.msra.mxu1 %v12123_v16  ;;  %v12200_v16 = vld [vmem:[#allocation20 + $0x4b4] ss:$8 sps:$4 sm:$0xff]  }
 0x8a4   :  { %9465 = vmatprep.subr.bf16.mxu1 %v12128_v47  ;;  %v12198_v47 = vld [vmem:[#allocation20 + $0x4b0] ss:$8 sps:$4 sm:$0xff]  }
 0x8a7   :  { %9466 = vmatpush1.bf16.msra.mxu1 %v12126_v23  ;;  %v12206_v23 = vld [vmem:[#allocation20 + $0x4d4] ss:$8 sps:$4 sm:$0xff]  }
 0x8a8   :  { %9467 = vmatprep.subr.bf16.mxu1 %v12131_v52  ;;  %v12204_v52 = vld [vmem:[#allocation20 + $0x4d0] ss:$8 sps:$4 sm:$0xff]  }
 0x8a9   :  { %v12346_v12 = vpop.eup %12345 }
 0x8aa   :  { %v8322_v27 = vadd.f32 1.0, %v12346_v12 }
 0x8ab   :  { %9468 = vmatpush1.bf16.msra.mxu1 %v12129_v56  ;;  %v12212_v56 = vld [vmem:[#allocation20 + $0x4f4] ss:$8 sps:$4 sm:$0xff]  }
 0x8ac   :  { %9469 = vmatprep.subr.bf16.mxu1 %v12134_v18  ;;  %12347 = vrcp.f32 %v8322_v27  ;;  %v12210_v18 = vld [vmem:[#allocation20 + $0x4f0] ss:$8 sps:$4 sm:$0xff]  }
 0x8af   :  { %9470 = vmatpush1.bf16.msra.mxu1 %v12132_v50 }
 0x8b0   :  { %9471 = vmatprep.subr.bf16.mxu1 %v12137_v26 }
 0x8b3   :  { %9472 = vmatpush1.bf16.msra.mxu1 %v12135_v31 }
 0x8b4   :  { %9473 = vmatprep.subr.bf16.mxu1 %v12140_v57 }
 0x8b6   :  { %v12348_v9 = vpop.eup %12347 }
 0x8b7   :  { %9474 = vmatpush1.bf16.msra.mxu1 %v12138_v63  ;;  %v8352_v14 = vmul.f32 %v12348_v9, %v8282_v10 }
 0x8b8   :  { %9475 = vmatprep.subr.bf16.mxu1 %v12143_v61 }
 0x8b9   :  { %v8362_v43 = vpack.c.bf16 %v8352_v14, %v8352_v14 }
 0x8bb   :  { %9476 = vmatpush1.bf16.msra.mxu1 %v12141_v35 }
 0x8bc   :  { %9477 = vmatprep.subr.bf16.mxu1 %v12146_v36 }
 0x8bf   :  { %9478 = vmatpush1.bf16.msra.mxu1 %v12144_v28 }
 0x8c0   :  { %9479 = vmatprep.subr.bf16.mxu1 %v12149_v15 }
 0x8c3   :  { %9480 = vmatpush1.bf16.msra.mxu1 %v12147_v60 }
 0x8c4   :  { %9481 = vmatprep.subr.bf16.mxu1 %v12152_v33 }
 0x8c7   :  { %9482 = vmatpush1.bf16.msra.mxu1 %v12150_v38 }
 0x8c8   :  { %9483 = vmatprep.subr.bf16.mxu1 %v12155_v7 }
 0x8cb   :  { %9484 = vmatpush1.bf16.msra.mxu1 %v12153_v29 }
 0x8cc   :  { %9485 = vmatprep.subr.bf16.mxu1 %v12158_v40 }
 0x8cf   :  { %9486 = vmatpush1.bf16.msra.mxu1 %v12156_v21 }
 0x8d0   :  { %9487 = vmatprep.subr.bf16.mxu1 %v12161_v32 }
 0x8d3   :  { %9488 = vmatpush1.bf16.msra.mxu1 %v12159_v41 }
 0x8d4   :  { %9489 = vmatprep.subr.bf16.mxu1 %v12164_v42 }
 0x8d7   :  { %9490 = vmatpush1.bf16.msra.mxu1 %v12162_v24 }
 0x8d8   :  { %9500 = vmatprep.subr.bf16.mxu1 %v12167_v53 }
 0x8da   :  { %9492 = vmatmul.mubr.bf16.vlgmr.msra.gmra.mrb[20].mxu1 %v8362_v43 }
 0x8db   :  { %9501 = vmatpush1.bf16.msra.mxu1 %v12165_v37 }
 0x8dc   :  { %9502 = vmatprep.subr.bf16.mxu1 %v12170_v1 }
 0x8df   :  { %9503 = vmatpush1.bf16.msra.mxu1 %v12168_v45 }
 0x8e0   :  { %9504 = vmatprep.subr.bf16.mxu1 %v12173_v44 }
 0x8e3   :  { %9505 = vmatpush1.bf16.msra.mxu1 %v12171_v13 }
 0x8e4   :  { %9506 = vmatprep.subr.bf16.mxu1 %v12176_v0 }
 0x8e7   :  { %9507 = vmatpush1.bf16.msra.mxu1 %v12174_v39 }
 0x8e8   :  { %9508 = vmatprep.subr.bf16.mxu1 %v12179_v46  ;;  %v3334_v46 = vld [vmem:[#allocation19 + $0x40] sm:$0xff] }
 0x8eb   :  { %9509 = vmatpush1.bf16.msra.mxu1 %v12177_v8  ;;  %v3335_v8 = vld [vmem:[#allocation19 + $0x48] sm:$0xff] }
 0x8ec   :  { %9510 = vmatprep.subr.bf16.mxu1 %v12182_v34  ;;  %v8221_v34 = vrot.slane %v3334_v46, %v12951_v30 }
 0x8ef   :  { %9511 = vmatpush1.bf16.msra.mxu1 %v12180_v48 }
 0x8f0   :  { %9512 = vmatprep.subr.bf16.mxu1 %v12185_v49  ;;  %v8225_v49 = vrot.slane %v3335_v8, %v12951_v30 }
 0x8f3   :  { %9513 = vmatpush1.bf16.msra.mxu1 %v12183_v54 }
 0x8f4   :  { %9514 = vmatprep.subr.bf16.mxu1 %v12188_v58 }
 0x8f7   :  { %9515 = vmatpush1.bf16.msra.mxu1 %v12186_v62  ;;  %v8271_v62 = vrot.slane %v3334_v46, %v12955_v20 }
 0x8f8   :  { %9516 = vmatprep.subr.bf16.mxu1 %v12191_v59 }
 0x8fb   :  { %9517 = vmatpush1.bf16.msra.mxu1 %v12189_v4  ;;  %v8275_v4 = vrot.slane %v3335_v8, %v12955_v20 }
 0x8fc   :  { %9518 = vmatprep.subr.bf16.mxu1 %v12194_v5 }
 0x8ff   :  { %9519 = vmatpush1.bf16.msra.mxu1 %v12192_v2 }
 0x900   :  { %9520 = vmatprep.subr.bf16.mxu1 %v12197_v6 }
 0x903   :  { %9521 = vmatpush1.bf16.msra.mxu1 %v12195_v3 }
 0x904   :  { %9522 = vmatprep.subr.bf16.mxu1 %v12200_v16 }
 0x907   :  { %9523 = vmatpush1.bf16.msra.mxu1 %v12198_v47 }
 0x908   :  { %9524 = vmatprep.subr.bf16.mxu1 %v12203_v51 }
 0x90b   :  { %9525 = vmatpush1.bf16.msra.mxu1 %v12201_v17 }
 0x90c   :  { %9526 = vmatprep.subr.bf16.mxu1 %v12206_v23 }
 0x90f   :  { %9527 = vmatpush1.bf16.msra.mxu1 %v12204_v52 }
 0x910   :  { %9528 = vmatprep.subr.bf16.mxu1 %v12209_v55 }
 0x913   :  { %9529 = vmatpush1.bf16.msra.mxu1 %v12207_v11 }
 0x914   :  { %9530 = vmatprep.subr.bf16.mxu1 %v12212_v56 }
 0x917   :  { %9531 = vmatpush1.bf16.msra.mxu1 %v12210_v18 }
 0x946   :  { %v7989_v19 = vpop.f32.mrb[28].mxu0 }
 0x947   :  { %v8044_v25 = vrot.slane %v7989_v19, 4  ;;  %v7991_v50 = vpop.f32.mrb[29].mxu0 }
 0x948   :  { %v8050_v26 = vrot.slane %v7991_v50, 4  ;;  %v7993_v10 = vpop.f32.mrb[30].mxu0 }
 0x949   :  { %v8045_v31 = vadd.f32 %v8044_v25, %v7989_v19  ;;  %v7994_v57 = vpop.f32.mrb[31].mxu0  ;;  %v8366_v25 = vld [vmem:[#allocation22] sm:$0xff] }
 0x94a   :  { %v8051_v22 = vadd.f32 %v8050_v26, %v7991_v50  ;;  %v8531_v26 = vrot.slane %v8366_v25, %v12951_v30 }
 0x94b   :  { %v8046_v63 = vrot.slane %v8045_v31, 2 }
 0x94c   :  { %v8052_v61 = vrot.slane %v8051_v22, 2 }
 0x94d   :  { %v8047_v35 = vadd.f32 %v8046_v63, %v8045_v31 }
 0x94e   :  { %v8053_v36 = vadd.f32 %v8052_v61, %v8051_v22 }
 0x94f   :  { %v8048_v28 = vrot.slane %v8047_v35, 1 }
 0x950   :  { %v8054_v15 = vrot.slane %v8053_v36, 1 }
 0x951   :  { %v8049_v60 = vadd.f32 %v8048_v28, %v8047_v35 }
 0x952   :  { %v8055_v12 = vadd.f32 %v8054_v15, %v8053_v36 }
 0x953   :  { %v8064_v33 = vmul.f32 0.125, %v8049_v60 }
 0x954   :  { %v8065_v27 = vmul.f32 0.125, %v8055_v12 }
 0x955   :  { %v8074_v38 = vsub.f32 %v7989_v19, %v8064_v33 }
 0x956   :  { %v8075_v7 = vsub.f32 %v7991_v50, %v8065_v27  ;;  %v8367_v50 = vld [vmem:[#allocation22 + $0x8] sm:$0xff] }
 0x957   :  { %v8084_v29 = vmul.f32 %v8074_v38, %v8074_v38  ;;  %v8535_v10 = vrot.slane %v8367_v50, %v12951_v30 }
 0x958   :  { %v8085_v40 = vmul.f32 %v8075_v7, %v8075_v7 }
 0x959   :  { %v8134_v21 = vrot.slane %v8084_v29, 4 }
 0x95a   :  { %v8140_v32 = vrot.slane %v8085_v40, 4 }
 0x95b   :  { %v8135_v41 = vadd.f32 %v8134_v21, %v8084_v29 }
 0x95c   :  { %v8141_v42 = vadd.f32 %v8140_v32, %v8085_v40 }
 0x95d   :  { %v8136_v9 = vrot.slane %v8135_v41, 2 }
 0x95e   :  { %v8142_v24 = vrot.slane %v8141_v42, 2 }
 0x95f   :  { %v8137_v14 = vadd.f32 %v8136_v9, %v8135_v41 }
 0x960   :  { %v8143_v43 = vadd.f32 %v8142_v24, %v8141_v42 }
 0x961   :  { %v8138_v53 = vrot.slane %v8137_v14, 1 }
 0x962   :  { %v8144_v37 = vrot.slane %v8143_v43, 1 }
 0x963   :  { %v8139_v1 = vadd.f32 %v8138_v53, %v8137_v14 }
 0x964   :  { %v8145_v45 = vadd.f32 %v8144_v37, %v8143_v43 }
 0x965   :  { %v8154_v44 = vmul.f32 0.125, %v8139_v1 }
 0x966   :  { %v8155_v13 = vmul.f32 0.125, %v8145_v45 }
 0x967   :  { %v8164_v0 = vadd.f32 0.8, %v8154_v44 }
 0x968   :  { %v8165_v39 = vadd.f32 0.8, %v8155_v13 }
 0x969   :  { %12349 = vrsqrt.f32 %v8164_v0 }
 0x96a   :  { %12351 = vrsqrt.f32 %v8165_v39 }
 0x973   :  { %v12350_v48 = vpop.eup %12349 }
 0x974   :  { %v12352_v54 = vpop.eup %12351  ;;  %v8184_v58 = vmul.f32 %v12350_v48, %v8074_v38 }
 0x975   :  { %v8185_v59 = vmul.f32 %v12352_v54, %v8075_v7 }
 0x976   :  { %v8234_v5 = vmul.f32 %v8221_v34, %v8184_v58 }
 0x977   :  { %v8235_v2 = vmul.f32 %v8225_v49, %v8185_v59 }
 0x978   :  { %v8284_v6 = vadd.f32 %v8271_v62, %v8234_v5 }
 0x979   :  { %v8285_v3 = vadd.f32 %v8275_v4, %v8235_v2 }
 0x97a   :  { %v10573_v16 = vmul.f32 -1.442695, %v8284_v6 }
 0x97b   :  { %v10574_v47 = vmul.f32 -1.442695, %v8285_v3 }
 0x97c   :  { %12353 = vpow2.f32 %v10573_v16 }
 0x97d   :  { %12355 = vpow2.f32 %v10574_v47 }
 0x986   :  { %v12354_v17 = vpop.eup %12353 }
 0x987   :  { %v12356_v51 = vpop.eup %12355  ;;  %v8324_v23 = vadd.f32 1.0, %v12354_v17 }
 0x988   :  { %v8325_v52 = vadd.f32 1.0, %v12356_v51 }
 0x989   :  { %12357 = vrcp.f32 %v8324_v23 }
 0x98a   :  { %12359 = vrcp.f32 %v8325_v52 }
 0x993   :  { %v12358_v55 = vpop.eup %12357 }
 0x994   :  { %v12360_v11 = vpop.eup %12359  ;;  %v8354_v56 = vmul.f32 %v12358_v55, %v8284_v6 }
 0x995   :  { %v8355_v18 = vmul.f32 %v12360_v11, %v8285_v3 }
 0x996   :  { %v8364_v20 = vpack.c.bf16 %v8354_v56, %v8354_v56 }
 0x997   :  { %v8365_v19 = vpack.c.bf16 %v8355_v18, %v8355_v18 }
 0x999   :  { %9532 = vmatprep.mubr.bf16.mxu1 %v8365_v19 }
 0x99a   :  { %9533 = vmatmul.mubr.bf16.vlgmr.msra.gmra.mrb[20].mxu1 %v8364_v20 }
 0xa6d   :  { %v9534_v31 = vpop.f32.mrb[20].mxu1 }
 0xa6e   :  { %v10764_v57 = vadd.f32 %v9534_v31, %v8531_v26  ;;  %v9536_v22 = vpop.f32.mrb[21].mxu1 }
 0xa6f   :  { %v10765_v63 = vadd.f32 %v9536_v22, %v8535_v10  ;;  %v9538_v61 = vpop.f32.mrb[22].mxu1 }
 0xa70   :  { %12361 = vtanh.f32 %v10764_v57  ;;  %v9539_v35 = vpop.f32.mrb[23].mxu1 }
 0xa71   :  { %12363 = vtanh.f32 %v10765_v63 }
 0xa7a   :  { %v12362_v36 = vpop.eup %12361 }
 0xa7b   :  { %v12364_v28 = vpop.eup %12363  ;;  %9543 = vst [vmem:[#allocation23] sm:$0xff] %v12362_v36 }
 0xa7c   :  { %9544 = vst [vmem:[#allocation23 + $0x8] sm:$0xff] %v12364_v28 }
 0xa7d   :  { %12662 = shalt.err (!%p12659_p10)
}
 0xa7e   :  { %s12663_s27 = scalar_lea.hbm %s13269_s13, 256 }
 0xa7f   :  { %p12664_p11 = scmp.ne.s32.totalorder %s13269_s13, %s12663_s27  ;;  %p12667_p12 = scmp.lt.u32.totalorder %s12663_s27, %s13269_s13 }
 0xa81   :  { %p12669_p13 = pnand %p12667_p12, %p12664_p11 }
 0xa83   :  { %12672 = shalt.err (!%p12669_p13)
}
 0xa84   :  { %9554 = dma.vmem_to_hbm [thread:$0]  %s9552_s16, 256, %s13269_s13, [#allocation4]  }
 0xa85   :  { %12687 = dma.done.wait [#allocation4], 256  }
 0xa86   :  { %12688 = vsyncadd [#allocation4], 4294967040 }
 0xa87   :  { %9558 = vsyncpa [#allocation3], 1 }
 0xa88   :  { %9559 = vsyncpa [#allocation6], 1 }
 0xa89   :  { %9560 = vsyncpa [#allocation9], 1 }
 0xa8a   :  { %9561 = vsyncpa [#allocation12], 1 }
 0xa8b   :  { %9562 = vsyncpa [#allocation15], 1 }
 0xa8c   :  { %9563 = vsyncpa [#allocation18], 1 }
 0xa8d   :  { %9564 = vsyncpa [#allocation21], 1 }
 0xa8e   :  { %9565 = vsyncpa [#allocation4], 1 }

</bundles_post_ra>
